<compile_context>
chip_gen: v7x
topology: tpu7x:2x2x1
jax: 0.10.0
libtpu: 0.0.40
codegen_flags: <defaults>
</compile_context>

<pallas_src>
import numpy as np
import jax
import jax.numpy as jnp
from jax import lax
from jax.experimental import pallas as pl
from jax.experimental.pallas import tpu as pltpu


def _round_up(x, m):
    return ((x + m - 1) // m) * m


def _fast_recip(x):
    # EUP approximate reciprocal seed + one Newton step: the table lookup runs on
    # the EUP slot (frees VALU bundles) and the refinement restores ~f32 accuracy.
    r = pl.reciprocal(x, approx=True)
    return r * (2.0 - x * r)


# ----------------------------------------------------------------------------
# Fused kernel: bilinear map (MXU) + dynamic routing, one batch tile per step.
# ----------------------------------------------------------------------------
def _make_fused_kernel(seq_len, dim_p, interest_num, routing_times):
    S, Dp, K, R = seq_len, dim_p, interest_num, routing_times

    def kernel(x_ref, m_ref, w_ref, o_ref, hat_ref):
        # x_ref  : (TB, S, Dp)     item embeddings (batch tile)
        # m_ref  : (TB, S, 1)      mask
        # w_ref  : (S, Dp, K*Dp)   bilinear weight, VMEM-resident (constant index_map)
        # o_ref  : (TB, K*Dp)      interest capsules (lane dense)
        # hat_ref: (TB, S, K*Dp)   f32 VMEM scratch for item_eb_hat (never hits HBM)

        # ---- bilinear map: one (TB, Dp) @ (Dp, K*Dp) MXU matmul per seq position.
        for s in range(S):
            hat_ref[:, s, :] = jnp.dot(x_ref[:, s, :], w_ref[s],
                                       preferred_element_type=jnp.float32)

        m_is_pad = (m_ref[...] == 0.0)                            # (TB, S, 1)

        # Routing iteration 0: logits are all zero, so softmax == 1/S everywhere,
        # then masked.  Identical for every interest k -> hoisted out of the K loop.
        sm0 = jnp.where(m_is_pad, jnp.float32(0.0), jnp.float32(1.0 / S))

        def squash(cap):                                          # cap: (TB, 1, Dp)
            capn = jnp.sum(cap * cap, axis=2, keepdims=True)      # (TB, 1, 1)
            sf = capn * _fast_recip(1.0 + capn) * lax.rsqrt(capn + 1e-9)
            return sf * cap

        for k in range(K):                                        # K is small -> unroll
            hk = hat_ref[:, :, k * Dp:(k + 1) * Dp]               # (TB, S, Dp), 128-aligned

            # --- iteration 0 (shared masked-uniform softmax) ---
            interest = squash(jnp.sum(sm0 * hk, axis=1, keepdims=True))   # (TB, 1, Dp)
            cw = None
            if R > 1:  # PyTorch updates logits for i < 2; i=0 update feeds iter 1.
                cw = jnp.sum(hk * interest, axis=2, keepdims=True)        # (TB, S, 1)

            # --- iterations 1 .. R-1 ---
            for it in range(1, R):
                # Masked softmax over the sequence axis.  Mask is applied AFTER the
                # softmax and the denominator includes padded positions — exactly
                # the PyTorch semantics.
                cmax = jnp.max(cw, axis=1, keepdims=True)                 # (TB, 1, 1)
                e = jnp.exp(cw - cmax)
                denom = jnp.sum(e, axis=1, keepdims=True)                 # (TB, 1, 1)
                sm = e * _fast_recip(denom)
                sm = jnp.where(m_is_pad, 0.0, sm)
                interest = squash(jnp.sum(sm * hk, axis=1, keepdims=True))
                # PyTorch only updates logits for i < 2; skipping the update on the
                # final iteration is dead work and does not change the output.
                if it < 2 and it + 1 < R:
                    cw = cw + jnp.sum(hk * interest, axis=2, keepdims=True)

            # Direct, 128-aligned lane-slice store (no concatenate, no live list).
            o_ref[:, k * Dp:(k + 1) * Dp] = interest[:, 0, :]

    return kernel


# ----------------------------------------------------------------------------
# Wrapper
# ----------------------------------------------------------------------------
def capsule_network_forward(item_eb, mask, w, *, interest_num, routing_times=3,
                            block_b=128, vmem_budget=40 * 1024 * 1024):
    """item_eb: (B, S, D) f32, mask: (B, S) or (B, S, 1) f32,
    w: (1, S_w, K*D, D) f32.  Returns (B, K, D) (bilinear_type=2 semantics)."""
    item_eb = item_eb.astype(jnp.float32)
    if mask.ndim == 3:
        mask = mask[..., 0]
    mask = mask.astype(jnp.float32)

    B, S, D = item_eb.shape
    K = interest_num
    Dp = _round_up(D, 128)          # keep every per-capsule lane slice vreg-aligned
    KDp = K * Dp

    # --- layout plumbing once, in plain JAX, outside the kernel ---------------
    # w: (1, S_w, K*D, D_in) -> (S, Dp_in, K*Dp_out); zero padding leaves the math
    # unchanged (padded contraction rows and padded output lanes are zero).
    w_s = w[0, :S].astype(jnp.float32).reshape(S, K, D, D)        # (S, K, D_out, D_in)
    if Dp != D:
        w_s = jnp.pad(w_s, ((0, 0), (0, 0), (0, Dp - D), (0, Dp - D)))
        item_eb = jnp.pad(item_eb, ((0, 0), (0, 0), (0, Dp - D)))
    w3t = jnp.transpose(w_s, (0, 3, 1, 2)).reshape(S, Dp, KDp)    # (S, Dp_in, K*Dp_out)

    # --- batch tiling: auto-shrink TB so resident w + hat scratch + pipelined
    # tiles fit a conservative VMEM budget (v7x has only 64 MiB physical).
    TB = block_b if B > block_b else _round_up(B, 8)

    def vmem_est(tb):
        wb = S * Dp * KDp * 4 * 2            # resident weight (count 2 bufs, worst case)
        xb = tb * S * Dp * 4 * 2             # double-buffered item_eb tile
        mb = tb * max(S, 8) * 128 * 4 * 2    # mask tile (lane-padded)
        hb = tb * S * KDp * 4                # hat scratch
        ob = tb * KDp * 4 * 2                # double-buffered output tile
        return wb + xb + mb + hb + ob

    while TB > 8 and vmem_est(TB) > vmem_budget:
        TB //= 2
    TB = max(TB, 8)
    Bp = _round_up(B, TB)
    if Bp != B:   # padded rows: x=0, mask=0 -> exact-zero capsules, sliced off below
        item_eb = jnp.pad(item_eb, ((0, Bp - B), (0, 0), (0, 0)))
        mask = jnp.pad(mask, ((0, Bp - B), (0, 0)))
    n_bt = Bp // TB
    mask3 = mask[:, :, None]                                      # (Bp, S, 1)

    vmem_limit = int(min(max(vmem_est(TB) + (4 << 20), 16 << 20), 64 << 20))

    kernel = _make_fused_kernel(S, Dp, K, routing_times)
    out = pl.pallas_call(
        kernel,
        out_shape=jax.ShapeDtypeStruct((Bp, KDp), jnp.float32),
        grid_spec=pltpu.PrefetchScalarGridSpec(
            num_scalar_prefetch=0,
            grid=(n_bt,),
            in_specs=[
                pl.BlockSpec((TB, S, Dp), lambda i: (i, 0, 0)),    # item_eb batch tile
                pl.BlockSpec((TB, S, 1), lambda i: (i, 0, 0)),     # mask batch tile
                pl.BlockSpec((S, Dp, KDp), lambda i: (0, 0, 0)),   # weight: VMEM resident
            ],
            out_specs=pl.BlockSpec((TB, KDp), lambda i: (i, 0)),
            scratch_shapes=[pltpu.VMEM((TB, S, KDp), jnp.float32)],
        ),
        compiler_params=pltpu.CompilerParams(
            dimension_semantics=("parallel",),      # batch tiles independent (v7x 2-TC)
            vmem_limit_bytes=vmem_limit),
    )(item_eb, mask3, w3t)

    return out[:B].reshape(B, K, Dp)[:, :, :D]


# ----------------------------------------------------------------------------
# Module-like wrapper (mirrors torch_rechub CapsuleNetwork, bilinear_type=2)
# ----------------------------------------------------------------------------
class CapsuleNetwork:
    def __init__(self, embedding_dim, seq_len, bilinear_type=2, interest_num=4,
                 routing_times=3, relu_layer=False, key=None):
        if bilinear_type != 2:
            # TODO(synk): bilinear_type 0 (MIND shared-linear + randn routing init)
            # and 1 are not implemented in this Pallas port.
            raise NotImplementedError("Only bilinear_type=2 (ComirecDR) is implemented.")
        if relu_layer:
            # TODO(synk): optional Linear+ReLU output head not implemented (default False).
            raise NotImplementedError("relu_layer=True is not implemented.")
        self.embedding_dim = embedding_dim
        self.seq_len = seq_len
        self.interest_num = interest_num
        self.routing_times = routing_times
        key = jax.random.PRNGKey(0) if key is None else key
        self.w = jax.random.normal(
            key, (1, seq_len, interest_num * embedding_dim, embedding_dim),
            dtype=jnp.float32) * 0.1

    def __call__(self, item_eb, mask):
        return capsule_network_forward(
            item_eb, mask, self.w,
            interest_num=self.interest_num,
            routing_times=self.routing_times)


# ----------------------------------------------------------------------------
# Pure-JAX reference (mirrors the PyTorch forward exactly)
# ----------------------------------------------------------------------------
def capsule_network_ref(item_eb, mask, w, interest_num, routing_times=3):
    B, S, D = item_eb.shape
    K = interest_num
    u = item_eb[:, :, None, :]                                   # (B,S,1,D)
    hat = jnp.sum(w[:, :S, :, :] * u, axis=3)                    # (B,S,K*D)
    hat = hat.reshape(B, S, K, D)
    hat = jnp.transpose(hat, (0, 2, 1, 3))                       # (B,K,S,D)
    cw = jnp.zeros((B, K, S), jnp.float32)
    atten = jnp.broadcast_to(mask[:, None, :], (B, K, S))
    interest = None
    for i in range(routing_times):
        sm = jax.nn.softmax(cw, axis=-1)
        sm = jnp.where(atten == 0, 0.0, sm)
        interest = jnp.sum(sm[..., None] * hat, axis=2)          # (B,K,D)
        capn = jnp.sum(jnp.square(interest), axis=-1, keepdims=True)
        sf = capn / (1.0 + capn) / jnp.sqrt(capn + 1e-9)
        interest = sf * interest
        if i < 2:
            delta = jnp.sum(hat * interest[:, :, None, :], axis=-1)  # (B,K,S)
            cw = cw + delta
    return interest


# ----------------------------------------------------------------------------
# Demo / correctness check
# ----------------------------------------------------------------------------
if __name__ == "__main__":
    B, S, D, K = 8, 8, 128, 4
    key = jax.random.PRNGKey(0)
    k_w, k_x, k_len = jax.random.split(key, 3)

    net = CapsuleNetwork(embedding_dim=D, seq_len=S, bilinear_type=2,
                         interest_num=K, routing_times=3, relu_layer=False,
                         key=k_w)

    item_eb = jax.random.normal(k_x, (B, S, D), dtype=jnp.float32)
    lens = jax.random.randint(k_len, (B,), 1, S + 1)             # 1..S valid items
    mask = (jnp.arange(S)[None, :] < lens[:, None]).astype(jnp.float32)  # (B, S)

    out = net(item_eb, mask)
    out = jax.block_until_ready(out)
    assert out.shape == (B, K, D), out.shape

    ref = capsule_network_ref(item_eb, mask, net.w, K, routing_times=3)
    # Newton-refined EUP reciprocal keeps ~f32 accuracy; tolerance has margin for it.
    np.testing.assert_allclose(np.asarray(out), np.asarray(ref),
                               rtol=1e-3, atol=1e-3)
    print("KERNEL_OK")
</pallas_src>

<mosaic_0001>
module attributes {stable_mosaic.version = 11 : i64} {
  func.func @kernel(%arg0: i32, %arg1: memref<8x8x128xf32, #tpu.memory_space<vmem>>, %arg2: memref<8x8x1xf32, #tpu.memory_space<vmem>>, %arg3: memref<8x128x512xf32, #tpu.memory_space<vmem>>, %arg4: memref<8x512xf32, #tpu.memory_space<vmem>>, %arg5: memref<8x8x512xf32, #tpu.memory_space<vmem>>) attributes {dimension_semantics = [#tpu.dimension_semantics<parallel>], iteration_bounds = array<i64: 1>, scalar_prefetch = 0 : i64, scratch_operands = 1 : i64, tpu.core_type = #tpu.core_type<tc>, window_params = [{transform_indices = @transform_0, window_bounds = array<i64: 8, 8, 128>}, {transform_indices = @transform_1, window_bounds = array<i64: 8, 8, 1>}, {pipeline_mode = #tpu.pipeline_mode<synchronous>, transform_indices = @transform_2, window_bounds = array<i64: 8, 128, 512>}, {transform_indices = @transform_3, window_bounds = array<i64: 8, 512>}]} {
    %c0 = arith.constant 0 : index
    %c0_0 = arith.constant 0 : index
    %c0_1 = arith.constant 0 : index
    %0 = vector.load %arg1[%c0, %c0_0, %c0_1] : memref<8x8x128xf32, #tpu.memory_space<vmem>>, vector<8x1x128xf32>
    %1 = vector.shape_cast %0 : vector<8x1x128xf32> to vector<8x128xf32>
    %c0_2 = arith.constant 0 : index
    %c0_3 = arith.constant 0 : index
    %c0_4 = arith.constant 0 : index
    %2 = vector.load %arg3[%c0_2, %c0_3, %c0_4] : memref<8x128x512xf32, #tpu.memory_space<vmem>>, vector<1x128x512xf32>
    %3 = vector.shape_cast %2 : vector<1x128x512xf32> to vector<128x512xf32>
    %cst = arith.constant dense<0.000000e+00> : vector<8x512xf32>
    %4 = tpu.matmul %1, %3, %cst {dimension_numbers = #tpu.dot_dimension_numbers<[1], [0], [0], [1], [0, 0, 1, 1], [], []>} : vector<8x128xf32>, vector<128x512xf32>, vector<8x512xf32> -> vector<8x512xf32>
    %c0_5 = arith.constant 0 : index
    %c0_6 = arith.constant 0 : index
    %c0_7 = arith.constant 0 : index
    %5 = vector.load %arg5[%c0_5, %c0_6, %c0_7] : memref<8x8x512xf32, #tpu.memory_space<vmem>>, vector<8x1x512xf32>
    %6 = vector.shape_cast %5 : vector<8x1x512xf32> to vector<8x512xf32>
    %7 = vector.shape_cast %4 : vector<8x512xf32> to vector<8x1x512xf32>
    tpu.vector_store %arg5[%c0_5, %c0_6, %c0_7], %7 {strides = array<i32>} : memref<8x8x512xf32, #tpu.memory_space<vmem>>, vector<8x1x512xf32>,
    %c0_8 = arith.constant 0 : index
    %c1 = arith.constant 1 : index
    %c0_9 = arith.constant 0 : index
    %8 = vector.load %arg1[%c0_8, %c1, %c0_9] : memref<8x8x128xf32, #tpu.memory_space<vmem>>, vector<8x1x128xf32>
    %9 = vector.shape_cast %8 : vector<8x1x128xf32> to vector<8x128xf32>
    %c1_10 = arith.constant 1 : index
    %c0_11 = arith.constant 0 : index
    %c0_12 = arith.constant 0 : index
    %10 = vector.load %arg3[%c1_10, %c0_11, %c0_12] : memref<8x128x512xf32, #tpu.memory_space<vmem>>, vector<1x128x512xf32>
    %11 = vector.shape_cast %10 : vector<1x128x512xf32> to vector<128x512xf32>
    %cst_13 = arith.constant dense<0.000000e+00> : vector<8x512xf32>
    %12 = tpu.matmul %9, %11, %cst_13 {dimension_numbers = #tpu.dot_dimension_numbers<[1], [0], [0], [1], [0, 0, 1, 1], [], []>} : vector<8x128xf32>, vector<128x512xf32>, vector<8x512xf32> -> vector<8x512xf32>
    %c0_14 = arith.constant 0 : index
    %c1_15 = arith.constant 1 : index
    %c0_16 = arith.constant 0 : index
    %13 = vector.load %arg5[%c0_14, %c1_15, %c0_16] : memref<8x8x512xf32, #tpu.memory_space<vmem>>, vector<8x1x512xf32>
    %14 = vector.shape_cast %13 : vector<8x1x512xf32> to vector<8x512xf32>
    %15 = vector.shape_cast %12 : vector<8x512xf32> to vector<8x1x512xf32>
    tpu.vector_store %arg5[%c0_14, %c1_15, %c0_16], %15 {strides = array<i32>} : memref<8x8x512xf32, #tpu.memory_space<vmem>>, vector<8x1x512xf32>,
    %c0_17 = arith.constant 0 : index
    %c2 = arith.constant 2 : index
    %c0_18 = arith.constant 0 : index
    %16 = vector.load %arg1[%c0_17, %c2, %c0_18] : memref<8x8x128xf32, #tpu.memory_space<vmem>>, vector<8x1x128xf32>
    %17 = vector.shape_cast %16 : vector<8x1x128xf32> to vector<8x128xf32>
    %c2_19 = arith.constant 2 : index
    %c0_20 = arith.constant 0 : index
    %c0_21 = arith.constant 0 : index
    %18 = vector.load %arg3[%c2_19, %c0_20, %c0_21] : memref<8x128x512xf32, #tpu.memory_space<vmem>>, vector<1x128x512xf32>
    %19 = vector.shape_cast %18 : vector<1x128x512xf32> to vector<128x512xf32>
    %cst_22 = arith.constant dense<0.000000e+00> : vector<8x512xf32>
    %20 = tpu.matmul %17, %19, %cst_22 {dimension_numbers = #tpu.dot_dimension_numbers<[1], [0], [0], [1], [0, 0, 1, 1], [], []>} : vector<8x128xf32>, vector<128x512xf32>, vector<8x512xf32> -> vector<8x512xf32>
    %c0_23 = arith.constant 0 : index
    %c2_24 = arith.constant 2 : index
    %c0_25 = arith.constant 0 : index
    %21 = vector.load %arg5[%c0_23, %c2_24, %c0_25] : memref<8x8x512xf32, #tpu.memory_space<vmem>>, vector<8x1x512xf32>
    %22 = vector.shape_cast %21 : vector<8x1x512xf32> to vector<8x512xf32>
    %23 = vector.shape_cast %20 : vector<8x512xf32> to vector<8x1x512xf32>
    tpu.vector_store %arg5[%c0_23, %c2_24, %c0_25], %23 {strides = array<i32>} : memref<8x8x512xf32, #tpu.memory_space<vmem>>, vector<8x1x512xf32>,
    %c0_26 = arith.constant 0 : index
    %c3 = arith.constant 3 : index
    %c0_27 = arith.constant 0 : index
    %24 = vector.load %arg1[%c0_26, %c3, %c0_27] : memref<8x8x128xf32, #tpu.memory_space<vmem>>, vector<8x1x128xf32>
    %25 = vector.shape_cast %24 : vector<8x1x128xf32> to vector<8x128xf32>
    %c3_28 = arith.constant 3 : index
    %c0_29 = arith.constant 0 : index
    %c0_30 = arith.constant 0 : index
    %26 = vector.load %arg3[%c3_28, %c0_29, %c0_30] : memref<8x128x512xf32, #tpu.memory_space<vmem>>, vector<1x128x512xf32>
    %27 = vector.shape_cast %26 : vector<1x128x512xf32> to vector<128x512xf32>
    %cst_31 = arith.constant dense<0.000000e+00> : vector<8x512xf32>
    %28 = tpu.matmul %25, %27, %cst_31 {dimension_numbers = #tpu.dot_dimension_numbers<[1], [0], [0], [1], [0, 0, 1, 1], [], []>} : vector<8x128xf32>, vector<128x512xf32>, vector<8x512xf32> -> vector<8x512xf32>
    %c0_32 = arith.constant 0 : index
    %c3_33 = arith.constant 3 : index
    %c0_34 = arith.constant 0 : index
    %29 = vector.load %arg5[%c0_32, %c3_33, %c0_34] : memref<8x8x512xf32, #tpu.memory_space<vmem>>, vector<8x1x512xf32>
    %30 = vector.shape_cast %29 : vector<8x1x512xf32> to vector<8x512xf32>
    %31 = vector.shape_cast %28 : vector<8x512xf32> to vector<8x1x512xf32>
    tpu.vector_store %arg5[%c0_32, %c3_33, %c0_34], %31 {strides = array<i32>} : memref<8x8x512xf32, #tpu.memory_space<vmem>>, vector<8x1x512xf32>,
    %c0_35 = arith.constant 0 : index
    %c4 = arith.constant 4 : index
    %c0_36 = arith.constant 0 : index
    %32 = vector.load %arg1[%c0_35, %c4, %c0_36] : memref<8x8x128xf32, #tpu.memory_space<vmem>>, vector<8x1x128xf32>
    %33 = vector.shape_cast %32 : vector<8x1x128xf32> to vector<8x128xf32>
    %c4_37 = arith.constant 4 : index
    %c0_38 = arith.constant 0 : index
    %c0_39 = arith.constant 0 : index
    %34 = vector.load %arg3[%c4_37, %c0_38, %c0_39] : memref<8x128x512xf32, #tpu.memory_space<vmem>>, vector<1x128x512xf32>
    %35 = vector.shape_cast %34 : vector<1x128x512xf32> to vector<128x512xf32>
    %cst_40 = arith.constant dense<0.000000e+00> : vector<8x512xf32>
    %36 = tpu.matmul %33, %35, %cst_40 {dimension_numbers = #tpu.dot_dimension_numbers<[1], [0], [0], [1], [0, 0, 1, 1], [], []>} : vector<8x128xf32>, vector<128x512xf32>, vector<8x512xf32> -> vector<8x512xf32>
    %c0_41 = arith.constant 0 : index
    %c4_42 = arith.constant 4 : index
    %c0_43 = arith.constant 0 : index
    %37 = vector.load %arg5[%c0_41, %c4_42, %c0_43] : memref<8x8x512xf32, #tpu.memory_space<vmem>>, vector<8x1x512xf32>
    %38 = vector.shape_cast %37 : vector<8x1x512xf32> to vector<8x512xf32>
    %39 = vector.shape_cast %36 : vector<8x512xf32> to vector<8x1x512xf32>
    tpu.vector_store %arg5[%c0_41, %c4_42, %c0_43], %39 {strides = array<i32>} : memref<8x8x512xf32, #tpu.memory_space<vmem>>, vector<8x1x512xf32>,
    %c0_44 = arith.constant 0 : index
    %c5 = arith.constant 5 : index
    %c0_45 = arith.constant 0 : index
    %40 = vector.load %arg1[%c0_44, %c5, %c0_45] : memref<8x8x128xf32, #tpu.memory_space<vmem>>, vector<8x1x128xf32>
    %41 = vector.shape_cast %40 : vector<8x1x128xf32> to vector<8x128xf32>
    %c5_46 = arith.constant 5 : index
    %c0_47 = arith.constant 0 : index
    %c0_48 = arith.constant 0 : index
    %42 = vector.load %arg3[%c5_46, %c0_47, %c0_48] : memref<8x128x512xf32, #tpu.memory_space<vmem>>, vector<1x128x512xf32>
    %43 = vector.shape_cast %42 : vector<1x128x512xf32> to vector<128x512xf32>
    %cst_49 = arith.constant dense<0.000000e+00> : vector<8x512xf32>
    %44 = tpu.matmul %41, %43, %cst_49 {dimension_numbers = #tpu.dot_dimension_numbers<[1], [0], [0], [1], [0, 0, 1, 1], [], []>} : vector<8x128xf32>, vector<128x512xf32>, vector<8x512xf32> -> vector<8x512xf32>
    %c0_50 = arith.constant 0 : index
    %c5_51 = arith.constant 5 : index
    %c0_52 = arith.constant 0 : index
    %45 = vector.load %arg5[%c0_50, %c5_51, %c0_52] : memref<8x8x512xf32, #tpu.memory_space<vmem>>, vector<8x1x512xf32>
    %46 = vector.shape_cast %45 : vector<8x1x512xf32> to vector<8x512xf32>
    %47 = vector.shape_cast %44 : vector<8x512xf32> to vector<8x1x512xf32>
    tpu.vector_store %arg5[%c0_50, %c5_51, %c0_52], %47 {strides = array<i32>} : memref<8x8x512xf32, #tpu.memory_space<vmem>>, vector<8x1x512xf32>,
    %c0_53 = arith.constant 0 : index
    %c6 = arith.constant 6 : index
    %c0_54 = arith.constant 0 : index
    %48 = vector.load %arg1[%c0_53, %c6, %c0_54] : memref<8x8x128xf32, #tpu.memory_space<vmem>>, vector<8x1x128xf32>
    %49 = vector.shape_cast %48 : vector<8x1x128xf32> to vector<8x128xf32>
    %c6_55 = arith.constant 6 : index
    %c0_56 = arith.constant 0 : index
    %c0_57 = arith.constant 0 : index
    %50 = vector.load %arg3[%c6_55, %c0_56, %c0_57] : memref<8x128x512xf32, #tpu.memory_space<vmem>>, vector<1x128x512xf32>
    %51 = vector.shape_cast %50 : vector<1x128x512xf32> to vector<128x512xf32>
    %cst_58 = arith.constant dense<0.000000e+00> : vector<8x512xf32>
    %52 = tpu.matmul %49, %51, %cst_58 {dimension_numbers = #tpu.dot_dimension_numbers<[1], [0], [0], [1], [0, 0, 1, 1], [], []>} : vector<8x128xf32>, vector<128x512xf32>, vector<8x512xf32> -> vector<8x512xf32>
    %c0_59 = arith.constant 0 : index
    %c6_60 = arith.constant 6 : index
    %c0_61 = arith.constant 0 : index
    %53 = vector.load %arg5[%c0_59, %c6_60, %c0_61] : memref<8x8x512xf32, #tpu.memory_space<vmem>>, vector<8x1x512xf32>
    %54 = vector.shape_cast %53 : vector<8x1x512xf32> to vector<8x512xf32>
    %55 = vector.shape_cast %52 : vector<8x512xf32> to vector<8x1x512xf32>
    tpu.vector_store %arg5[%c0_59, %c6_60, %c0_61], %55 {strides = array<i32>} : memref<8x8x512xf32, #tpu.memory_space<vmem>>, vector<8x1x512xf32>,
    %c0_62 = arith.constant 0 : index
    %c7 = arith.constant 7 : index
    %c0_63 = arith.constant 0 : index
    %56 = vector.load %arg1[%c0_62, %c7, %c0_63] : memref<8x8x128xf32, #tpu.memory_space<vmem>>, vector<8x1x128xf32>
    %57 = vector.shape_cast %56 : vector<8x1x128xf32> to vector<8x128xf32>
    %c7_64 = arith.constant 7 : index
    %c0_65 = arith.constant 0 : index
    %c0_66 = arith.constant 0 : index
    %58 = vector.load %arg3[%c7_64, %c0_65, %c0_66] : memref<8x128x512xf32, #tpu.memory_space<vmem>>, vector<1x128x512xf32>
    %59 = vector.shape_cast %58 : vector<1x128x512xf32> to vector<128x512xf32>
    %cst_67 = arith.constant dense<0.000000e+00> : vector<8x512xf32>
    %60 = tpu.matmul %57, %59, %cst_67 {dimension_numbers = #tpu.dot_dimension_numbers<[1], [0], [0], [1], [0, 0, 1, 1], [], []>} : vector<8x128xf32>, vector<128x512xf32>, vector<8x512xf32> -> vector<8x512xf32>
    %c0_68 = arith.constant 0 : index
    %c7_69 = arith.constant 7 : index
    %c0_70 = arith.constant 0 : index
    %61 = vector.load %arg5[%c0_68, %c7_69, %c0_70] : memref<8x8x512xf32, #tpu.memory_space<vmem>>, vector<8x1x512xf32>
    %62 = vector.shape_cast %61 : vector<8x1x512xf32> to vector<8x512xf32>
    %63 = vector.shape_cast %60 : vector<8x512xf32> to vector<8x1x512xf32>
    tpu.vector_store %arg5[%c0_68, %c7_69, %c0_70], %63 {strides = array<i32>} : memref<8x8x512xf32, #tpu.memory_space<vmem>>, vector<8x1x512xf32>,
    %c0_71 = arith.constant 0 : index
    %c0_72 = arith.constant 0 : index
    %c0_73 = arith.constant 0 : index
    %64 = vector.load %arg2[%c0_71, %c0_72, %c0_73] : memref<8x8x1xf32, #tpu.memory_space<vmem>>, vector<8x8x1xf32>
    %cst_74 = arith.constant 0.000000e+00 : f32
    %65 = vector.broadcast %cst_74 : f32 to vector<8x8x1xf32>
    %66 = arith.cmpf oeq, %64, %65 : vector<8x8x1xf32>
    %cst_75 = arith.constant 0.000000e+00 : f32
    %cst_76 = arith.constant 1.250000e-01 : f32
    %67 = vector.broadcast %cst_75 : f32 to vector<8x8x1xf32>
    %68 = vector.broadcast %cst_76 : f32 to vector<8x8x1xf32>
    %69 = arith.select %66, %67, %68 : vector<8x8x1xi1>, vector<8x8x1xf32>
    %c0_77 = arith.constant 0 : index
    %c0_78 = arith.constant 0 : index
    %c0_79 = arith.constant 0 : index
    %70 = vector.load %arg5[%c0_77, %c0_78, %c0_79] : memref<8x8x512xf32, #tpu.memory_space<vmem>>, vector<8x8x128xf32>
    %71 = vector.broadcast %69 : vector<8x8x1xf32> to vector<8x8x128xf32>
    %72 = arith.mulf %71, %70 : vector<8x8x128xf32>
    %cst_80 = arith.constant dense<0.000000e+00> : vector<8x128xf32>
    %73 = vector.multi_reduction <add>, %72, %cst_80 [1] : vector<8x8x128xf32> to vector<8x128xf32>
    %74 = vector.shape_cast %73 : vector<8x128xf32> to vector<8x1x128xf32>
    %75 = arith.mulf %74, %74 : vector<8x1x128xf32>
    %cst_81 = arith.constant dense<0.000000e+00> : vector<8x1xf32>
    %76 = vector.multi_reduction <add>, %75, %cst_81 [2] : vector<8x1x128xf32> to vector<8x1xf32>
    %77 = vector.shape_cast %76 : vector<8x1xf32> to vector<8x1x1xf32>
    %cst_82 = arith.constant 1.000000e+00 : f32
    %78 = vector.broadcast %cst_82 : f32 to vector<8x1x1xf32>
    %79 = arith.addf %78, %77 : vector<8x1x1xf32>
    %80 = tpu.reciprocal %79 {approx = true} : vector<8x1x1xf32> -> vector<8x1x1xf32>
    %81 = arith.mulf %79, %80 : vector<8x1x1xf32>
    %cst_83 = arith.constant 2.000000e+00 : f32
    %82 = vector.broadcast %cst_83 : f32 to vector<8x1x1xf32>
    %83 = arith.subf %82, %81 : vector<8x1x1xf32>
    %84 = arith.mulf %80, %83 : vector<8x1x1xf32>
    %85 = arith.mulf %77, %84 : vector<8x1x1xf32>
    %cst_84 = arith.constant 9.99999971E-10 : f32
    %86 = vector.broadcast %cst_84 : f32 to vector<8x1x1xf32>
    %87 = arith.addf %77, %86 : vector<8x1x1xf32>
    %88 = math.rsqrt %87 : vector<8x1x1xf32>
    %89 = arith.mulf %85, %88 : vector<8x1x1xf32>
    %90 = vector.broadcast %89 : vector<8x1x1xf32> to vector<8x1x128xf32>
    %91 = arith.mulf %90, %74 : vector<8x1x128xf32>
    %92 = vector.broadcast %91 : vector<8x1x128xf32> to vector<8x8x128xf32>
    %93 = arith.mulf %70, %92 : vector<8x8x128xf32>
    %cst_85 = arith.constant dense<0.000000e+00> : vector<8x8xf32>
    %94 = vector.multi_reduction <add>, %93, %cst_85 [2] : vector<8x8x128xf32> to vector<8x8xf32>
    %95 = vector.shape_cast %94 : vector<8x8xf32> to vector<8x8x1xf32>
    %cst_86 = arith.constant dense<0xFF800000> : vector<8x1xf32>
    %96 = vector.multi_reduction <maximumf>, %95, %cst_86 [1] : vector<8x8x1xf32> to vector<8x1xf32>
    %97 = vector.shape_cast %96 : vector<8x1xf32> to vector<8x1x1xf32>
    %98 = vector.broadcast %97 : vector<8x1x1xf32> to vector<8x8x1xf32>
    %99 = arith.subf %95, %98 : vector<8x8x1xf32>
    %100 = math.exp %99 : vector<8x8x1xf32>
    %cst_87 = arith.constant dense<0.000000e+00> : vector<8x1xf32>
    %101 = vector.multi_reduction <add>, %100, %cst_87 [1] : vector<8x8x1xf32> to vector<8x1xf32>
    %102 = vector.shape_cast %101 : vector<8x1xf32> to vector<8x1x1xf32>
    %103 = tpu.reciprocal %102 {approx = true} : vector<8x1x1xf32> -> vector<8x1x1xf32>
    %104 = arith.mulf %102, %103 : vector<8x1x1xf32>
    %cst_88 = arith.constant 2.000000e+00 : f32
    %105 = vector.broadcast %cst_88 : f32 to vector<8x1x1xf32>
    %106 = arith.subf %105, %104 : vector<8x1x1xf32>
    %107 = arith.mulf %103, %106 : vector<8x1x1xf32>
    %108 = vector.broadcast %107 : vector<8x1x1xf32> to vector<8x8x1xf32>
    %109 = arith.mulf %100, %108 : vector<8x8x1xf32>
    %cst_89 = arith.constant 0.000000e+00 : f32
    %110 = vector.broadcast %cst_89 : f32 to vector<8x8x1xf32>
    %111 = arith.select %66, %110, %109 : vector<8x8x1xi1>, vector<8x8x1xf32>
    %112 = vector.broadcast %111 : vector<8x8x1xf32> to vector<8x8x128xf32>
    %113 = arith.mulf %112, %70 : vector<8x8x128xf32>
    %cst_90 = arith.constant dense<0.000000e+00> : vector<8x128xf32>
    %114 = vector.multi_reduction <add>, %113, %cst_90 [1] : vector<8x8x128xf32> to vector<8x128xf32>
    %115 = vector.shape_cast %114 : vector<8x128xf32> to vector<8x1x128xf32>
    %116 = arith.mulf %115, %115 : vector<8x1x128xf32>
    %cst_91 = arith.constant dense<0.000000e+00> : vector<8x1xf32>
    %117 = vector.multi_reduction <add>, %116, %cst_91 [2] : vector<8x1x128xf32> to vector<8x1xf32>
    %118 = vector.shape_cast %117 : vector<8x1xf32> to vector<8x1x1xf32>
    %cst_92 = arith.constant 1.000000e+00 : f32
    %119 = vector.broadcast %cst_92 : f32 to vector<8x1x1xf32>
    %120 = arith.addf %119, %118 : vector<8x1x1xf32>
    %121 = tpu.reciprocal %120 {approx = true} : vector<8x1x1xf32> -> vector<8x1x1xf32>
    %122 = arith.mulf %120, %121 : vector<8x1x1xf32>
    %cst_93 = arith.constant 2.000000e+00 : f32
    %123 = vector.broadcast %cst_93 : f32 to vector<8x1x1xf32>
    %124 = arith.subf %123, %122 : vector<8x1x1xf32>
    %125 = arith.mulf %121, %124 : vector<8x1x1xf32>
    %126 = arith.mulf %118, %125 : vector<8x1x1xf32>
    %cst_94 = arith.constant 9.99999971E-10 : f32
    %127 = vector.broadcast %cst_94 : f32 to vector<8x1x1xf32>
    %128 = arith.addf %118, %127 : vector<8x1x1xf32>
    %129 = math.rsqrt %128 : vector<8x1x1xf32>
    %130 = arith.mulf %126, %129 : vector<8x1x1xf32>
    %131 = vector.broadcast %130 : vector<8x1x1xf32> to vector<8x1x128xf32>
    %132 = arith.mulf %131, %115 : vector<8x1x128xf32>
    %133 = vector.broadcast %132 : vector<8x1x128xf32> to vector<8x8x128xf32>
    %134 = arith.mulf %70, %133 : vector<8x8x128xf32>
    %cst_95 = arith.constant dense<0.000000e+00> : vector<8x8xf32>
    %135 = vector.multi_reduction <add>, %134, %cst_95 [2] : vector<8x8x128xf32> to vector<8x8xf32>
    %136 = vector.shape_cast %135 : vector<8x8xf32> to vector<8x8x1xf32>
    %137 = arith.addf %95, %136 : vector<8x8x1xf32>
    %cst_96 = arith.constant dense<0xFF800000> : vector<8x1xf32>
    %138 = vector.multi_reduction <maximumf>, %137, %cst_96 [1] : vector<8x8x1xf32> to vector<8x1xf32>
    %139 = vector.shape_cast %138 : vector<8x1xf32> to vector<8x1x1xf32>
    %140 = vector.broadcast %139 : vector<8x1x1xf32> to vector<8x8x1xf32>
    %141 = arith.subf %137, %140 : vector<8x8x1xf32>
    %142 = math.exp %141 : vector<8x8x1xf32>
    %cst_97 = arith.constant dense<0.000000e+00> : vector<8x1xf32>
    %143 = vector.multi_reduction <add>, %142, %cst_97 [1] : vector<8x8x1xf32> to vector<8x1xf32>
    %144 = vector.shape_cast %143 : vector<8x1xf32> to vector<8x1x1xf32>
    %145 = tpu.reciprocal %144 {approx = true} : vector<8x1x1xf32> -> vector<8x1x1xf32>
    %146 = arith.mulf %144, %145 : vector<8x1x1xf32>
    %cst_98 = arith.constant 2.000000e+00 : f32
    %147 = vector.broadcast %cst_98 : f32 to vector<8x1x1xf32>
    %148 = arith.subf %147, %146 : vector<8x1x1xf32>
    %149 = arith.mulf %145, %148 : vector<8x1x1xf32>
    %150 = vector.broadcast %149 : vector<8x1x1xf32> to vector<8x8x1xf32>
    %151 = arith.mulf %142, %150 : vector<8x8x1xf32>
    %cst_99 = arith.constant 0.000000e+00 : f32
    %152 = vector.broadcast %cst_99 : f32 to vector<8x8x1xf32>
    %153 = arith.select %66, %152, %151 : vector<8x8x1xi1>, vector<8x8x1xf32>
    %154 = vector.broadcast %153 : vector<8x8x1xf32> to vector<8x8x128xf32>
    %155 = arith.mulf %154, %70 : vector<8x8x128xf32>
    %cst_100 = arith.constant dense<0.000000e+00> : vector<8x128xf32>
    %156 = vector.multi_reduction <add>, %155, %cst_100 [1] : vector<8x8x128xf32> to vector<8x128xf32>
    %157 = vector.shape_cast %156 : vector<8x128xf32> to vector<8x1x128xf32>
    %158 = arith.mulf %157, %157 : vector<8x1x128xf32>
    %cst_101 = arith.constant dense<0.000000e+00> : vector<8x1xf32>
    %159 = vector.multi_reduction <add>, %158, %cst_101 [2] : vector<8x1x128xf32> to vector<8x1xf32>
    %160 = vector.shape_cast %159 : vector<8x1xf32> to vector<8x1x1xf32>
    %cst_102 = arith.constant 1.000000e+00 : f32
    %161 = vector.broadcast %cst_102 : f32 to vector<8x1x1xf32>
    %162 = arith.addf %161, %160 : vector<8x1x1xf32>
    %163 = tpu.reciprocal %162 {approx = true} : vector<8x1x1xf32> -> vector<8x1x1xf32>
    %164 = arith.mulf %162, %163 : vector<8x1x1xf32>
    %cst_103 = arith.constant 2.000000e+00 : f32
    %165 = vector.broadcast %cst_103 : f32 to vector<8x1x1xf32>
    %166 = arith.subf %165, %164 : vector<8x1x1xf32>
    %167 = arith.mulf %163, %166 : vector<8x1x1xf32>
    %168 = arith.mulf %160, %167 : vector<8x1x1xf32>
    %cst_104 = arith.constant 9.99999971E-10 : f32
    %169 = vector.broadcast %cst_104 : f32 to vector<8x1x1xf32>
    %170 = arith.addf %160, %169 : vector<8x1x1xf32>
    %171 = math.rsqrt %170 : vector<8x1x1xf32>
    %172 = arith.mulf %168, %171 : vector<8x1x1xf32>
    %173 = vector.broadcast %172 : vector<8x1x1xf32> to vector<8x1x128xf32>
    %174 = arith.mulf %173, %157 : vector<8x1x128xf32>
    %175 = vector.shape_cast %174 : vector<8x1x128xf32> to vector<8x128xf32>
    %c0_105 = arith.constant 0 : index
    %c0_106 = arith.constant 0 : index
    %176 = vector.load %arg4[%c0_105, %c0_106] : memref<8x512xf32, #tpu.memory_space<vmem>>, vector<8x128xf32>
    tpu.vector_store %arg4[%c0_105, %c0_106], %175 {strides = array<i32>} : memref<8x512xf32, #tpu.memory_space<vmem>>, vector<8x128xf32>,
    %c0_107 = arith.constant 0 : index
    %c0_108 = arith.constant 0 : index
    %c128 = arith.constant 128 : index
    %177 = vector.load %arg5[%c0_107, %c0_108, %c128] : memref<8x8x512xf32, #tpu.memory_space<vmem>>, vector<8x8x128xf32>
    %178 = vector.broadcast %69 : vector<8x8x1xf32> to vector<8x8x128xf32>
    %179 = arith.mulf %178, %177 : vector<8x8x128xf32>
    %cst_109 = arith.constant dense<0.000000e+00> : vector<8x128xf32>
    %180 = vector.multi_reduction <add>, %179, %cst_109 [1] : vector<8x8x128xf32> to vector<8x128xf32>
    %181 = vector.shape_cast %180 : vector<8x128xf32> to vector<8x1x128xf32>
    %182 = arith.mulf %181, %181 : vector<8x1x128xf32>
    %cst_110 = arith.constant dense<0.000000e+00> : vector<8x1xf32>
    %183 = vector.multi_reduction <add>, %182, %cst_110 [2] : vector<8x1x128xf32> to vector<8x1xf32>
    %184 = vector.shape_cast %183 : vector<8x1xf32> to vector<8x1x1xf32>
    %cst_111 = arith.constant 1.000000e+00 : f32
    %185 = vector.broadcast %cst_111 : f32 to vector<8x1x1xf32>
    %186 = arith.addf %185, %184 : vector<8x1x1xf32>
    %187 = tpu.reciprocal %186 {approx = true} : vector<8x1x1xf32> -> vector<8x1x1xf32>
    %188 = arith.mulf %186, %187 : vector<8x1x1xf32>
    %cst_112 = arith.constant 2.000000e+00 : f32
    %189 = vector.broadcast %cst_112 : f32 to vector<8x1x1xf32>
    %190 = arith.subf %189, %188 : vector<8x1x1xf32>
    %191 = arith.mulf %187, %190 : vector<8x1x1xf32>
    %192 = arith.mulf %184, %191 : vector<8x1x1xf32>
    %cst_113 = arith.constant 9.99999971E-10 : f32
    %193 = vector.broadcast %cst_113 : f32 to vector<8x1x1xf32>
    %194 = arith.addf %184, %193 : vector<8x1x1xf32>
    %195 = math.rsqrt %194 : vector<8x1x1xf32>
    %196 = arith.mulf %192, %195 : vector<8x1x1xf32>
    %197 = vector.broadcast %196 : vector<8x1x1xf32> to vector<8x1x128xf32>
    %198 = arith.mulf %197, %181 : vector<8x1x128xf32>
    %199 = vector.broadcast %198 : vector<8x1x128xf32> to vector<8x8x128xf32>
    %200 = arith.mulf %177, %199 : vector<8x8x128xf32>
    %cst_114 = arith.constant dense<0.000000e+00> : vector<8x8xf32>
    %201 = vector.multi_reduction <add>, %200, %cst_114 [2] : vector<8x8x128xf32> to vector<8x8xf32>
    %202 = vector.shape_cast %201 : vector<8x8xf32> to vector<8x8x1xf32>
    %cst_115 = arith.constant dense<0xFF800000> : vector<8x1xf32>
    %203 = vector.multi_reduction <maximumf>, %202, %cst_115 [1] : vector<8x8x1xf32> to vector<8x1xf32>
    %204 = vector.shape_cast %203 : vector<8x1xf32> to vector<8x1x1xf32>
    %205 = vector.broadcast %204 : vector<8x1x1xf32> to vector<8x8x1xf32>
    %206 = arith.subf %202, %205 : vector<8x8x1xf32>
    %207 = math.exp %206 : vector<8x8x1xf32>
    %cst_116 = arith.constant dense<0.000000e+00> : vector<8x1xf32>
    %208 = vector.multi_reduction <add>, %207, %cst_116 [1] : vector<8x8x1xf32> to vector<8x1xf32>
    %209 = vector.shape_cast %208 : vector<8x1xf32> to vector<8x1x1xf32>
    %210 = tpu.reciprocal %209 {approx = true} : vector<8x1x1xf32> -> vector<8x1x1xf32>
    %211 = arith.mulf %209, %210 : vector<8x1x1xf32>
    %cst_117 = arith.constant 2.000000e+00 : f32
    %212 = vector.broadcast %cst_117 : f32 to vector<8x1x1xf32>
    %213 = arith.subf %212, %211 : vector<8x1x1xf32>
    %214 = arith.mulf %210, %213 : vector<8x1x1xf32>
    %215 = vector.broadcast %214 : vector<8x1x1xf32> to vector<8x8x1xf32>
    %216 = arith.mulf %207, %215 : vector<8x8x1xf32>
    %cst_118 = arith.constant 0.000000e+00 : f32
    %217 = vector.broadcast %cst_118 : f32 to vector<8x8x1xf32>
    %218 = arith.select %66, %217, %216 : vector<8x8x1xi1>, vector<8x8x1xf32>
    %219 = vector.broadcast %218 : vector<8x8x1xf32> to vector<8x8x128xf32>
    %220 = arith.mulf %219, %177 : vector<8x8x128xf32>
    %cst_119 = arith.constant dense<0.000000e+00> : vector<8x128xf32>
    %221 = vector.multi_reduction <add>, %220, %cst_119 [1] : vector<8x8x128xf32> to vector<8x128xf32>
    %222 = vector.shape_cast %221 : vector<8x128xf32> to vector<8x1x128xf32>
    %223 = arith.mulf %222, %222 : vector<8x1x128xf32>
    %cst_120 = arith.constant dense<0.000000e+00> : vector<8x1xf32>
    %224 = vector.multi_reduction <add>, %223, %cst_120 [2] : vector<8x1x128xf32> to vector<8x1xf32>
    %225 = vector.shape_cast %224 : vector<8x1xf32> to vector<8x1x1xf32>
    %cst_121 = arith.constant 1.000000e+00 : f32
    %226 = vector.broadcast %cst_121 : f32 to vector<8x1x1xf32>
    %227 = arith.addf %226, %225 : vector<8x1x1xf32>
    %228 = tpu.reciprocal %227 {approx = true} : vector<8x1x1xf32> -> vector<8x1x1xf32>
    %229 = arith.mulf %227, %228 : vector<8x1x1xf32>
    %cst_122 = arith.constant 2.000000e+00 : f32
    %230 = vector.broadcast %cst_122 : f32 to vector<8x1x1xf32>
    %231 = arith.subf %230, %229 : vector<8x1x1xf32>
    %232 = arith.mulf %228, %231 : vector<8x1x1xf32>
    %233 = arith.mulf %225, %232 : vector<8x1x1xf32>
    %cst_123 = arith.constant 9.99999971E-10 : f32
    %234 = vector.broadcast %cst_123 : f32 to vector<8x1x1xf32>
    %235 = arith.addf %225, %234 : vector<8x1x1xf32>
    %236 = math.rsqrt %235 : vector<8x1x1xf32>
    %237 = arith.mulf %233, %236 : vector<8x1x1xf32>
    %238 = vector.broadcast %237 : vector<8x1x1xf32> to vector<8x1x128xf32>
    %239 = arith.mulf %238, %222 : vector<8x1x128xf32>
    %240 = vector.broadcast %239 : vector<8x1x128xf32> to vector<8x8x128xf32>
    %241 = arith.mulf %177, %240 : vector<8x8x128xf32>
    %cst_124 = arith.constant dense<0.000000e+00> : vector<8x8xf32>
    %242 = vector.multi_reduction <add>, %241, %cst_124 [2] : vector<8x8x128xf32> to vector<8x8xf32>
    %243 = vector.shape_cast %242 : vector<8x8xf32> to vector<8x8x1xf32>
    %244 = arith.addf %202, %243 : vector<8x8x1xf32>
    %cst_125 = arith.constant dense<0xFF800000> : vector<8x1xf32>
    %245 = vector.multi_reduction <maximumf>, %244, %cst_125 [1] : vector<8x8x1xf32> to vector<8x1xf32>
    %246 = vector.shape_cast %245 : vector<8x1xf32> to vector<8x1x1xf32>
    %247 = vector.broadcast %246 : vector<8x1x1xf32> to vector<8x8x1xf32>
    %248 = arith.subf %244, %247 : vector<8x8x1xf32>
    %249 = math.exp %248 : vector<8x8x1xf32>
    %cst_126 = arith.constant dense<0.000000e+00> : vector<8x1xf32>
    %250 = vector.multi_reduction <add>, %249, %cst_126 [1] : vector<8x8x1xf32> to vector<8x1xf32>
    %251 = vector.shape_cast %250 : vector<8x1xf32> to vector<8x1x1xf32>
    %252 = tpu.reciprocal %251 {approx = true} : vector<8x1x1xf32> -> vector<8x1x1xf32>
    %253 = arith.mulf %251, %252 : vector<8x1x1xf32>
    %cst_127 = arith.constant 2.000000e+00 : f32
    %254 = vector.broadcast %cst_127 : f32 to vector<8x1x1xf32>
    %255 = arith.subf %254, %253 : vector<8x1x1xf32>
    %256 = arith.mulf %252, %255 : vector<8x1x1xf32>
    %257 = vector.broadcast %256 : vector<8x1x1xf32> to vector<8x8x1xf32>
    %258 = arith.mulf %249, %257 : vector<8x8x1xf32>
    %cst_128 = arith.constant 0.000000e+00 : f32
    %259 = vector.broadcast %cst_128 : f32 to vector<8x8x1xf32>
    %260 = arith.select %66, %259, %258 : vector<8x8x1xi1>, vector<8x8x1xf32>
    %261 = vector.broadcast %260 : vector<8x8x1xf32> to vector<8x8x128xf32>
    %262 = arith.mulf %261, %177 : vector<8x8x128xf32>
    %cst_129 = arith.constant dense<0.000000e+00> : vector<8x128xf32>
    %263 = vector.multi_reduction <add>, %262, %cst_129 [1] : vector<8x8x128xf32> to vector<8x128xf32>
    %264 = vector.shape_cast %263 : vector<8x128xf32> to vector<8x1x128xf32>
    %265 = arith.mulf %264, %264 : vector<8x1x128xf32>
    %cst_130 = arith.constant dense<0.000000e+00> : vector<8x1xf32>
    %266 = vector.multi_reduction <add>, %265, %cst_130 [2] : vector<8x1x128xf32> to vector<8x1xf32>
    %267 = vector.shape_cast %266 : vector<8x1xf32> to vector<8x1x1xf32>
    %cst_131 = arith.constant 1.000000e+00 : f32
    %268 = vector.broadcast %cst_131 : f32 to vector<8x1x1xf32>
    %269 = arith.addf %268, %267 : vector<8x1x1xf32>
    %270 = tpu.reciprocal %269 {approx = true} : vector<8x1x1xf32> -> vector<8x1x1xf32>
    %271 = arith.mulf %269, %270 : vector<8x1x1xf32>
    %cst_132 = arith.constant 2.000000e+00 : f32
    %272 = vector.broadcast %cst_132 : f32 to vector<8x1x1xf32>
    %273 = arith.subf %272, %271 : vector<8x1x1xf32>
    %274 = arith.mulf %270, %273 : vector<8x1x1xf32>
    %275 = arith.mulf %267, %274 : vector<8x1x1xf32>
    %cst_133 = arith.constant 9.99999971E-10 : f32
    %276 = vector.broadcast %cst_133 : f32 to vector<8x1x1xf32>
    %277 = arith.addf %267, %276 : vector<8x1x1xf32>
    %278 = math.rsqrt %277 : vector<8x1x1xf32>
    %279 = arith.mulf %275, %278 : vector<8x1x1xf32>
    %280 = vector.broadcast %279 : vector<8x1x1xf32> to vector<8x1x128xf32>
    %281 = arith.mulf %280, %264 : vector<8x1x128xf32>
    %282 = vector.shape_cast %281 : vector<8x1x128xf32> to vector<8x128xf32>
    %c0_134 = arith.constant 0 : index
    %c128_135 = arith.constant 128 : index
    %283 = vector.load %arg4[%c0_134, %c128_135] : memref<8x512xf32, #tpu.memory_space<vmem>>, vector<8x128xf32>
    tpu.vector_store %arg4[%c0_134, %c128_135], %282 {strides = array<i32>} : memref<8x512xf32, #tpu.memory_space<vmem>>, vector<8x128xf32>,
    %c0_136 = arith.constant 0 : index
    %c0_137 = arith.constant 0 : index
    %c256 = arith.constant 256 : index
    %284 = vector.load %arg5[%c0_136, %c0_137, %c256] : memref<8x8x512xf32, #tpu.memory_space<vmem>>, vector<8x8x128xf32>
    %285 = vector.broadcast %69 : vector<8x8x1xf32> to vector<8x8x128xf32>
    %286 = arith.mulf %285, %284 : vector<8x8x128xf32>
    %cst_138 = arith.constant dense<0.000000e+00> : vector<8x128xf32>
    %287 = vector.multi_reduction <add>, %286, %cst_138 [1] : vector<8x8x128xf32> to vector<8x128xf32>
    %288 = vector.shape_cast %287 : vector<8x128xf32> to vector<8x1x128xf32>
    %289 = arith.mulf %288, %288 : vector<8x1x128xf32>
    %cst_139 = arith.constant dense<0.000000e+00> : vector<8x1xf32>
    %290 = vector.multi_reduction <add>, %289, %cst_139 [2] : vector<8x1x128xf32> to vector<8x1xf32>
    %291 = vector.shape_cast %290 : vector<8x1xf32> to vector<8x1x1xf32>
    %cst_140 = arith.constant 1.000000e+00 : f32
    %292 = vector.broadcast %cst_140 : f32 to vector<8x1x1xf32>
    %293 = arith.addf %292, %291 : vector<8x1x1xf32>
    %294 = tpu.reciprocal %293 {approx = true} : vector<8x1x1xf32> -> vector<8x1x1xf32>
    %295 = arith.mulf %293, %294 : vector<8x1x1xf32>
    %cst_141 = arith.constant 2.000000e+00 : f32
    %296 = vector.broadcast %cst_141 : f32 to vector<8x1x1xf32>
    %297 = arith.subf %296, %295 : vector<8x1x1xf32>
    %298 = arith.mulf %294, %297 : vector<8x1x1xf32>
    %299 = arith.mulf %291, %298 : vector<8x1x1xf32>
    %cst_142 = arith.constant 9.99999971E-10 : f32
    %300 = vector.broadcast %cst_142 : f32 to vector<8x1x1xf32>
    %301 = arith.addf %291, %300 : vector<8x1x1xf32>
    %302 = math.rsqrt %301 : vector<8x1x1xf32>
    %303 = arith.mulf %299, %302 : vector<8x1x1xf32>
    %304 = vector.broadcast %303 : vector<8x1x1xf32> to vector<8x1x128xf32>
    %305 = arith.mulf %304, %288 : vector<8x1x128xf32>
    %306 = vector.broadcast %305 : vector<8x1x128xf32> to vector<8x8x128xf32>
    %307 = arith.mulf %284, %306 : vector<8x8x128xf32>
    %cst_143 = arith.constant dense<0.000000e+00> : vector<8x8xf32>
    %308 = vector.multi_reduction <add>, %307, %cst_143 [2] : vector<8x8x128xf32> to vector<8x8xf32>
    %309 = vector.shape_cast %308 : vector<8x8xf32> to vector<8x8x1xf32>
    %cst_144 = arith.constant dense<0xFF800000> : vector<8x1xf32>
    %310 = vector.multi_reduction <maximumf>, %309, %cst_144 [1] : vector<8x8x1xf32> to vector<8x1xf32>
    %311 = vector.shape_cast %310 : vector<8x1xf32> to vector<8x1x1xf32>
    %312 = vector.broadcast %311 : vector<8x1x1xf32> to vector<8x8x1xf32>
    %313 = arith.subf %309, %312 : vector<8x8x1xf32>
    %314 = math.exp %313 : vector<8x8x1xf32>
    %cst_145 = arith.constant dense<0.000000e+00> : vector<8x1xf32>
    %315 = vector.multi_reduction <add>, %314, %cst_145 [1] : vector<8x8x1xf32> to vector<8x1xf32>
    %316 = vector.shape_cast %315 : vector<8x1xf32> to vector<8x1x1xf32>
    %317 = tpu.reciprocal %316 {approx = true} : vector<8x1x1xf32> -> vector<8x1x1xf32>
    %318 = arith.mulf %316, %317 : vector<8x1x1xf32>
    %cst_146 = arith.constant 2.000000e+00 : f32
    %319 = vector.broadcast %cst_146 : f32 to vector<8x1x1xf32>
    %320 = arith.subf %319, %318 : vector<8x1x1xf32>
    %321 = arith.mulf %317, %320 : vector<8x1x1xf32>
    %322 = vector.broadcast %321 : vector<8x1x1xf32> to vector<8x8x1xf32>
    %323 = arith.mulf %314, %322 : vector<8x8x1xf32>
    %cst_147 = arith.constant 0.000000e+00 : f32
    %324 = vector.broadcast %cst_147 : f32 to vector<8x8x1xf32>
    %325 = arith.select %66, %324, %323 : vector<8x8x1xi1>, vector<8x8x1xf32>
    %326 = vector.broadcast %325 : vector<8x8x1xf32> to vector<8x8x128xf32>
    %327 = arith.mulf %326, %284 : vector<8x8x128xf32>
    %cst_148 = arith.constant dense<0.000000e+00> : vector<8x128xf32>
    %328 = vector.multi_reduction <add>, %327, %cst_148 [1] : vector<8x8x128xf32> to vector<8x128xf32>
    %329 = vector.shape_cast %328 : vector<8x128xf32> to vector<8x1x128xf32>
    %330 = arith.mulf %329, %329 : vector<8x1x128xf32>
    %cst_149 = arith.constant dense<0.000000e+00> : vector<8x1xf32>
    %331 = vector.multi_reduction <add>, %330, %cst_149 [2] : vector<8x1x128xf32> to vector<8x1xf32>
    %332 = vector.shape_cast %331 : vector<8x1xf32> to vector<8x1x1xf32>
    %cst_150 = arith.constant 1.000000e+00 : f32
    %333 = vector.broadcast %cst_150 : f32 to vector<8x1x1xf32>
    %334 = arith.addf %333, %332 : vector<8x1x1xf32>
    %335 = tpu.reciprocal %334 {approx = true} : vector<8x1x1xf32> -> vector<8x1x1xf32>
    %336 = arith.mulf %334, %335 : vector<8x1x1xf32>
    %cst_151 = arith.constant 2.000000e+00 : f32
    %337 = vector.broadcast %cst_151 : f32 to vector<8x1x1xf32>
    %338 = arith.subf %337, %336 : vector<8x1x1xf32>
    %339 = arith.mulf %335, %338 : vector<8x1x1xf32>
    %340 = arith.mulf %332, %339 : vector<8x1x1xf32>
    %cst_152 = arith.constant 9.99999971E-10 : f32
    %341 = vector.broadcast %cst_152 : f32 to vector<8x1x1xf32>
    %342 = arith.addf %332, %341 : vector<8x1x1xf32>
    %343 = math.rsqrt %342 : vector<8x1x1xf32>
    %344 = arith.mulf %340, %343 : vector<8x1x1xf32>
    %345 = vector.broadcast %344 : vector<8x1x1xf32> to vector<8x1x128xf32>
    %346 = arith.mulf %345, %329 : vector<8x1x128xf32>
    %347 = vector.broadcast %346 : vector<8x1x128xf32> to vector<8x8x128xf32>
    %348 = arith.mulf %284, %347 : vector<8x8x128xf32>
    %cst_153 = arith.constant dense<0.000000e+00> : vector<8x8xf32>
    %349 = vector.multi_reduction <add>, %348, %cst_153 [2] : vector<8x8x128xf32> to vector<8x8xf32>
    %350 = vector.shape_cast %349 : vector<8x8xf32> to vector<8x8x1xf32>
    %351 = arith.addf %309, %350 : vector<8x8x1xf32>
    %cst_154 = arith.constant dense<0xFF800000> : vector<8x1xf32>
    %352 = vector.multi_reduction <maximumf>, %351, %cst_154 [1] : vector<8x8x1xf32> to vector<8x1xf32>
    %353 = vector.shape_cast %352 : vector<8x1xf32> to vector<8x1x1xf32>
    %354 = vector.broadcast %353 : vector<8x1x1xf32> to vector<8x8x1xf32>
    %355 = arith.subf %351, %354 : vector<8x8x1xf32>
    %356 = math.exp %355 : vector<8x8x1xf32>
    %cst_155 = arith.constant dense<0.000000e+00> : vector<8x1xf32>
    %357 = vector.multi_reduction <add>, %356, %cst_155 [1] : vector<8x8x1xf32> to vector<8x1xf32>
    %358 = vector.shape_cast %357 : vector<8x1xf32> to vector<8x1x1xf32>
    %359 = tpu.reciprocal %358 {approx = true} : vector<8x1x1xf32> -> vector<8x1x1xf32>
    %360 = arith.mulf %358, %359 : vector<8x1x1xf32>
    %cst_156 = arith.constant 2.000000e+00 : f32
    %361 = vector.broadcast %cst_156 : f32 to vector<8x1x1xf32>
    %362 = arith.subf %361, %360 : vector<8x1x1xf32>
    %363 = arith.mulf %359, %362 : vector<8x1x1xf32>
    %364 = vector.broadcast %363 : vector<8x1x1xf32> to vector<8x8x1xf32>
    %365 = arith.mulf %356, %364 : vector<8x8x1xf32>
    %cst_157 = arith.constant 0.000000e+00 : f32
    %366 = vector.broadcast %cst_157 : f32 to vector<8x8x1xf32>
    %367 = arith.select %66, %366, %365 : vector<8x8x1xi1>, vector<8x8x1xf32>
    %368 = vector.broadcast %367 : vector<8x8x1xf32> to vector<8x8x128xf32>
    %369 = arith.mulf %368, %284 : vector<8x8x128xf32>
    %cst_158 = arith.constant dense<0.000000e+00> : vector<8x128xf32>
    %370 = vector.multi_reduction <add>, %369, %cst_158 [1] : vector<8x8x128xf32> to vector<8x128xf32>
    %371 = vector.shape_cast %370 : vector<8x128xf32> to vector<8x1x128xf32>
    %372 = arith.mulf %371, %371 : vector<8x1x128xf32>
    %cst_159 = arith.constant dense<0.000000e+00> : vector<8x1xf32>
    %373 = vector.multi_reduction <add>, %372, %cst_159 [2] : vector<8x1x128xf32> to vector<8x1xf32>
    %374 = vector.shape_cast %373 : vector<8x1xf32> to vector<8x1x1xf32>
    %cst_160 = arith.constant 1.000000e+00 : f32
    %375 = vector.broadcast %cst_160 : f32 to vector<8x1x1xf32>
    %376 = arith.addf %375, %374 : vector<8x1x1xf32>
    %377 = tpu.reciprocal %376 {approx = true} : vector<8x1x1xf32> -> vector<8x1x1xf32>
    %378 = arith.mulf %376, %377 : vector<8x1x1xf32>
    %cst_161 = arith.constant 2.000000e+00 : f32
    %379 = vector.broadcast %cst_161 : f32 to vector<8x1x1xf32>
    %380 = arith.subf %379, %378 : vector<8x1x1xf32>
    %381 = arith.mulf %377, %380 : vector<8x1x1xf32>
    %382 = arith.mulf %374, %381 : vector<8x1x1xf32>
    %cst_162 = arith.constant 9.99999971E-10 : f32
    %383 = vector.broadcast %cst_162 : f32 to vector<8x1x1xf32>
    %384 = arith.addf %374, %383 : vector<8x1x1xf32>
    %385 = math.rsqrt %384 : vector<8x1x1xf32>
    %386 = arith.mulf %382, %385 : vector<8x1x1xf32>
    %387 = vector.broadcast %386 : vector<8x1x1xf32> to vector<8x1x128xf32>
    %388 = arith.mulf %387, %371 : vector<8x1x128xf32>
    %389 = vector.shape_cast %388 : vector<8x1x128xf32> to vector<8x128xf32>
    %c0_163 = arith.constant 0 : index
    %c256_164 = arith.constant 256 : index
    %390 = vector.load %arg4[%c0_163, %c256_164] : memref<8x512xf32, #tpu.memory_space<vmem>>, vector<8x128xf32>
    tpu.vector_store %arg4[%c0_163, %c256_164], %389 {strides = array<i32>} : memref<8x512xf32, #tpu.memory_space<vmem>>, vector<8x128xf32>,
    %c0_165 = arith.constant 0 : index
    %c0_166 = arith.constant 0 : index
    %c384 = arith.constant 384 : index
    %391 = vector.load %arg5[%c0_165, %c0_166, %c384] : memref<8x8x512xf32, #tpu.memory_space<vmem>>, vector<8x8x128xf32>
    %392 = vector.broadcast %69 : vector<8x8x1xf32> to vector<8x8x128xf32>
    %393 = arith.mulf %392, %391 : vector<8x8x128xf32>
    %cst_167 = arith.constant dense<0.000000e+00> : vector<8x128xf32>
    %394 = vector.multi_reduction <add>, %393, %cst_167 [1] : vector<8x8x128xf32> to vector<8x128xf32>
    %395 = vector.shape_cast %394 : vector<8x128xf32> to vector<8x1x128xf32>
    %396 = arith.mulf %395, %395 : vector<8x1x128xf32>
    %cst_168 = arith.constant dense<0.000000e+00> : vector<8x1xf32>
    %397 = vector.multi_reduction <add>, %396, %cst_168 [2] : vector<8x1x128xf32> to vector<8x1xf32>
    %398 = vector.shape_cast %397 : vector<8x1xf32> to vector<8x1x1xf32>
    %cst_169 = arith.constant 1.000000e+00 : f32
    %399 = vector.broadcast %cst_169 : f32 to vector<8x1x1xf32>
    %400 = arith.addf %399, %398 : vector<8x1x1xf32>
    %401 = tpu.reciprocal %400 {approx = true} : vector<8x1x1xf32> -> vector<8x1x1xf32>
    %402 = arith.mulf %400, %401 : vector<8x1x1xf32>
    %cst_170 = arith.constant 2.000000e+00 : f32
    %403 = vector.broadcast %cst_170 : f32 to vector<8x1x1xf32>
    %404 = arith.subf %403, %402 : vector<8x1x1xf32>
    %405 = arith.mulf %401, %404 : vector<8x1x1xf32>
    %406 = arith.mulf %398, %405 : vector<8x1x1xf32>
    %cst_171 = arith.constant 9.99999971E-10 : f32
    %407 = vector.broadcast %cst_171 : f32 to vector<8x1x1xf32>
    %408 = arith.addf %398, %407 : vector<8x1x1xf32>
    %409 = math.rsqrt %408 : vector<8x1x1xf32>
    %410 = arith.mulf %406, %409 : vector<8x1x1xf32>
    %411 = vector.broadcast %410 : vector<8x1x1xf32> to vector<8x1x128xf32>
    %412 = arith.mulf %411, %395 : vector<8x1x128xf32>
    %413 = vector.broadcast %412 : vector<8x1x128xf32> to vector<8x8x128xf32>
    %414 = arith.mulf %391, %413 : vector<8x8x128xf32>
    %cst_172 = arith.constant dense<0.000000e+00> : vector<8x8xf32>
    %415 = vector.multi_reduction <add>, %414, %cst_172 [2] : vector<8x8x128xf32> to vector<8x8xf32>
    %416 = vector.shape_cast %415 : vector<8x8xf32> to vector<8x8x1xf32>
    %cst_173 = arith.constant dense<0xFF800000> : vector<8x1xf32>
    %417 = vector.multi_reduction <maximumf>, %416, %cst_173 [1] : vector<8x8x1xf32> to vector<8x1xf32>
    %418 = vector.shape_cast %417 : vector<8x1xf32> to vector<8x1x1xf32>
    %419 = vector.broadcast %418 : vector<8x1x1xf32> to vector<8x8x1xf32>
    %420 = arith.subf %416, %419 : vector<8x8x1xf32>
    %421 = math.exp %420 : vector<8x8x1xf32>
    %cst_174 = arith.constant dense<0.000000e+00> : vector<8x1xf32>
    %422 = vector.multi_reduction <add>, %421, %cst_174 [1] : vector<8x8x1xf32> to vector<8x1xf32>
    %423 = vector.shape_cast %422 : vector<8x1xf32> to vector<8x1x1xf32>
    %424 = tpu.reciprocal %423 {approx = true} : vector<8x1x1xf32> -> vector<8x1x1xf32>
    %425 = arith.mulf %423, %424 : vector<8x1x1xf32>
    %cst_175 = arith.constant 2.000000e+00 : f32
    %426 = vector.broadcast %cst_175 : f32 to vector<8x1x1xf32>
    %427 = arith.subf %426, %425 : vector<8x1x1xf32>
    %428 = arith.mulf %424, %427 : vector<8x1x1xf32>
    %429 = vector.broadcast %428 : vector<8x1x1xf32> to vector<8x8x1xf32>
    %430 = arith.mulf %421, %429 : vector<8x8x1xf32>
    %cst_176 = arith.constant 0.000000e+00 : f32
    %431 = vector.broadcast %cst_176 : f32 to vector<8x8x1xf32>
    %432 = arith.select %66, %431, %430 : vector<8x8x1xi1>, vector<8x8x1xf32>
    %433 = vector.broadcast %432 : vector<8x8x1xf32> to vector<8x8x128xf32>
    %434 = arith.mulf %433, %391 : vector<8x8x128xf32>
    %cst_177 = arith.constant dense<0.000000e+00> : vector<8x128xf32>
    %435 = vector.multi_reduction <add>, %434, %cst_177 [1] : vector<8x8x128xf32> to vector<8x128xf32>
    %436 = vector.shape_cast %435 : vector<8x128xf32> to vector<8x1x128xf32>
    %437 = arith.mulf %436, %436 : vector<8x1x128xf32>
    %cst_178 = arith.constant dense<0.000000e+00> : vector<8x1xf32>
    %438 = vector.multi_reduction <add>, %437, %cst_178 [2] : vector<8x1x128xf32> to vector<8x1xf32>
    %439 = vector.shape_cast %438 : vector<8x1xf32> to vector<8x1x1xf32>
    %cst_179 = arith.constant 1.000000e+00 : f32
    %440 = vector.broadcast %cst_179 : f32 to vector<8x1x1xf32>
    %441 = arith.addf %440, %439 : vector<8x1x1xf32>
    %442 = tpu.reciprocal %441 {approx = true} : vector<8x1x1xf32> -> vector<8x1x1xf32>
    %443 = arith.mulf %441, %442 : vector<8x1x1xf32>
    %cst_180 = arith.constant 2.000000e+00 : f32
    %444 = vector.broadcast %cst_180 : f32 to vector<8x1x1xf32>
    %445 = arith.subf %444, %443 : vector<8x1x1xf32>
    %446 = arith.mulf %442, %445 : vector<8x1x1xf32>
    %447 = arith.mulf %439, %446 : vector<8x1x1xf32>
    %cst_181 = arith.constant 9.99999971E-10 : f32
    %448 = vector.broadcast %cst_181 : f32 to vector<8x1x1xf32>
    %449 = arith.addf %439, %448 : vector<8x1x1xf32>
    %450 = math.rsqrt %449 : vector<8x1x1xf32>
    %451 = arith.mulf %447, %450 : vector<8x1x1xf32>
    %452 = vector.broadcast %451 : vector<8x1x1xf32> to vector<8x1x128xf32>
    %453 = arith.mulf %452, %436 : vector<8x1x128xf32>
    %454 = vector.broadcast %453 : vector<8x1x128xf32> to vector<8x8x128xf32>
    %455 = arith.mulf %391, %454 : vector<8x8x128xf32>
    %cst_182 = arith.constant dense<0.000000e+00> : vector<8x8xf32>
    %456 = vector.multi_reduction <add>, %455, %cst_182 [2] : vector<8x8x128xf32> to vector<8x8xf32>
    %457 = vector.shape_cast %456 : vector<8x8xf32> to vector<8x8x1xf32>
    %458 = arith.addf %416, %457 : vector<8x8x1xf32>
    %cst_183 = arith.constant dense<0xFF800000> : vector<8x1xf32>
    %459 = vector.multi_reduction <maximumf>, %458, %cst_183 [1] : vector<8x8x1xf32> to vector<8x1xf32>
    %460 = vector.shape_cast %459 : vector<8x1xf32> to vector<8x1x1xf32>
    %461 = vector.broadcast %460 : vector<8x1x1xf32> to vector<8x8x1xf32>
    %462 = arith.subf %458, %461 : vector<8x8x1xf32>
    %463 = math.exp %462 : vector<8x8x1xf32>
    %cst_184 = arith.constant dense<0.000000e+00> : vector<8x1xf32>
    %464 = vector.multi_reduction <add>, %463, %cst_184 [1] : vector<8x8x1xf32> to vector<8x1xf32>
    %465 = vector.shape_cast %464 : vector<8x1xf32> to vector<8x1x1xf32>
    %466 = tpu.reciprocal %465 {approx = true} : vector<8x1x1xf32> -> vector<8x1x1xf32>
    %467 = arith.mulf %465, %466 : vector<8x1x1xf32>
    %cst_185 = arith.constant 2.000000e+00 : f32
    %468 = vector.broadcast %cst_185 : f32 to vector<8x1x1xf32>
    %469 = arith.subf %468, %467 : vector<8x1x1xf32>
    %470 = arith.mulf %466, %469 : vector<8x1x1xf32>
    %471 = vector.broadcast %470 : vector<8x1x1xf32> to vector<8x8x1xf32>
    %472 = arith.mulf %463, %471 : vector<8x8x1xf32>
    %cst_186 = arith.constant 0.000000e+00 : f32
    %473 = vector.broadcast %cst_186 : f32 to vector<8x8x1xf32>
    %474 = arith.select %66, %473, %472 : vector<8x8x1xi1>, vector<8x8x1xf32>
    %475 = vector.broadcast %474 : vector<8x8x1xf32> to vector<8x8x128xf32>
    %476 = arith.mulf %475, %391 : vector<8x8x128xf32>
    %cst_187 = arith.constant dense<0.000000e+00> : vector<8x128xf32>
    %477 = vector.multi_reduction <add>, %476, %cst_187 [1] : vector<8x8x128xf32> to vector<8x128xf32>
    %478 = vector.shape_cast %477 : vector<8x128xf32> to vector<8x1x128xf32>
    %479 = arith.mulf %478, %478 : vector<8x1x128xf32>
    %cst_188 = arith.constant dense<0.000000e+00> : vector<8x1xf32>
    %480 = vector.multi_reduction <add>, %479, %cst_188 [2] : vector<8x1x128xf32> to vector<8x1xf32>
    %481 = vector.shape_cast %480 : vector<8x1xf32> to vector<8x1x1xf32>
    %cst_189 = arith.constant 1.000000e+00 : f32
    %482 = vector.broadcast %cst_189 : f32 to vector<8x1x1xf32>
    %483 = arith.addf %482, %481 : vector<8x1x1xf32>
    %484 = tpu.reciprocal %483 {approx = true} : vector<8x1x1xf32> -> vector<8x1x1xf32>
    %485 = arith.mulf %483, %484 : vector<8x1x1xf32>
    %cst_190 = arith.constant 2.000000e+00 : f32
    %486 = vector.broadcast %cst_190 : f32 to vector<8x1x1xf32>
    %487 = arith.subf %486, %485 : vector<8x1x1xf32>
    %488 = arith.mulf %484, %487 : vector<8x1x1xf32>
    %489 = arith.mulf %481, %488 : vector<8x1x1xf32>
    %cst_191 = arith.constant 9.99999971E-10 : f32
    %490 = vector.broadcast %cst_191 : f32 to vector<8x1x1xf32>
    %491 = arith.addf %481, %490 : vector<8x1x1xf32>
    %492 = math.rsqrt %491 : vector<8x1x1xf32>
    %493 = arith.mulf %489, %492 : vector<8x1x1xf32>
    %494 = vector.broadcast %493 : vector<8x1x1xf32> to vector<8x1x128xf32>
    %495 = arith.mulf %494, %478 : vector<8x1x128xf32>
    %496 = vector.shape_cast %495 : vector<8x1x128xf32> to vector<8x128xf32>
    %c0_192 = arith.constant 0 : index
    %c384_193 = arith.constant 384 : index
    %497 = vector.load %arg4[%c0_192, %c384_193] : memref<8x512xf32, #tpu.memory_space<vmem>>, vector<8x128xf32>
    tpu.vector_store %arg4[%c0_192, %c384_193], %496 {strides = array<i32>} : memref<8x512xf32, #tpu.memory_space<vmem>>, vector<8x128xf32>,
    return
  }
  func.func @transform_0(%arg0: i32) -> (i32, i32, i32) {
    %c0_i32 = arith.constant 0 : i32
    %c0_i32_0 = arith.constant 0 : i32
    %c0_i32_1 = arith.constant 0 : i32
    return %arg0, %c0_i32, %c0_i32_0 : i32, i32, i32
  }
  func.func @transform_1(%arg0: i32) -> (i32, i32, i32) {
    %c0_i32 = arith.constant 0 : i32
    %c0_i32_0 = arith.constant 0 : i32
    %c0_i32_1 = arith.constant 0 : i32
    return %arg0, %c0_i32, %c0_i32_0 : i32, i32, i32
  }
  func.func @transform_2(%arg0: i32) -> (i32, i32, i32) {
    %c0_i32 = arith.constant 0 : i32
    %c0_i32_0 = arith.constant 0 : i32
    %c0_i32_1 = arith.constant 0 : i32
    %c0_i32_2 = arith.constant 0 : i32
    return %c0_i32, %c0_i32_0, %c0_i32_1 : i32, i32, i32
  }
  func.func @transform_3(%arg0: i32) -> (i32, i32) {
    %c0_i32 = arith.constant 0 : i32
    %c0_i32_0 = arith.constant 0 : i32
    return %arg0, %c0_i32 : i32, i32
  }
}

</mosaic_0001>

<bundles_post_ra>
// kernel: tpu_custom_call.1
= control target key start
LH: loop header
LB: loop body
LE: loop exit
PB: predicated region body
PF: predicated region fallthrough
CT: control target
= control target key end

     0   :  { %8 = vsyncpa [#allocation4], 0  ;;  %s10971_s0 = inlined_call_operand.hbm [shape: f32[8,8,128], index: 0, kind: input, shape index: {}]   ;;  %s10972_s1 = inlined_call_operand.vmem [shape: f32[8,8,1], index: 1, kind: input, shape index: {}]   ;;  %s10973_s2 = inlined_call_operand.hbm [shape: f32[8,128,512], index: 2, kind: input, shape index: {}]   ;;  %s10974_s3 = inlined_call_operand.hbm [shape: f32[8,512], index: 3, kind: output, shape index: {}]  }
   0x1   :  { %9 = vsyncpa [#allocation7], 0 }
   0x2   :  { %10 = vsyncpa [#allocation5], 0  ;;  %s8133_s12 = smov [#allocation3]   ;;  %s8061_s16 = scalar_lea.hbm %s10971_s0, 1024 }
   0x3   :  { %s16_s13 = sshll.u32 %s8133_s12, 4  ;;  %p8062_p0 = scmp.ne.s32.totalorder %s10971_s0, %s8061_s16  ;;  %s17_s13 = int_to_ptr.vmem [resolvable:$true] %s16_s13 }
   0x4   :  { %p8065_p1 = scmp.lt.u32.totalorder %s8061_s16, %s10971_s0 }
   0x6   :  { %p8067_p2 = pnand %p8065_p1, %p8062_p0 }
   0x8   :  { %8070 = shalt.err (!%p8067_p2)
}
   0x9   :  { %s8071_s21 = scalar_lea.vmem %s17_s13, 1024  ;;  %p8076_p4 = scmp.lt.s32.totalorder %s17_s13, %s17_s13 }
   0xa   :  { %p8072_p3 = scmp.ne.s32.totalorder %s17_s13, %s8071_s21  ;;  %p8077_p5 = scmp.lt.s32.totalorder %s8071_s21, %s8071_s21 }
   0xc   :  { %p8078_p6 = por %p8077_p5, %p8076_p4 }
   0xe   :  { %p8079_p7 = pnand %p8078_p6, %p8072_p3 }
  0x10   :  { %8082 = shalt.err (!%p8079_p7)
}
  0x11   :  { %s8134_s22 = smov 128   ;;  %s8135_s23 = smov 8  }
  0x12   :  { %22 = dma.hbm_to_vmem [thread:$0]  %s10971_s0, 1024, %s17_s13, [#allocation4], %s8134_s22, %s8134_s22, %s8135_s23  }
  0x13   :  { %s8136_s26 = smov [#allocation6]   ;;  %s8083_s30 = scalar_lea.hbm %s10973_s2, 65536 }
  0x14   :  { %s30_s27 = sshll.u32 %s8136_s26, 4  ;;  %p8084_p8 = scmp.ne.s32.totalorder %s10973_s2, %s8083_s30  ;;  %s31_s27 = int_to_ptr.vmem [resolvable:$true] %s30_s27 }
  0x15   :  { %p8087_p9 = scmp.lt.u32.totalorder %s8083_s30, %s10973_s2 }
  0x17   :  { %p8089_p10 = pnand %p8087_p9, %p8084_p8 }
  0x19   :  { %8092 = shalt.err (!%p8089_p10)
}
  0x1a   :  { %s8093_s8 = scalar_lea.vmem %s31_s27, 65536  ;;  %p8098_p12 = scmp.lt.s32.totalorder %s31_s27, %s31_s27 }
  0x1b   :  { %p8094_p11 = scmp.ne.s32.totalorder %s31_s27, %s8093_s8  ;;  %p8099_p13 = scmp.lt.s32.totalorder %s8093_s8, %s8093_s8 }
  0x1d   :  { %p8100_p0 = por %p8099_p13, %p8098_p12 }
  0x1f   :  { %p8101_p1 = pnand %p8100_p0, %p8094_p11 }
  0x21   :  { %8104 = shalt.err (!%p8101_p1)
}
  0x22   :  { %s8137_s0 = smov 512   ;;  %s8138_s9 = smov 32  }
  0x23   :  { %36 = dma.hbm_to_vmem [thread:$0]  %s10973_s2, 65536, %s31_s27, [#allocation7], %s8137_s0, %s8137_s0, %s8138_s9  }
  0x24   :  { %8127 = dma.done.wait [#allocation4], 1024  }
  0x25   :  { %8128 = vsyncadd [#allocation4], 4294966272 }
  0x26   :  { %8129 = dma.done.wait [#allocation7], 65536  }
  0x27   :  { %8130 = vsyncadd [#allocation7], 4294901760  ;;  %v8139_v0 = vmov 0.0   ;;  %v52_v1 = vld [vmem:[#allocation6 + $0x8] sm:$0xff]  ;;  %v54_v3 = vld [vmem:[#allocation6 + $0x18] sm:$0xff]  ;;  %vm124_vm0 = vcmask 1041409  }
  0x28   :  { %209 = vmatprep.mubr.f32.mxu0 %v8139_v0  ;;  %280 = vmatprep.mubr.f32.mxu1 %v8139_v0  ;;  %v56_v2 = vld [vmem:[#allocation6 + $0x28] sm:$0xff]  ;;  %v58_v5 = vld [vmem:[#allocation6 + $0x38] sm:$0xff]  ;;  %v51_v6 = vld [vmem:[#allocation6] sm:$0xff]  ;;  %vm127_vm1 = vcmask 1042434   ;;  %vm130_vm2 = vcmask 1043459   ;;  %vm133_vm3 = vcmask 1044484  }
  0x29   :  { %v6776_v4 = vpack.c.bf16 %v56_v2, %v52_v1  ;;  %v55_v7 = vld [vmem:[#allocation6 + $0x20] sm:$0xff]  ;;  %v6808_v8 = vpack.c.bf16 %v58_v5, %v54_v3  ;;  %v53_v10 = vld [vmem:[#allocation6 + $0x10] sm:$0xff]  ;;  %v60_v12 = vld [vmem:[#allocation6 + $0x48] sm:$0xff]  ;;  %vm136_vm4 = vcmask 1045509   ;;  %vm139_vm5 = vcmask 1046534  }
  0x2a   :  { %v6778_v9 = vpack.c.bf16 %v55_v7, %v51_v6  ;;  %v57_v11 = vld [vmem:[#allocation6 + $0x30] sm:$0xff]  ;;  %v64_v14 = vld [vmem:[#allocation6 + $0x68] sm:$0xff]  ;;  %v62_v15 = vld [vmem:[#allocation6 + $0x58] sm:$0xff]  ;;  %vm142_vm6 = vcmask 1047559  }
  0x2b   :  { %6777 = vmatprep.subr.bf16.mxu0 %v6776_v4  ;;  %v6810_v13 = vpack.c.bf16 %v57_v11, %v53_v10  ;;  %v66_v16 = vld [vmem:[#allocation6 + $0x78] sm:$0xff]  ;;  %6809 = vmatprep.subr.bf16.mxu1 %v6808_v8  ;;  %v6780_v17 = vpack.c.bf16 %v64_v14, %v60_v12  ;;  %v59_v19 = vld [vmem:[#allocation6 + $0x40] sm:$0xff]  ;;  %v61_v21 = vld [vmem:[#allocation6 + $0x50] sm:$0xff] }
  0x2c   :  { %6779 = vmatpush1.bf16.msra.mxu0 %v6778_v9  ;;  %v6812_v18 = vpack.c.bf16 %v66_v16, %v62_v15  ;;  %v63_v20 = vld [vmem:[#allocation6 + $0x60] sm:$0xff]  ;;  %v65_v23 = vld [vmem:[#allocation6 + $0x70] sm:$0xff]  ;;  %v68_v24 = vld [vmem:[#allocation6 + $0x88] sm:$0xff] }
  0x2d   :  { %6811 = vmatpush1.bf16.msra.mxu1 %v6810_v13  ;;  %v6782_v22 = vpack.c.bf16 %v63_v20, %v59_v19  ;;  %v72_v25 = vld [vmem:[#allocation6 + $0xa8] sm:$0xff]  ;;  %6781 = vmatprep.subr.bf16.mxu0 %v6780_v17  ;;  %v6814_v26 = vpack.c.bf16 %v65_v23, %v61_v21  ;;  %v70_v28 = vld [vmem:[#allocation6 + $0x98] sm:$0xff]  ;;  %v67_v30 = vld [vmem:[#allocation6 + $0x80] sm:$0xff] }
  0x2e   :  { %6813 = vmatprep.subr.bf16.mxu1 %v6812_v18  ;;  %v6784_v27 = vpack.c.bf16 %v72_v25, %v68_v24  ;;  %v74_v29 = vld [vmem:[#allocation6 + $0xb8] sm:$0xff]  ;;  %v71_v32 = vld [vmem:[#allocation6 + $0xa0] sm:$0xff]  ;;  %v69_v33 = vld [vmem:[#allocation6 + $0x90] sm:$0xff] }
  0x2f   :  { %v6816_v31 = vpack.c.bf16 %v74_v29, %v70_v28  ;;  %v73_v34 = vld [vmem:[#allocation6 + $0xb0] sm:$0xff]  ;;  %v6786_v35 = vpack.c.bf16 %v71_v32, %v67_v30  ;;  %v76_v36 = vld [vmem:[#allocation6 + $0xc8] sm:$0xff]  ;;  %v78_v38 = vld [vmem:[#allocation6 + $0xd8] sm:$0xff] }
  0x30   :  { %6783 = vmatpush1.bf16.msra.mxu0 %v6782_v22  ;;  %v80_v37 = vld [vmem:[#allocation6 + $0xe8] sm:$0xff]  ;;  %v6818_v39 = vpack.c.bf16 %v73_v34, %v69_v33  ;;  %v82_v41 = vld [vmem:[#allocation6 + $0xf8] sm:$0xff]  ;;  %v75_v42 = vld [vmem:[#allocation6 + $0xc0] sm:$0xff] }
  0x31   :  { %6815 = vmatpush1.bf16.msra.mxu1 %v6814_v26  ;;  %6785 = vmatprep.subr.bf16.mxu0 %v6784_v27  ;;  %v6788_v40 = vpack.c.bf16 %v80_v37, %v76_v36  ;;  %v79_v43 = vld [vmem:[#allocation6 + $0xe0] sm:$0xff]  ;;  %v6820_v44 = vpack.c.bf16 %v82_v41, %v78_v38  ;;  %v77_v45 = vld [vmem:[#allocation6 + $0xd0] sm:$0xff]  ;;  %v84_v47 = vld [vmem:[#allocation6 + $0x108] sm:$0xff] }
  0x32   :  { %6817 = vmatprep.subr.bf16.mxu1 %v6816_v31  ;;  %v81_v46 = vld [vmem:[#allocation6 + $0xf0] sm:$0xff]  ;;  %v88_v48 = vld [vmem:[#allocation6 + $0x128] sm:$0xff]  ;;  %v86_v49 = vld [vmem:[#allocation6 + $0x118] sm:$0xff]  ;;  %v6790_v51 = vpack.c.bf16 %v79_v43, %v75_v42 }
  0x33   :  { %v90_v50 = vld [vmem:[#allocation6 + $0x138] sm:$0xff]  ;;  %v6822_v52 = vpack.c.bf16 %v81_v46, %v77_v45  ;;  %v6792_v53 = vpack.c.bf16 %v88_v48, %v84_v47  ;;  %v83_v54 = vld [vmem:[#allocation6 + $0x100] sm:$0xff]  ;;  %v85_v56 = vld [vmem:[#allocation6 + $0x110] sm:$0xff] }
  0x34   :  { %6787 = vmatpush1.bf16.msra.mxu0 %v6786_v35  ;;  %v87_v55 = vld [vmem:[#allocation6 + $0x120] sm:$0xff]  ;;  %v6824_v57 = vpack.c.bf16 %v90_v50, %v86_v49  ;;  %v89_v58 = vld [vmem:[#allocation6 + $0x130] sm:$0xff]  ;;  %v92_v59 = vld [vmem:[#allocation6 + $0x148] sm:$0xff] }
  0x35   :  { %6819 = vmatpush1.bf16.msra.mxu1 %v6818_v39  ;;  %6789 = vmatprep.subr.bf16.mxu0 %v6788_v40  ;;  %v96_v60 = vld [vmem:[#allocation6 + $0x168] sm:$0xff]  ;;  %v94_v61 = vld [vmem:[#allocation6 + $0x158] sm:$0xff]  ;;  %v6794_v63 = vpack.c.bf16 %v87_v55, %v83_v54  ;;  %v91_v1 = vld [vmem:[#allocation6 + $0x140] sm:$0xff]  ;;  %v6826_v2 = vpack.c.bf16 %v89_v58, %v85_v56 }
  0x36   :  { %6821 = vmatprep.subr.bf16.mxu1 %v6820_v44  ;;  %v98_v62 = vld [vmem:[#allocation6 + $0x178] sm:$0xff]  ;;  %v6796_v3 = vpack.c.bf16 %v96_v60, %v92_v59  ;;  %v95_v4 = vld [vmem:[#allocation6 + $0x160] sm:$0xff]  ;;  %v93_v5 = vld [vmem:[#allocation6 + $0x150] sm:$0xff] }
  0x37   :  { %v97_v6 = vld [vmem:[#allocation6 + $0x170] sm:$0xff]  ;;  %v6828_v7 = vpack.c.bf16 %v98_v62, %v94_v61  ;;  %v100_v8 = vld [vmem:[#allocation6 + $0x188] sm:$0xff]  ;;  %v102_v10 = vld [vmem:[#allocation6 + $0x198] sm:$0xff]  ;;  %v6798_v14 = vpack.c.bf16 %v95_v4, %v91_v1 }
  0x38   :  { %6791 = vmatpush1.bf16.msra.mxu0 %v6790_v51  ;;  %v104_v9 = vld [vmem:[#allocation6 + $0x1a8] sm:$0xff]  ;;  %v106_v11 = vld [vmem:[#allocation6 + $0x1b8] sm:$0xff]  ;;  %v99_v12 = vld [vmem:[#allocation6 + $0x180] sm:$0xff]  ;;  %v6830_v18 = vpack.c.bf16 %v97_v6, %v93_v5 }
  0x39   :  { %6823 = vmatpush1.bf16.msra.mxu1 %v6822_v52  ;;  %6793 = vmatprep.subr.bf16.mxu0 %v6792_v53  ;;  %v103_v13 = vld [vmem:[#allocation6 + $0x1a0] sm:$0xff]  ;;  %v101_v15 = vld [vmem:[#allocation6 + $0x190] sm:$0xff]  ;;  %v108_v17 = vld [vmem:[#allocation6 + $0x1c8] sm:$0xff]  ;;  %v6800_v19 = vpack.c.bf16 %v104_v9, %v100_v8  ;;  %v6832_v23 = vpack.c.bf16 %v106_v11, %v102_v10 }
  0x3a   :  { %6825 = vmatprep.subr.bf16.mxu1 %v6824_v57  ;;  %v105_v16 = vld [vmem:[#allocation6 + $0x1b0] sm:$0xff]  ;;  %v112_v20 = vld [vmem:[#allocation6 + $0x1e8] sm:$0xff]  ;;  %v110_v21 = vld [vmem:[#allocation6 + $0x1d8] sm:$0xff]  ;;  %v6802_v30 = vpack.c.bf16 %v103_v13, %v99_v12 }
  0x3b   :  { %v44_v22 = vld [vmem:[#allocation3 + $0x8] sm:$0x1]  ;;  %v45_v24 = vld [vmem:[#allocation3 + $0x10] sm:$0x1]  ;;  %v46_v25 = vld [vmem:[#allocation3 + $0x18] sm:$0x1]  ;;  %v6834_v36 = vpack.c.bf16 %v105_v16, %v101_v15  ;;  %v6804_v37 = vpack.c.bf16 %v112_v20, %v108_v17 }
  0x3c   :  { %6795 = vmatpush1.bf16.msra.mxu0 %v6794_v63  ;;  %v47_v26 = vld [vmem:[#allocation3 + $0x20] sm:$0x1]  ;;  %v114_v27 = vld [vmem:[#allocation6 + $0x1f8] sm:$0xff]  ;;  %v48_v29 = vld [vmem:[#allocation3 + $0x28] sm:$0x1]  ;;  %v123_v33 = vrot.slane %v44_v22, 7 }
  0x3d   :  { %6827 = vmatpush1.bf16.msra.mxu1 %v6826_v2  ;;  %6797 = vmatprep.subr.bf16.mxu0 %v6796_v3  ;;  %v43_v28 = vld [vmem:[#allocation3] sm:$0x1]  ;;  %v49_v32 = vld [vmem:[#allocation3 + $0x30] sm:$0x1]  ;;  %v126_v34 = vrot.slane %v45_v24, 6  ;;  %v129_v35 = vrot.slane %v46_v25, 5  ;;  %v6836_v42 = vpack.c.bf16 %v114_v27, %v110_v21 }
  0x3e   :  { %6829 = vmatprep.subr.bf16.mxu1 %v6828_v7  ;;  %v107_v31 = vld [vmem:[#allocation6 + $0x1c0] sm:$0xff]  ;;  %v109_v39 = vld [vmem:[#allocation6 + $0x1d0] sm:$0xff]  ;;  %v50_v40 = vld [vmem:[#allocation3 + $0x38] sm:$0x1]  ;;  %v132_v41 = vrot.slane %v47_v26, 4  ;;  %v125_v44 = vsel %vm124_vm0, %v123_v33, %v43_v28  ;;  %v135_v45 = vrot.slane %v48_v29, 3 }
  0x3f   :  { %v111_v38 = vld [vmem:[#allocation6 + $0x1e0] sm:$0xff]  ;;  %v113_v43 = vld [vmem:[#allocation6 + $0x1f0] sm:$0xff]  ;;  %v404_v46 = vld [vmem:[#allocation6 + $0x208] sm:$0xff]  ;;  %v128_v48 = vsel %vm127_vm1, %v126_v34, %v125_v44  ;;  %v138_v49 = vrot.slane %v49_v32, 2  ;;  %v141_v54 = vrot.slane %v50_v40, 1 }
  0x40   :  { %6799 = vmatpush1.bf16.msra.mxu0 %v6798_v14  ;;  %v408_v47 = vld [vmem:[#allocation6 + $0x228] sm:$0xff]  ;;  %v406_v50 = vld [vmem:[#allocation6 + $0x218] sm:$0xff]  ;;  %v6806_v52 = vpack.c.bf16 %v111_v38, %v107_v31  ;;  %v131_v53 = vsel %vm130_vm2, %v129_v35, %v128_v48  ;;  %v6838_v55 = vpack.c.bf16 %v113_v43, %v109_v39  ;;  %v403_v58 = vld [vmem:[#allocation6 + $0x200] sm:$0xff] }
  0x41   :  { %6831 = vmatpush1.bf16.msra.mxu1 %v6830_v18  ;;  %6801 = vmatprep.subr.bf16.mxu0 %v6800_v19  ;;  %v410_v51 = vld [vmem:[#allocation6 + $0x238] sm:$0xff]  ;;  %v134_v56 = vsel %vm133_vm3, %v132_v41, %v131_v53  ;;  %v6840_v57 = vpack.c.bf16 %v408_v47, %v404_v46  ;;  %v407_v59 = vld [vmem:[#allocation6 + $0x220] sm:$0xff]  ;;  %v405_v60 = vld [vmem:[#allocation6 + $0x210] sm:$0xff] }
  0x42   :  { %6833 = vmatprep.subr.bf16.mxu1 %v6832_v23  ;;  %v137_v61 = vsel %vm136_vm4, %v135_v45, %v134_v56  ;;  %v6872_v62 = vpack.c.bf16 %v410_v51, %v406_v50  ;;  %v409_v63 = vld [vmem:[#allocation6 + $0x230] sm:$0xff]  ;;  %v412_v1 = vld [vmem:[#allocation6 + $0x248] sm:$0xff]  ;;  %v414_v4 = vld [vmem:[#allocation6 + $0x258] sm:$0xff]  ;;  %v6842_v7 = vpack.c.bf16 %v407_v59, %v403_v58 }
  0x43   :  { %v416_v2 = vld [vmem:[#allocation6 + $0x268] sm:$0xff]  ;;  %v140_v3 = vsel %vm139_vm5, %v138_v49, %v137_v61  ;;  %v418_v5 = vld [vmem:[#allocation6 + $0x278] sm:$0xff]  ;;  %v6874_v8 = vpack.c.bf16 %v409_v63, %v405_v60  ;;  %v411_v10 = vld [vmem:[#allocation6 + $0x240] sm:$0xff] }
  0x44   :  { %6803 = vmatpush1.bf16.msra.mxu0 %v6802_v30  ;;  %v143_v6 = vsel %vm142_vm6, %v141_v54, %v140_v3  ;;  %v6844_v9 = vpack.c.bf16 %v416_v2, %v412_v1  ;;  %v415_v11 = vld [vmem:[#allocation6 + $0x260] sm:$0xff]  ;;  %v413_v12 = vld [vmem:[#allocation6 + $0x250] sm:$0xff]  ;;  %v6876_v13 = vpack.c.bf16 %v418_v5, %v414_v4  ;;  %v420_v15 = vld [vmem:[#allocation6 + $0x288] sm:$0xff] }
  0x45   :  { %6835 = vmatpush1.bf16.msra.mxu1 %v6834_v36  ;;  %6805 = vmatprep.subr.bf16.mxu0 %v6804_v37  ;;  %v417_v14 = vld [vmem:[#allocation6 + $0x270] sm:$0xff]  ;;  %v424_v16 = vld [vmem:[#allocation6 + $0x2a8] sm:$0xff]  ;;  %v422_v17 = vld [vmem:[#allocation6 + $0x298] sm:$0xff]  ;;  %v6846_v19 = vpack.c.bf16 %v415_v11, %v411_v10 }
  0x46   :  { %6837 = vmatprep.subr.bf16.mxu1 %v6836_v42  ;;  %v426_v18 = vld [vmem:[#allocation6 + $0x2b8] sm:$0xff]  ;;  %v6878_v20 = vpack.c.bf16 %v417_v14, %v413_v12  ;;  %v6848_v21 = vpack.c.bf16 %v424_v16, %v420_v15  ;;  %v419_v22 = vld [vmem:[#allocation6 + $0x280] sm:$0xff]  ;;  %v421_v24 = vld [vmem:[#allocation6 + $0x290] sm:$0xff] }
  0x47   :  { %v423_v23 = vld [vmem:[#allocation6 + $0x2a0] sm:$0xff]  ;;  %v6880_v25 = vpack.c.bf16 %v426_v18, %v422_v17  ;;  %v425_v26 = vld [vmem:[#allocation6 + $0x2b0] sm:$0xff]  ;;  %v428_v27 = vld [vmem:[#allocation6 + $0x2c8] sm:$0xff] }
  0x48   :  { %6807 = vmatpush1.bf16.msra.mxu0 %v6806_v52  ;;  %v432_v28 = vld [vmem:[#allocation6 + $0x2e8] sm:$0xff]  ;;  %v430_v29 = vld [vmem:[#allocation6 + $0x2d8] sm:$0xff]  ;;  %v6850_v31 = vpack.c.bf16 %v423_v23, %v419_v22  ;;  %v6882_v32 = vpack.c.bf16 %v425_v26, %v421_v24  ;;  %v427_v34 = vld [vmem:[#allocation6 + $0x2c0] sm:$0xff] }
  0x49   :  { %6839 = vmatpush1.bf16.msra.mxu1 %v6838_v55  ;;  %6841 = vmatprep.subr.bf16.mxu0 %v6840_v57  ;;  %v434_v30 = vld [vmem:[#allocation6 + $0x2f8] sm:$0xff]  ;;  %v6852_v33 = vpack.c.bf16 %v432_v28, %v428_v27  ;;  %v431_v35 = vld [vmem:[#allocation6 + $0x2e0] sm:$0xff]  ;;  %v429_v36 = vld [vmem:[#allocation6 + $0x2d0] sm:$0xff] }
  0x4a   :  { %6873 = vmatprep.subr.bf16.mxu1 %v6872_v62  ;;  %v6884_v37 = vpack.c.bf16 %v434_v30, %v430_v29  ;;  %v433_v38 = vld [vmem:[#allocation6 + $0x2f0] sm:$0xff]  ;;  %v436_v39 = vld [vmem:[#allocation6 + $0x308] sm:$0xff]  ;;  %v438_v41 = vld [vmem:[#allocation6 + $0x318] sm:$0xff]  ;;  %v6854_v43 = vpack.c.bf16 %v431_v35, %v427_v34 }
  0x4b   :  { %210 = vmatmul.mubr.f32.vlgmr.msra.gmra.mrb[0].mxu0 %v143_v6  ;;  %v440_v40 = vld [vmem:[#allocation6 + $0x328] sm:$0xff]  ;;  %v442_v42 = vld [vmem:[#allocation6 + $0x338] sm:$0xff]  ;;  %v435_v44 = vld [vmem:[#allocation6 + $0x300] sm:$0xff]  ;;  %v6886_v47 = vpack.c.bf16 %v433_v38, %v429_v36 }
  0x4c   :  { %281 = vmatmul.mubr.f32.vlgmr.msra.gmra.mrb[0].mxu1 %v143_v6  ;;  %6843 = vmatpush1.bf16.msra.mxu0 %v6842_v7  ;;  %v439_v45 = vld [vmem:[#allocation6 + $0x320] sm:$0xff]  ;;  %v437_v46 = vld [vmem:[#allocation6 + $0x310] sm:$0xff]  ;;  %v6856_v48 = vpack.c.bf16 %v440_v40, %v436_v39  ;;  %v444_v50 = vld [vmem:[#allocation6 + $0x348] sm:$0xff]  ;;  %v6888_v52 = vpack.c.bf16 %v442_v42, %v438_v41 }
  0x4d   :  { %6875 = vmatpush1.bf16.msra.mxu1 %v6874_v8  ;;  %6845 = vmatprep.subr.bf16.mxu0 %v6844_v9  ;;  %v441_v49 = vld [vmem:[#allocation6 + $0x330] sm:$0xff]  ;;  %v448_v51 = vld [vmem:[#allocation6 + $0x368] sm:$0xff]  ;;  %v397_v55 = vld [vmem:[#allocation3 + $0x19] sm:$0x1]  ;;  %v6858_v59 = vpack.c.bf16 %v439_v45, %v435_v44 }
  0x4e   :  { %6877 = vmatprep.subr.bf16.mxu1 %v6876_v13  ;;  %554 = vmatprep.mubr.f32.mxu0 %v8139_v0  ;;  %v395_v53 = vld [vmem:[#allocation3 + $0x9] sm:$0x1]  ;;  %v396_v54 = vld [vmem:[#allocation3 + $0x11] sm:$0x1]  ;;  %v446_v56 = vld [vmem:[#allocation6 + $0x358] sm:$0xff]  ;;  %v479_v63 = vrot.slane %v397_v55, 5  ;;  %v6890_v1 = vpack.c.bf16 %v441_v49, %v437_v46  ;;  %v6860_v2 = vpack.c.bf16 %v448_v51, %v444_v50 }
  0x4f   :  { %625 = vmatprep.mubr.f32.mxu1 %v8139_v0  ;;  %v450_v57 = vld [vmem:[#allocation6 + $0x378] sm:$0xff]  ;;  %v394_v58 = vld [vmem:[#allocation3 + $0x1] sm:$0x1]  ;;  %v475_v61 = vrot.slane %v395_v53, 7  ;;  %v477_v62 = vrot.slane %v396_v54, 6  ;;  %v445_v5 = vld [vmem:[#allocation6 + $0x350] sm:$0xff] }
  0x50   :  { %6847 = vmatpush1.bf16.msra.mxu0 %v6846_v19  ;;  %v398_v60 = vld [vmem:[#allocation3 + $0x21] sm:$0x1]  ;;  %v6892_v6 = vpack.c.bf16 %v450_v57, %v446_v56  ;;  %v449_v7 = vld [vmem:[#allocation6 + $0x370] sm:$0xff]  ;;  %v452_v8 = vld [vmem:[#allocation6 + $0x388] sm:$0xff] }
  0x51   :  { %6879 = vmatpush1.bf16.msra.mxu1 %v6878_v20  ;;  %6849 = vmatprep.subr.bf16.mxu0 %v6848_v21  ;;  %v443_v3 = vld [vmem:[#allocation6 + $0x340] sm:$0xff]  ;;  %v456_v9 = vld [vmem:[#allocation6 + $0x3a8] sm:$0xff]  ;;  %v476_v10 = vsel %vm124_vm0, %v475_v61, %v394_v58  ;;  %v454_v11 = vld [vmem:[#allocation6 + $0x398] sm:$0xff]  ;;  %v481_v15 = vrot.slane %v398_v60, 4  ;;  %v6894_v19 = vpack.c.bf16 %v449_v7, %v445_v5 }
  0x52   :  { %6881 = vmatprep.subr.bf16.mxu1 %v6880_v25  ;;  %v447_v4 = vld [vmem:[#allocation6 + $0x360] sm:$0xff]  ;;  %v458_v12 = vld [vmem:[#allocation6 + $0x3b8] sm:$0xff]  ;;  %v399_v13 = vld [vmem:[#allocation3 + $0x29] sm:$0x1]  ;;  %v478_v14 = vsel %vm127_vm1, %v477_v62, %v476_v10  ;;  %v6864_v20 = vpack.c.bf16 %v456_v9, %v452_v8 }
  0x53   :  { %v6862_v16 = vpack.c.bf16 %v447_v4, %v443_v3  ;;  %v451_v17 = vld [vmem:[#allocation6 + $0x380] sm:$0xff]  ;;  %v480_v18 = vsel %vm130_vm2, %v479_v63, %v478_v14  ;;  %v453_v22 = vld [vmem:[#allocation6 + $0x390] sm:$0xff]  ;;  %v6896_v24 = vpack.c.bf16 %v458_v12, %v454_v11  ;;  %v460_v25 = vld [vmem:[#allocation6 + $0x3c8] sm:$0xff]  ;;  %v483_v28 = vrot.slane %v399_v13, 3 }
  0x54   :  { %6851 = vmatpush1.bf16.msra.mxu0 %v6850_v31  ;;  %v455_v21 = vld [vmem:[#allocation6 + $0x3a0] sm:$0xff]  ;;  %v457_v23 = vld [vmem:[#allocation6 + $0x3b0] sm:$0xff]  ;;  %v464_v26 = vld [vmem:[#allocation6 + $0x3e8] sm:$0xff]  ;;  %v482_v31 = vsel %vm133_vm3, %v481_v15, %v480_v18 }
  0x55   :  { %6883 = vmatpush1.bf16.msra.mxu1 %v6882_v32  ;;  %6853 = vmatprep.subr.bf16.mxu0 %v6852_v33  ;;  %v400_v27 = vld [vmem:[#allocation3 + $0x31] sm:$0x1]  ;;  %v462_v29 = vld [vmem:[#allocation6 + $0x3d8] sm:$0xff]  ;;  %v6866_v32 = vpack.c.bf16 %v455_v21, %v451_v17  ;;  %v459_v33 = vld [vmem:[#allocation6 + $0x3c0] sm:$0xff]  ;;  %v6898_v34 = vpack.c.bf16 %v457_v23, %v453_v22  ;;  %v6868_v35 = vpack.c.bf16 %v464_v26, %v460_v25 }
  0x56   :  { %6885 = vmatprep.subr.bf16.mxu1 %v6884_v37  ;;  %v466_v30 = vld [vmem:[#allocation6 + $0x3f8] sm:$0xff]  ;;  %v463_v36 = vld [vmem:[#allocation6 + $0x3e0] sm:$0xff]  ;;  %v461_v37 = vld [vmem:[#allocation6 + $0x3d0] sm:$0xff]  ;;  %v485_v39 = vrot.slane %v400_v27, 2  ;;  %v484_v42 = vsel %vm136_vm4, %v483_v28, %v482_v31 }
  0x57   :  { %v401_v38 = vld [vmem:[#allocation3 + $0x39] sm:$0x1]  ;;  %v6900_v40 = vpack.c.bf16 %v466_v30, %v462_v29  ;;  %v465_v41 = vld [vmem:[#allocation6 + $0x3f0] sm:$0xff]  ;;  %v750_v44 = vld [vmem:[#allocation6 + $0x428] sm:$0xff] }
  0x58   :  { %6855 = vmatpush1.bf16.msra.mxu0 %v6854_v43  ;;  %v746_v43 = vld [vmem:[#allocation6 + $0x408] sm:$0xff]  ;;  %v748_v45 = vld [vmem:[#allocation6 + $0x418] sm:$0xff]  ;;  %v6902_v49 = vpack.c.bf16 %v465_v41, %v461_v37  ;;  %v486_v50 = vsel %vm139_vm5, %v485_v39, %v484_v42  ;;  %v749_v53 = vld [vmem:[#allocation6 + $0x420] sm:$0xff] }
  0x59   :  { %6887 = vmatpush1.bf16.msra.mxu1 %v6886_v47  ;;  %6857 = vmatprep.subr.bf16.mxu0 %v6856_v48  ;;  %v752_v46 = vld [vmem:[#allocation6 + $0x438] sm:$0xff]  ;;  %v6870_v47 = vpack.c.bf16 %v463_v36, %v459_v33  ;;  %v487_v48 = vrot.slane %v401_v38, 1  ;;  %v6904_v51 = vpack.c.bf16 %v750_v44, %v746_v43  ;;  %v747_v54 = vld [vmem:[#allocation6 + $0x410] sm:$0xff]  ;;  %v754_v57 = vld [vmem:[#allocation6 + $0x448] sm:$0xff] }
  0x5a   :  { %6889 = vmatprep.subr.bf16.mxu1 %v6888_v52  ;;  %v745_v52 = vld [vmem:[#allocation6 + $0x400] sm:$0xff]  ;;  %v6936_v55 = vpack.c.bf16 %v752_v46, %v748_v45  ;;  %v751_v56 = vld [vmem:[#allocation6 + $0x430] sm:$0xff]  ;;  %v758_v58 = vld [vmem:[#allocation6 + $0x468] sm:$0xff] }
  0x5b   :  { %v760_v60 = vld [vmem:[#allocation6 + $0x478] sm:$0xff]  ;;  %v488_v61 = vsel %vm142_vm6, %v487_v48, %v486_v50  ;;  %v6906_v62 = vpack.c.bf16 %v749_v53, %v745_v52  ;;  %v6938_v63 = vpack.c.bf16 %v751_v56, %v747_v54  ;;  %v757_v3 = vld [vmem:[#allocation6 + $0x460] sm:$0xff]  ;;  %v755_v4 = vld [vmem:[#allocation6 + $0x450] sm:$0xff] }
  0x5c   :  { %6859 = vmatpush1.bf16.msra.mxu0 %v6858_v59  ;;  %v756_v59 = vld [vmem:[#allocation6 + $0x458] sm:$0xff]  ;;  %v762_v7 = vld [vmem:[#allocation6 + $0x488] sm:$0xff]  ;;  %v761_v14 = vld [vmem:[#allocation6 + $0x480] sm:$0xff] }
  0x5d   :  { %6891 = vmatpush1.bf16.msra.mxu1 %v6890_v1  ;;  %6861 = vmatprep.subr.bf16.mxu0 %v6860_v2  ;;  %v6908_v1 = vpack.c.bf16 %v758_v58, %v754_v57  ;;  %v753_v2 = vld [vmem:[#allocation6 + $0x440] sm:$0xff]  ;;  %v6940_v5 = vpack.c.bf16 %v760_v60, %v756_v59  ;;  %v766_v8 = vld [vmem:[#allocation6 + $0x4a8] sm:$0xff]  ;;  %v764_v9 = vld [vmem:[#allocation6 + $0x498] sm:$0xff] }
  0x5e   :  { %6893 = vmatprep.subr.bf16.mxu1 %v6892_v6  ;;  %v759_v6 = vld [vmem:[#allocation6 + $0x470] sm:$0xff]  ;;  %v768_v10 = vld [vmem:[#allocation6 + $0x4b8] sm:$0xff]  ;;  %v6910_v11 = vpack.c.bf16 %v757_v3, %v753_v2  ;;  %v6912_v13 = vpack.c.bf16 %v766_v8, %v762_v7  ;;  %v765_v15 = vld [vmem:[#allocation6 + $0x4a0] sm:$0xff] }
  0x5f   :  { %v6942_v12 = vpack.c.bf16 %v759_v6, %v755_v4  ;;  %v6944_v17 = vpack.c.bf16 %v768_v10, %v764_v9  ;;  %v767_v18 = vld [vmem:[#allocation6 + $0x4b0] sm:$0xff]  ;;  %v772_v21 = vld [vmem:[#allocation6 + $0x4d8] sm:$0xff]  ;;  %v737_v23 = vld [vmem:[#allocation3 + $0xa] sm:$0x1] }
  0x60   :  { %6863 = vmatpush1.bf16.msra.mxu0 %v6862_v16  ;;  %v763_v16 = vld [vmem:[#allocation6 + $0x490] sm:$0xff]  ;;  %v776_v22 = vld [vmem:[#allocation6 + $0x4f8] sm:$0xff]  ;;  %v769_v25 = vld [vmem:[#allocation6 + $0x4c0] sm:$0xff] }
  0x61   :  { %6895 = vmatpush1.bf16.msra.mxu1 %v6894_v19  ;;  %6865 = vmatprep.subr.bf16.mxu0 %v6864_v20  ;;  %v770_v19 = vld [vmem:[#allocation6 + $0x4c8] sm:$0xff]  ;;  %v6946_v26 = vpack.c.bf16 %v767_v18, %v763_v16  ;;  %v773_v28 = vld [vmem:[#allocation6 + $0x4e0] sm:$0xff]  ;;  %v771_v29 = vld [vmem:[#allocation6 + $0x4d0] sm:$0xff]  ;;  %v6948_v31 = vpack.c.bf16 %v776_v22, %v772_v21 }
  0x62   :  { %6897 = vmatprep.subr.bf16.mxu1 %v6896_v24  ;;  %v774_v20 = vld [vmem:[#allocation6 + $0x4e8] sm:$0xff]  ;;  %v6914_v24 = vpack.c.bf16 %v765_v15, %v761_v14  ;;  %v775_v30 = vld [vmem:[#allocation6 + $0x4f0] sm:$0xff]  ;;  %v780_v36 = vld [vmem:[#allocation6 + $0x518] sm:$0xff]  ;;  %v6918_v39 = vpack.c.bf16 %v773_v28, %v769_v25 }
  0x63   :  { %v6916_v27 = vpack.c.bf16 %v774_v20, %v770_v19  ;;  %v782_v33 = vld [vmem:[#allocation6 + $0x528] sm:$0xff]  ;;  %v784_v37 = vld [vmem:[#allocation6 + $0x538] sm:$0xff]  ;;  %v736_v38 = vld [vmem:[#allocation3 + $0x2] sm:$0x1]  ;;  %v6950_v41 = vpack.c.bf16 %v775_v30, %v771_v29 }
  0x64   :  { %6867 = vmatpush1.bf16.msra.mxu0 %v6866_v32  ;;  %v778_v32 = vld [vmem:[#allocation6 + $0x508] sm:$0xff]  ;;  %v781_v43 = vld [vmem:[#allocation6 + $0x520] sm:$0xff]  ;;  %v779_v44 = vld [vmem:[#allocation6 + $0x510] sm:$0xff] }
  0x65   :  { %6899 = vmatpush1.bf16.msra.mxu1 %v6898_v34  ;;  %6869 = vmatprep.subr.bf16.mxu0 %v6868_v35  ;;  %v738_v34 = vld [vmem:[#allocation3 + $0x12] sm:$0x1]  ;;  %v817_v35 = vrot.slane %v737_v23, 7  ;;  %v6920_v42 = vpack.c.bf16 %v782_v33, %v778_v32  ;;  %v739_v45 = vld [vmem:[#allocation3 + $0x1a] sm:$0x1]  ;;  %v790_v50 = vld [vmem:[#allocation6 + $0x568] sm:$0xff] }
  0x66   :  { %6901 = vmatprep.subr.bf16.mxu1 %v6900_v40  ;;  %v777_v40 = vld [vmem:[#allocation6 + $0x500] sm:$0xff]  ;;  %v819_v46 = vrot.slane %v738_v34, 6  ;;  %v783_v48 = vld [vmem:[#allocation6 + $0x530] sm:$0xff]  ;;  %v788_v52 = vld [vmem:[#allocation6 + $0x558] sm:$0xff]  ;;  %v821_v56 = vrot.slane %v739_v45, 5 }
  0x67   :  { %v792_v53 = vld [vmem:[#allocation6 + $0x578] sm:$0xff]  ;;  %v6922_v54 = vpack.c.bf16 %v781_v43, %v777_v40  ;;  %v6954_v57 = vpack.c.bf16 %v783_v48, %v779_v44  ;;  %v785_v59 = vld [vmem:[#allocation6 + $0x540] sm:$0xff]  ;;  %v794_v2 = vld [vmem:[#allocation6 + $0x588] sm:$0xff] }
  0x68   :  { %6871 = vmatpush1.bf16.msra.mxu0 %v6870_v47  ;;  %v6952_v47 = vpack.c.bf16 %v784_v37, %v780_v36  ;;  %v789_v60 = vld [vmem:[#allocation6 + $0x560] sm:$0xff]  ;;  %v798_v3 = vld [vmem:[#allocation6 + $0x5a8] sm:$0xff]  ;;  %v796_v4 = vld [vmem:[#allocation6 + $0x598] sm:$0xff] }
  0x69   :  { %6903 = vmatpush1.bf16.msra.mxu1 %v6902_v49  ;;  %6905 = vmatprep.subr.bf16.mxu0 %v6904_v51  ;;  %v786_v49 = vld [vmem:[#allocation6 + $0x548] sm:$0xff]  ;;  %v818_v51 = vsel %vm124_vm0, %v817_v35, %v736_v38  ;;  %v6926_v8 = vpack.c.bf16 %v789_v60, %v785_v59  ;;  %v793_v9 = vld [vmem:[#allocation6 + $0x580] sm:$0xff]  ;;  %v795_v14 = vld [vmem:[#allocation6 + $0x590] sm:$0xff] }
  0x6a   :  { %6937 = vmatprep.subr.bf16.mxu1 %v6936_v55  ;;  %v740_v55 = vld [vmem:[#allocation3 + $0x22] sm:$0x1]  ;;  %v6924_v58 = vpack.c.bf16 %v790_v50, %v786_v49  ;;  %v741_v6 = vld [vmem:[#allocation3 + $0x2a] sm:$0x1]  ;;  %v799_v15 = vld [vmem:[#allocation6 + $0x5b0] sm:$0xff] }
  0x6b   :  { %555 = vmatmul.mubr.f32.vlgmr.msra.gmra.mrb[2].mxu0 %v488_v61  ;;  %v823_v7 = vrot.slane %v740_v55, 4  ;;  %v806_v18 = vld [vmem:[#allocation6 + $0x5e8] sm:$0xff]  ;;  %v742_v19 = vld [vmem:[#allocation3 + $0x32] sm:$0x1]  ;;  %v825_v20 = vrot.slane %v741_v6, 3  ;;  %v804_v21 = vld [vmem:[#allocation6 + $0x5d8] sm:$0xff] }
  0x6c   :  { %626 = vmatmul.mubr.f32.vlgmr.msra.gmra.mrb[2].mxu1 %v488_v61  ;;  %6907 = vmatpush1.bf16.msra.mxu0 %v6906_v62  ;;  %v787_v61 = vld [vmem:[#allocation6 + $0x550] sm:$0xff]  ;;  %v820_v62 = vsel %vm127_vm1, %v819_v46, %v818_v51  ;;  %v808_v22 = vld [vmem:[#allocation6 + $0x5f8] sm:$0xff]  ;;  %v801_v25 = vld [vmem:[#allocation6 + $0x5c0] sm:$0xff] }
  0x6d   :  { %6939 = vmatpush1.bf16.msra.mxu1 %v6938_v63  ;;  %6909 = vmatprep.subr.bf16.mxu0 %v6908_v1  ;;  %v6956_v63 = vpack.c.bf16 %v792_v53, %v788_v52  ;;  %v791_v1 = vld [vmem:[#allocation6 + $0x570] sm:$0xff]  ;;  %v822_v10 = vsel %vm130_vm2, %v821_v56, %v820_v62  ;;  %v805_v28 = vld [vmem:[#allocation6 + $0x5e0] sm:$0xff]  ;;  %v743_v30 = vld [vmem:[#allocation3 + $0x3a] sm:$0x1]  ;;  %v6964_v32 = vpack.c.bf16 %v808_v22, %v804_v21 }
  0x6e   :  { %6941 = vmatprep.subr.bf16.mxu1 %v6940_v5  ;;  %896 = vmatprep.mubr.f32.mxu0 %v8139_v0  ;;  %v800_v5 = vld [vmem:[#allocation6 + $0x5b8] sm:$0xff]  ;;  %v824_v23 = vsel %vm133_vm3, %v823_v7, %v822_v10  ;;  %v803_v29 = vld [vmem:[#allocation6 + $0x5d0] sm:$0xff]  ;;  %v1088_v35 = vld [vmem:[#allocation6 + $0x608] sm:$0xff]  ;;  %v829_v40 = vrot.slane %v743_v30, 1 }
  0x6f   :  { %967 = vmatprep.mubr.f32.mxu1 %v8139_v0  ;;  %v6960_v16 = vpack.c.bf16 %v800_v5, %v796_v4  ;;  %v807_v33 = vld [vmem:[#allocation6 + $0x5f0] sm:$0xff]  ;;  %v826_v34 = vsel %vm136_vm4, %v825_v20, %v824_v23  ;;  %v1092_v36 = vld [vmem:[#allocation6 + $0x628] sm:$0xff]  ;;  %v1090_v37 = vld [vmem:[#allocation6 + $0x618] sm:$0xff] }
  0x70   :  { %6911 = vmatpush1.bf16.msra.mxu0 %v6910_v11  ;;  %v6958_v11 = vpack.c.bf16 %v791_v1, %v787_v61  ;;  %v1094_v38 = vld [vmem:[#allocation6 + $0x638] sm:$0xff]  ;;  %v6968_v43 = vpack.c.bf16 %v1092_v36, %v1088_v35  ;;  %v1087_v44 = vld [vmem:[#allocation6 + $0x600] sm:$0xff]  ;;  %v1089_v46 = vld [vmem:[#allocation6 + $0x610] sm:$0xff] }
  0x71   :  { %6943 = vmatpush1.bf16.msra.mxu1 %v6942_v12  ;;  %6913 = vmatprep.subr.bf16.mxu0 %v6912_v13  ;;  %v6928_v12 = vpack.c.bf16 %v798_v3, %v794_v2  ;;  %v797_v13 = vld [vmem:[#allocation6 + $0x5a0] sm:$0xff]  ;;  %v1093_v48 = vld [vmem:[#allocation6 + $0x630] sm:$0xff]  ;;  %v1096_v49 = vld [vmem:[#allocation6 + $0x648] sm:$0xff] }
  0x72   :  { %6945 = vmatprep.subr.bf16.mxu1 %v6944_v17  ;;  %v802_v17 = vld [vmem:[#allocation6 + $0x5c8] sm:$0xff]  ;;  %v1091_v45 = vld [vmem:[#allocation6 + $0x620] sm:$0xff]  ;;  %v1098_v51 = vld [vmem:[#allocation6 + $0x658] sm:$0xff]  ;;  %v7002_v55 = vpack.c.bf16 %v1093_v48, %v1089_v46 }
  0x73   :  { %v1100_v50 = vld [vmem:[#allocation6 + $0x668] sm:$0xff]  ;;  %v1102_v52 = vld [vmem:[#allocation6 + $0x678] sm:$0xff]  ;;  %v1097_v59 = vld [vmem:[#allocation6 + $0x650] sm:$0xff] }
  0x74   :  { %6915 = vmatpush1.bf16.msra.mxu0 %v6914_v24  ;;  %v6930_v24 = vpack.c.bf16 %v797_v13, %v793_v9  ;;  %v6972_v56 = vpack.c.bf16 %v1100_v50, %v1096_v49  ;;  %v7004_v60 = vpack.c.bf16 %v1102_v52, %v1098_v51  ;;  %v1101_v61 = vld [vmem:[#allocation6 + $0x670] sm:$0xff]  ;;  %v1104_v62 = vld [vmem:[#allocation6 + $0x688] sm:$0xff]  ;;  %v1106_v1 = vld [vmem:[#allocation6 + $0x698] sm:$0xff] }
  0x75   :  { %6947 = vmatpush1.bf16.msra.mxu1 %v6946_v26  ;;  %6917 = vmatprep.subr.bf16.mxu0 %v6916_v27  ;;  %v6962_v26 = vpack.c.bf16 %v799_v15, %v795_v14  ;;  %v6932_v27 = vpack.c.bf16 %v806_v18, %v802_v17  ;;  %v1110_v2 = vld [vmem:[#allocation6 + $0x6b8] sm:$0xff]  ;;  %v7006_v4 = vpack.c.bf16 %v1101_v61, %v1097_v59  ;;  %v1103_v6 = vld [vmem:[#allocation6 + $0x680] sm:$0xff]  ;;  %v1109_v10 = vld [vmem:[#allocation6 + $0x6b0] sm:$0xff] }
  0x76   :  { %6949 = vmatprep.subr.bf16.mxu1 %v6948_v31  ;;  %v827_v31 = vrot.slane %v742_v19, 2  ;;  %v1107_v7 = vld [vmem:[#allocation6 + $0x6a0] sm:$0xff]  ;;  %v7008_v9 = vpack.c.bf16 %v1110_v2, %v1106_v1  ;;  %v1114_v13 = vld [vmem:[#allocation6 + $0x6d8] sm:$0xff]  ;;  %v1079_v15 = vld [vmem:[#allocation3 + $0xb] sm:$0x1] }
  0x77   :  { %v1118_v14 = vld [vmem:[#allocation6 + $0x6f8] sm:$0xff]  ;;  %v1111_v17 = vld [vmem:[#allocation6 + $0x6c0] sm:$0xff]  ;;  %v1113_v21 = vld [vmem:[#allocation6 + $0x6d0] sm:$0xff] }
  0x78   :  { %6919 = vmatpush1.bf16.msra.mxu0 %v6918_v39  ;;  %v6934_v39 = vpack.c.bf16 %v805_v28, %v801_v25  ;;  %v1115_v20 = vld [vmem:[#allocation6 + $0x6e0] sm:$0xff]  ;;  %v1117_v22 = vld [vmem:[#allocation6 + $0x6f0] sm:$0xff]  ;;  %v7012_v23 = vpack.c.bf16 %v1118_v14, %v1114_v13  ;;  %v1124_v25 = vld [vmem:[#allocation6 + $0x728] sm:$0xff] }
  0x79   :  { %6951 = vmatpush1.bf16.msra.mxu1 %v6950_v41  ;;  %6921 = vmatprep.subr.bf16.mxu0 %v6920_v42  ;;  %v6966_v41 = vpack.c.bf16 %v807_v33, %v803_v29  ;;  %v828_v42 = vsel %vm139_vm5, %v827_v31, %v826_v34  ;;  %v1122_v28 = vld [vmem:[#allocation6 + $0x718] sm:$0xff]  ;;  %v1078_v30 = vld [vmem:[#allocation3 + $0x3] sm:$0x1]  ;;  %v6982_v31 = vpack.c.bf16 %v1115_v20, %v1111_v17  ;;  %v1121_v36 = vld [vmem:[#allocation6 + $0x710] sm:$0xff] }
  0x7a   :  { %6953 = vmatprep.subr.bf16.mxu1 %v6952_v47  ;;  %v7000_v47 = vpack.c.bf16 %v1094_v38, %v1090_v37  ;;  %v830_v53 = vsel %vm142_vm6, %v829_v40, %v828_v42  ;;  %v1126_v29 = vld [vmem:[#allocation6 + $0x738] sm:$0xff]  ;;  %v7014_v33 = vpack.c.bf16 %v1117_v22, %v1113_v21  ;;  %v1123_v35 = vld [vmem:[#allocation6 + $0x720] sm:$0xff]  ;;  %v1125_v40 = vld [vmem:[#allocation6 + $0x730] sm:$0xff] }
  0x7b   :  { %v1081_v37 = vld [vmem:[#allocation3 + $0x1b] sm:$0x1]  ;;  %v1132_v42 = vld [vmem:[#allocation6 + $0x768] sm:$0xff]  ;;  %v7018_v49 = vpack.c.bf16 %v1125_v40, %v1121_v36  ;;  %v1127_v51 = vld [vmem:[#allocation6 + $0x740] sm:$0xff] }
  0x7c   :  { %6923 = vmatpush1.bf16.msra.mxu0 %v6922_v54  ;;  %v6970_v54 = vpack.c.bf16 %v1091_v45, %v1087_v44  ;;  %v1130_v44 = vld [vmem:[#allocation6 + $0x758] sm:$0xff]  ;;  %v1163_v48 = vrot.slane %v1081_v37, 5  ;;  %v1131_v52 = vld [vmem:[#allocation6 + $0x760] sm:$0xff]  ;;  %v1083_v61 = vld [vmem:[#allocation3 + $0x2b] sm:$0x1] }
  0x7d   :  { %6955 = vmatpush1.bf16.msra.mxu1 %v6954_v57  ;;  %6925 = vmatprep.subr.bf16.mxu0 %v6924_v58  ;;  %v1095_v57 = vld [vmem:[#allocation6 + $0x640] sm:$0xff]  ;;  %v1134_v45 = vld [vmem:[#allocation6 + $0x778] sm:$0xff]  ;;  %v1145_v21 = vld [vmem:[#allocation6 + $0x7d0] sm:$0xff] }
  0x7e   :  { %6957 = vmatprep.subr.bf16.mxu1 %v6956_v63  ;;  %v1099_v58 = vld [vmem:[#allocation6 + $0x660] sm:$0xff]  ;;  %v1108_v63 = vld [vmem:[#allocation6 + $0x6a8] sm:$0xff]  ;;  %v1138_v59 = vld [vmem:[#allocation6 + $0x798] sm:$0xff] }
  0x7f   :  { %v6974_v3 = vpack.c.bf16 %v1099_v58, %v1095_v57  ;;  %v6976_v5 = vpack.c.bf16 %v1108_v63, %v1104_v62  ;;  %v1136_v57 = vld [vmem:[#allocation6 + $0x788] sm:$0xff]  ;;  %v6990_v63 = vpack.c.bf16 %v1131_v52, %v1127_v51  ;;  %v1135_v1 = vld [vmem:[#allocation6 + $0x780] sm:$0xff]  ;;  %v1146_v13 = vld [vmem:[#allocation6 + $0x7d8] sm:$0xff] }
  0x80   :  { %6927 = vmatpush1.bf16.msra.mxu0 %v6926_v8  ;;  %v1105_v8 = vld [vmem:[#allocation6 + $0x690] sm:$0xff]  ;;  %v1140_v58 = vld [vmem:[#allocation6 + $0x7a8] sm:$0xff]  ;;  %v1150_v14 = vld [vmem:[#allocation6 + $0x7f8] sm:$0xff] }
  0x81   :  { %6959 = vmatpush1.bf16.msra.mxu1 %v6958_v11  ;;  %6929 = vmatprep.subr.bf16.mxu0 %v6928_v12  ;;  %v1112_v11 = vld [vmem:[#allocation6 + $0x6c8] sm:$0xff]  ;;  %v7010_v18 = vpack.c.bf16 %v1109_v10, %v1105_v8  ;;  %v1143_v17 = vld [vmem:[#allocation6 + $0x7c0] sm:$0xff]  ;;  %v1085_v22 = vld [vmem:[#allocation3 + $0x3b] sm:$0x1] }
  0x82   :  { %6961 = vmatprep.subr.bf16.mxu1 %v6960_v16  ;;  %v1116_v12 = vld [vmem:[#allocation6 + $0x6e8] sm:$0xff]  ;;  %v6978_v16 = vpack.c.bf16 %v1107_v7, %v1103_v6  ;;  %v1137_v6 = vld [vmem:[#allocation6 + $0x790] sm:$0xff]  ;;  %v1147_v20 = vld [vmem:[#allocation6 + $0x7e0] sm:$0xff] }
  0x83   :  { %v6980_v19 = vpack.c.bf16 %v1116_v12, %v1112_v11  ;;  %v1141_v7 = vld [vmem:[#allocation6 + $0x7b0] sm:$0xff]  ;;  %v1148_v10 = vld [vmem:[#allocation6 + $0x7e8] sm:$0xff]  ;;  %v1167_v12 = vrot.slane %v1083_v61, 3  ;;  %v1429_v36 = vld [vmem:[#allocation6 + $0x800] sm:$0xff] }
  0x84   :  { %6931 = vmatpush1.bf16.msra.mxu0 %v6930_v24  ;;  %v1120_v24 = vld [vmem:[#allocation6 + $0x708] sm:$0xff]  ;;  %v1084_v11 = vld [vmem:[#allocation3 + $0x33] sm:$0x1]  ;;  %v1433_v37 = vld [vmem:[#allocation6 + $0x820] sm:$0xff] }
  0x85   :  { %6963 = vmatpush1.bf16.msra.mxu1 %v6962_v26  ;;  %6933 = vmatprep.subr.bf16.mxu0 %v6932_v27  ;;  %v1080_v26 = vld [vmem:[#allocation3 + $0x13] sm:$0x1]  ;;  %v1159_v27 = vrot.slane %v1079_v15, 7  ;;  %v6984_v34 = vpack.c.bf16 %v1124_v25, %v1120_v24  ;;  %v7028_v24 = vpack.c.bf16 %v1150_v14, %v1146_v13  ;;  %v1445_v61 = vld [vmem:[#allocation6 + $0x880] sm:$0xff] }
  0x86   :  { %6965 = vmatprep.subr.bf16.mxu1 %v6964_v32  ;;  %v1119_v32 = vld [vmem:[#allocation6 + $0x700] sm:$0xff]  ;;  %v1161_v38 = vrot.slane %v1080_v26, 6  ;;  %v1149_v25 = vld [vmem:[#allocation6 + $0x7f0] sm:$0xff] }
  0x87   :  { %v6986_v46 = vpack.c.bf16 %v1123_v35, %v1119_v32  ;;  %v1171_v32 = vrot.slane %v1085_v22, 1  ;;  %v1435_v40 = vld [vmem:[#allocation6 + $0x830] sm:$0xff]  ;;  %v1420_v22 = vld [vmem:[#allocation3 + $0x4] sm:$0x1] }
  0x88   :  { %6935 = vmatpush1.bf16.msra.mxu0 %v6934_v39  ;;  %v7016_v39 = vpack.c.bf16 %v1126_v29, %v1122_v28  ;;  %v1434_v28 = vld [vmem:[#allocation6 + $0x828] sm:$0xff]  ;;  %v1432_v29 = vld [vmem:[#allocation6 + $0x818] sm:$0xff]  ;;  %v1439_v51 = vld [vmem:[#allocation6 + $0x850] sm:$0xff] }
  0x89   :  { %6967 = vmatpush1.bf16.msra.mxu1 %v6966_v41  ;;  %6969 = vmatprep.subr.bf16.mxu0 %v6968_v43  ;;  %v1128_v41 = vld [vmem:[#allocation6 + $0x748] sm:$0xff]  ;;  %v1160_v43 = vsel %vm124_vm0, %v1159_v27, %v1078_v30  ;;  %v1436_v30 = vld [vmem:[#allocation6 + $0x838] sm:$0xff]  ;;  %v1455_v13 = vld [vmem:[#allocation6 + $0x8d0] sm:$0xff] }
  0x8a   :  { %7001 = vmatprep.subr.bf16.mxu1 %v7000_v47  ;;  %v1082_v47 = vld [vmem:[#allocation3 + $0x23] sm:$0x1]  ;;  %v6988_v50 = vpack.c.bf16 %v1132_v42, %v1128_v41  ;;  %v1430_v27 = vld [vmem:[#allocation6 + $0x808] sm:$0xff]  ;;  %v1459_v14 = vld [vmem:[#allocation6 + $0x8f0] sm:$0xff] }
  0x8b   :  { %897 = vmatmul.mubr.f32.vlgmr.msra.gmra.mrb[4].mxu0 %v830_v53  ;;  %v1165_v62 = vrot.slane %v1082_v47, 4  ;;  %v7032_v35 = vpack.c.bf16 %v1434_v28, %v1430_v27  ;;  %v1438_v41 = vld [vmem:[#allocation6 + $0x848] sm:$0xff]  ;;  %v1465_v27 = vld [vmem:[#allocation6 + $0x920] sm:$0xff]  ;;  %v1463_v28 = vld [vmem:[#allocation6 + $0x910] sm:$0xff] }
  0x8c   :  { %968 = vmatmul.mubr.f32.vlgmr.msra.gmra.mrb[4].mxu1 %v830_v53  ;;  %6971 = vmatpush1.bf16.msra.mxu0 %v6970_v54  ;;  %v1129_v53 = vld [vmem:[#allocation6 + $0x750] sm:$0xff]  ;;  %v1162_v54 = vsel %vm127_vm1, %v1161_v38, %v1160_v43  ;;  %v1442_v42 = vld [vmem:[#allocation6 + $0x868] sm:$0xff]  ;;  %v1440_v43 = vld [vmem:[#allocation6 + $0x858] sm:$0xff] }
  0x8d   :  { %7003 = vmatpush1.bf16.msra.mxu1 %v7002_v55  ;;  %6973 = vmatprep.subr.bf16.mxu0 %v6972_v56  ;;  %v7020_v55 = vpack.c.bf16 %v1134_v45, %v1130_v44  ;;  %v1133_v56 = vld [vmem:[#allocation6 + $0x770] sm:$0xff]  ;;  %v1164_v2 = vsel %vm130_vm2, %v1163_v48, %v1162_v54  ;;  %v1444_v44 = vld [vmem:[#allocation6 + $0x878] sm:$0xff]  ;;  %v7036_v48 = vpack.c.bf16 %v1442_v42, %v1438_v41  ;;  %v1446_v54 = vld [vmem:[#allocation6 + $0x888] sm:$0xff] }
  0x8e   :  { %7005 = vmatprep.subr.bf16.mxu1 %v7004_v60  ;;  %1238 = vmatprep.mubr.f32.mxu0 %v8139_v0  ;;  %v1142_v60 = vld [vmem:[#allocation6 + $0x7b8] sm:$0xff]  ;;  %v1166_v15 = vsel %vm133_vm3, %v1165_v62, %v1164_v2  ;;  %v1431_v38 = vld [vmem:[#allocation6 + $0x810] sm:$0xff]  ;;  %v7068_v52 = vpack.c.bf16 %v1444_v44, %v1440_v43  ;;  %v1449_v62 = vld [vmem:[#allocation6 + $0x8a0] sm:$0xff] }
  0x8f   :  { %1309 = vmatprep.mubr.f32.mxu1 %v8139_v0  ;;  %v7024_v8 = vpack.c.bf16 %v1142_v60, %v1138_v59  ;;  %v1168_v26 = vsel %vm136_vm4, %v1167_v12, %v1166_v15  ;;  %v7066_v47 = vpack.c.bf16 %v1435_v40, %v1431_v38  ;;  %v1451_v2 = vld [vmem:[#allocation6 + $0x8b0] sm:$0xff]  ;;  %v1457_v12 = vld [vmem:[#allocation6 + $0x8e0] sm:$0xff] }
  0x90   :  { %6975 = vmatpush1.bf16.msra.mxu0 %v6974_v3  ;;  %v7022_v3 = vpack.c.bf16 %v1133_v56, %v1129_v53  ;;  %v1443_v53 = vld [vmem:[#allocation6 + $0x870] sm:$0xff]  ;;  %v1448_v56 = vld [vmem:[#allocation6 + $0x898] sm:$0xff]  ;;  %v1469_v43 = vld [vmem:[#allocation6 + $0x940] sm:$0xff] }
  0x91   :  { %7007 = vmatpush1.bf16.msra.mxu1 %v7006_v4  ;;  %6977 = vmatprep.subr.bf16.mxu0 %v6976_v5  ;;  %v6992_v4 = vpack.c.bf16 %v1140_v58, %v1136_v57  ;;  %v1139_v5 = vld [vmem:[#allocation6 + $0x7a0] sm:$0xff]  ;;  %v1452_v57 = vld [vmem:[#allocation6 + $0x8b8] sm:$0xff]  ;;  %v7070_v59 = vpack.c.bf16 %v1443_v53, %v1439_v51  ;;  %v1425_v53 = vld [vmem:[#allocation3 + $0x2c] sm:$0x1] }
  0x92   :  { %7009 = vmatprep.subr.bf16.mxu1 %v7008_v9  ;;  %v1144_v9 = vld [vmem:[#allocation6 + $0x7c8] sm:$0xff]  ;;  %v1473_v44 = vld [vmem:[#allocation6 + $0x960] sm:$0xff]  ;;  %v1480_v51 = vld [vmem:[#allocation6 + $0x998] sm:$0xff] }
  0x94   :  { %6979 = vmatpush1.bf16.msra.mxu0 %v6978_v16  ;;  %v6994_v16 = vpack.c.bf16 %v1139_v5, %v1135_v1  ;;  %v7072_v1 = vpack.c.bf16 %v1452_v57, %v1448_v56  ;;  %v1456_v5 = vld [vmem:[#allocation6 + $0x8d8] sm:$0xff]  ;;  %v1477_v56 = vld [vmem:[#allocation6 + $0x980] sm:$0xff] }
  0x95   :  { %7011 = vmatpush1.bf16.msra.mxu1 %v7010_v18  ;;  %6981 = vmatprep.subr.bf16.mxu0 %v6980_v19  ;;  %v7026_v18 = vpack.c.bf16 %v1141_v7, %v1137_v6  ;;  %v6996_v19 = vpack.c.bf16 %v1148_v10, %v1144_v9  ;;  %v1460_v6 = vld [vmem:[#allocation6 + $0x8f8] sm:$0xff]  ;;  %v1421_v7 = vld [vmem:[#allocation3 + $0xc] sm:$0x1]  ;;  %v1453_v9 = vld [vmem:[#allocation6 + $0x8c0] sm:$0xff] }
  0x96   :  { %7013 = vmatprep.subr.bf16.mxu1 %v7012_v23  ;;  %v1169_v23 = vrot.slane %v1084_v11, 2  ;;  %v7076_v15 = vpack.c.bf16 %v1460_v6, %v1456_v5  ;;  %v1488_v5 = vld [vmem:[#allocation6 + $0x9d8] sm:$0xff] }
  0x97   :  { %v1492_v6 = vld [vmem:[#allocation6 + $0x9f8] sm:$0xff] }
  0x98   :  { %6983 = vmatpush1.bf16.msra.mxu0 %v6982_v31  ;;  %v6998_v31 = vpack.c.bf16 %v1147_v20, %v1143_v17  ;;  %v1466_v17 = vld [vmem:[#allocation6 + $0x928] sm:$0xff]  ;;  %v1464_v20 = vld [vmem:[#allocation6 + $0x918] sm:$0xff] }
  0x99   :  { %7015 = vmatpush1.bf16.msra.mxu1 %v7014_v33  ;;  %6985 = vmatprep.subr.bf16.mxu0 %v6984_v34  ;;  %v7030_v33 = vpack.c.bf16 %v1149_v25, %v1145_v21  ;;  %v1170_v34 = vsel %vm139_vm5, %v1169_v23, %v1168_v26  ;;  %v1468_v21 = vld [vmem:[#allocation6 + $0x938] sm:$0xff]  ;;  %v7046_v23 = vpack.c.bf16 %v1457_v12, %v1453_v9  ;;  %v1485_v9 = vld [vmem:[#allocation6 + $0x9c0] sm:$0xff] }
  0x9a   :  { %7017 = vmatprep.subr.bf16.mxu1 %v7016_v39  ;;  %v7064_v39 = vpack.c.bf16 %v1436_v30, %v1432_v29  ;;  %v1172_v45 = vsel %vm142_vm6, %v1171_v32, %v1170_v34  ;;  %v7078_v25 = vpack.c.bf16 %v1459_v14, %v1455_v13  ;;  %v1423_v29 = vld [vmem:[#allocation3 + $0x1c] sm:$0x1]  ;;  %v1467_v32 = vld [vmem:[#allocation6 + $0x930] sm:$0xff]  ;;  %v1474_v34 = vld [vmem:[#allocation6 + $0x968] sm:$0xff] }
  0x9b   :  { %v1505_v40 = vrot.slane %v1423_v29, 5  ;;  %v7082_v41 = vpack.c.bf16 %v1467_v32, %v1463_v28  ;;  %v1489_v12 = vld [vmem:[#allocation6 + $0x9e0] sm:$0xff]  ;;  %v1487_v13 = vld [vmem:[#allocation6 + $0x9d0] sm:$0xff]  ;;  %v1427_v14 = vld [vmem:[#allocation3 + $0x3c] sm:$0x1] }
  0x9c   :  { %6987 = vmatpush1.bf16.msra.mxu0 %v6986_v46  ;;  %v7034_v46 = vpack.c.bf16 %v1433_v37, %v1429_v36  ;;  %v1472_v36 = vld [vmem:[#allocation6 + $0x958] sm:$0xff]  ;;  %v1771_v28 = vld [vmem:[#allocation6 + $0xa00] sm:$0xff]  ;;  %v1777_v32 = vld [vmem:[#allocation6 + $0xa30] sm:$0xff] }
  0x9d   :  { %7019 = vmatpush1.bf16.msra.mxu1 %v7018_v49  ;;  %6989 = vmatprep.subr.bf16.mxu0 %v6988_v50  ;;  %v1437_v49 = vld [vmem:[#allocation6 + $0x840] sm:$0xff]  ;;  %v1476_v37 = vld [vmem:[#allocation6 + $0x978] sm:$0xff] }
  0x9e   :  { %7021 = vmatprep.subr.bf16.mxu1 %v7020_v55  ;;  %v1441_v50 = vld [vmem:[#allocation6 + $0x860] sm:$0xff]  ;;  %v1450_v55 = vld [vmem:[#allocation6 + $0x8a8] sm:$0xff] }
  0x9f   :  { %v7038_v58 = vpack.c.bf16 %v1441_v50, %v1437_v49  ;;  %v7040_v60 = vpack.c.bf16 %v1450_v55, %v1446_v54  ;;  %v1478_v49 = vld [vmem:[#allocation6 + $0x988] sm:$0xff]  ;;  %v7054_v55 = vpack.c.bf16 %v1473_v44, %v1469_v43  ;;  %v1775_v29 = vld [vmem:[#allocation6 + $0xa20] sm:$0xff]  ;;  %v1781_v43 = vld [vmem:[#allocation6 + $0xa50] sm:$0xff] }
  0xa0   :  { %6991 = vmatpush1.bf16.msra.mxu0 %v6990_v63  ;;  %v1447_v63 = vld [vmem:[#allocation6 + $0x890] sm:$0xff]  ;;  %v1482_v50 = vld [vmem:[#allocation6 + $0x9a8] sm:$0xff] }
  0xa1   :  { %7023 = vmatpush1.bf16.msra.mxu1 %v7022_v3  ;;  %6993 = vmatprep.subr.bf16.mxu0 %v6992_v4  ;;  %v1454_v3 = vld [vmem:[#allocation6 + $0x8c8] sm:$0xff]  ;;  %v7074_v10 = vpack.c.bf16 %v1451_v2, %v1447_v63 }
  0xa2   :  { %7025 = vmatprep.subr.bf16.mxu1 %v7024_v8  ;;  %v1458_v4 = vld [vmem:[#allocation6 + $0x8e8] sm:$0xff]  ;;  %v7042_v8 = vpack.c.bf16 %v1449_v62, %v1445_v61  ;;  %v1479_v61 = vld [vmem:[#allocation6 + $0x990] sm:$0xff] }
  0xa3   :  { %v7044_v11 = vpack.c.bf16 %v1458_v4, %v1454_v3  ;;  %v1483_v62 = vld [vmem:[#allocation6 + $0x9b0] sm:$0xff]  ;;  %v1490_v2 = vld [vmem:[#allocation6 + $0x9e8] sm:$0xff]  ;;  %v1509_v4 = vrot.slane %v1425_v53, 3  ;;  %v1787_v53 = vld [vmem:[#allocation6 + $0xa80] sm:$0xff] }
  0xa4   :  { %6995 = vmatpush1.bf16.msra.mxu0 %v6994_v16  ;;  %v1462_v16 = vld [vmem:[#allocation6 + $0x908] sm:$0xff]  ;;  %v1426_v3 = vld [vmem:[#allocation3 + $0x34] sm:$0x1] }
  0xa5   :  { %7027 = vmatpush1.bf16.msra.mxu1 %v7026_v18  ;;  %6997 = vmatprep.subr.bf16.mxu0 %v6996_v19  ;;  %v1422_v18 = vld [vmem:[#allocation3 + $0x14] sm:$0x1]  ;;  %v1501_v19 = vrot.slane %v1421_v7, 7  ;;  %v7048_v26 = vpack.c.bf16 %v1466_v17, %v1462_v16  ;;  %v7092_v16 = vpack.c.bf16 %v1492_v6, %v1488_v5 }
  0xa6   :  { %7029 = vmatprep.subr.bf16.mxu1 %v7028_v24  ;;  %v1461_v24 = vld [vmem:[#allocation6 + $0x900] sm:$0xff]  ;;  %v1503_v30 = vrot.slane %v1422_v18, 6  ;;  %v1491_v17 = vld [vmem:[#allocation6 + $0x9f0] sm:$0xff] }
  0xa7   :  { %v7050_v38 = vpack.c.bf16 %v1465_v27, %v1461_v24  ;;  %v1513_v24 = vrot.slane %v1427_v14, 1  ;;  %v1797_v5 = vld [vmem:[#allocation6 + $0xad0] sm:$0xff]  ;;  %v1762_v14 = vld [vmem:[#allocation3 + $0x5] sm:$0x1] }
  0xa8   :  { %6999 = vmatpush1.bf16.msra.mxu0 %v6998_v31  ;;  %v7080_v31 = vpack.c.bf16 %v1468_v21, %v1464_v20  ;;  %v1776_v20 = vld [vmem:[#allocation6 + $0xa28] sm:$0xff]  ;;  %v1774_v21 = vld [vmem:[#allocation6 + $0xa18] sm:$0xff]  ;;  %v1801_v6 = vld [vmem:[#allocation6 + $0xaf0] sm:$0xff] }
  0xa9   :  { %7031 = vmatpush1.bf16.msra.mxu1 %v7030_v33  ;;  %7033 = vmatprep.subr.bf16.mxu0 %v7032_v35  ;;  %v1470_v33 = vld [vmem:[#allocation6 + $0x948] sm:$0xff]  ;;  %v1502_v35 = vsel %vm124_vm0, %v1501_v19, %v1420_v22  ;;  %v1778_v22 = vld [vmem:[#allocation6 + $0xa38] sm:$0xff] }
  0xaa   :  { %7065 = vmatprep.subr.bf16.mxu1 %v7064_v39  ;;  %v1424_v39 = vld [vmem:[#allocation3 + $0x24] sm:$0x1]  ;;  %v7052_v42 = vpack.c.bf16 %v1474_v34, %v1470_v33  ;;  %v1772_v19 = vld [vmem:[#allocation6 + $0xa08] sm:$0xff] }
  0xab   :  { %1239 = vmatmul.mubr.f32.vlgmr.msra.gmra.mrb[6].mxu0 %v1172_v45  ;;  %v1507_v54 = vrot.slane %v1424_v39, 4  ;;  %v7096_v27 = vpack.c.bf16 %v1776_v20, %v1772_v19  ;;  %v1780_v33 = vld [vmem:[#allocation6 + $0xa48] sm:$0xff]  ;;  %v1807_v19 = vld [vmem:[#allocation6 + $0xb20] sm:$0xff]  ;;  %v1805_v20 = vld [vmem:[#allocation6 + $0xb10] sm:$0xff] }
  0xac   :  { %1310 = vmatmul.mubr.f32.vlgmr.msra.gmra.mrb[6].mxu1 %v1172_v45  ;;  %7035 = vmatpush1.bf16.msra.mxu0 %v7034_v46  ;;  %v1471_v45 = vld [vmem:[#allocation6 + $0x950] sm:$0xff]  ;;  %v1504_v46 = vsel %vm127_vm1, %v1503_v30, %v1502_v35  ;;  %v1784_v34 = vld [vmem:[#allocation6 + $0xa68] sm:$0xff]  ;;  %v1782_v35 = vld [vmem:[#allocation6 + $0xa58] sm:$0xff] }
  0xad   :  { %7067 = vmatpush1.bf16.msra.mxu1 %v7066_v47  ;;  %7037 = vmatprep.subr.bf16.mxu0 %v7036_v48  ;;  %v7084_v47 = vpack.c.bf16 %v1476_v37, %v1472_v36  ;;  %v1475_v48 = vld [vmem:[#allocation6 + $0x970] sm:$0xff]  ;;  %v1506_v57 = vsel %vm130_vm2, %v1505_v40, %v1504_v46  ;;  %v1786_v36 = vld [vmem:[#allocation6 + $0xa78] sm:$0xff]  ;;  %v7100_v40 = vpack.c.bf16 %v1784_v34, %v1780_v33  ;;  %v1788_v46 = vld [vmem:[#allocation6 + $0xa88] sm:$0xff] }
  0xae   :  { %7069 = vmatprep.subr.bf16.mxu1 %v7068_v52  ;;  %1580 = vmatprep.mubr.f32.mxu0 %v8139_v0  ;;  %v1484_v52 = vld [vmem:[#allocation6 + $0x9b8] sm:$0xff]  ;;  %v1508_v7 = vsel %vm133_vm3, %v1507_v54, %v1506_v57  ;;  %v1773_v30 = vld [vmem:[#allocation6 + $0xa10] sm:$0xff]  ;;  %v7132_v44 = vpack.c.bf16 %v1786_v36, %v1782_v35  ;;  %v1791_v54 = vld [vmem:[#allocation6 + $0xaa0] sm:$0xff] }
  0xaf   :  { %1651 = vmatprep.mubr.f32.mxu1 %v8139_v0  ;;  %v7088_v63 = vpack.c.bf16 %v1484_v52, %v1480_v51  ;;  %v1510_v18 = vsel %vm136_vm4, %v1509_v4, %v1508_v7  ;;  %v7130_v39 = vpack.c.bf16 %v1777_v32, %v1773_v30  ;;  %v1793_v57 = vld [vmem:[#allocation6 + $0xab0] sm:$0xff]  ;;  %v1799_v4 = vld [vmem:[#allocation6 + $0xae0] sm:$0xff] }
  0xb0   :  { %7039 = vmatpush1.bf16.msra.mxu0 %v7038_v58  ;;  %v7086_v58 = vpack.c.bf16 %v1475_v48, %v1471_v45  ;;  %v1785_v45 = vld [vmem:[#allocation6 + $0xa70] sm:$0xff]  ;;  %v1790_v48 = vld [vmem:[#allocation6 + $0xa98] sm:$0xff]  ;;  %v1811_v35 = vld [vmem:[#allocation6 + $0xb40] sm:$0xff] }
  0xb1   :  { %7071 = vmatpush1.bf16.msra.mxu1 %v7070_v59  ;;  %7041 = vmatprep.subr.bf16.mxu0 %v7040_v60  ;;  %v7056_v59 = vpack.c.bf16 %v1482_v50, %v1478_v49  ;;  %v1481_v60 = vld [vmem:[#allocation6 + $0x9a0] sm:$0xff]  ;;  %v1794_v49 = vld [vmem:[#allocation6 + $0xab8] sm:$0xff]  ;;  %v7134_v51 = vpack.c.bf16 %v1785_v45, %v1781_v43  ;;  %v1767_v45 = vld [vmem:[#allocation3 + $0x2d] sm:$0x1] }
  0xb2   :  { %7073 = vmatprep.subr.bf16.mxu1 %v7072_v1  ;;  %v1486_v1 = vld [vmem:[#allocation6 + $0x9c8] sm:$0xff]  ;;  %v1815_v36 = vld [vmem:[#allocation6 + $0xb60] sm:$0xff]  ;;  %v1822_v43 = vld [vmem:[#allocation6 + $0xb98] sm:$0xff] }
  0xb4   :  { %7043 = vmatpush1.bf16.msra.mxu0 %v7042_v8  ;;  %v7058_v8 = vpack.c.bf16 %v1481_v60, %v1477_v56  ;;  %v7136_v56 = vpack.c.bf16 %v1794_v49, %v1790_v48  ;;  %v1798_v60 = vld [vmem:[#allocation6 + $0xad8] sm:$0xff]  ;;  %v1819_v48 = vld [vmem:[#allocation6 + $0xb80] sm:$0xff] }
  0xb5   :  { %7075 = vmatpush1.bf16.msra.mxu1 %v7074_v10  ;;  %7045 = vmatprep.subr.bf16.mxu0 %v7044_v11  ;;  %v7090_v10 = vpack.c.bf16 %v1483_v62, %v1479_v61  ;;  %v7060_v11 = vpack.c.bf16 %v1490_v2, %v1486_v1  ;;  %v1802_v61 = vld [vmem:[#allocation6 + $0xaf8] sm:$0xff]  ;;  %v1763_v62 = vld [vmem:[#allocation3 + $0xd] sm:$0x1]  ;;  %v1795_v1 = vld [vmem:[#allocation6 + $0xac0] sm:$0xff] }
  0xb6   :  { %7077 = vmatprep.subr.bf16.mxu1 %v7076_v15  ;;  %v1511_v15 = vrot.slane %v1426_v3, 2  ;;  %v7140_v7 = vpack.c.bf16 %v1802_v61, %v1798_v60  ;;  %v1830_v60 = vld [vmem:[#allocation6 + $0xbd8] sm:$0xff] }
  0xb7   :  { %v1834_v61 = vld [vmem:[#allocation6 + $0xbf8] sm:$0xff] }
  0xb8   :  { %7047 = vmatpush1.bf16.msra.mxu0 %v7046_v23  ;;  %v7062_v23 = vpack.c.bf16 %v1489_v12, %v1485_v9  ;;  %v1808_v9 = vld [vmem:[#allocation6 + $0xb28] sm:$0xff]  ;;  %v1806_v12 = vld [vmem:[#allocation6 + $0xb18] sm:$0xff] }
  0xb9   :  { %7079 = vmatpush1.bf16.msra.mxu1 %v7078_v25  ;;  %7049 = vmatprep.subr.bf16.mxu0 %v7048_v26  ;;  %v7094_v25 = vpack.c.bf16 %v1491_v17, %v1487_v13  ;;  %v1512_v26 = vsel %vm139_vm5, %v1511_v15, %v1510_v18  ;;  %v1810_v13 = vld [vmem:[#allocation6 + $0xb38] sm:$0xff]  ;;  %v7110_v15 = vpack.c.bf16 %v1799_v4, %v1795_v1  ;;  %v1827_v1 = vld [vmem:[#allocation6 + $0xbc0] sm:$0xff] }
  0xba   :  { %7081 = vmatprep.subr.bf16.mxu1 %v7080_v31  ;;  %v7128_v31 = vpack.c.bf16 %v1778_v22, %v1774_v21  ;;  %v1514_v37 = vsel %vm142_vm6, %v1513_v24, %v1512_v26  ;;  %v7142_v17 = vpack.c.bf16 %v1801_v6, %v1797_v5  ;;  %v1765_v21 = vld [vmem:[#allocation3 + $0x1d] sm:$0x1]  ;;  %v1809_v24 = vld [vmem:[#allocation6 + $0xb30] sm:$0xff]  ;;  %v1816_v26 = vld [vmem:[#allocation6 + $0xb68] sm:$0xff] }
  0xbb   :  { %v1847_v32 = vrot.slane %v1765_v21, 5  ;;  %v7146_v33 = vpack.c.bf16 %v1809_v24, %v1805_v20  ;;  %v1831_v4 = vld [vmem:[#allocation6 + $0xbe0] sm:$0xff]  ;;  %v1829_v5 = vld [vmem:[#allocation6 + $0xbd0] sm:$0xff]  ;;  %v1769_v6 = vld [vmem:[#allocation3 + $0x3d] sm:$0x1] }
  0xbc   :  { %7051 = vmatpush1.bf16.msra.mxu0 %v7050_v38  ;;  %v7098_v38 = vpack.c.bf16 %v1775_v29, %v1771_v28  ;;  %v1814_v28 = vld [vmem:[#allocation6 + $0xb58] sm:$0xff]  ;;  %v2113_v20 = vld [vmem:[#allocation6 + $0xc00] sm:$0xff]  ;;  %v2119_v24 = vld [vmem:[#allocation6 + $0xc30] sm:$0xff] }
  0xbd   :  { %7083 = vmatpush1.bf16.msra.mxu1 %v7082_v41  ;;  %7053 = vmatprep.subr.bf16.mxu0 %v7052_v42  ;;  %v1779_v41 = vld [vmem:[#allocation6 + $0xa40] sm:$0xff]  ;;  %v1818_v29 = vld [vmem:[#allocation6 + $0xb78] sm:$0xff] }
  0xbe   :  { %7085 = vmatprep.subr.bf16.mxu1 %v7084_v47  ;;  %v1783_v42 = vld [vmem:[#allocation6 + $0xa60] sm:$0xff]  ;;  %v1792_v47 = vld [vmem:[#allocation6 + $0xaa8] sm:$0xff] }
  0xbf   :  { %v7102_v50 = vpack.c.bf16 %v1783_v42, %v1779_v41  ;;  %v7104_v52 = vpack.c.bf16 %v1792_v47, %v1788_v46  ;;  %v1820_v41 = vld [vmem:[#allocation6 + $0xb88] sm:$0xff]  ;;  %v7118_v47 = vpack.c.bf16 %v1815_v36, %v1811_v35  ;;  %v2117_v21 = vld [vmem:[#allocation6 + $0xc20] sm:$0xff]  ;;  %v2123_v35 = vld [vmem:[#allocation6 + $0xc50] sm:$0xff] }
  0xc0   :  { %7055 = vmatpush1.bf16.msra.mxu0 %v7054_v55  ;;  %v1789_v55 = vld [vmem:[#allocation6 + $0xa90] sm:$0xff]  ;;  %v1824_v42 = vld [vmem:[#allocation6 + $0xba8] sm:$0xff] }
  0xc1   :  { %7087 = vmatpush1.bf16.msra.mxu1 %v7086_v58  ;;  %7057 = vmatprep.subr.bf16.mxu0 %v7056_v59  ;;  %v1796_v58 = vld [vmem:[#allocation6 + $0xac8] sm:$0xff]  ;;  %v7138_v2 = vpack.c.bf16 %v1793_v57, %v1789_v55 }
  0xc2   :  { %7089 = vmatprep.subr.bf16.mxu1 %v7088_v63  ;;  %v1800_v59 = vld [vmem:[#allocation6 + $0xae8] sm:$0xff]  ;;  %v7106_v63 = vpack.c.bf16 %v1791_v54, %v1787_v53  ;;  %v1821_v53 = vld [vmem:[#allocation6 + $0xb90] sm:$0xff] }
  0xc3   :  { %v7108_v3 = vpack.c.bf16 %v1800_v59, %v1796_v58  ;;  %v1825_v54 = vld [vmem:[#allocation6 + $0xbb0] sm:$0xff]  ;;  %v1832_v57 = vld [vmem:[#allocation6 + $0xbe8] sm:$0xff]  ;;  %v1851_v59 = vrot.slane %v1767_v45, 3  ;;  %v2129_v45 = vld [vmem:[#allocation6 + $0xc80] sm:$0xff] }
  0xc4   :  { %7059 = vmatpush1.bf16.msra.mxu0 %v7058_v8  ;;  %v1804_v8 = vld [vmem:[#allocation6 + $0xb08] sm:$0xff]  ;;  %v1768_v58 = vld [vmem:[#allocation3 + $0x35] sm:$0x1] }
  0xc5   :  { %7091 = vmatpush1.bf16.msra.mxu1 %v7090_v10  ;;  %7061 = vmatprep.subr.bf16.mxu0 %v7060_v11  ;;  %v1764_v10 = vld [vmem:[#allocation3 + $0x15] sm:$0x1]  ;;  %v1843_v11 = vrot.slane %v1763_v62, 7  ;;  %v7112_v18 = vpack.c.bf16 %v1808_v9, %v1804_v8  ;;  %v7156_v8 = vpack.c.bf16 %v1834_v61, %v1830_v60 }
  0xc6   :  { %7093 = vmatprep.subr.bf16.mxu1 %v7092_v16  ;;  %v1803_v16 = vld [vmem:[#allocation6 + $0xb00] sm:$0xff]  ;;  %v1845_v22 = vrot.slane %v1764_v10, 6  ;;  %v1833_v9 = vld [vmem:[#allocation6 + $0xbf0] sm:$0xff] }
  0xc7   :  { %v7114_v30 = vpack.c.bf16 %v1807_v19, %v1803_v16  ;;  %v1855_v16 = vrot.slane %v1769_v6, 1  ;;  %v2139_v60 = vld [vmem:[#allocation6 + $0xcd0] sm:$0xff]  ;;  %v2104_v6 = vld [vmem:[#allocation3 + $0x6] sm:$0x1] }
  0xc8   :  { %7063 = vmatpush1.bf16.msra.mxu0 %v7062_v23  ;;  %v7144_v23 = vpack.c.bf16 %v1810_v13, %v1806_v12  ;;  %v2118_v12 = vld [vmem:[#allocation6 + $0xc28] sm:$0xff]  ;;  %v2116_v13 = vld [vmem:[#allocation6 + $0xc18] sm:$0xff]  ;;  %v2143_v61 = vld [vmem:[#allocation6 + $0xcf0] sm:$0xff] }
  0xc9   :  { %7095 = vmatpush1.bf16.msra.mxu1 %v7094_v25  ;;  %7097 = vmatprep.subr.bf16.mxu0 %v7096_v27  ;;  %v1812_v25 = vld [vmem:[#allocation6 + $0xb48] sm:$0xff]  ;;  %v1844_v27 = vsel %vm124_vm0, %v1843_v11, %v1762_v14  ;;  %v2120_v14 = vld [vmem:[#allocation6 + $0xc38] sm:$0xff] }
  0xca   :  { %7129 = vmatprep.subr.bf16.mxu1 %v7128_v31  ;;  %v1766_v31 = vld [vmem:[#allocation3 + $0x25] sm:$0x1]  ;;  %v7116_v34 = vpack.c.bf16 %v1816_v26, %v1812_v25  ;;  %v2114_v11 = vld [vmem:[#allocation6 + $0xc08] sm:$0xff] }
  0xcb   :  { %1581 = vmatmul.mubr.f32.vlgmr.msra.gmra.mrb[8].mxu0 %v1514_v37  ;;  %v1849_v46 = vrot.slane %v1766_v31, 4  ;;  %v7160_v19 = vpack.c.bf16 %v2118_v12, %v2114_v11  ;;  %v2122_v25 = vld [vmem:[#allocation6 + $0xc48] sm:$0xff]  ;;  %v2149_v11 = vld [vmem:[#allocation6 + $0xd20] sm:$0xff]  ;;  %v2147_v12 = vld [vmem:[#allocation6 + $0xd10] sm:$0xff] }
  0xcc   :  { %1652 = vmatmul.mubr.f32.vlgmr.msra.gmra.mrb[8].mxu1 %v1514_v37  ;;  %7099 = vmatpush1.bf16.msra.mxu0 %v7098_v38  ;;  %v1813_v37 = vld [vmem:[#allocation6 + $0xb50] sm:$0xff]  ;;  %v1846_v38 = vsel %vm127_vm1, %v1845_v22, %v1844_v27  ;;  %v2126_v26 = vld [vmem:[#allocation6 + $0xc68] sm:$0xff]  ;;  %v2124_v27 = vld [vmem:[#allocation6 + $0xc58] sm:$0xff] }
  0xcd   :  { %7131 = vmatpush1.bf16.msra.mxu1 %v7130_v39  ;;  %7101 = vmatprep.subr.bf16.mxu0 %v7100_v40  ;;  %v7148_v39 = vpack.c.bf16 %v1818_v29, %v1814_v28  ;;  %v1817_v40 = vld [vmem:[#allocation6 + $0xb70] sm:$0xff]  ;;  %v1848_v49 = vsel %vm130_vm2, %v1847_v32, %v1846_v38  ;;  %v2128_v28 = vld [vmem:[#allocation6 + $0xc78] sm:$0xff]  ;;  %v7164_v32 = vpack.c.bf16 %v2126_v26, %v2122_v25  ;;  %v2130_v38 = vld [vmem:[#allocation6 + $0xc88] sm:$0xff] }
  0xce   :  { %7133 = vmatprep.subr.bf16.mxu1 %v7132_v44  ;;  %1922 = vmatprep.mubr.f32.mxu0 %v8139_v0  ;;  %v1826_v44 = vld [vmem:[#allocation6 + $0xbb8] sm:$0xff]  ;;  %v1850_v62 = vsel %vm133_vm3, %v1849_v46, %v1848_v49  ;;  %v2115_v22 = vld [vmem:[#allocation6 + $0xc10] sm:$0xff]  ;;  %v7196_v36 = vpack.c.bf16 %v2128_v28, %v2124_v27  ;;  %v2133_v46 = vld [vmem:[#allocation6 + $0xca0] sm:$0xff] }
  0xcf   :  { %1993 = vmatprep.mubr.f32.mxu1 %v8139_v0  ;;  %v7152_v55 = vpack.c.bf16 %v1826_v44, %v1822_v43  ;;  %v1852_v10 = vsel %vm136_vm4, %v1851_v59, %v1850_v62  ;;  %v7194_v31 = vpack.c.bf16 %v2119_v24, %v2115_v22  ;;  %v2135_v49 = vld [vmem:[#allocation6 + $0xcb0] sm:$0xff]  ;;  %v2141_v59 = vld [vmem:[#allocation6 + $0xce0] sm:$0xff] }
  0xd0   :  { %7103 = vmatpush1.bf16.msra.mxu0 %v7102_v50  ;;  %v7150_v50 = vpack.c.bf16 %v1817_v40, %v1813_v37  ;;  %v2127_v37 = vld [vmem:[#allocation6 + $0xc70] sm:$0xff]  ;;  %v2132_v40 = vld [vmem:[#allocation6 + $0xc98] sm:$0xff]  ;;  %v2153_v27 = vld [vmem:[#allocation6 + $0xd40] sm:$0xff] }
  0xd1   :  { %7135 = vmatpush1.bf16.msra.mxu1 %v7134_v51  ;;  %7105 = vmatprep.subr.bf16.mxu0 %v7104_v52  ;;  %v7120_v51 = vpack.c.bf16 %v1824_v42, %v1820_v41  ;;  %v1823_v52 = vld [vmem:[#allocation6 + $0xba0] sm:$0xff]  ;;  %v2136_v41 = vld [vmem:[#allocation6 + $0xcb8] sm:$0xff]  ;;  %v7198_v43 = vpack.c.bf16 %v2127_v37, %v2123_v35  ;;  %v2109_v37 = vld [vmem:[#allocation3 + $0x2e] sm:$0x1] }
  0xd2   :  { %7137 = vmatprep.subr.bf16.mxu1 %v7136_v56  ;;  %v1828_v56 = vld [vmem:[#allocation6 + $0xbc8] sm:$0xff]  ;;  %v2157_v28 = vld [vmem:[#allocation6 + $0xd60] sm:$0xff]  ;;  %v2164_v35 = vld [vmem:[#allocation6 + $0xd98] sm:$0xff] }
  0xd4   :  { %7107 = vmatpush1.bf16.msra.mxu0 %v7106_v63  ;;  %v7122_v63 = vpack.c.bf16 %v1823_v52, %v1819_v48  ;;  %v7200_v48 = vpack.c.bf16 %v2136_v41, %v2132_v40  ;;  %v2140_v52 = vld [vmem:[#allocation6 + $0xcd8] sm:$0xff]  ;;  %v2161_v40 = vld [vmem:[#allocation6 + $0xd80] sm:$0xff] }
  0xd5   :  { %7139 = vmatpush1.bf16.msra.mxu1 %v7138_v2  ;;  %7109 = vmatprep.subr.bf16.mxu0 %v7108_v3  ;;  %v7154_v2 = vpack.c.bf16 %v1825_v54, %v1821_v53  ;;  %v7124_v3 = vpack.c.bf16 %v1832_v57, %v1828_v56  ;;  %v2144_v53 = vld [vmem:[#allocation6 + $0xcf8] sm:$0xff]  ;;  %v2105_v54 = vld [vmem:[#allocation3 + $0xe] sm:$0x1]  ;;  %v2137_v56 = vld [vmem:[#allocation6 + $0xcc0] sm:$0xff] }
  0xd6   :  { %7141 = vmatprep.subr.bf16.mxu1 %v7140_v7  ;;  %v1853_v7 = vrot.slane %v1768_v58, 2  ;;  %v7204_v62 = vpack.c.bf16 %v2144_v53, %v2140_v52  ;;  %v2172_v52 = vld [vmem:[#allocation6 + $0xdd8] sm:$0xff] }
  0xd7   :  { %v2176_v53 = vld [vmem:[#allocation6 + $0xdf8] sm:$0xff] }
  0xd8   :  { %7111 = vmatpush1.bf16.msra.mxu0 %v7110_v15  ;;  %v7126_v15 = vpack.c.bf16 %v1831_v4, %v1827_v1  ;;  %v2150_v1 = vld [vmem:[#allocation6 + $0xd28] sm:$0xff]  ;;  %v2148_v4 = vld [vmem:[#allocation6 + $0xd18] sm:$0xff] }
  0xd9   :  { %7143 = vmatpush1.bf16.msra.mxu1 %v7142_v17  ;;  %7113 = vmatprep.subr.bf16.mxu0 %v7112_v18  ;;  %v7158_v17 = vpack.c.bf16 %v1833_v9, %v1829_v5  ;;  %v1854_v18 = vsel %vm139_vm5, %v1853_v7, %v1852_v10  ;;  %v2152_v5 = vld [vmem:[#allocation6 + $0xd38] sm:$0xff]  ;;  %v7174_v7 = vpack.c.bf16 %v2141_v59, %v2137_v56  ;;  %v2169_v56 = vld [vmem:[#allocation6 + $0xdc0] sm:$0xff] }
  0xda   :  { %7145 = vmatprep.subr.bf16.mxu1 %v7144_v23  ;;  %v7192_v23 = vpack.c.bf16 %v2120_v14, %v2116_v13  ;;  %v1856_v29 = vsel %vm142_vm6, %v1855_v16, %v1854_v18  ;;  %v7206_v9 = vpack.c.bf16 %v2143_v61, %v2139_v60  ;;  %v2107_v13 = vld [vmem:[#allocation3 + $0x1e] sm:$0x1]  ;;  %v2151_v16 = vld [vmem:[#allocation6 + $0xd30] sm:$0xff]  ;;  %v2158_v18 = vld [vmem:[#allocation6 + $0xd68] sm:$0xff] }
  0xdb   :  { %v2189_v24 = vrot.slane %v2107_v13, 5  ;;  %v7210_v25 = vpack.c.bf16 %v2151_v16, %v2147_v12  ;;  %v2171_v60 = vld [vmem:[#allocation6 + $0xdd0] sm:$0xff]  ;;  %v2464_v16 = vld [vmem:[#allocation6 + $0xe48] sm:$0xff] }
  0xdc   :  { %7115 = vmatpush1.bf16.msra.mxu0 %v7114_v30  ;;  %v7162_v30 = vpack.c.bf16 %v2117_v21, %v2113_v20  ;;  %v2156_v20 = vld [vmem:[#allocation6 + $0xd58] sm:$0xff]  ;;  %v2175_v61 = vld [vmem:[#allocation6 + $0xdf0] sm:$0xff] }
  0xdd   :  { %7147 = vmatpush1.bf16.msra.mxu1 %v7146_v33  ;;  %7117 = vmatprep.subr.bf16.mxu0 %v7116_v34  ;;  %v2121_v33 = vld [vmem:[#allocation6 + $0xc40] sm:$0xff]  ;;  %v2160_v21 = vld [vmem:[#allocation6 + $0xd78] sm:$0xff]  ;;  %v2461_v12 = vld [vmem:[#allocation6 + $0xe30] sm:$0xff]  ;;  %v7222_v13 = vpack.c.bf16 %v2175_v61, %v2171_v60 }
  0xde   :  { %7149 = vmatprep.subr.bf16.mxu1 %v7148_v39  ;;  %v2125_v34 = vld [vmem:[#allocation6 + $0xc60] sm:$0xff]  ;;  %v2134_v39 = vld [vmem:[#allocation6 + $0xca8] sm:$0xff] }
  0xdf   :  { %v7166_v42 = vpack.c.bf16 %v2125_v34, %v2121_v33  ;;  %v7168_v44 = vpack.c.bf16 %v2134_v39, %v2130_v38  ;;  %v2162_v33 = vld [vmem:[#allocation6 + $0xd88] sm:$0xff]  ;;  %v7182_v39 = vpack.c.bf16 %v2157_v28, %v2153_v27 }
  0xe0   :  { %7119 = vmatpush1.bf16.msra.mxu0 %v7118_v47  ;;  %v2131_v47 = vld [vmem:[#allocation6 + $0xc90] sm:$0xff]  ;;  %v2166_v34 = vld [vmem:[#allocation6 + $0xda8] sm:$0xff] }
  0xe1   :  { %7151 = vmatpush1.bf16.msra.mxu1 %v7150_v50  ;;  %7121 = vmatprep.subr.bf16.mxu0 %v7120_v51  ;;  %v2138_v50 = vld [vmem:[#allocation6 + $0xcc8] sm:$0xff]  ;;  %v7202_v57 = vpack.c.bf16 %v2135_v49, %v2131_v47 }
  0xe2   :  { %7153 = vmatprep.subr.bf16.mxu1 %v7152_v55  ;;  %v2142_v51 = vld [vmem:[#allocation6 + $0xce8] sm:$0xff]  ;;  %v7170_v55 = vpack.c.bf16 %v2133_v46, %v2129_v45  ;;  %v2163_v45 = vld [vmem:[#allocation6 + $0xd90] sm:$0xff] }
  0xe3   :  { %v7172_v58 = vpack.c.bf16 %v2142_v51, %v2138_v50  ;;  %v2167_v46 = vld [vmem:[#allocation6 + $0xdb0] sm:$0xff]  ;;  %v2174_v49 = vld [vmem:[#allocation6 + $0xde8] sm:$0xff]  ;;  %v2193_v51 = vrot.slane %v2109_v37, 3 }
  0xe4   :  { %7123 = vmatpush1.bf16.msra.mxu0 %v7122_v63  ;;  %v2146_v63 = vld [vmem:[#allocation6 + $0xd08] sm:$0xff]  ;;  %v2110_v50 = vld [vmem:[#allocation3 + $0x36] sm:$0x1] }
  0xe5   :  { %7155 = vmatpush1.bf16.msra.mxu1 %v7154_v2  ;;  %7125 = vmatprep.subr.bf16.mxu0 %v7124_v3  ;;  %v2106_v2 = vld [vmem:[#allocation3 + $0x16] sm:$0x1]  ;;  %v2185_v3 = vrot.slane %v2105_v54, 7  ;;  %v7176_v10 = vpack.c.bf16 %v2150_v1, %v2146_v63  ;;  %v2195_v63 = vrot.slane %v2110_v50, 2  ;;  %v7220_v1 = vpack.c.bf16 %v2176_v53, %v2172_v52  ;;  %v2476_v37 = vld [vmem:[#allocation6 + $0xea8] sm:$0xff]  ;;  %v8314_v50 = vld [vmem:[%s10972_s1 + $0x38] sm:$0xff] }
  0xe6   :  { %7157 = vmatprep.subr.bf16.mxu1 %v7156_v8  ;;  %v2145_v8 = vld [vmem:[#allocation6 + $0xd00] sm:$0xff]  ;;  %v2187_v14 = vrot.slane %v2106_v2, 6  ;;  %11101 = vst [vmem:[#allocation19_spill] sm:$0xff] %v8314_v50  ;;  %vm2803_vm14 = vcmp.eq.f32.partialorder %v8314_v50, 0.0 }
  0xe7   :  { %v7178_v22 = vpack.c.bf16 %v2149_v11, %v2145_v8  ;;  %v2459_v8 = vld [vmem:[#allocation6 + $0xe20] sm:$0xff]  ;;  %v8249_v11 = vld [vmem:[#allocation6 + $0xe10] sm:$0xff] }
  0xe8   :  { %7127 = vmatpush1.bf16.msra.mxu0 %v7126_v15  ;;  %v7208_v15 = vpack.c.bf16 %v2152_v5, %v2148_v4  ;;  %v2460_v4 = vld [vmem:[#allocation6 + $0xe28] sm:$0xff]  ;;  %v2458_v5 = vld [vmem:[#allocation6 + $0xe18] sm:$0xff] }
  0xe9   :  { %7159 = vmatpush1.bf16.msra.mxu1 %v7158_v17  ;;  %7161 = vmatprep.subr.bf16.mxu0 %v7160_v19  ;;  %v2154_v17 = vld [vmem:[#allocation6 + $0xd48] sm:$0xff]  ;;  %v2186_v19 = vsel %vm124_vm0, %v2185_v3, %v2104_v6  ;;  %v2462_v6 = vld [vmem:[#allocation6 + $0xe38] sm:$0xff] }
  0xea   :  { %7193 = vmatprep.subr.bf16.mxu1 %v7192_v23  ;;  %v2108_v23 = vld [vmem:[#allocation3 + $0x26] sm:$0x1]  ;;  %v7180_v26 = vpack.c.bf16 %v2158_v18, %v2154_v17  ;;  %v2456_v3 = vld [vmem:[#allocation6 + $0xe08] sm:$0xff]  ;;  %v7256_v18 = vpack.c.bf16 %v2462_v6, %v2458_v5 }
  0xeb   :  { %1923 = vmatmul.mubr.f32.vlgmr.msra.gmra.mrb[10].mxu0 %v1856_v29  ;;  %v2191_v38 = vrot.slane %v2108_v23, 4  ;;  %v2468_v17 = vld [vmem:[#allocation6 + $0xe68] sm:$0xff]  ;;  %v7258_v23 = vpack.c.bf16 %v2461_v12, %v8249_v11  ;;  %v2479_v6 = vld [vmem:[#allocation6 + $0xec0] sm:$0xff]  ;;  %v2481_v11 = vld [vmem:[#allocation6 + $0xed0] sm:$0xff] }
  0xec   :  { %1994 = vmatmul.mubr.f32.vlgmr.msra.gmra.mrb[10].mxu1 %v1856_v29  ;;  %7163 = vmatpush1.bf16.msra.mxu0 %v7162_v30  ;;  %v2155_v29 = vld [vmem:[#allocation6 + $0xd50] sm:$0xff]  ;;  %v2188_v30 = vsel %vm127_vm1, %v2187_v14, %v2186_v19  ;;  %v7228_v28 = vpack.c.bf16 %v2468_v17, %v2464_v16  ;;  %v2488_v16 = vld [vmem:[#allocation6 + $0xf08] sm:$0xff] }
  0xed   :  { %7195 = vmatpush1.bf16.msra.mxu1 %v7194_v31  ;;  %7165 = vmatprep.subr.bf16.mxu0 %v7164_v32  ;;  %v7212_v31 = vpack.c.bf16 %v2160_v21, %v2156_v20  ;;  %v2159_v32 = vld [vmem:[#allocation6 + $0xd70] sm:$0xff]  ;;  %v2190_v41 = vsel %vm130_vm2, %v2189_v24, %v2188_v30  ;;  %v2466_v20 = vld [vmem:[#allocation6 + $0xe58] sm:$0xff]  ;;  %v8255_v21 = vld [vmem:[%s10972_s1] sm:$0xff]  ;;  %v8140_v30 = vmov 0.125  }
  0xee   :  { %7197 = vmatprep.subr.bf16.mxu1 %v7196_v36  ;;  %2264 = vmatprep.mubr.f32.mxu0 %v8139_v0  ;;  %v2168_v36 = vld [vmem:[#allocation6 + $0xdb8] sm:$0xff]  ;;  %v2192_v54 = vsel %vm133_vm3, %v2191_v38, %v2190_v41  ;;  %11094 = vst [vmem:[#allocation12_spill] sm:$0xff] %v8255_v21  ;;  %vm2796_vm7 = vcmp.eq.f32.partialorder %v8255_v21, 0.0  ;;  %v8141_v41 = vmov 0   ;;  %v2811_v60 = vsel %vm2803_vm14, 0.0, %v8140_v30  ;;  %v2485_v12 = vld [vmem:[#allocation6 + $0xef0] sm:$0xff] }
  0xef   :  { %2335 = vmatprep.mubr.f32.mxu1 %v8139_v0  ;;  %v7216_v47 = vpack.c.bf16 %v2168_v36, %v2164_v35  ;;  %v2194_v2 = vsel %vm136_vm4, %v2193_v51, %v2192_v54  ;;  %v2470_v24 = vld [vmem:[#allocation6 + $0xe78] sm:$0xff]  ;;  %v2469_v35 = vld [vmem:[#allocation6 + $0xe70] sm:$0xff]  ;;  %v2472_v36 = vld [vmem:[#allocation6 + $0xe88] sm:$0xff]  ;;  %7299 = vset.pattern.permute.xlu0 %v8141_v41 }
  0xf0   :  { %7167 = vmatpush1.bf16.msra.mxu0 %v7166_v42  ;;  %v7214_v42 = vpack.c.bf16 %v2159_v32, %v2155_v29  ;;  %v2196_v14 = vsel %vm139_vm5, %v2195_v63, %v2194_v2  ;;  %v8270_v29 = vld [vmem:[#allocation6 + $0xe50] sm:$0xff]  ;;  %v2471_v51 = vld [vmem:[#allocation6 + $0xe80] sm:$0xff]  ;;  %v2484_v63 = vld [vmem:[#allocation6 + $0xee8] sm:$0xff]  ;;  %7310 = vset.pattern.permute.xlu1 %v8141_v41 }
  0xf1   :  { %7199 = vmatpush1.bf16.msra.mxu1 %v7198_v43  ;;  %7169 = vmatprep.subr.bf16.mxu0 %v7168_v44  ;;  %v7184_v43 = vpack.c.bf16 %v2166_v34, %v2162_v33  ;;  %v2165_v44 = vld [vmem:[#allocation6 + $0xda0] sm:$0xff]  ;;  %v8284_v34 = vld [vmem:[%s10972_s1 + $0x28] sm:$0xff]  ;;  %v7262_v54 = vpack.c.bf16 %v2469_v35, %v8270_v29  ;;  %v2489_v29 = vld [vmem:[#allocation6 + $0xf10] sm:$0xff]  ;;  %v8142_v35 = vmov 1966171168  }
  0xf2   :  { %7201 = vmatprep.subr.bf16.mxu1 %v7200_v48  ;;  %v2170_v48 = vld [vmem:[#allocation6 + $0xdc8] sm:$0xff]  ;;  %v8279_v33 = vld [vmem:[%s10972_s1 + $0x20] sm:$0xff]  ;;  %11097 = vst [vmem:[#allocation15_spill] sm:$0xff] %v8284_v34  ;;  %vm2801_vm10 = vcmp.eq.f32.partialorder %v8284_v34, 0.0  ;;  %v2502_v41 = vld [vmem:[#allocation6 + $0xf78] sm:$0xff] }
  0xf3   :  { %v7188_v59 = vpack.c.bf16 %v2174_v49, %v2170_v48  ;;  %11096 = vst [vmem:[#allocation14_spill] sm:$0xff] %v8279_v33  ;;  %vm2800_vm9 = vcmp.eq.f32.partialorder %v8279_v33, 0.0  ;;  %v8309_v49 = vld [vmem:[%s10972_s1 + $0x30] sm:$0xff]  ;;  %v2492_v17 = vld [vmem:[#allocation6 + $0xf28] sm:$0xff] }
  0xf4   :  { %7171 = vmatpush1.bf16.msra.mxu0 %v7170_v55  ;;  %v7186_v55 = vpack.c.bf16 %v2165_v44, %v2161_v40  ;;  %v2474_v40 = vld [vmem:[#allocation6 + $0xe98] sm:$0xff]  ;;  %v8295_v44 = vld [vmem:[%s10972_s1 + $0x10] sm:$0xff]  ;;  %11100 = vst [vmem:[#allocation18_spill] sm:$0xff] %v8309_v49  ;;  %vm2802_vm13 = vcmp.eq.f32.partialorder %v8309_v49, 0.0 }
  0xf5   :  { %7203 = vmatpush1.bf16.msra.mxu1 %v7202_v57  ;;  %7173 = vmatprep.subr.bf16.mxu0 %v7172_v58  ;;  %v2173_v57 = vld [vmem:[#allocation6 + $0xde0] sm:$0xff]  ;;  %v7218_v58 = vpack.c.bf16 %v2167_v46, %v2163_v45  ;;  %11098 = vst [vmem:[#allocation16_spill] sm:$0xff] %v8295_v44  ;;  %v8300_v45 = vld [vmem:[%s10972_s1 + $0x18] sm:$0xff]  ;;  %vm2798_vm11 = vcmp.eq.f32.partialorder %v8295_v44, 0.0 }
  0xf6   :  { %7205 = vmatprep.subr.bf16.mxu1 %v7204_v62  ;;  %v2111_v62 = vld [vmem:[#allocation3 + $0x3e] sm:$0x1]  ;;  %11099 = vst [vmem:[#allocation17_spill] sm:$0xff] %v8300_v45  ;;  %vm2799_vm12 = vcmp.eq.f32.partialorder %v8300_v45, 0.0  ;;  %v2806_v52 = vsel %vm2798_vm11, 0.0, %v8140_v30 }
  0xf7   :  { %v2807_v53 = vsel %vm2799_vm12, 0.0, %v8140_v30 }
  0xf8   :  { %7175 = vmatpush1.bf16.msra.mxu0 %v7174_v7  ;;  %v2455_v7 = vld [vmem:[#allocation6 + $0xe00] sm:$0xff]  ;;  %v7305_v2 = vpack.i.bf16 %v2807_v53, %v2806_v52 }
  0xf9   :  { %7207 = vmatpush1.bf16.msra.mxu1 %v7206_v9  ;;  %7177 = vmatprep.subr.bf16.mxu0 %v7176_v10  ;;  %v7190_v9 = vpack.c.bf16 %v2173_v57, %v2169_v56  ;;  %v2197_v10 = vrot.slane %v2111_v62, 1  ;;  %v7226_v19 = vpack.c.bf16 %v2459_v8, %v2455_v7  ;;  %v2475_v56 = vld [vmem:[#allocation6 + $0xea0] sm:$0xff]  ;;  %v2473_v57 = vld [vmem:[#allocation6 + $0xe90] sm:$0xff]  ;;  %v2480_v62 = vld [vmem:[#allocation6 + $0xec8] sm:$0xff] }
  0xfa   :  { %7209 = vmatprep.subr.bf16.mxu1 %v7208_v15  ;;  %v7224_v15 = vpack.c.bf16 %v2460_v4, %v2456_v3  ;;  %v2482_v3 = vld [vmem:[#allocation6 + $0xed8] sm:$0xff]  ;;  %v7234_v5 = vpack.c.bf16 %v2475_v56, %v2471_v51  ;;  %v2483_v7 = vld [vmem:[#allocation6 + $0xee0] sm:$0xff] }
  0xfb   :  { %v2198_v27 = vsel %vm142_vm6, %v2197_v10, %v2196_v14  ;;  %v2486_v4 = vld [vmem:[#allocation6 + $0xef8] sm:$0xff]  ;;  %v7236_v10 = vpack.c.bf16 %v2484_v63, %v2480_v62  ;;  %v2499_v53 = vld [vmem:[#allocation6 + $0xf60] sm:$0xff] }
  0xfc   :  { %7179 = vmatpush1.bf16.msra.mxu0 %v7178_v22  ;;  %v8260_v22 = vld [vmem:[%s10972_s1 + $0x8] sm:$0xff]  ;;  %v2506_v63 = vld [vmem:[#allocation6 + $0xf98] sm:$0xff]  ;;  %s8143_s1 = smov [#allocation8]  }
  0xfd   :  { %7211 = vmatpush1.bf16.msra.mxu1 %v7210_v25  ;;  %7181 = vmatprep.subr.bf16.mxu0 %v7180_v26  ;;  %11095 = vst [vmem:[#allocation13_spill] sm:$0xff] %v8260_v22  ;;  %v8263_v25 = vld [vmem:[#allocation6 + $0xe40] sm:$0xff]  ;;  %vm2797_vm8 = vcmp.eq.f32.partialorder %v8260_v22, 0.0  ;;  %s6766_s27 = sshll.u32 %s8143_s1, 4  ;;  %s6767_s27 = int_to_ptr.vmem [resolvable:$true] %s6766_s27 }
  0xfe   :  { %7213 = vmatprep.subr.bf16.mxu1 %v7212_v31  ;;  %v8265_v26 = vld [vmem:[#allocation6 + $0xe60] sm:$0xff]  ;;  %v2804_v31 = vsel %vm2796_vm7, 0.0, %v8140_v30  ;;  %v2805_v32 = vsel %vm2797_vm8, 0.0, %v8140_v30  ;;  %s8105_s28 = scalar_lea.vmem %s6767_s27, 512  ;;  %p8110_p3 = scmp.lt.s32.totalorder %s6767_s27, %s6767_s27 }
  0xff   :  { %v7300_v38 = vpack.i.bf16 %v2805_v32, %v2804_v31  ;;  %v7230_v46 = vpack.c.bf16 %v8265_v26, %v8263_v25  ;;  %v7270_v25 = vpack.c.bf16 %v2485_v12, %v2481_v11  ;;  %v7240_v26 = vpack.c.bf16 %v2492_v17, %v2488_v16  ;;  %v2493_v32 = vld [vmem:[#allocation6 + $0xf30] sm:$0xff]  ;;  %p8106_p2 = scmp.ne.s32.totalorder %s6767_s27, %s8105_s28  ;;  %p8111_p4 = scmp.lt.s32.totalorder %s8105_s28, %s8105_s28 }
 0x100   :  { %7183 = vmatpush1.bf16.msra.mxu0 %v7182_v39  ;;  %v7260_v39 = vpack.c.bf16 %v2470_v24, %v2466_v20  ;;  %v7238_v20 = vpack.c.bf16 %v2483_v7, %v2479_v6  ;;  %v7274_v51 = vpack.c.bf16 %v2493_v32, %v2489_v29  ;;  %v2515_v29 = vld [vmem:[#allocation6 + $0xfe0] sm:$0xff] }
 0x101   :  { %7215 = vmatpush1.bf16.msra.mxu1 %v7214_v42  ;;  %7185 = vmatprep.subr.bf16.mxu0 %v7184_v43  ;;  %v2808_v42 = vsel %vm2800_vm9, 0.0, %v8140_v30  ;;  %v2809_v43 = vsel %vm2801_vm10, 0.0, %v8140_v30  ;;  %p8112_p5 = por %p8111_p4, %p8110_p3 }
 0x102   :  { %7217 = vmatprep.subr.bf16.mxu1 %v7216_v47  ;;  %v2478_v47 = vld [vmem:[#allocation6 + $0xeb8] sm:$0xff]  ;;  %7301 = vperm.xlu0 %7299, %v7300_v38   ;;  %v7311_v48 = vpack.i.bf16 %v2809_v43, %v2808_v42  ;;  %v2496_v38 = vld [vmem:[#allocation6 + $0xf48] sm:$0xff]  ;;  %v2450_v42 = vld [vmem:[#allocation3 + $0x27] sm:$0x1] }
 0x103   :  { %v7264_v61 = vpack.c.bf16 %v2478_v47, %v2474_v40  ;;  %v2498_v40 = vld [vmem:[#allocation6 + $0xf58] sm:$0xff]  ;;  %v2495_v47 = vld [vmem:[#allocation6 + $0xf40] sm:$0xff]  ;;  %v2533_v62 = vrot.slane %v2450_v42, 4  ;;  %p8113_p6 = pnand %p8112_p5, %p8106_p2 }
 0x104   :  { %7187 = vmatpush1.bf16.msra.mxu0 %v7186_v55  ;;  %v7232_v55 = vpack.c.bf16 %v2476_v37, %v2472_v36  ;;  %7312 = vperm.xlu1 %7310, %v7311_v48   ;;  %v296_v36 = vunpack.c.l.s4 %v8142_v35  ;;  %v298_v37 = vlaneseq  ;;  %v2513_v35 = vld [vmem:[#allocation6 + $0xfd0] sm:$0xff] }
 0x105   :  { %7219 = vmatpush1.bf16.msra.mxu1 %v7218_v58  ;;  %7189 = vmatprep.subr.bf16.mxu0 %v7188_v59  ;;  %v2477_v58 = vld [vmem:[#allocation6 + $0xeb0] sm:$0xff]  ;;  %v2810_v59 = vsel %vm2802_vm13, 0.0, %v8140_v30 }
 0x106   :  { %7221 = vmatprep.subr.bf16.mxu1 %v7220_v1  ;;  %v2447_v1 = vld [vmem:[#allocation3 + $0xf] sm:$0x1]  ;;  %v7316_v8 = vpack.i.bf16 %v2811_v60, %v2810_v59  ;;  %7306 = vperm.xlu0 %7299, %v7305_v2   ;;  %v297_v56 = vunpack.c.0.s8 %v296_v36  ;;  %v2517_v36 = vld [vmem:[#allocation6 + $0xff0] sm:$0xff]  ;;  %vm8343_vm15 = vcmp.lt.s32.totalorder %v298_v37, 512 }
 0x107   :  { %v2527_v14 = vrot.slane %v2447_v1, 7  ;;  %v2504_v59 = vld [vmem:[#allocation6 + $0xf88] sm:$0xff]  ;;  %v2510_v1 = vld [vmem:[#allocation6 + $0xfb8] sm:$0xff] }
 0x108   :  { %7191 = vmatpush1.bf16.msra.mxu0 %v7190_v9  ;;  %v7266_v9 = vpack.c.bf16 %v2477_v58, %v2473_v57  ;;  %7317 = vperm.xlu1 %7310, %v7316_v8   ;;  %v299_v57 = vshrl.u32 %v298_v37, 7  ;;  %v7276_v58 = vpack.c.bf16 %v2502_v41, %v2498_v40  ;;  %v2508_v60 = vld [vmem:[#allocation6 + $0xfa8] sm:$0xff]  ;;  %v2505_v8 = vld [vmem:[#allocation6 + $0xf90] sm:$0xff] }
 0x109   :  { %7223 = vmatpush1.bf16.msra.mxu1 %v7222_v13  ;;  %7225 = vmatprep.subr.bf16.mxu0 %v7224_v15  ;;  %v2448_v13 = vld [vmem:[#allocation3 + $0x17] sm:$0x1]  ;;  %v7268_v15 = vpack.c.bf16 %v2486_v4, %v2482_v3  ;;  %v7246_v3 = vpack.c.bf16 %v2499_v53, %v2495_v47  ;;  %v2503_v4 = vld [vmem:[#allocation6 + $0xf80] sm:$0xff]  ;;  %v7248_v7 = vpack.c.bf16 %v2508_v60, %v2504_v59 }
 0x10a   :  { %7257 = vmatprep.subr.bf16.mxu1 %v7256_v18  ;;  %v2490_v18 = vld [vmem:[#allocation6 + $0xf18] sm:$0xff]  ;;  %v2529_v24 = vrot.slane %v2448_v13, 6  ;;  %v8333_v13 = vsub.s32 %v297_v56, %v299_v57 }
 0x10b   :  { %2265 = vmatmul.mubr.f32.vlgmr.msra.gmra.mrb[12].mxu0 %v2198_v27 }
 0x10c   :  { %2336 = vmatmul.mubr.f32.vlgmr.msra.gmra.mrb[12].mxu1 %v2198_v27  ;;  %7227 = vmatpush1.bf16.msra.mxu0 %v7226_v19  ;;  %v2494_v19 = vld [vmem:[#allocation6 + $0xf38] sm:$0xff]  ;;  %v2487_v27 = vld [vmem:[#allocation6 + $0xf00] sm:$0xff] }
 0x10d   :  { %7259 = vmatpush1.bf16.msra.mxu1 %v7258_v23  ;;  %7229 = vmatprep.subr.bf16.mxu0 %v7228_v28  ;;  %v2449_v23 = vld [vmem:[#allocation3 + $0x1f] sm:$0x1]  ;;  %v2491_v28 = vld [vmem:[#allocation6 + $0xf20] sm:$0xff]  ;;  %v7272_v31 = vpack.c.bf16 %v2494_v19, %v2490_v18  ;;  %v2516_v19 = vld [vmem:[#allocation6 + $0xfe8] sm:$0xff] }
 0x10e   :  { %7261 = vmatprep.subr.bf16.mxu1 %v7260_v39  ;;  %2606 = vmatprep.mubr.f32.mxu0 %v8139_v0  ;;  %v2500_v39 = vld [vmem:[#allocation6 + $0xf68] sm:$0xff]  ;;  %v2531_v43 = vrot.slane %v2449_v23, 5  ;;  %v2518_v23 = vld [vmem:[#allocation6 + $0xff8] sm:$0xff] }
 0x10f   :  { %2677 = vmatprep.mubr.f32.mxu1 %v8139_v0  ;;  %v2446_v0 = vld [vmem:[#allocation3 + $0x7] sm:$0x1]  ;;  %v7244_v52 = vpack.c.bf16 %v2500_v39, %v2496_v38  ;;  %v2453_v38 = vld [vmem:[#allocation3 + $0x3f] sm:$0x1] }
 0x110   :  { %7231 = vmatpush1.bf16.msra.mxu0 %v7230_v46  ;;  %v2528_v30 = vsel %vm124_vm0, %v2527_v14, %v2446_v0  ;;  %v7242_v46 = vpack.c.bf16 %v2491_v28, %v2487_v27  ;;  %v7280_v14 = vpack.c.bf16 %v2510_v1, %v2506_v63  ;;  %v2511_v28 = vld [vmem:[#allocation6 + $0xfc0] sm:$0xff]  ;;  %v2539_v53 = vrot.slane %v2453_v38, 1 }
 0x111   :  { %7263 = vmatpush1.bf16.msra.mxu1 %v7262_v54  ;;  %7233 = vmatprep.subr.bf16.mxu0 %v7232_v55  ;;  %v2530_v48 = vsel %vm127_vm1, %v2529_v24, %v2528_v30  ;;  %v2497_v54 = vld [vmem:[#allocation6 + $0xf50] sm:$0xff] }
 0x112   :  { %7265 = vmatprep.subr.bf16.mxu1 %v7264_v61  ;;  %v2501_v55 = vld [vmem:[#allocation6 + $0xf70] sm:$0xff]  ;;  %v2451_v61 = vld [vmem:[#allocation3 + $0x2f] sm:$0x1]  ;;  %v2532_v2 = vsel %vm130_vm2, %v2531_v43, %v2530_v48  ;;  %v7254_v48 = vpack.c.bf16 %v2515_v29, %v2511_v28 }
 0x113   :  { %v7278_v6 = vpack.c.bf16 %v2501_v55, %v2497_v54  ;;  %v2535_v11 = vrot.slane %v2451_v61, 3  ;;  %v2534_v16 = vsel %vm133_vm3, %v2533_v62, %v2532_v2 }
 0x114   :  { %7235 = vmatpush1.bf16.msra.mxu0 %v7234_v5  ;;  %v2507_v5 = vld [vmem:[#allocation6 + $0xfa0] sm:$0xff] }
 0x115   :  { %7267 = vmatpush1.bf16.msra.mxu1 %v7266_v9  ;;  %7237 = vmatprep.subr.bf16.mxu0 %v7236_v10  ;;  %v2509_v9 = vld [vmem:[#allocation6 + $0xfb0] sm:$0xff]  ;;  %v7250_v18 = vpack.c.bf16 %v2507_v5, %v2503_v4  ;;  %v2536_v39 = vsel %vm136_vm4, %v2535_v11, %v2534_v16 }
 0x116   :  { %7269 = vmatprep.subr.bf16.mxu1 %v7268_v15  ;;  %v2452_v10 = vld [vmem:[#allocation3 + $0x37] sm:$0x1]  ;;  %v2512_v15 = vld [vmem:[#allocation6 + $0xfc8] sm:$0xff]  ;;  %v7282_v27 = vpack.c.bf16 %v2509_v9, %v2505_v8 }
 0x117   :  { %v2537_v30 = vrot.slane %v2452_v10, 2  ;;  %v7252_v42 = vpack.c.bf16 %v2516_v19, %v2512_v15 }
 0x118   :  { %7239 = vmatpush1.bf16.msra.mxu0 %v7238_v20  ;;  %v2514_v20 = vld [vmem:[#allocation6 + $0xfd8] sm:$0xff] }
 0x119   :  { %7271 = vmatpush1.bf16.msra.mxu1 %v7270_v25  ;;  %7241 = vmatprep.subr.bf16.mxu0 %v7240_v26  ;;  %v7284_v43 = vpack.c.bf16 %v2518_v23, %v2514_v20 }
 0x11a   :  { %7273 = vmatprep.subr.bf16.mxu1 %v7272_v31 }
 0x11c   :  { %7243 = vmatpush1.bf16.msra.mxu0 %v7242_v46 }
 0x11d   :  { %7275 = vmatpush1.bf16.msra.mxu1 %v7274_v51  ;;  %7245 = vmatprep.subr.bf16.mxu0 %v7244_v52  ;;  %v7286_v51 = vpack.c.bf16 %v2517_v36, %v2513_v35  ;;  %v2538_v52 = vsel %vm139_vm5, %v2537_v30, %v2536_v39 }
 0x11e   :  { %v211_v12 = vpop.f32.mrb[0].mxu0  ;;  %7277 = vmatprep.subr.bf16.mxu1 %v7276_v58  ;;  %v2540_v63 = vsel %vm142_vm6, %v2539_v53, %v2538_v52 }
 0x11f   :  { %v282_v17 = vpop.f32.mrb[0].mxu1  ;;  %v213_v0 = vpop.f32.mrb[1].mxu0 }
 0x120   :  { %v291_v24 = vcombine.low %v211_v12, %v213_v0  ;;  %v292_v25 = vcombine.high %v211_v12, %v213_v0  ;;  %v284_v26 = vpop.f32.mrb[1].mxu1  ;;  %7247 = vmatpush1.bf16.msra.mxu0 %v7246_v3 }
 0x121   :  { %v293_v31 = vcombine.low %v282_v17, %v284_v26  ;;  %v294_v32 = vcombine.high %v282_v17, %v284_v26  ;;  %7279 = vmatpush1.bf16.msra.mxu1 %v7278_v6  ;;  %7249 = vmatprep.subr.bf16.mxu0 %v7248_v7 }
 0x122   :  { %v301_v40 = vrot.slane %v291_v24, %v8333_v13  ;;  %v308_v41 = vrot.slane %v292_v25, %v8333_v13  ;;  %7281 = vmatprep.subr.bf16.mxu1 %v7280_v14 }
 0x123   :  { %v315_v46 = vrot.slane %v293_v31, %v8333_v13  ;;  %v322_v47 = vrot.slane %v294_v32, %v8333_v13 }
 0x124   :  { %7251 = vmatpush1.bf16.msra.mxu0 %v7250_v18 }
 0x125   :  { %v323_v54 = vcombine.low %v301_v40, %v315_v46  ;;  %v324_v55 = vcombine.high %v301_v40, %v315_v46  ;;  %v325_v56 = vcombine.low %v308_v41, %v322_v47  ;;  %v326_v57 = vcombine.high %v308_v41, %v322_v47  ;;  %7283 = vmatpush1.bf16.msra.mxu1 %v7282_v27 }
 0x126   :  { %7253 = vmatprep.subr.bf16.mxu0 %v7252_v42  ;;  %7285 = vmatprep.subr.bf16.mxu1 %v7284_v43 }
 0x127   :  { %v333_v59 = vrot.slane %v323_v54, %v8333_v13  ;;  %v340_v60 = vrot.slane %v325_v56, %v8333_v13  ;;  %v347_v61 = vrot.slane %v324_v55, %v8333_v13  ;;  %v354_v62 = vrot.slane %v326_v57, %v8333_v13 }
 0x128   :  { %7255 = vmatpush1.bf16.msra.mxu0 %v7254_v48 }
 0x129   :  { %v355_v1 = vcombine.high %v333_v59, %v333_v59  ;;  %v356_v2 = vcombine.high %v340_v60, %v340_v60  ;;  %v357_v3 = vcombine.high %v347_v61, %v347_v61  ;;  %v358_v37 = vcombine.high %v354_v62, %v354_v62  ;;  %371 = vst.msk [vmem:[#allocation2] ss:$8 sm:$0xf] %vm8343_vm15, %v333_v59 }
 0x12a   :  { %374 = vst.msk [vmem:[#allocation2 + $0x20] ss:$8 sm:$0xf] %vm8343_vm15, %v347_v61  ;;  %383 = vst.msk [vmem:[#allocation2 + $0x80] ss:$8 sm:$0xf] %vm8343_vm15, %v340_v60  ;;  %7287 = vmatpush1.bf16.msra.mxu1 %v7286_v51 }
 0x12b   :  { %386 = vst.msk [vmem:[#allocation2 + $0xa0] ss:$8 sm:$0xf] %vm8343_vm15, %v354_v62  ;;  %377 = vst.msk [vmem:[#allocation2 + $0x40] ss:$8 sm:$0xf] %vm8343_vm15, %v355_v1  ;;  %2607 = vmatmul.mubr.f32.vlgmr.msra.gmra.mrb[14].mxu0 %v2540_v63 }
 0x12c   :  { %380 = vst.msk [vmem:[#allocation2 + $0x60] ss:$8 sm:$0xf] %vm8343_vm15, %v357_v3  ;;  %389 = vst.msk [vmem:[#allocation2 + $0xc0] ss:$8 sm:$0xf] %vm8343_vm15, %v356_v2 }
 0x12d   :  { %392 = vst.msk [vmem:[#allocation2 + $0xe0] ss:$8 sm:$0xf] %vm8343_vm15, %v358_v37  ;;  %2678 = vmatmul.mubr.f32.vlgmr.msra.gmra.mrb[14].mxu1 %v2540_v63 }
 0x13e   :  { %v556_v4 = vpop.f32.mrb[2].mxu0 }
 0x13f   :  { %v627_v5 = vpop.f32.mrb[2].mxu1  ;;  %v558_v6 = vpop.f32.mrb[3].mxu0 }
 0x140   :  { %v636_v7 = vcombine.low %v556_v4, %v558_v6  ;;  %v637_v8 = vcombine.high %v556_v4, %v558_v6  ;;  %v629_v9 = vpop.f32.mrb[3].mxu1 }
 0x141   :  { %v638_v10 = vcombine.low %v627_v5, %v629_v9  ;;  %v639_v11 = vcombine.high %v627_v5, %v629_v9 }
 0x142   :  { %v646_v12 = vrot.slane %v636_v7, %v8333_v13  ;;  %v653_v14 = vrot.slane %v637_v8, %v8333_v13 }
 0x143   :  { %v660_v15 = vrot.slane %v638_v10, %v8333_v13  ;;  %v667_v16 = vrot.slane %v639_v11, %v8333_v13 }
 0x145   :  { %v668_v17 = vcombine.low %v646_v12, %v660_v15  ;;  %v669_v0 = vcombine.high %v646_v12, %v660_v15  ;;  %v670_v18 = vcombine.low %v653_v14, %v667_v16  ;;  %v671_v19 = vcombine.high %v653_v14, %v667_v16 }
 0x147   :  { %v678_v20 = vrot.slane %v668_v17, %v8333_v13  ;;  %v685_v23 = vrot.slane %v670_v18, %v8333_v13  ;;  %v692_v24 = vrot.slane %v669_v0, %v8333_v13  ;;  %v699_v25 = vrot.slane %v671_v19, %v8333_v13 }
 0x149   :  { %v700_v26 = vcombine.high %v678_v20, %v678_v20  ;;  %v701_v27 = vcombine.high %v685_v23, %v685_v23  ;;  %v702_v28 = vcombine.high %v692_v24, %v692_v24  ;;  %v703_v29 = vcombine.high %v699_v25, %v699_v25  ;;  %713 = vst.msk [vmem:[#allocation2 + $0x1] ss:$8 sm:$0xf] %vm8343_vm15, %v678_v20 }
 0x14a   :  { %716 = vst.msk [vmem:[#allocation2 + $0x21] ss:$8 sm:$0xf] %vm8343_vm15, %v692_v24  ;;  %725 = vst.msk [vmem:[#allocation2 + $0x81] ss:$8 sm:$0xf] %vm8343_vm15, %v685_v23 }
 0x14b   :  { %728 = vst.msk [vmem:[#allocation2 + $0xa1] ss:$8 sm:$0xf] %vm8343_vm15, %v699_v25  ;;  %719 = vst.msk [vmem:[#allocation2 + $0x41] ss:$8 sm:$0xf] %vm8343_vm15, %v700_v26 }
 0x14c   :  { %722 = vst.msk [vmem:[#allocation2 + $0x61] ss:$8 sm:$0xf] %vm8343_vm15, %v702_v28  ;;  %731 = vst.msk [vmem:[#allocation2 + $0xc1] ss:$8 sm:$0xf] %vm8343_vm15, %v701_v27 }
 0x14d   :  { %734 = vst.msk [vmem:[#allocation2 + $0xe1] ss:$8 sm:$0xf] %vm8343_vm15, %v703_v29 }
 0x15e   :  { %v898_v30 = vpop.f32.mrb[4].mxu0 }
 0x15f   :  { %v969_v31 = vpop.f32.mrb[4].mxu1  ;;  %v900_v32 = vpop.f32.mrb[5].mxu0 }
 0x160   :  { %v978_v35 = vcombine.low %v898_v30, %v900_v32  ;;  %v979_v36 = vcombine.high %v898_v30, %v900_v32  ;;  %v971_v38 = vpop.f32.mrb[5].mxu1 }
 0x161   :  { %v980_v39 = vcombine.low %v969_v31, %v971_v38  ;;  %v981_v40 = vcombine.high %v969_v31, %v971_v38 }
 0x162   :  { %v988_v41 = vrot.slane %v978_v35, %v8333_v13  ;;  %v995_v42 = vrot.slane %v979_v36, %v8333_v13 }
 0x163   :  { %v1002_v43 = vrot.slane %v980_v39, %v8333_v13  ;;  %v1009_v46 = vrot.slane %v981_v40, %v8333_v13 }
 0x165   :  { %v1010_v47 = vcombine.low %v988_v41, %v1002_v43  ;;  %v1011_v48 = vcombine.high %v988_v41, %v1002_v43  ;;  %v1012_v51 = vcombine.low %v995_v42, %v1009_v46  ;;  %v1013_v52 = vcombine.high %v995_v42, %v1009_v46 }
 0x167   :  { %v1020_v53 = vrot.slane %v1010_v47, %v8333_v13  ;;  %v1027_v54 = vrot.slane %v1012_v51, %v8333_v13  ;;  %v1034_v55 = vrot.slane %v1011_v48, %v8333_v13  ;;  %v1041_v56 = vrot.slane %v1013_v52, %v8333_v13 }
 0x169   :  { %v1042_v57 = vcombine.high %v1020_v53, %v1020_v53  ;;  %v1043_v59 = vcombine.high %v1027_v54, %v1027_v54  ;;  %v1044_v60 = vcombine.high %v1034_v55, %v1034_v55  ;;  %v1045_v61 = vcombine.high %v1041_v56, %v1041_v56  ;;  %1055 = vst.msk [vmem:[#allocation2 + $0x2] ss:$8 sm:$0xf] %vm8343_vm15, %v1020_v53 }
 0x16a   :  { %1058 = vst.msk [vmem:[#allocation2 + $0x22] ss:$8 sm:$0xf] %vm8343_vm15, %v1034_v55  ;;  %1067 = vst.msk [vmem:[#allocation2 + $0x82] ss:$8 sm:$0xf] %vm8343_vm15, %v1027_v54 }
 0x16b   :  { %1070 = vst.msk [vmem:[#allocation2 + $0xa2] ss:$8 sm:$0xf] %vm8343_vm15, %v1041_v56  ;;  %1061 = vst.msk [vmem:[#allocation2 + $0x42] ss:$8 sm:$0xf] %vm8343_vm15, %v1042_v57 }
 0x16c   :  { %1064 = vst.msk [vmem:[#allocation2 + $0x62] ss:$8 sm:$0xf] %vm8343_vm15, %v1044_v60  ;;  %1073 = vst.msk [vmem:[#allocation2 + $0xc2] ss:$8 sm:$0xf] %vm8343_vm15, %v1043_v59 }
 0x16d   :  { %1076 = vst.msk [vmem:[#allocation2 + $0xe2] ss:$8 sm:$0xf] %vm8343_vm15, %v1045_v61 }
 0x17e   :  { %v1240_v62 = vpop.f32.mrb[6].mxu0 }
 0x17f   :  { %v1311_v63 = vpop.f32.mrb[6].mxu1  ;;  %v1242_v1 = vpop.f32.mrb[7].mxu0 }
 0x180   :  { %v1320_v2 = vcombine.low %v1240_v62, %v1242_v1  ;;  %v1321_v3 = vcombine.high %v1240_v62, %v1242_v1  ;;  %v1313_v37 = vpop.f32.mrb[7].mxu1 }
 0x181   :  { %v1322_v4 = vcombine.low %v1311_v63, %v1313_v37  ;;  %v1323_v5 = vcombine.high %v1311_v63, %v1313_v37 }
 0x182   :  { %v1330_v6 = vrot.slane %v1320_v2, %v8333_v13  ;;  %v1337_v7 = vrot.slane %v1321_v3, %v8333_v13 }
 0x183   :  { %v1344_v8 = vrot.slane %v1322_v4, %v8333_v13  ;;  %v1351_v9 = vrot.slane %v1323_v5, %v8333_v13 }
 0x185   :  { %v1352_v10 = vcombine.low %v1330_v6, %v1344_v8  ;;  %v1353_v11 = vcombine.high %v1330_v6, %v1344_v8  ;;  %v1354_v12 = vcombine.low %v1337_v7, %v1351_v9  ;;  %v1355_v14 = vcombine.high %v1337_v7, %v1351_v9 }
 0x187   :  { %v1362_v15 = vrot.slane %v1352_v10, %v8333_v13  ;;  %v1369_v16 = vrot.slane %v1354_v12, %v8333_v13  ;;  %v1376_v17 = vrot.slane %v1353_v11, %v8333_v13  ;;  %v1383_v0 = vrot.slane %v1355_v14, %v8333_v13 }
 0x189   :  { %v1384_v18 = vcombine.high %v1362_v15, %v1362_v15  ;;  %v1385_v19 = vcombine.high %v1369_v16, %v1369_v16  ;;  %v1386_v20 = vcombine.high %v1376_v17, %v1376_v17  ;;  %v1387_v23 = vcombine.high %v1383_v0, %v1383_v0  ;;  %1397 = vst.msk [vmem:[#allocation2 + $0x3] ss:$8 sm:$0xf] %vm8343_vm15, %v1362_v15 }
 0x18a   :  { %1400 = vst.msk [vmem:[#allocation2 + $0x23] ss:$8 sm:$0xf] %vm8343_vm15, %v1376_v17  ;;  %1409 = vst.msk [vmem:[#allocation2 + $0x83] ss:$8 sm:$0xf] %vm8343_vm15, %v1369_v16 }
 0x18b   :  { %1412 = vst.msk [vmem:[#allocation2 + $0xa3] ss:$8 sm:$0xf] %vm8343_vm15, %v1383_v0  ;;  %1403 = vst.msk [vmem:[#allocation2 + $0x43] ss:$8 sm:$0xf] %vm8343_vm15, %v1384_v18 }
 0x18c   :  { %1406 = vst.msk [vmem:[#allocation2 + $0x63] ss:$8 sm:$0xf] %vm8343_vm15, %v1386_v20  ;;  %1415 = vst.msk [vmem:[#allocation2 + $0xc3] ss:$8 sm:$0xf] %vm8343_vm15, %v1385_v19 }
 0x18d   :  { %1418 = vst.msk [vmem:[#allocation2 + $0xe3] ss:$8 sm:$0xf] %vm8343_vm15, %v1387_v23 }
 0x19e   :  { %v1582_v24 = vpop.f32.mrb[8].mxu0 }
 0x19f   :  { %v1653_v25 = vpop.f32.mrb[8].mxu1  ;;  %v1584_v26 = vpop.f32.mrb[9].mxu0 }
 0x1a0   :  { %v1662_v27 = vcombine.low %v1582_v24, %v1584_v26  ;;  %v1663_v28 = vcombine.high %v1582_v24, %v1584_v26  ;;  %v1655_v29 = vpop.f32.mrb[9].mxu1 }
 0x1a1   :  { %v1664_v30 = vcombine.low %v1653_v25, %v1655_v29  ;;  %v1665_v31 = vcombine.high %v1653_v25, %v1655_v29 }
 0x1a2   :  { %v1672_v32 = vrot.slane %v1662_v27, %v8333_v13  ;;  %v1679_v35 = vrot.slane %v1663_v28, %v8333_v13 }
 0x1a3   :  { %v1686_v36 = vrot.slane %v1664_v30, %v8333_v13  ;;  %v1693_v38 = vrot.slane %v1665_v31, %v8333_v13 }
 0x1a5   :  { %v1694_v39 = vcombine.low %v1672_v32, %v1686_v36  ;;  %v1695_v40 = vcombine.high %v1672_v32, %v1686_v36  ;;  %v1696_v41 = vcombine.low %v1679_v35, %v1693_v38  ;;  %v1697_v42 = vcombine.high %v1679_v35, %v1693_v38 }
 0x1a7   :  { %v1704_v43 = vrot.slane %v1694_v39, %v8333_v13  ;;  %v1711_v46 = vrot.slane %v1696_v41, %v8333_v13  ;;  %v1718_v47 = vrot.slane %v1695_v40, %v8333_v13  ;;  %v1725_v48 = vrot.slane %v1697_v42, %v8333_v13 }
 0x1a9   :  { %v1726_v51 = vcombine.high %v1704_v43, %v1704_v43  ;;  %v1727_v52 = vcombine.high %v1711_v46, %v1711_v46  ;;  %v1728_v53 = vcombine.high %v1718_v47, %v1718_v47  ;;  %v1729_v54 = vcombine.high %v1725_v48, %v1725_v48  ;;  %1739 = vst.msk [vmem:[#allocation2 + $0x4] ss:$8 sm:$0xf] %vm8343_vm15, %v1704_v43 }
 0x1aa   :  { %1742 = vst.msk [vmem:[#allocation2 + $0x24] ss:$8 sm:$0xf] %vm8343_vm15, %v1718_v47  ;;  %1751 = vst.msk [vmem:[#allocation2 + $0x84] ss:$8 sm:$0xf] %vm8343_vm15, %v1711_v46 }
 0x1ab   :  { %1754 = vst.msk [vmem:[#allocation2 + $0xa4] ss:$8 sm:$0xf] %vm8343_vm15, %v1725_v48  ;;  %1745 = vst.msk [vmem:[#allocation2 + $0x44] ss:$8 sm:$0xf] %vm8343_vm15, %v1726_v51 }
 0x1ac   :  { %1748 = vst.msk [vmem:[#allocation2 + $0x64] ss:$8 sm:$0xf] %vm8343_vm15, %v1728_v53  ;;  %1757 = vst.msk [vmem:[#allocation2 + $0xc4] ss:$8 sm:$0xf] %vm8343_vm15, %v1727_v52 }
 0x1ad   :  { %1760 = vst.msk [vmem:[#allocation2 + $0xe4] ss:$8 sm:$0xf] %vm8343_vm15, %v1729_v54 }
 0x1be   :  { %v1924_v55 = vpop.f32.mrb[10].mxu0 }
 0x1bf   :  { %v1995_v56 = vpop.f32.mrb[10].mxu1  ;;  %v1926_v57 = vpop.f32.mrb[11].mxu0 }
 0x1c0   :  { %v2004_v59 = vcombine.low %v1924_v55, %v1926_v57  ;;  %v2005_v60 = vcombine.high %v1924_v55, %v1926_v57  ;;  %v1997_v61 = vpop.f32.mrb[11].mxu1 }
 0x1c1   :  { %v2006_v62 = vcombine.low %v1995_v56, %v1997_v61  ;;  %v2007_v63 = vcombine.high %v1995_v56, %v1997_v61 }
 0x1c2   :  { %v2014_v1 = vrot.slane %v2004_v59, %v8333_v13  ;;  %v2021_v2 = vrot.slane %v2005_v60, %v8333_v13 }
 0x1c3   :  { %v2028_v3 = vrot.slane %v2006_v62, %v8333_v13  ;;  %v2035_v37 = vrot.slane %v2007_v63, %v8333_v13 }
 0x1c5   :  { %v2036_v4 = vcombine.low %v2014_v1, %v2028_v3  ;;  %v2037_v5 = vcombine.high %v2014_v1, %v2028_v3  ;;  %v2038_v6 = vcombine.low %v2021_v2, %v2035_v37  ;;  %v2039_v7 = vcombine.high %v2021_v2, %v2035_v37 }
 0x1c7   :  { %v2046_v8 = vrot.slane %v2036_v4, %v8333_v13  ;;  %v2053_v9 = vrot.slane %v2038_v6, %v8333_v13  ;;  %v2060_v10 = vrot.slane %v2037_v5, %v8333_v13  ;;  %v2067_v11 = vrot.slane %v2039_v7, %v8333_v13  ;;  %v7302_v6 = vpop.permute.xlu0 %7301 }
 0x1c9   :  { %v2068_v12 = vcombine.high %v2046_v8, %v2046_v8  ;;  %v2069_v14 = vcombine.high %v2053_v9, %v2053_v9  ;;  %v2070_v15 = vcombine.high %v2060_v10, %v2060_v10  ;;  %v2071_v16 = vcombine.high %v2067_v11, %v2067_v11  ;;  %2081 = vst.msk [vmem:[#allocation2 + $0x5] ss:$8 sm:$0xf] %vm8343_vm15, %v2046_v8 }
 0x1ca   :  { %2084 = vst.msk [vmem:[#allocation2 + $0x25] ss:$8 sm:$0xf] %vm8343_vm15, %v2060_v10  ;;  %2093 = vst.msk [vmem:[#allocation2 + $0x85] ss:$8 sm:$0xf] %vm8343_vm15, %v2053_v9 }
 0x1cb   :  { %2096 = vst.msk [vmem:[#allocation2 + $0xa5] ss:$8 sm:$0xf] %vm8343_vm15, %v2067_v11  ;;  %2087 = vst.msk [vmem:[#allocation2 + $0x45] ss:$8 sm:$0xf] %vm8343_vm15, %v2068_v12  ;;  %v7313_v11 = vpop.permute.xlu1 %7312  ;;  %v8538_v12 = vunpack.i.l.bf16 %v7302_v6 }
 0x1cc   :  { %2090 = vst.msk [vmem:[#allocation2 + $0x65] ss:$8 sm:$0xf] %vm8343_vm15, %v2070_v15  ;;  %2099 = vst.msk [vmem:[#allocation2 + $0xc5] ss:$8 sm:$0xf] %vm8343_vm15, %v2069_v14  ;;  %v8540_v14 = vunpack.i.l.bf16 %v7313_v11  ;;  %v7307_v15 = vpop.permute.xlu0 %7306 }
 0x1cd   :  { %2102 = vst.msk [vmem:[#allocation2 + $0xe5] ss:$8 sm:$0xf] %vm8343_vm15, %v2071_v16  ;;  %v8542_v16 = vunpack.i.h.bf16 %v7313_v11  ;;  %v8554_v58 = vunpack.i.l.bf16 %v7307_v15 }
 0x1de   :  { %v2266_v17 = vpop.f32.mrb[12].mxu0 }
 0x1df   :  { %v2337_v0 = vpop.f32.mrb[12].mxu1  ;;  %v2268_v18 = vpop.f32.mrb[13].mxu0 }
 0x1e0   :  { %v2346_v19 = vcombine.low %v2266_v17, %v2268_v18  ;;  %v2347_v20 = vcombine.high %v2266_v17, %v2268_v18  ;;  %v2339_v23 = vpop.f32.mrb[13].mxu1  ;;  %v8544_v17 = vpop.permute.xlu1 %7317 }
 0x1e1   :  { %v2348_v24 = vcombine.low %v2337_v0, %v2339_v23  ;;  %v2349_v25 = vcombine.high %v2337_v0, %v2339_v23  ;;  %v8546_v0 = vunpack.i.h.bf16 %v7307_v15 }
 0x1e2   :  { %v2356_v26 = vrot.slane %v2346_v19, %v8333_v13  ;;  %v2363_v27 = vrot.slane %v2347_v20, %v8333_v13 }
 0x1e3   :  { %v2370_v28 = vrot.slane %v2348_v24, %v8333_v13  ;;  %v2377_v29 = vrot.slane %v2349_v25, %v8333_v13 }
 0x1e5   :  { %v2378_v30 = vcombine.low %v2356_v26, %v2370_v28  ;;  %v2379_v31 = vcombine.high %v2356_v26, %v2370_v28  ;;  %v2380_v32 = vcombine.low %v2363_v27, %v2377_v29  ;;  %v2381_v35 = vcombine.high %v2363_v27, %v2377_v29 }
 0x1e6   :  { %v8569_v29 = vunpack.i.h.bf16 %v8544_v17 }
 0x1e7   :  { %v2388_v36 = vrot.slane %v2378_v30, %v8333_v13  ;;  %v2395_v38 = vrot.slane %v2380_v32, %v8333_v13  ;;  %v2402_v39 = vrot.slane %v2379_v31, %v8333_v13  ;;  %v2409_v40 = vrot.slane %v2381_v35, %v8333_v13 }
 0x1e9   :  { %v2410_v41 = vcombine.high %v2388_v36, %v2388_v36  ;;  %v2411_v42 = vcombine.high %v2395_v38, %v2395_v38  ;;  %v2412_v43 = vcombine.high %v2402_v39, %v2402_v39  ;;  %v2413_v46 = vcombine.high %v2409_v40, %v2409_v40  ;;  %2423 = vst.msk [vmem:[#allocation2 + $0x6] ss:$8 sm:$0xf] %vm8343_vm15, %v2388_v36 }
 0x1ea   :  { %2426 = vst.msk [vmem:[#allocation2 + $0x26] ss:$8 sm:$0xf] %vm8343_vm15, %v2402_v39  ;;  %2435 = vst.msk [vmem:[#allocation2 + $0x86] ss:$8 sm:$0xf] %vm8343_vm15, %v2395_v38 }
 0x1eb   :  { %2438 = vst.msk [vmem:[#allocation2 + $0xa6] ss:$8 sm:$0xf] %vm8343_vm15, %v2409_v40  ;;  %2429 = vst.msk [vmem:[#allocation2 + $0x46] ss:$8 sm:$0xf] %vm8343_vm15, %v2410_v41 }
 0x1ec   :  { %2432 = vst.msk [vmem:[#allocation2 + $0x66] ss:$8 sm:$0xf] %vm8343_vm15, %v2412_v43  ;;  %2441 = vst.msk [vmem:[#allocation2 + $0xc6] ss:$8 sm:$0xf] %vm8343_vm15, %v2411_v42 }
 0x1ed   :  { %2444 = vst.msk [vmem:[#allocation2 + $0xe6] ss:$8 sm:$0xf] %vm8343_vm15, %v2413_v46 }
 0x1fe   :  { %v2608_v47 = vpop.f32.mrb[14].mxu0 }
 0x1ff   :  { %v2610_v51 = vpop.f32.mrb[15].mxu0 }
 0x200   :  { %v2679_v48 = vpop.f32.mrb[14].mxu1  ;;  %v2688_v52 = vcombine.low %v2608_v47, %v2610_v51  ;;  %v2689_v53 = vcombine.high %v2608_v47, %v2610_v51 }
 0x201   :  { %v2681_v54 = vpop.f32.mrb[15].mxu1 }
 0x202   :  { %v2690_v55 = vcombine.low %v2679_v48, %v2681_v54  ;;  %v2691_v56 = vcombine.high %v2679_v48, %v2681_v54  ;;  %v2698_v57 = vrot.slane %v2688_v52, %v8333_v13  ;;  %v2705_v59 = vrot.slane %v2689_v53, %v8333_v13 }
 0x204   :  { %v2712_v60 = vrot.slane %v2690_v55, %v8333_v13  ;;  %v2719_v61 = vrot.slane %v2691_v56, %v8333_v13 }
 0x206   :  { %v2720_v62 = vcombine.low %v2698_v57, %v2712_v60  ;;  %v2721_v63 = vcombine.high %v2698_v57, %v2712_v60  ;;  %v2722_v1 = vcombine.low %v2705_v59, %v2719_v61  ;;  %v2723_v2 = vcombine.high %v2705_v59, %v2719_v61 }
 0x208   :  { %v2730_v3 = vrot.slane %v2720_v62, %v8333_v13  ;;  %v2737_v37 = vrot.slane %v2722_v1, %v8333_v13  ;;  %v2744_v4 = vrot.slane %v2721_v63, %v8333_v13  ;;  %v2751_v5 = vrot.slane %v2723_v2, %v8333_v13 }
 0x209   :  { %v8536_v13 = vunpack.i.h.bf16 %v7302_v6 }
 0x20a   :  { %v2752_v7 = vcombine.high %v2730_v3, %v2730_v3  ;;  %v2753_v8 = vcombine.high %v2737_v37, %v2737_v37  ;;  %v2754_v9 = vcombine.high %v2744_v4, %v2744_v4  ;;  %v2755_v10 = vcombine.high %v2751_v5, %v2751_v5  ;;  %2765 = vst.msk [vmem:[#allocation2 + $0x7] ss:$8 sm:$0xf] %vm8343_vm15, %v2730_v3 }
 0x20b   :  { %2768 = vst.msk [vmem:[#allocation2 + $0x27] ss:$8 sm:$0xf] %vm8343_vm15, %v2744_v4  ;;  %2777 = vst.msk [vmem:[#allocation2 + $0x87] ss:$8 sm:$0xf] %vm8343_vm15, %v2737_v37 }
 0x20c   :  { %2780 = vst.msk [vmem:[#allocation2 + $0xa7] ss:$8 sm:$0xf] %vm8343_vm15, %v2751_v5  ;;  %2771 = vst.msk [vmem:[#allocation2 + $0x47] ss:$8 sm:$0xf] %vm8343_vm15, %v2752_v7 }
 0x20d   :  { %2774 = vst.msk [vmem:[#allocation2 + $0x67] ss:$8 sm:$0xf] %vm8343_vm15, %v2754_v9  ;;  %2783 = vst.msk [vmem:[#allocation2 + $0xc7] ss:$8 sm:$0xf] %vm8343_vm15, %v2753_v8 }
 0x20e   :  { %2786 = vst.msk [vmem:[#allocation2 + $0xe7] ss:$8 sm:$0xf] %vm8343_vm15, %v2755_v10 }
 0x211   :  { %v8550_v19 = vld [vmem:[#allocation2] sm:$0xff]  ;;  %v8564_v27 = vld [vmem:[#allocation2 + $0x8] sm:$0xff]  ;;  %v4806_v35 = vld [vmem:[#allocation2 + $0x10] sm:$0xff] }
 0x212   :  { %v8548_v18 = vld [vmem:[#allocation2 + $0x20] sm:$0xff]  ;;  %v2860_v24 = vmul.f32 %v8538_v12, %v8550_v19  ;;  %v8566_v28 = vld [vmem:[#allocation2 + $0x28] sm:$0xff]  ;;  %v3837_v31 = vmul.f32 %v8538_v12, %v8564_v27  ;;  %v4807_v36 = vld [vmem:[#allocation2 + $0x30] sm:$0xff]  ;;  %v4814_v41 = vmul.f32 %v8538_v12, %v4806_v35 }
 0x213   :  { %v8552_v20 = vld [vmem:[#allocation2 + $0x80] sm:$0xff]  ;;  %v2861_v23 = vmul.f32 %v8536_v13, %v8548_v18  ;;  %v3838_v32 = vmul.f32 %v8536_v13, %v8566_v28  ;;  %v4815_v47 = vmul.f32 %v8536_v13, %v4807_v36 }
 0x214   :  { %v2864_v25 = vmul.f32 %v8540_v14, %v8552_v20  ;;  %v8562_v26 = vld [vmem:[#allocation2 + $0xa0] sm:$0xff]  ;;  %v2868_v39 = vrot.slane %v2860_v24, 4  ;;  %v3845_v43 = vrot.slane %v3837_v31, 4  ;;  %v4822_v53 = vrot.slane %v4814_v41, 4 }
 0x215   :  { %v2865_v30 = vmul.f32 %v8542_v16, %v8562_v26  ;;  %v2874_v38 = vrot.slane %v2861_v23, 4  ;;  %v3851_v46 = vrot.slane %v3838_v32, 4  ;;  %v4828_v57 = vrot.slane %v4815_v47, 4 }
 0x216   :  { %v2892_v40 = vrot.slane %v2864_v25, 4  ;;  %v2869_v51 = vadd.f32 %v2868_v39, %v2860_v24  ;;  %v3846_v55 = vadd.f32 %v3845_v43, %v3837_v31  ;;  %v4823_v62 = vadd.f32 %v4822_v53, %v4814_v41 }
 0x217   :  { %v2898_v42 = vrot.slane %v2865_v30, 4  ;;  %v2875_v48 = vadd.f32 %v2874_v38, %v2861_v23  ;;  %v3852_v56 = vadd.f32 %v3851_v46, %v3838_v32  ;;  %v4829_v3 = vadd.f32 %v4828_v57, %v4815_v47  ;;  %v8591_v46 = vld [vmem:[#allocation2 + $0x18] sm:$0xff] }
 0x218   :  { %v2893_v52 = vadd.f32 %v2892_v40, %v2864_v25  ;;  %v2870_v60 = vrot.slane %v2869_v51, 2  ;;  %v3847_v1 = vrot.slane %v3846_v55, 2  ;;  %v4824_v6 = vrot.slane %v4823_v62, 2  ;;  %v5784_v47 = vld [vmem:[#allocation2 + $0x38] sm:$0xff] }
 0x219   :  { %v2899_v54 = vadd.f32 %v2898_v42, %v2865_v30  ;;  %v2876_v59 = vrot.slane %v2875_v48, 2  ;;  %v3853_v2 = vrot.slane %v3852_v56, 2  ;;  %v4830_v10 = vrot.slane %v4829_v3, 2 }
 0x21a   :  { %v2894_v61 = vrot.slane %v2893_v52, 2  ;;  %v2871_v4 = vadd.f32 %v2870_v60, %v2869_v51  ;;  %v3848_v8 = vadd.f32 %v3847_v1, %v3846_v55  ;;  %v4825_v24 = vadd.f32 %v4824_v6, %v4823_v62  ;;  %v4810_v55 = vld [vmem:[#allocation2 + $0x90] sm:$0xff]  ;;  %v3834_v62 = vld [vmem:[#allocation2 + $0xa8] sm:$0xff] }
 0x21b   :  { %v2900_v63 = vrot.slane %v2899_v54, 2  ;;  %v2877_v37 = vadd.f32 %v2876_v59, %v2875_v48  ;;  %v3854_v9 = vadd.f32 %v3853_v2, %v3852_v56  ;;  %v4831_v32 = vadd.f32 %v4830_v10, %v4829_v3  ;;  %v5787_v56 = vld [vmem:[#allocation2 + $0x98] sm:$0xff] }
 0x21c   :  { %v2895_v5 = vadd.f32 %v2894_v61, %v2893_v52  ;;  %v2872_v15 = vrot.slane %v2871_v4, 1  ;;  %v3849_v30 = vrot.slane %v3848_v8, 1  ;;  %v4826_v39 = vrot.slane %v4825_v24, 1 }
 0x21d   :  { %v2901_v7 = vadd.f32 %v2900_v63, %v2899_v54  ;;  %v2878_v11 = vrot.slane %v2877_v37, 1  ;;  %v3855_v31 = vrot.slane %v3854_v9, 1  ;;  %v4832_v43 = vrot.slane %v4831_v32, 1  ;;  %v3833_v54 = vld [vmem:[#allocation2 + $0x88] sm:$0xff]  ;;  %v4811_v63 = vld [vmem:[#allocation2 + $0xb0] sm:$0xff] }
 0x21e   :  { %v2896_v23 = vrot.slane %v2895_v5, 1  ;;  %v8581_v36 = vadd.f32 %v2872_v15, %v2871_v4  ;;  %v8587_v41 = vadd.f32 %v3849_v30, %v3848_v8  ;;  %v8599_v53 = vadd.f32 %v4826_v39, %v4825_v24  ;;  %v5788_v4 = vld [vmem:[#allocation2 + $0xb8] sm:$0xff] }
 0x21f   :  { %v2902_v25 = vrot.slane %v2901_v7, 1  ;;  %v8579_v35 = vadd.f32 %v2878_v11, %v2877_v37  ;;  %v8589_v42 = vadd.f32 %v3855_v31, %v3854_v9  ;;  %v8607_v61 = vadd.f32 %v4832_v43, %v4831_v32 }
 0x220   :  { %v8583_v38 = vadd.f32 %v2896_v23, %v2895_v5  ;;  %v2916_v51 = vmul.f32 %v8581_v36, %v8581_v36  ;;  %v3893_v59 = vmul.f32 %v8587_v41, %v8587_v41  ;;  %v8610_v1 = vunpack.i.l.bf16 %v8544_v17 }
 0x221   :  { %v8585_v40 = vadd.f32 %v2902_v25, %v2901_v7  ;;  %v2917_v48 = vmul.f32 %v8579_v35, %v8579_v35  ;;  %v3894_v60 = vmul.f32 %v8589_v42, %v8589_v42  ;;  %v4870_v2 = vmul.f32 %v8599_v53, %v8599_v53 }
 0x222   :  { %v2920_v52 = vmul.f32 %v8583_v38, %v8583_v38  ;;  %2924 = vadd.xlane.f32.xlu0 %v2916_v51  ;;  %v5791_v3 = vmul.f32 %v8538_v12, %v8591_v46  ;;  %v5792_v37 = vmul.f32 %v8536_v13, %v5784_v47  ;;  %v4871_v5 = vmul.f32 %v8607_v61, %v8607_v61 }
 0x223   :  { %v2921_v57 = vmul.f32 %v8585_v40, %v8585_v40  ;;  %2926 = vadd.xlane.f32.xlu1 %v2917_v48  ;;  %v3841_v6 = vmul.f32 %v8540_v14, %v3833_v54  ;;  %v4818_v7 = vmul.f32 %v8540_v14, %v4810_v55  ;;  %v5795_v17 = vmul.f32 %v8540_v14, %v5787_v56 }
 0x224   :  { %v5799_v8 = vrot.slane %v5791_v3, 4  ;;  %v5805_v9 = vrot.slane %v5792_v37, 4  ;;  %v3842_v10 = vmul.f32 %v8542_v16, %v3834_v62  ;;  %v4819_v11 = vmul.f32 %v8542_v16, %v4811_v63 }
 0x225   :  { %v3869_v15 = vrot.slane %v3841_v6, 4  ;;  %v4846_v12 = vrot.slane %v4818_v7, 4  ;;  %v5823_v23 = vrot.slane %v5795_v17, 4  ;;  %v5796_v13 = vmul.f32 %v8542_v16, %v5788_v4 }
 0x226   :  { %2934 = vadd.xlane.f32.xlu0 %v2921_v57  ;;  %v5800_v24 = vadd.f32 %v5799_v8, %v5791_v3  ;;  %v5806_v25 = vadd.f32 %v5805_v9, %v5792_v37  ;;  %v3875_v30 = vrot.slane %v3842_v10, 4  ;;  %v4852_v31 = vrot.slane %v4819_v11, 4 }
 0x227   :  { %2932 = vadd.xlane.f32.xlu1 %v2920_v52  ;;  %v3870_v32 = vadd.f32 %v3869_v15, %v3841_v6  ;;  %v4847_v39 = vadd.f32 %v4846_v12, %v4818_v7  ;;  %v5824_v14 = vadd.f32 %v5823_v23, %v5795_v17  ;;  %v5829_v43 = vrot.slane %v5796_v13, 4 }
 0x228   :  { %v5801_v47 = vrot.slane %v5800_v24, 2  ;;  %v5807_v48 = vrot.slane %v5806_v25, 2  ;;  %v3876_v51 = vadd.f32 %v3875_v30, %v3842_v10  ;;  %v4853_v54 = vadd.f32 %v4852_v31, %v4819_v11 }
 0x229   :  { %v3871_v55 = vrot.slane %v3870_v32, 2  ;;  %v4848_v56 = vrot.slane %v4847_v39, 2  ;;  %v5825_v62 = vrot.slane %v5824_v14, 2  ;;  %v5830_v63 = vadd.f32 %v5829_v43, %v5796_v13 }
 0x22a   :  { %3903 = vadd.xlane.f32.xlu0 %v3894_v60  ;;  %v5802_v16 = vadd.f32 %v5801_v47, %v5800_v24  ;;  %v5808_v52 = vadd.f32 %v5807_v48, %v5806_v25  ;;  %v3877_v57 = vrot.slane %v3876_v51, 2  ;;  %v4854_v3 = vrot.slane %v4853_v54, 2  ;;  %v2814_v47 = vld [vmem:[#allocation2 + $0x40] sm:$0xff]  ;;  %v3831_v48 = vld [vmem:[#allocation2 + $0x48] sm:$0xff] }
 0x22b   :  { %3901 = vadd.xlane.f32.xlu1 %v3893_v59  ;;  %v3872_v37 = vadd.f32 %v3871_v55, %v3870_v32  ;;  %v4849_v4 = vadd.f32 %v4848_v56, %v4847_v39  ;;  %v5826_v6 = vadd.f32 %v5825_v62, %v5824_v14  ;;  %v5831_v7 = vrot.slane %v5830_v63, 2  ;;  %v2818_v39 = vld [vmem:[#allocation2 + $0xc0] sm:$0xff] }
 0x22c   :  { %v5803_v17 = vrot.slane %v5802_v16, 1  ;;  %v5809_v8 = vrot.slane %v5808_v52, 1  ;;  %v3878_v9 = vadd.f32 %v3877_v57, %v3876_v51  ;;  %v4855_v15 = vadd.f32 %v4854_v3, %v4853_v54  ;;  %v2815_v51 = vld [vmem:[#allocation2 + $0x60] sm:$0xff] }
 0x22d   :  { %v3873_v10 = vrot.slane %v3872_v37, 1  ;;  %v4850_v11 = vrot.slane %v4849_v4, 1  ;;  %v5827_v12 = vrot.slane %v5826_v6, 1  ;;  %v5832_v23 = vadd.f32 %v5831_v7, %v5830_v63  ;;  %v5785_v63 = vld [vmem:[#allocation2 + $0x58] sm:$0xff] }
 0x22e   :  { %4880 = vadd.xlane.f32.xlu0 %v4871_v5  ;;  %v8625_v59 = vadd.f32 %v5803_v17, %v5802_v16  ;;  %v8627_v60 = vadd.f32 %v5809_v8, %v5808_v52  ;;  %v3879_v13 = vrot.slane %v3878_v9, 1  ;;  %v4856_v24 = vrot.slane %v4855_v15, 1  ;;  %v2819_v16 = vld [vmem:[#allocation2 + $0xe0] sm:$0xff]  ;;  %v4809_v52 = vld [vmem:[#allocation2 + $0x70] sm:$0xff] }
 0x22f   :  { %4878 = vadd.xlane.f32.xlu1 %v4870_v2  ;;  %v8629_v25 = vadd.f32 %v3873_v10, %v3872_v37  ;;  %v8631_v30 = vadd.f32 %v4850_v11, %v4849_v4  ;;  %v8633_v31 = vadd.f32 %v5827_v12, %v5826_v6  ;;  %v5833_v32 = vrot.slane %v5832_v23, 1  ;;  %v4808_v4 = vld [vmem:[#allocation2 + $0x50] sm:$0xff] }
 0x230   :  { %v5847_v14 = vmul.f32 %v8625_v59, %v8625_v59  ;;  %v5848_v2 = vmul.f32 %v8627_v60, %v8627_v60  ;;  %v8639_v5 = vadd.f32 %v3879_v13, %v3878_v9  ;;  %v8641_v43 = vadd.f32 %v4856_v24, %v4855_v15 }
 0x231   :  { %11104 = vst [vmem:[#allocation20_spill] sm:$0xff] %v8629_v25  ;;  %11105 = vst [vmem:[#allocation21_spill] sm:$0xff] %v8631_v30  ;;  %v3897_v54 = vmul.f32 %v8629_v25, %v8629_v25  ;;  %v4874_v55 = vmul.f32 %v8631_v30, %v8631_v30  ;;  %v5851_v56 = vmul.f32 %v8633_v31, %v8633_v31 }
 0x232   :  { %11106 = vst [vmem:[#allocation22_spill] sm:$0xff] %v8633_v31  ;;  %11107 = vst [vmem:[#allocation23_spill] sm:$0xff] %v8639_v5  ;;  %v8649_v62 = vadd.f32 %v5833_v32, %v5832_v23  ;;  %5857 = vadd.xlane.f32.xlu0 %v5848_v2  ;;  %v3898_v57 = vmul.f32 %v8639_v5, %v8639_v5  ;;  %v4875_v3 = vmul.f32 %v8641_v43, %v8641_v43 }
 0x233   :  { %11108 = vst [vmem:[#allocation24_spill] sm:$0xff] %v8641_v43  ;;  %5855 = vadd.xlane.f32.xlu1 %v5847_v14  ;;  %v2866_v37 = vmul.f32 %v8610_v1, %v2818_v39  ;;  %v2862_v7 = vmul.f32 %v8554_v58, %v2814_v47  ;;  %v3839_v17 = vmul.f32 %v8554_v58, %v3831_v48 }
 0x234   :  { %11109 = vst [vmem:[#allocation25_spill] sm:$0xff] %v8649_v62  ;;  %v5852_v6 = vmul.f32 %v8649_v62, %v8649_v62  ;;  %v2863_v8 = vmul.f32 %v8546_v0, %v2815_v51  ;;  %v5793_v15 = vmul.f32 %v8554_v58, %v5785_v63  ;;  %v2867_v10 = vmul.f32 %v8569_v29, %v2819_v16 }
 0x235   :  { %v2904_v9 = vrot.slane %v2866_v37, 4  ;;  %v4817_v11 = vmul.f32 %v8546_v0, %v4809_v52  ;;  %v2880_v12 = vrot.slane %v2862_v7, 4  ;;  %v3857_v23 = vrot.slane %v3839_v17, 4 }
 0x236   :  { %v2886_v13 = vrot.slane %v2863_v8, 4  ;;  %v4816_v24 = vmul.f32 %v8554_v58, %v4808_v4  ;;  %4886 = vadd.xlane.f32.xlu0 %v4874_v55  ;;  %v5811_v39 = vrot.slane %v5793_v15, 4  ;;  %v2910_v14 = vrot.slane %v2867_v10, 4 }
 0x237   :  { %3909 = vadd.xlane.f32.xlu1 %v3897_v54  ;;  %v2905_v32 = vadd.f32 %v2904_v9, %v2866_v37  ;;  %v4840_v2 = vrot.slane %v4817_v11, 4  ;;  %v2881_v47 = vadd.f32 %v2880_v12, %v2862_v7  ;;  %v3858_v48 = vadd.f32 %v3857_v23, %v3839_v17 }
 0x238   :  { %v2887_v51 = vadd.f32 %v2886_v13, %v2863_v8  ;;  %v4834_v50 = vrot.slane %v4816_v24, 4  ;;  %v5812_v45 = vadd.f32 %v5811_v39, %v5793_v15  ;;  %v2911_v16 = vadd.f32 %v2910_v14, %v2867_v10  ;;  %v3835_v14 = vld [vmem:[#allocation2 + $0xc8] sm:$0xff] }
 0x239   :  { %v2906_v63 = vrot.slane %v2905_v32, 2  ;;  %v4841_v49 = vadd.f32 %v4840_v2, %v4817_v11  ;;  %v2882_v52 = vrot.slane %v2881_v47, 2  ;;  %v3859_v44 = vrot.slane %v3858_v48, 2 }
 0x23a   :  { %v2888_v34 = vrot.slane %v2887_v51, 2  ;;  %v4835_v33 = vadd.f32 %v4834_v50, %v4816_v24  ;;  %3911 = vadd.xlane.f32.xlu0 %v3898_v57  ;;  %v5813_v54 = vrot.slane %v5812_v45, 2  ;;  %v2912_v55 = vrot.slane %v2911_v16, 2 }
 0x23b   :  { %5863 = vadd.xlane.f32.xlu1 %v5851_v56  ;;  %v2907_v58 = vadd.f32 %v2906_v63, %v2905_v32  ;;  %v4842_v37 = vrot.slane %v4841_v49, 2  ;;  %v2883_v4 = vadd.f32 %v2882_v52, %v2881_v47  ;;  %v3860_v9 = vadd.f32 %v3859_v44, %v3858_v48  ;;  %v4813_v63 = vld [vmem:[#allocation2 + $0xf0] sm:$0xff]  ;;  %v3836_v52 = vld [vmem:[#allocation2 + $0xe8] sm:$0xff] }
 0x23c   :  { %v2889_v7 = vadd.f32 %v2888_v34, %v2887_v51  ;;  %v4836_v17 = vrot.slane %v4835_v33, 2  ;;  %v5814_v12 = vadd.f32 %v5813_v54, %v5812_v45  ;;  %v2913_v23 = vadd.f32 %v2912_v55, %v2911_v16  ;;  %v4812_v16 = vld [vmem:[#allocation2 + $0xd0] sm:$0xff] }
 0x23d   :  { %v2908_v8 = vrot.slane %v2907_v58, 1  ;;  %v4843_v15 = vadd.f32 %v4842_v37, %v4841_v49  ;;  %v2884_v10 = vrot.slane %v2883_v4, 1  ;;  %v3861_v11 = vrot.slane %v3860_v9, 1 }
 0x23e   :  { %v2890_v13 = vrot.slane %v2889_v7, 1  ;;  %v4837_v39 = vadd.f32 %v4836_v17, %v4835_v33  ;;  %5865 = vadd.xlane.f32.xlu0 %v5852_v6  ;;  %v5815_v56 = vrot.slane %v5814_v12, 1  ;;  %v2914_v57 = vrot.slane %v2913_v23, 1  ;;  %v3832_v33 = vld [vmem:[#allocation2 + $0x68] sm:$0xff]  ;;  %v5786_v6 = vld [vmem:[#allocation2 + $0x78] sm:$0xff] }
 0x23f   :  { %4888 = vadd.xlane.f32.xlu1 %v4875_v3  ;;  %v8665_v50 = vadd.f32 %v2908_v8, %v2907_v58  ;;  %v4844_v24 = vrot.slane %v4843_v15, 1  ;;  %v8667_v32 = vadd.f32 %v2884_v10, %v2883_v4  ;;  %v8669_v44 = vadd.f32 %v3861_v11, %v3860_v9  ;;  %v5789_v3 = vld [vmem:[#allocation2 + $0xd8] sm:$0xff] }
 0x240   :  { %v8671_v34 = vadd.f32 %v2890_v13, %v2889_v7  ;;  %v4838_v45 = vrot.slane %v4837_v39, 1  ;;  %v8675_v2 = vadd.f32 %v5815_v56, %v5814_v12  ;;  %v8679_v48 = vadd.f32 %v2914_v57, %v2913_v23  ;;  %v5790_v4 = vld [vmem:[#allocation2 + $0xf8] sm:$0xff] }
 0x241   :  { %11110 = vst [vmem:[#allocation26_spill] sm:$0xff] %v8665_v50  ;;  %11111 = vst [vmem:[#allocation27_spill] sm:$0xff] %v8667_v32  ;;  %v2922_v49 = vmul.f32 %v8665_v50, %v8665_v50  ;;  %v2918_v47 = vmul.f32 %v8667_v32, %v8667_v32  ;;  %v8681_v51 = vadd.f32 %v4844_v24, %v4843_v15 }
 0x242   :  { %11112 = vst [vmem:[#allocation28_spill] sm:$0xff] %v8669_v44  ;;  %11113 = vst [vmem:[#allocation29_spill] sm:$0xff] %v8671_v34  ;;  %v3895_v58 = vmul.f32 %v8669_v44, %v8669_v44  ;;  %v2919_v54 = vmul.f32 %v8671_v34, %v8671_v34  ;;  %v8687_v55 = vadd.f32 %v4838_v45, %v4837_v39 }
 0x243   :  { %11114 = vst [vmem:[#allocation30_spill] sm:$0xff] %v8675_v2  ;;  %11115 = vst [vmem:[#allocation31_spill] sm:$0xff] %v8679_v48  ;;  %2936 = vadd.xlane.f32.xlu1 %v2922_v49  ;;  %v3843_v37 = vmul.f32 %v8610_v1, %v3835_v14  ;;  %2928 = vadd.xlane.f32.xlu0 %v2918_v47  ;;  %v5849_v9 = vmul.f32 %v8675_v2, %v8675_v2 }
 0x244   :  { %11116 = vst [vmem:[#allocation32_spill] sm:$0xff] %v8681_v51  ;;  %11117 = vst [vmem:[#allocation33_spill] sm:$0xff] %v8687_v55  ;;  %v3840_v7 = vmul.f32 %v8546_v0, %v3832_v33  ;;  %v5797_v17 = vmul.f32 %v8610_v1, %v5789_v3  ;;  %v5794_v8 = vmul.f32 %v8546_v0, %v5786_v6 }
 0x245   :  { %v3881_v12 = vrot.slane %v3843_v37, 4  ;;  %v4821_v23 = vmul.f32 %v8569_v29, %v4813_v63  ;;  %v4820_v15 = vmul.f32 %v8610_v1, %v4812_v16  ;;  %v3844_v10 = vmul.f32 %v8569_v29, %v3836_v52 }
 0x246   :  { %v3863_v11 = vrot.slane %v3840_v7, 4  ;;  %v5835_v13 = vrot.slane %v5797_v17, 4  ;;  %v5817_v39 = vrot.slane %v5794_v8, 4  ;;  %v5798_v56 = vmul.f32 %v8569_v29, %v5790_v4 }
 0x247   :  { %3905 = vadd.xlane.f32.xlu1 %v3895_v58  ;;  %v3882_v57 = vadd.f32 %v3881_v12, %v3843_v37  ;;  %v4864_v24 = vrot.slane %v4821_v23, 4  ;;  %v4858_v45 = vrot.slane %v4820_v15, 4  ;;  %v3887_v14 = vrot.slane %v3844_v10, 4  ;;  %2930 = vadd.xlane.f32.xlu0 %v2919_v54 }
 0x248   :  { %v3864_v49 = vadd.f32 %v3863_v11, %v3840_v7  ;;  %v5836_v0 = vadd.f32 %v5835_v13, %v5797_v17  ;;  %v5818_v33 = vadd.f32 %v5817_v39, %v5794_v8  ;;  %v5841_v3 = vrot.slane %v5798_v56, 4 }
 0x249   :  { %v3883_v6 = vrot.slane %v3882_v57, 2  ;;  %v4865_v47 = vadd.f32 %v4864_v24, %v4821_v23  ;;  %v4859_v1 = vadd.f32 %v4858_v45, %v4820_v15  ;;  %v3888_v63 = vadd.f32 %v3887_v14, %v3844_v10 }
 0x24a   :  { %v2923_v16 = vmul.f32 %v8679_v48, %v8679_v48  ;;  %v3865_v52 = vrot.slane %v3864_v49, 2  ;;  %v5837_v22 = vrot.slane %v5836_v0, 2  ;;  %v5819_v29 = vrot.slane %v5818_v33, 2 }
 0x24b   :  { %5859 = vadd.xlane.f32.xlu1 %v5849_v9  ;;  %v4873_v58 = vmul.f32 %v8681_v51, %v8681_v51  ;;  %v3884_v37 = vadd.f32 %v3883_v6, %v3882_v57  ;;  %v4866_v54 = vrot.slane %v4865_v47, 2  ;;  %v4860_v4 = vrot.slane %v4859_v1, 2 }
 0x24c   :  { %2938 = vadd.xlane.f32.xlu0 %v2923_v16  ;;  %v4872_v7 = vmul.f32 %v8687_v55, %v8687_v55  ;;  %v3866_v17 = vadd.f32 %v3865_v52, %v3864_v49  ;;  %v5838_v8 = vadd.f32 %v5837_v22, %v5836_v0  ;;  %v5820_v12 = vadd.f32 %v5819_v29, %v5818_v33 }
 0x24d   :  { %v3885_v23 = vrot.slane %v3884_v37, 1  ;;  %v4867_v15 = vadd.f32 %v4866_v54, %v4865_v47  ;;  %v3889_v10 = vrot.slane %v3888_v63, 2  ;;  %v5842_v11 = vadd.f32 %v5841_v3, %v5798_v56 }
 0x24e   :  { %v3867_v13 = vrot.slane %v3866_v17, 1  ;;  %v5839_v39 = vrot.slane %v5838_v8, 1  ;;  %v5821_v9 = vrot.slane %v5820_v12, 1  ;;  %v4861_v24 = vadd.f32 %v4860_v4, %v4859_v1 }
 0x24f   :  { %4884 = vadd.xlane.f32.xlu1 %v4873_v58  ;;  %v8705_v45 = vadd.f32 %v3885_v23, %v3884_v37  ;;  %v4868_v22 = vrot.slane %v4867_v15, 1  ;;  %v5843_v0 = vrot.slane %v5842_v11, 2  ;;  %v3890_v6 = vadd.f32 %v3889_v10, %v3888_v63 }
 0x250   :  { %4882 = vadd.xlane.f32.xlu0 %v4872_v7  ;;  %v8707_v57 = vadd.f32 %v3867_v13, %v3866_v17  ;;  %v8711_v49 = vadd.f32 %v5839_v39, %v5838_v8  ;;  %v8715_v33 = vadd.f32 %v5821_v9, %v5820_v12  ;;  %v4862_v3 = vrot.slane %v4861_v24, 1 }
 0x251   :  { %11118 = vst [vmem:[#allocation34_spill] sm:$0xff] %v8705_v45  ;;  %v3899_v14 = vmul.f32 %v8705_v45, %v8705_v45  ;;  %v8719_v1 = vadd.f32 %v4868_v22, %v4867_v15  ;;  %v3891_v29 = vrot.slane %v3890_v6, 1  ;;  %v5844_v58 = vadd.f32 %v5843_v0, %v5842_v11 }
 0x252   :  { %11119 = vst [vmem:[#allocation35_spill] sm:$0xff] %v8707_v57  ;;  %11120 = vst [vmem:[#allocation36_spill] sm:$0xff] %v8711_v49  ;;  %v3896_v56 = vmul.f32 %v8707_v57, %v8707_v57  ;;  %v5853_v47 = vmul.f32 %v8711_v49, %v8711_v49  ;;  %v5850_v16 = vmul.f32 %v8715_v33, %v8715_v33 }
 0x253   :  { %11121 = vst [vmem:[#allocation37_spill] sm:$0xff] %v8715_v33  ;;  %3913 = vadd.xlane.f32.xlu1 %v3899_v14  ;;  %11122 = vst [vmem:[#allocation38_spill] sm:$0xff] %v8719_v1  ;;  %v8723_v52 = vadd.f32 %v4862_v3, %v4861_v24  ;;  %v4877_v37 = vmul.f32 %v8719_v1, %v8719_v1  ;;  %v8729_v54 = vadd.f32 %v3891_v29, %v3890_v6 }
 0x254   :  { %3907 = vadd.xlane.f32.xlu0 %v3896_v56  ;;  %v5845_v4 = vrot.slane %v5844_v58, 1 }
 0x255   :  { %11123 = vst [vmem:[#allocation39_spill] sm:$0xff] %v8723_v52  ;;  %v4876_v63 = vmul.f32 %v8723_v52, %v8723_v52  ;;  %11124 = vst [vmem:[#allocation40_spill] sm:$0xff] %v8729_v54  ;;  %v3900_v7 = vmul.f32 %v8729_v54, %v8729_v54 }
 0x256   :  { %v8733_v17 = vadd.f32 %v5845_v4, %v5844_v58 }
 0x257   :  { %5867 = vadd.xlane.f32.xlu1 %v5853_v47 }
 0x258   :  { %5861 = vadd.xlane.f32.xlu0 %v5850_v16  ;;  %11125 = vst [vmem:[#allocation41_spill] sm:$0xff] %v8733_v17  ;;  %v5854_v8 = vmul.f32 %v8733_v17, %v8733_v17 }
 0x25b   :  { %4892 = vadd.xlane.f32.xlu1 %v4877_v37 }
 0x25c   :  { %4890 = vadd.xlane.f32.xlu0 %v4876_v63 }
 0x260   :  { %3915 = vadd.xlane.f32.xlu0 %v3900_v7 }
 0x264   :  { %5869 = vadd.xlane.f32.xlu0 %v5854_v8 }
 0x2af   :  { %v8737_v23 = vpop.xlane.xlu0 %2924 }
 0x2b0   :  { %v2927_v12 = vpop.xlane.xlu1 %2926  ;;  %v2940_v10 = vadd.f32 1.0, %v8737_v23  ;;  %v2988_v13 = vadd.f32 1e-09, %v8737_v23 }
 0x2b1   :  { %v2941_v15 = vadd.f32 1.0, %v2927_v12  ;;  %v2989_v11 = vadd.f32 1e-09, %v2927_v12 }
 0x2b3   :  { %7321 = vrcp.f32 %v2941_v15  ;;  %v8743_v9 = vpop.xlane.xlu0 %2934 }
 0x2b4   :  { %v8741_v39 = vpop.xlane.xlu1 %2932  ;;  %7323 = vrcp.f32 %v2940_v10  ;;  %v2945_v14 = vadd.f32 1.0, %v8743_v9  ;;  %v2993_v0 = vadd.f32 1e-09, %v8743_v9 }
 0x2b5   :  { %v2944_v24 = vadd.f32 1.0, %v8741_v39  ;;  %7325 = vrsqrt.f32 %v2989_v11  ;;  %v2992_v22 = vadd.f32 1e-09, %v8741_v39 }
 0x2b7   :  { %7327 = vrcp.f32 %v2944_v24  ;;  %v8751_v3 = vpop.xlane.xlu0 %3903 }
 0x2b8   :  { %7329 = vrsqrt.f32 %v2988_v13  ;;  %v8749_v56 = vpop.xlane.xlu1 %3901  ;;  %v3918_v47 = vadd.f32 1.0, %v8751_v3  ;;  %v3966_v29 = vadd.f32 1e-09, %v8751_v3 }
 0x2b9   :  { %7331 = vrcp.f32 %v2945_v14  ;;  %v3917_v6 = vadd.f32 1.0, %v8749_v56  ;;  %v3965_v16 = vadd.f32 1e-09, %v8749_v56 }
 0x2ba   :  { %7333 = vrsqrt.f32 %v2992_v22 }
 0x2bb   :  { %7335 = vrcp.f32 %v3917_v6  ;;  %v8759_v37 = vpop.xlane.xlu0 %4880 }
 0x2bc   :  { %7337 = vrsqrt.f32 %v2993_v0  ;;  %v8757_v58 = vpop.xlane.xlu1 %4878  ;;  %v8763_v7 = vadd.f32 1.0, %v8759_v37  ;;  %v4943_v49 = vadd.f32 1e-09, %v8759_v37 }
 0x2bd   :  { %v7322_v63 = vpop.eup %7321  ;;  %7339 = vrcp.f32 %v3918_v47  ;;  %v4894_v4 = vadd.f32 1.0, %v8757_v58  ;;  %v4942_v11 = vadd.f32 1e-09, %v8757_v58 }
 0x2be   :  { %v2957_v8 = vmul.f32 %v7322_v63, %v2941_v15  ;;  %7341 = vrsqrt.f32 %v3965_v16  ;;  %v7324_v13 = vpop.eup %7323 }
 0x2bf   :  { %7343 = vrcp.f32 %v4894_v4  ;;  %v7326_v22 = vpop.eup %7325  ;;  %v2956_v21 = vmul.f32 %v7324_v13, %v2940_v10  ;;  %v8768_v1 = vpop.xlane.xlu0 %5857 }
 0x2c0   :  { %v2965_v0 = vsub.f32 2.0, %v2957_v8  ;;  %7345 = vrsqrt.f32 %v3966_v29  ;;  %v8766_v17 = vpop.xlane.xlu1 %5855  ;;  %v8778_v29 = vadd.f32 1.0, %v8768_v1  ;;  %v5920_v50 = vadd.f32 1e-09, %v8768_v1 }
 0x2c1   :  { %v7328_v54 = vpop.eup %7327  ;;  %7347 = vrcp.f32 %v8763_v7  ;;  %v8773_v15 = vadd.f32 1.0, %v8766_v17  ;;  %v2964_v45 = vsub.f32 2.0, %v2956_v21  ;;  %v5919_v10 = vadd.f32 1e-09, %v8766_v17 }
 0x2c2   :  { %v7330_v16 = vpop.eup %7329  ;;  %v2973_v52 = vmul.f32 %v7322_v63, %v2965_v0  ;;  %v2960_v33 = vmul.f32 %v7328_v54, %v2944_v24  ;;  %7349 = vrsqrt.f32 %v4942_v11 }
 0x2c3   :  { %v7332_v8 = vpop.eup %7331  ;;  %7351 = vrcp.f32 %v8773_v15  ;;  %v2972_v55 = vmul.f32 %v7324_v13, %v2964_v45  ;;  %v8784_v63 = vpop.xlane.xlu0 %4886 }
 0x2c4   :  { %v8780_v57 = vpop.eup %7333  ;;  %v2981_v51 = vmul.f32 %v2973_v52, %v2927_v12  ;;  %v2968_v2 = vsub.f32 2.0, %v2960_v33  ;;  %v2961_v48 = vmul.f32 %v7332_v8, %v2945_v14  ;;  %v8782_v44 = vpop.xlane.xlu1 %3909  ;;  %7353 = vrsqrt.f32 %v4943_v49 }
 0x2c5   :  { %v7336_v21 = vpop.eup %7335  ;;  %v2980_v62 = vmul.f32 %v2972_v55, %v8737_v23  ;;  %7355 = vrcp.f32 %v8778_v29  ;;  %v8792_v45 = vadd.f32 1.0, %v8782_v44  ;;  %v8802_v55 = vadd.f32 1.0, %v8784_v63 }
 0x2c6   :  { %v8786_v24 = vpop.eup %7337  ;;  %v2976_v11 = vmul.f32 %v7328_v54, %v2968_v2  ;;  %v2969_v0 = vsub.f32 2.0, %v2961_v48  ;;  %v3933_v34 = vmul.f32 %v7336_v21, %v3917_v6  ;;  %v3005_v33 = vmul.f32 %v7326_v22, %v2981_v51 }
 0x2c7   :  { %v7340_v32 = vpop.eup %7339  ;;  %7357 = vrsqrt.f32 %v5919_v10  ;;  %v8798_v2 = vpop.xlane.xlu0 %3911  ;;  %v3969_v6 = vadd.f32 1e-09, %v8782_v44  ;;  %v4946_v23 = vadd.f32 1e-09, %v8784_v63  ;;  %v3004_v43 = vmul.f32 %v7330_v16, %v2980_v62 }
 0x2c8   :  { %v8794_v52 = vpop.eup %7341  ;;  %v3941_v12 = vsub.f32 2.0, %v3933_v34  ;;  %v3934_v49 = vmul.f32 %v7340_v32, %v3918_v47  ;;  %v8796_v14 = vpop.xlane.xlu1 %5863  ;;  %v2977_v54 = vmul.f32 %v7332_v8, %v2969_v0  ;;  %v2984_v51 = vmul.f32 %v2976_v11, %v8741_v39 }
 0x2c9   :  { %v7344_v48 = vpop.eup %7343  ;;  %7359 = vrsqrt.f32 %v5920_v50  ;;  %v3013_v8 = vmul.f32 %v3005_v33, %v8579_v35  ;;  %v8814_v30 = vadd.f32 1.0, %v8796_v14  ;;  %v5923_v39 = vadd.f32 1e-09, %v8796_v14 }
 0x2ca   :  { %v8805_v13 = vpop.eup %7345  ;;  %v3942_v34 = vsub.f32 2.0, %v3934_v49  ;;  %v4910_v47 = vmul.f32 %v7344_v48, %v4894_v4  ;;  %v3949_v10 = vmul.f32 %v7336_v21, %v3941_v12  ;;  %7361 = vrcp.f32 %v8792_v45 }
 0x2cb   :  { %v7348_v22 = vpop.eup %7347  ;;  %v8819_v50 = vpop.xlane.xlu0 %5865  ;;  %v2985_v21 = vmul.f32 %v2977_v54, %v8743_v9  ;;  %v8823_v35 = vadd.f32 1.0, %v8798_v2  ;;  %v3970_v16 = vadd.f32 1e-09, %v8798_v2  ;;  %7363 = vrsqrt.f32 %v3969_v6 }
 0x2cc   :  { %v8810_v0 = vpop.eup %7349  ;;  %v4918_v5 = vsub.f32 2.0, %v4910_v47  ;;  %v4911_v31 = vmul.f32 %v7348_v22, %v8763_v7  ;;  %v8817_v11 = vpop.xlane.xlu1 %4888  ;;  %v3950_v62 = vmul.f32 %v7340_v32, %v3942_v34  ;;  %v3957_v47 = vmul.f32 %v3949_v10, %v8749_v56 }
 0x2cd   :  { %v7352_v4 = vpop.eup %7351  ;;  %7365 = vrcp.f32 %v8802_v55  ;;  %v3012_v25 = vmul.f32 %v3004_v43, %v8581_v36  ;;  %v3021_v32 = vmul.f32 %v3013_v8, %v8548_v18  ;;  %v8834_v54 = vadd.f32 1.0, %v8817_v11 }
 0x2ce   :  { %v4926_v33 = vmul.f32 %v7344_v48, %v4918_v5  ;;  %v4919_v7 = vsub.f32 2.0, %v4911_v31  ;;  %v5887_v12 = vmul.f32 %v7352_v4, %v8773_v15  ;;  %v8827_v49 = vpop.eup %7353  ;;  %v4947_v5 = vadd.f32 1e-09, %v8817_v11 }
 0x2cf   :  { %v8838_v31 = vadd.f32 1.0, %v8819_v50  ;;  %v7356_v48 = vpop.eup %7355  ;;  %v3958_v56 = vmul.f32 %v3950_v62, %v8751_v3  ;;  %7367 = vrcp.f32 %v8814_v30  ;;  %v5924_v36 = vadd.f32 1e-09, %v8819_v50  ;;  %3030 = vadd.xlane.f32.xlu0 %v3021_v32 }
 0x2d0   :  { %v5895_v9 = vsub.f32 2.0, %v5887_v12  ;;  %v8840_v15 = vpop.xlane.xlu1 %2936  ;;  %v3020_v18 = vmul.f32 %v3012_v25, %v8550_v19  ;;  %v8846_v43 = vpop.xlane.xlu0 %2928  ;;  %v4934_v34 = vmul.f32 %v4926_v33, %v8757_v58  ;;  %v4927_v10 = vmul.f32 %v7348_v22, %v4919_v7 }
 0x2d1   :  { %v8848_v6 = vpop.eup %7357  ;;  %v5888_v8 = vmul.f32 %v7356_v48, %v8778_v29  ;;  %7369 = vrsqrt.f32 %v4946_v23  ;;  %v8854_v3 = vadd.f32 1.0, %v8840_v15  ;;  %v3008_v62 = vmul.f32 %v8780_v57, %v2984_v51 }
 0x2d2   :  { %7371 = vrcp.f32 %v8823_v35  ;;  %3028 = vadd.xlane.f32.xlu1 %v3020_v18  ;;  %v3009_v19 = vmul.f32 %v8786_v24, %v2985_v21  ;;  %v5903_v12 = vmul.f32 %v7352_v4, %v5895_v9  ;;  %v2994_v58 = vadd.f32 1e-09, %v8840_v15 }
 0x2d3   :  { %v8858_v25 = vpop.eup %7359  ;;  %v5896_v32 = vsub.f32 2.0, %v5888_v8  ;;  %7373 = vrsqrt.f32 %v5923_v39  ;;  %v3016_v23 = vmul.f32 %v3008_v62, %v8583_v38  ;;  %v3981_v57 = vmul.f32 %v8794_v52, %v3957_v47 }
 0x2d4   :  { %v8861_v22 = vpop.xlane.xlu1 %3905  ;;  %v7362_v29 = vpop.eup %7361  ;;  %7375 = vrcp.f32 %v8834_v54  ;;  %v3017_v33 = vmul.f32 %v3009_v19, %v8585_v40  ;;  %v4935_v24 = vmul.f32 %v4927_v10, %v8759_v37  ;;  %v8872_v39 = vadd.f32 1.0, %v8846_v43 }
 0x2d5   :  { %v8867_v51 = vpop.xlane.xlu0 %2930  ;;  %v3937_v4 = vmul.f32 %v7362_v29, %v8792_v45  ;;  %7377 = vrsqrt.f32 %v3970_v16  ;;  %v3024_v21 = vmul.f32 %v3016_v23, %v8552_v20  ;;  %v3989_v40 = vmul.f32 %v3981_v57, %v8587_v41  ;;  %v8878_v7 = vpop.eup %7363 }
 0x2d6   :  { %7379 = vrcp.f32 %v8838_v31  ;;  %v3025_v38 = vmul.f32 %v3017_v33, %v8562_v26  ;;  %v5911_v52 = vmul.f32 %v5903_v12, %v8766_v17  ;;  %v5904_v47 = vmul.f32 %v7356_v48, %v5896_v32 }
 0x2d7   :  { %v3945_v37 = vsub.f32 2.0, %v3937_v4  ;;  %7381 = vrsqrt.f32 %v4947_v5  ;;  %v7366_v45 = vpop.eup %7365  ;;  %3036 = vadd.xlane.f32.xlu1 %v3024_v21  ;;  %v3997_v16 = vmul.f32 %v3989_v40, %v8564_v27  ;;  %v8884_v20 = vadd.f32 1.0, %v8861_v22 }
 0x2d8   :  { %7383 = vrcp.f32 %v8854_v3  ;;  %3038 = vadd.xlane.f32.xlu0 %v3025_v38  ;;  %v3982_v26 = vmul.f32 %v8805_v13, %v3958_v56  ;;  %v4914_v9 = vmul.f32 %v7366_v45, %v8802_v55  ;;  %v2990_v17 = vadd.f32 1e-09, %v8846_v43  ;;  %v8894_v48 = vpop.xlane.xlu1 %5859 }
 0x2d9   :  { %v8887_v41 = vpop.xlane.xlu0 %2938  ;;  %7385 = vrsqrt.f32 %v5924_v36  ;;  %v8892_v5 = vadd.f32 1.0, %v8867_v51  ;;  %v7368_v18 = vpop.eup %7367  ;;  %v3953_v10 = vmul.f32 %v7362_v29, %v3945_v37  ;;  %v4958_v13 = vmul.f32 %v8810_v0, %v4934_v34 }
 0x2da   :  { %7387 = vrcp.f32 %v8872_v39  ;;  %v3990_v27 = vmul.f32 %v3982_v26, %v8589_v42  ;;  %v5912_v55 = vmul.f32 %v5904_v47, %v8768_v1  ;;  %v4922_v36 = vsub.f32 2.0, %v4914_v9 }
 0x2db   :  { %v8899_v56 = vpop.eup %7369  ;;  %v5891_v8 = vmul.f32 %v7368_v18, %v8814_v30  ;;  %7389 = vrsqrt.f32 %v2994_v58  ;;  %4005 = vadd.xlane.f32.xlu1 %v3997_v16  ;;  %v3967_v19 = vadd.f32 1e-09, %v8861_v22  ;;  %v4966_v42 = vmul.f32 %v4958_v13, %v8599_v53 }
 0x2dc   :  { %v7372_v62 = vpop.eup %7371  ;;  %7391 = vrcp.f32 %v8884_v20  ;;  %v3998_v12 = vmul.f32 %v3990_v27, %v8566_v28  ;;  %v2991_v1 = vadd.f32 1e-09, %v8867_v51  ;;  %v8912_v30 = vadd.f32 1.0, %v8894_v48  ;;  %v7961_v28 = vld [vmem:[#allocation2 + $0x10] sm:$0xff]  ;;  %v8922_v38 = vpop.xlane.xlu1 %4884 }
 0x2dd   :  { %v8907_v32 = vpop.eup %7373  ;;  %v5899_v0 = vsub.f32 2.0, %v5891_v8  ;;  %v3938_v34 = vmul.f32 %v7372_v62, %v8823_v35  ;;  %v8914_v58 = vpop.xlane.xlu0 %4882  ;;  %v3961_v23 = vmul.f32 %v3953_v10, %v8782_v44  ;;  %7393 = vrcp.f32 %v8892_v5 }
 0x2de   :  { %v7376_v29 = vpop.eup %7375  ;;  %4007 = vadd.xlane.f32.xlu0 %v3998_v12  ;;  %v4974_v53 = vmul.f32 %v7961_v28, %v4966_v42  ;;  %v4959_v33 = vmul.f32 %v8827_v49, %v4935_v24  ;;  %v4930_v35 = vmul.f32 %v7366_v45, %v4922_v36  ;;  %7395 = vrsqrt.f32 %v2990_v17  ;;  %v7962_v17 = vld [vmem:[#allocation2 + $0x30] sm:$0xff] }
 0x2df   :  { %v8919_v57 = vpop.eup %7377  ;;  %v3946_v4 = vsub.f32 2.0, %v3938_v34  ;;  %v4915_v21 = vmul.f32 %v7376_v29, %v8834_v54  ;;  %7397 = vrsqrt.f32 %v3967_v19  ;;  %v5921_v44 = vadd.f32 1e-09, %v8894_v48 }
 0x2e0   :  { %v7380_v40 = vpop.eup %7379  ;;  %4982 = vadd.xlane.f32.xlu1 %v4974_v53  ;;  %v4967_v47 = vmul.f32 %v4959_v33, %v8607_v61  ;;  %v5935_v37 = vmul.f32 %v8848_v6, %v5911_v52  ;;  %v5907_v49 = vmul.f32 %v7368_v18, %v5899_v0  ;;  %v8931_v54 = vadd.f32 1.0, %v8887_v41  ;;  %v7963_v53 = vld [vmem:[#allocation2 + $0x38] sm:$0xff] }
 0x2e1   :  { %v8927_v16 = vpop.eup %7381  ;;  %v4923_v24 = vsub.f32 2.0, %v4915_v21  ;;  %v5892_v45 = vmul.f32 %v7380_v40, %v8838_v31  ;;  %v3954_v9 = vmul.f32 %v7372_v62, %v3946_v4  ;;  %7399 = vrcp.f32 %v8912_v30  ;;  %v8939_v31 = vpop.xlane.xlu0 %3907 }
 0x2e2   :  { %v7384_v26 = vpop.eup %7383  ;;  %v4975_v10 = vmul.f32 %v7962_v17, %v4967_v47  ;;  %v5943_v27 = vmul.f32 %v5935_v37, %v8625_v59  ;;  %v4938_v6 = vmul.f32 %v4930_v35, %v8784_v63  ;;  %7401 = vrsqrt.f32 %v2991_v1  ;;  %v11126_v37 = vld [vmem:[#allocation20_spill] sm:$0xff]  ;;  %v7964_v17 = vld [vmem:[#allocation2 + $0x88] sm:$0xff] }
 0x2e3   :  { %v8935_v61 = vpop.eup %7385  ;;  %v5900_v52 = vsub.f32 2.0, %v5892_v45  ;;  %v2962_v18 = vmul.f32 %v7384_v26, %v8854_v3  ;;  %v4931_v36 = vmul.f32 %v7376_v29, %v4923_v24  ;;  %v2995_v8 = vadd.f32 1e-09, %v8887_v41  ;;  %v8948_v3 = vpop.xlane.xlu1 %3913 }
 0x2e4   :  { %v7388_v13 = vpop.eup %7387  ;;  %4984 = vadd.xlane.f32.xlu0 %v4975_v10  ;;  %v5951_v62 = vmul.f32 %v5943_v27, %v8591_v46  ;;  %v5936_v19 = vmul.f32 %v8858_v25, %v5912_v55  ;;  %v5915_v12 = vmul.f32 %v5907_v49, %v8796_v14  ;;  %7403 = vrsqrt.f32 %v5921_v44  ;;  %v11127_v27 = vld [vmem:[#allocation21_spill] sm:$0xff] }
 0x2e5   :  { %v8944_v59 = vpop.eup %7389  ;;  %v2970_v63 = vsub.f32 2.0, %v2962_v18  ;;  %v2958_v42 = vmul.f32 %v7388_v13, %v8872_v39  ;;  %v3962_v34 = vmul.f32 %v3954_v9, %v8798_v2  ;;  %7405 = vrcp.f32 %v8931_v54  ;;  %v8971_v44 = vpop.xlane.xlu0 %5861 }
 0x2e6   :  { %v7392_v0 = vpop.eup %7391  ;;  %5959 = vadd.xlane.f32.xlu1 %v5951_v62  ;;  %v8953_v46 = vadd.f32 1.0, %v8922_v38  ;;  %v5944_v25 = vmul.f32 %v5936_v19, %v8627_v60  ;;  %v5908_v55 = vmul.f32 %v7380_v40, %v5900_v52  ;;  %v4945_v39 = vadd.f32 1e-09, %v8922_v38  ;;  %v7965_v62 = vld [vmem:[#allocation2 + $0x90] sm:$0xff] }
 0x2e7   :  { %v2966_v1 = vsub.f32 2.0, %v2958_v42  ;;  %v3935_v14 = vmul.f32 %v7392_v0, %v8884_v20  ;;  %v7394_v29 = vpop.eup %7393  ;;  %v8959_v28 = vmul.f32 %v4931_v36, %v8817_v11  ;;  %v8962_v33 = vadd.f32 1.0, %v8914_v58 }
 0x2e8   :  { %v5952_v2 = vmul.f32 %v7963_v53, %v5944_v25  ;;  %v3985_v35 = vmul.f32 %v8878_v7, %v3961_v23  ;;  %v8965_v4 = vpop.eup %7395  ;;  %v2978_v60 = vmul.f32 %v7384_v26, %v2970_v63  ;;  %v2959_v40 = vmul.f32 %v7394_v29, %v8892_v5  ;;  %v8982_v26 = vpop.xlane.xlu1 %5867 }
 0x2e9   :  { %v3943_v21 = vsub.f32 2.0, %v3935_v14  ;;  %v8969_v20 = vadd.f32 1.0, %v8948_v3  ;;  %v8973_v11 = vpop.eup %7397  ;;  %v2974_v47 = vmul.f32 %v7388_v13, %v2966_v1  ;;  %7407 = vrcp.f32 %v8953_v46 }
 0x2ea   :  { %5961 = vadd.xlane.f32.xlu0 %v5952_v2  ;;  %v3993_v49 = vmul.f32 %v3985_v35, %v11126_v37  ;;  %v4962_v7 = vmul.f32 %v8899_v56, %v4938_v6  ;;  %v8979_v23 = vmul.f32 %v5908_v55, %v8819_v50  ;;  %v2967_v5 = vsub.f32 2.0, %v2959_v40  ;;  %v11128_v55 = vld [vmem:[#allocation22_spill] sm:$0xff]  ;;  %v7966_v2 = vld [vmem:[#allocation2 + $0x98] sm:$0xff] }
 0x2eb   :  { %v3951_v24 = vmul.f32 %v7392_v0, %v3943_v21  ;;  %v4944_v45 = vadd.f32 1e-09, %v8914_v58  ;;  %v7400_v9 = vpop.eup %7399  ;;  %7409 = vrcp.f32 %v8962_v33  ;;  %v8987_v18 = vadd.f32 1.0, %v8939_v31  ;;  %v11129_v35 = vld [vmem:[#allocation23_spill] sm:$0xff] }
 0x2ec   :  { %v4001_v10 = vmul.f32 %v7964_v17, %v3993_v49  ;;  %v4970_v52 = vmul.f32 %v4962_v7, %v11127_v27  ;;  %v8989_v56 = vpop.eup %7401  ;;  %v8992_v50 = vmul.f32 %v2978_v60, %v8840_v15  ;;  %v5889_v6 = vmul.f32 %v7400_v9, %v8912_v30 }
 0x2ed   :  { %7411 = vrsqrt.f32 %v2995_v8  ;;  %v3971_v13 = vadd.f32 1e-09, %v8948_v3  ;;  %v2982_v36 = vmul.f32 %v2974_v47, %v8846_v43  ;;  %v5939_v63 = vmul.f32 %v8907_v32, %v5915_v12  ;;  %v9007_v8 = vpop.xlane.xlu0 %4890  ;;  %v7967_v47 = vld [vmem:[#allocation2 + $0xa8] sm:$0xff] }
 0x2ee   :  { %4013 = vadd.xlane.f32.xlu1 %v4001_v10  ;;  %7413 = vrcp.f32 %v8969_v20  ;;  %v4978_v19 = vmul.f32 %v7965_v62, %v4970_v52  ;;  %v8999_v42 = vpop.eup %7403  ;;  %v9002_v0 = vmul.f32 %v3951_v24, %v8861_v22  ;;  %v5897_v15 = vsub.f32 2.0, %v5889_v6  ;;  %v7968_v52 = vld [vmem:[#allocation2 + $0xb0] sm:$0xff]  ;;  %v11131_v62 = vld [vmem:[#allocation25_spill] sm:$0xff] }
 0x2ef   :  { %7415 = vrsqrt.f32 %v4945_v39  ;;  %v9005_v30 = vadd.f32 1.0, %v8982_v26  ;;  %v7406_v43 = vpop.eup %7405  ;;  %v2975_v25 = vmul.f32 %v7394_v29, %v2967_v5  ;;  %v5947_v1 = vmul.f32 %v5939_v63, %v11128_v55  ;;  %v9017_v39 = vpop.xlane.xlu1 %4892  ;;  %v11130_v5 = vld [vmem:[#allocation24_spill] sm:$0xff]  ;;  %v7969_v55 = vld [vmem:[#allocation2 + $0xb8] sm:$0xff] }
 0x2f0   :  { %4990 = vadd.xlane.f32.xlu0 %v4978_v19  ;;  %7417 = vrcp.f32 %v8987_v18  ;;  %v3986_v32 = vmul.f32 %v8919_v57, %v3962_v34  ;;  %v2963_v12 = vmul.f32 %v7406_v43, %v8931_v54  ;;  %v3968_v22 = vadd.f32 1e-09, %v8939_v31 }
 0x2f1   :  { %7419 = vrsqrt.f32 %v4944_v45  ;;  %v9015_v14 = vadd.f32 1.0, %v8971_v44  ;;  %v5905_v53 = vmul.f32 %v7400_v9, %v5897_v15  ;;  %v5955_v29 = vmul.f32 %v7966_v2, %v5947_v1  ;;  %v9032_v9 = vpop.xlane.xlu0 %3915 }
 0x2f2   :  { %7421 = vrcp.f32 %v9005_v30  ;;  %v3994_v60 = vmul.f32 %v3986_v32, %v11129_v35  ;;  %v2971_v21 = vsub.f32 2.0, %v2963_v12  ;;  %v5925_v57 = vadd.f32 1e-09, %v8982_v26  ;;  %v11132_v12 = vld [vmem:[#allocation27_spill] sm:$0xff] }
 0x2f3   :  { %7423 = vrsqrt.f32 %v3971_v13  ;;  %v4963_v54 = vmul.f32 %v8927_v16, %v8959_v28  ;;  %v7408_v34 = vpop.eup %7407  ;;  %v2983_v40 = vmul.f32 %v2975_v25, %v8867_v51  ;;  %5967 = vadd.xlane.f32.xlu1 %v5955_v29  ;;  %v9027_v49 = vadd.f32 1.0, %v9017_v39 }
 0x2f4   :  { %v4002_v37 = vmul.f32 %v7967_v47, %v3994_v60  ;;  %7425 = vrcp.f32 %v9015_v14  ;;  %v4913_v7 = vmul.f32 %v7408_v34, %v8953_v46  ;;  %v5922_v24 = vadd.f32 1e-09, %v8971_v44  ;;  %v7970_v60 = vld [vmem:[#allocation2 + $0x40] sm:$0xff] }
 0x2f5   :  { %7427 = vrsqrt.f32 %v3968_v22  ;;  %v4971_v45 = vmul.f32 %v4963_v54, %v11130_v5  ;;  %v7410_v16 = vpop.eup %7409  ;;  %v9035_v51 = vmul.f32 %v5905_v53, %v8894_v48  ;;  %v5940_v28 = vmul.f32 %v8935_v61, %v8979_v23  ;;  %v9062_v35 = vpop.xlane.xlu0 %5869 }
 0x2f6   :  { %4015 = vadd.xlane.f32.xlu0 %v4002_v37  ;;  %7429 = vrcp.f32 %v9027_v49  ;;  %v9041_v17 = vadd.f32 1.0, %v9007_v8  ;;  %v2979_v10 = vmul.f32 %v7406_v43, %v2971_v21  ;;  %v4912_v27 = vmul.f32 %v7410_v16, %v8962_v33 }
 0x2f7   :  { %v9043_v46 = vpop.eup %7411  ;;  %7431 = vrsqrt.f32 %v5925_v57  ;;  %v4979_v6 = vmul.f32 %v7968_v52, %v4971_v45  ;;  %v9047_v48 = vadd.f32 1e-09, %v9017_v39  ;;  %v5948_v19 = vmul.f32 %v5940_v28, %v11131_v62  ;;  %v11133_v45 = vld [vmem:[#allocation26_spill] sm:$0xff]  ;;  %v11134_v28 = vld [vmem:[#allocation29_spill] sm:$0xff]  ;;  %v7971_v52 = vld [vmem:[#allocation2 + $0xc0] sm:$0xff] }
 0x2f8   :  { %v7414_v13 = vpop.eup %7413  ;;  %v3006_v63 = vmul.f32 %v8965_v4, %v2982_v36  ;;  %v9052_v61 = vadd.f32 1.0, %v9032_v9  ;;  %v4921_v15 = vsub.f32 2.0, %v4913_v7  ;;  %v4920_v43 = vsub.f32 2.0, %v4912_v27 }
 0x2f9   :  { %v9054_v23 = vpop.eup %7415  ;;  %v3939_v33 = vmul.f32 %v7414_v13, %v8969_v20  ;;  %4992 = vadd.xlane.f32.xlu1 %v4979_v6  ;;  %7433 = vrcp.f32 %v9041_v17  ;;  %v5956_v1 = vmul.f32 %v7969_v55, %v5948_v19  ;;  %v4948_v32 = vadd.f32 1e-09, %v9007_v8 }
 0x2fa   :  { %v7418_v25 = vpop.eup %7417  ;;  %7435 = vrsqrt.f32 %v5922_v24  ;;  %v3014_v4 = vmul.f32 %v3006_v63, %v11132_v12  ;;  %v2987_v22 = vmul.f32 %v2979_v10, %v8887_v41  ;;  %v4928_v53 = vmul.f32 %v7410_v16, %v4920_v43 }
 0x2fb   :  { %v7420_v36 = vpop.eup %7419  ;;  %v3947_v2 = vsub.f32 2.0, %v3939_v33  ;;  %v3936_v29 = vmul.f32 %v7418_v25, %v8987_v18  ;;  %5969 = vadd.xlane.f32.xlu0 %v5956_v1  ;;  %7437 = vrcp.f32 %v9052_v61  ;;  %v3010_v57 = vmul.f32 %v8944_v59, %v8992_v50 }
 0x2fc   :  { %v7422_v20 = vpop.eup %7421  ;;  %v3022_v21 = vmul.f32 %v7970_v60, %v3014_v4  ;;  %v3007_v54 = vmul.f32 %v8989_v56, %v2983_v40  ;;  %v4929_v41 = vmul.f32 %v7408_v34, %v4921_v15  ;;  %v3972_v5 = vadd.f32 1e-09, %v9032_v9 }
 0x2fd   :  { %v9068_v47 = vpop.eup %7423  ;;  %v3955_v37 = vmul.f32 %v7414_v13, %v3947_v2  ;;  %v3944_v7 = vsub.f32 2.0, %v3936_v29  ;;  %v5893_v18 = vmul.f32 %v7422_v20, %v9005_v30  ;;  %v3018_v16 = vmul.f32 %v3010_v57, %v11133_v45  ;;  %v7972_v13 = vld [vmem:[#allocation2 + $0x60] sm:$0xff]  ;;  %v11136_v29 = vld [vmem:[#allocation31_spill] sm:$0xff]  ;;  %v7973_v57 = vld [vmem:[#allocation2 + $0x48] sm:$0xff] }
 0x2fe   :  { %v7426_v24 = vpop.eup %7425  ;;  %3032 = vadd.xlane.f32.xlu1 %v3022_v21  ;;  %v3015_v10 = vmul.f32 %v3007_v54, %v11134_v28  ;;  %v9075_v27 = vadd.f32 1.0, %v9062_v35  ;;  %v4936_v56 = vmul.f32 %v4928_v53, %v8914_v58  ;;  %7439 = vrsqrt.f32 %v4948_v32  ;;  %v11135_v53 = vld [vmem:[#allocation28_spill] sm:$0xff]  ;;  %v7976_v28 = vld [vmem:[#allocation2 + $0x58] sm:$0xff] }
 0x2ff   :  { %v7428_v59 = vpop.eup %7427  ;;  %v5901_v50 = vsub.f32 2.0, %v5893_v18  ;;  %v5890_v34 = vmul.f32 %v7426_v24, %v9015_v14  ;;  %v3952_v30 = vmul.f32 %v7418_v25, %v3944_v7  ;;  %v3026_v6 = vmul.f32 %v7971_v52, %v3018_v16  ;;  %v7974_v54 = vld [vmem:[#allocation2 + $0xe0] sm:$0xff]  ;;  %v7975_v7 = vld [vmem:[#allocation2 + $0x50] sm:$0xff] }
 0x300   :  { %v7430_v40 = vpop.eup %7429  ;;  %v3023_v62 = vmul.f32 %v7972_v13, %v3015_v10  ;;  %7441 = vrcp.f32 %v9075_v27  ;;  %v4937_v63 = vmul.f32 %v4929_v41, %v8922_v38  ;;  %v3963_v15 = vmul.f32 %v3955_v37, %v8948_v3 }
 0x301   :  { %v9080_v19 = vpop.eup %7431  ;;  %v5898_v43 = vsub.f32 2.0, %v5890_v34  ;;  %v4917_v58 = vmul.f32 %v7430_v40, %v9027_v49  ;;  %7443 = vrsqrt.f32 %v3972_v5  ;;  %v3983_v14 = vmul.f32 %v8973_v11, %v9002_v0  ;;  %v11140_v34 = vld [vmem:[#allocation35_spill] sm:$0xff] }
 0x302   :  { %3040 = vadd.xlane.f32.xlu1 %v3026_v6  ;;  %3034 = vadd.xlane.f32.xlu0 %v3023_v62  ;;  %v3011_v33 = vmul.f32 %v9043_v46, %v2987_v22  ;;  %v5937_v25 = vmul.f32 %v8999_v42, %v9035_v51  ;;  %v5909_v1 = vmul.f32 %v7422_v20, %v5901_v50  ;;  %v5926_v38 = vadd.f32 1e-09, %v9062_v35  ;;  %v11137_v22 = vld [vmem:[#allocation30_spill] sm:$0xff]  ;;  %v11138_v51 = vld [vmem:[#allocation33_spill] sm:$0xff]  ;;  %v11139_v50 = vld [vmem:[#allocation32_spill] sm:$0xff] }
 0x303   :  { %v7434_v55 = vpop.eup %7433  ;;  %v5906_v32 = vmul.f32 %v7426_v24, %v5898_v43  ;;  %v4960_v3 = vmul.f32 %v7420_v36, %v4936_v56  ;;  %v3960_v49 = vmul.f32 %v3952_v30, %v8939_v31  ;;  %v3991_v2 = vmul.f32 %v3983_v14, %v11135_v53  ;;  %v11141_v62 = vld [vmem:[#allocation37_spill] sm:$0xff] }
 0x304   :  { %v7436_v12 = vpop.eup %7435  ;;  %v4916_v4 = vmul.f32 %v7434_v55, %v9041_v17  ;;  %v3019_v11 = vmul.f32 %v3011_v33, %v11136_v29  ;;  %v4925_v46 = vsub.f32 2.0, %v4917_v58  ;;  %v5945_v42 = vmul.f32 %v5937_v25, %v11137_v22  ;;  %v7978_v33 = vld [vmem:[#allocation2 + $0x70] sm:$0xff]  ;;  %v7980_v53 = vld [vmem:[#allocation2 + $0xc8] sm:$0xff] }
 0x305   :  { %v5914_v0 = vmul.f32 %v5906_v32, %v8971_v44  ;;  %v4968_v20 = vmul.f32 %v4960_v3, %v11138_v51  ;;  %v7438_v60 = vpop.eup %7437  ;;  %v3999_v36 = vmul.f32 %v7973_v57, %v3991_v2  ;;  %v4961_v31 = vmul.f32 %v9054_v23, %v4937_v63  ;;  %v11144_v2 = vld [vmem:[#allocation36_spill] sm:$0xff]  ;;  %v7982_v51 = vld [vmem:[#allocation2 + $0xd8] sm:$0xff] }
 0x306   :  { %v4924_v21 = vsub.f32 2.0, %v4916_v4  ;;  %v3027_v41 = vmul.f32 %v7974_v54, %v3019_v11  ;;  %v5917_v17 = vmul.f32 %v5909_v1, %v8982_v26  ;;  %7445 = vrsqrt.f32 %v9047_v48  ;;  %v7979_v1 = vld [vmem:[#allocation2 + $0x78] sm:$0xff] }
 0x307   :  { %v3940_v37 = vmul.f32 %v7438_v60, %v9052_v61  ;;  %7447 = vrsqrt.f32 %v5926_v38  ;;  %4009 = vadd.xlane.f32.xlu1 %v3999_v36  ;;  %v4976_v18 = vmul.f32 %v7975_v7, %v4968_v20  ;;  %v3984_v24 = vmul.f32 %v7428_v59, %v3960_v49  ;;  %v7977_v59 = vld [vmem:[#allocation2 + $0x68] sm:$0xff]  ;;  %v11143_v38 = vld [vmem:[#allocation39_spill] sm:$0xff] }
 0x308   :  { %v4932_v44 = vmul.f32 %v7434_v55, %v4924_v21  ;;  %3042 = vadd.xlane.f32.xlu0 %v3027_v41  ;;  %v7440_v5 = vpop.eup %7439  ;;  %v4933_v45 = vmul.f32 %v7430_v40, %v4925_v46  ;;  %v5953_v10 = vmul.f32 %v7976_v28, %v5945_v42  ;;  %v5938_v56 = vmul.f32 %v7436_v12, %v5914_v0  ;;  %v11142_v55 = vld [vmem:[#allocation34_spill] sm:$0xff]  ;;  %v11145_v46 = vld [vmem:[#allocation40_spill] sm:$0xff]  ;;  %v11147_v36 = vld [vmem:[#allocation41_spill] sm:$0xff] }
 0x309   :  { %v3948_v16 = vsub.f32 2.0, %v3940_v37  ;;  %v4969_v48 = vmul.f32 %v4961_v31, %v11139_v50  ;;  %v3992_v61 = vmul.f32 %v3984_v24, %v11140_v34  ;;  %v3987_v30 = vmul.f32 %v9068_v47, %v3963_v15  ;;  %v7984_v41 = vld [vmem:[#allocation2 + $0xf0] sm:$0xff] }
 0x30a   :  { %v7442_v23 = vpop.eup %7441  ;;  %v4940_v26 = vmul.f32 %v4932_v44, %v9007_v8  ;;  %v5946_v63 = vmul.f32 %v5938_v56, %v11141_v62  ;;  %v4941_v14 = vmul.f32 %v4933_v45, %v9017_v39  ;;  %v5941_v15 = vmul.f32 %v9080_v19, %v5917_v17  ;;  %v7981_v19 = vld [vmem:[#allocation2 + $0xd0] sm:$0xff]  ;;  %v7985_v17 = vld [vmem:[#allocation2 + $0xf8] sm:$0xff] }
 0x30b   :  { %v3956_v52 = vmul.f32 %v7438_v60, %v3948_v16  ;;  %v5894_v6 = vmul.f32 %v7442_v23, %v9075_v27  ;;  %v7444_v13 = vpop.eup %7443  ;;  %5963 = vadd.xlane.f32.xlu1 %v5953_v10  ;;  %v4000_v40 = vmul.f32 %v7977_v59, %v3992_v61  ;;  %v4977_v25 = vmul.f32 %v7978_v33, %v4969_v48  ;;  %v11146_v60 = vld [vmem:[#allocation38_spill] sm:$0xff] }
 0x30c   :  { %4986 = vadd.xlane.f32.xlu0 %v4976_v18  ;;  %v4964_v43 = vmul.f32 %v7440_v5, %v4940_v26  ;;  %v3995_v47 = vmul.f32 %v3987_v30, %v11142_v55  ;;  %v5954_v32 = vmul.f32 %v7979_v1, %v5946_v63  ;;  %v5949_v29 = vmul.f32 %v5941_v15, %v11144_v2 }
 0x30d   :  { %v3964_v58 = vmul.f32 %v3956_v52, %v9032_v9  ;;  %v5902_v8 = vsub.f32 2.0, %v5894_v6 }
 0x30e   :  { %v4972_v3 = vmul.f32 %v4964_v43, %v11143_v38  ;;  %v4003_v39 = vmul.f32 %v7980_v53, %v3995_v47  ;;  %v5957_v20 = vmul.f32 %v7982_v51, %v5949_v29 }
 0x30f   :  { %v5910_v27 = vmul.f32 %v7442_v23, %v5902_v8  ;;  %4988 = vadd.xlane.f32.xlu1 %v4977_v25  ;;  %v3988_v12 = vmul.f32 %v7444_v13, %v3964_v58 }
 0x310   :  { %4011 = vadd.xlane.f32.xlu0 %v4000_v40  ;;  %v7446_v49 = vpop.eup %7445  ;;  %v4980_v0 = vmul.f32 %v7981_v19, %v4972_v3 }
 0x311   :  { %v5918_v9 = vmul.f32 %v5910_v27, %v9062_v35  ;;  %v7448_v4 = vpop.eup %7447  ;;  %v4965_v11 = vmul.f32 %v7446_v49, %v4941_v14  ;;  %v3996_v22 = vmul.f32 %v3988_v12, %v11145_v46  ;;  %v7983_v35 = vld [vmem:[#allocation2 + $0xe8] sm:$0xff] }
 0x313   :  { %4017 = vadd.xlane.f32.xlu1 %v4003_v39  ;;  %v5942_v42 = vmul.f32 %v7448_v4, %v5918_v9  ;;  %v4973_v21 = vmul.f32 %v4965_v11, %v11146_v60  ;;  %v4004_v57 = vmul.f32 %v7983_v35, %v3996_v22 }
 0x314   :  { %5965 = vadd.xlane.f32.xlu0 %v5954_v32 }
 0x315   :  { %v5950_v54 = vmul.f32 %v5942_v42, %v11147_v36  ;;  %v4981_v31 = vmul.f32 %v7984_v41, %v4973_v21 }
 0x317   :  { %5971 = vadd.xlane.f32.xlu1 %v5957_v20  ;;  %v5958_v37 = vmul.f32 %v7985_v17, %v5950_v54 }
 0x318   :  { %4994 = vadd.xlane.f32.xlu0 %v4980_v0 }
 0x31b   :  { %4996 = vadd.xlane.f32.xlu1 %v4981_v31 }
 0x31c   :  { %4019 = vadd.xlane.f32.xlu0 %v4004_v57 }
 0x320   :  { %5973 = vadd.xlane.f32.xlu0 %v5958_v37 }
 0x35c   :  { %v9118_v44 = vpop.xlane.xlu0 %3030 }
 0x35d   :  { %11148 = vst [vmem:[#allocation20_spill] sm:$0xff] %v9118_v44  ;;  %v3050_v7 = vrot.slane %v9118_v44, 4 }
 0x35f   :  { %v9121_v18 = vpop.xlane.xlu1 %3028  ;;  %v3051_v5 = vmax.f32 %v9118_v44, %v3050_v7 }
 0x360   :  { %11149 = vst [vmem:[#allocation21_spill] sm:$0xff] %v9121_v18  ;;  %v3044_v24 = vrot.slane %v9121_v18, 4 }
 0x361   :  { %v3052_v16 = vrot.slane %v3051_v5, 2 }
 0x362   :  { %v3045_v45 = vmax.f32 %v9121_v18, %v3044_v24 }
 0x363   :  { %v3053_v10 = vmax.f32 %v3051_v5, %v3052_v16 }
 0x364   :  { %v3046_v28 = vrot.slane %v3045_v45, 2  ;;  %v9126_v56 = vpop.xlane.xlu1 %3036 }
 0x365   :  { %11150 = vst [vmem:[#allocation22_spill] sm:$0xff] %v9126_v56  ;;  %v9128_v23 = vpop.xlane.xlu0 %3038  ;;  %v3054_v50 = vrot.slane %v3053_v10, 1  ;;  %v3068_v48 = vrot.slane %v9126_v56, 4 }
 0x366   :  { %11151 = vst [vmem:[#allocation23_spill] sm:$0xff] %v9128_v23  ;;  %v3047_v26 = vmax.f32 %v3045_v45, %v3046_v28  ;;  %v3074_v34 = vrot.slane %v9128_v23, 4 }
 0x367   :  { %v3055_v30 = vmax.f32 %v3053_v10, %v3054_v50  ;;  %v3069_v52 = vmax.f32 %v9126_v56, %v3068_v48 }
 0x368   :  { %v3048_v61 = vrot.slane %v3047_v26, 1  ;;  %v3075_v6 = vmax.f32 %v9128_v23, %v3074_v34  ;;  %v9134_v13 = vpop.xlane.xlu1 %4005 }
 0x369   :  { %11152 = vst [vmem:[#allocation24_spill] sm:$0xff] %v9134_v13  ;;  %v3093_v40 = vsub.f32 %v9118_v44, %v3055_v30  ;;  %v3070_v62 = vrot.slane %v3069_v52, 2  ;;  %v4021_v43 = vrot.slane %v9134_v13, 4 }
 0x36a   :  { %v3049_v59 = vmax.f32 %v3047_v26, %v3048_v61  ;;  %v3076_v63 = vrot.slane %v3075_v6, 2 }
 0x36b   :  { %v9138_v58 = vpop.xlane.xlu0 %4007  ;;  %v3102_v14 = vmul.f32 1.442695, %v3093_v40  ;;  %v3071_v33 = vmax.f32 %v3069_v52, %v3070_v62  ;;  %v4022_v55 = vmax.f32 %v9134_v13, %v4021_v43 }
 0x36c   :  { %11153 = vst [vmem:[#allocation25_spill] sm:$0xff] %v9138_v58  ;;  %v3092_v8 = vsub.f32 %v9121_v18, %v3049_v59  ;;  %v3077_v25 = vmax.f32 %v3075_v6, %v3076_v63  ;;  %v4027_v47 = vrot.slane %v9138_v58, 4 }
 0x36d   :  { %v9143_v15 = vpop.xlane.xlu1 %4982  ;;  %7449 = vpow2.f32 %v3102_v14  ;;  %v3072_v1 = vrot.slane %v3071_v33, 1  ;;  %v4023_v38 = vrot.slane %v4022_v55, 2 }
 0x36e   :  { %11154 = vst [vmem:[#allocation27_spill] sm:$0xff] %v9143_v15  ;;  %v3100_v27 = vmul.f32 1.442695, %v3092_v8  ;;  %v3078_v32 = vrot.slane %v3077_v25, 1  ;;  %v4028_v3 = vmax.f32 %v9138_v58, %v4027_v47  ;;  %v4998_v12 = vrot.slane %v9143_v15, 4 }
 0x36f   :  { %v3073_v49 = vmax.f32 %v3071_v33, %v3072_v1  ;;  %v4024_v4 = vmax.f32 %v4022_v55, %v4023_v38 }
 0x370   :  { %7451 = vpow2.f32 %v3100_v27  ;;  %v3079_v9 = vmax.f32 %v3077_v25, %v3078_v32  ;;  %v4029_v53 = vrot.slane %v4028_v3, 2  ;;  %v4999_v39 = vmax.f32 %v9143_v15, %v4998_v12 }
 0x371   :  { %v9148_v2 = vpop.xlane.xlu0 %4984  ;;  %v3096_v29 = vsub.f32 %v9126_v56, %v3073_v49  ;;  %v4025_v0 = vrot.slane %v4024_v4, 1 }
 0x372   :  { %11155 = vst [vmem:[#allocation26_spill] sm:$0xff] %v9148_v2  ;;  %v3097_v11 = vsub.f32 %v9128_v23, %v3079_v9  ;;  %v5004_v19 = vrot.slane %v9148_v2, 4  ;;  %v4030_v46 = vmax.f32 %v4028_v3, %v4029_v53  ;;  %v5000_v22 = vrot.slane %v4999_v39, 2 }
 0x373   :  { %v9153_v42 = vpop.xlane.xlu1 %5959  ;;  %v3108_v51 = vmul.f32 1.442695, %v3096_v29  ;;  %v4026_v21 = vmax.f32 %v4024_v4, %v4025_v0 }
 0x374   :  { %11156 = vst [vmem:[#allocation29_spill] sm:$0xff] %v9153_v42  ;;  %v5005_v20 = vmax.f32 %v9148_v2, %v5004_v19  ;;  %v5975_v60 = vrot.slane %v9153_v42, 4  ;;  %v4031_v35 = vrot.slane %v4030_v46, 1  ;;  %v5001_v57 = vmax.f32 %v4999_v39, %v5000_v22 }
 0x375   :  { %7453 = vpow2.f32 %v3108_v51  ;;  %v3110_v36 = vmul.f32 1.442695, %v3097_v11  ;;  %v4069_v31 = vsub.f32 %v9134_v13, %v4026_v21 }
 0x376   :  { %v5006_v54 = vrot.slane %v5005_v20, 2  ;;  %v5976_v41 = vmax.f32 %v9153_v42, %v5975_v60  ;;  %v4032_v17 = vmax.f32 %v4030_v46, %v4031_v35  ;;  %v5002_v37 = vrot.slane %v5001_v57, 1 }
 0x377   :  { %v9159_v7 = vpop.xlane.xlu0 %5961  ;;  %v9161_v24 = vpop.eup %7449  ;;  %v4077_v28 = vmul.f32 1.442695, %v4069_v31  ;;  %7455 = vpow2.f32 %v3110_v36 }
 0x378   :  { %11157 = vst [vmem:[#allocation28_spill] sm:$0xff] %v9159_v7  ;;  %v5007_v5 = vmax.f32 %v5005_v20, %v5006_v54  ;;  %v5977_v45 = vrot.slane %v5976_v41, 2  ;;  %v5981_v16 = vrot.slane %v9159_v7, 4  ;;  %v4070_v10 = vsub.f32 %v9138_v58, %v4032_v17 }
 0x379   :  { %v5003_v26 = vmax.f32 %v5001_v57, %v5002_v37  ;;  %v3122_v50 = vrot.slane %v9161_v24, 4  ;;  %7457 = vpow2.f32 %v4077_v28 }
 0x37a   :  { %v9166_v48 = vpop.eup %7451  ;;  %v5008_v34 = vrot.slane %v5007_v5, 1  ;;  %v5978_v61 = vmax.f32 %v5976_v41, %v5977_v45  ;;  %v5982_v30 = vmax.f32 %v9159_v7, %v5981_v16  ;;  %v4079_v52 = vmul.f32 1.442695, %v4070_v10 }
 0x37b   :  { %v5046_v6 = vsub.f32 %v9143_v15, %v5003_v26  ;;  %v9170_v59 = vpop.xlane.xlu1 %4013  ;;  %v3116_v40 = vrot.slane %v9166_v48, 4  ;;  %v3123_v55 = vadd.f32 %v9161_v24, %v3122_v50 }
 0x37c   :  { %11158 = vst [vmem:[#allocation31_spill] sm:$0xff] %v9170_v59  ;;  %v5009_v62 = vmax.f32 %v5007_v5, %v5008_v34  ;;  %v5979_v63 = vrot.slane %v5978_v61, 1  ;;  %v5983_v43 = vrot.slane %v5982_v30, 2  ;;  %v4045_v8 = vrot.slane %v9170_v59, 4 }
 0x37d   :  { %7459 = vpow2.f32 %v4079_v52  ;;  %v5054_v14 = vmul.f32 1.442695, %v5046_v6  ;;  %v9174_v33 = vpop.xlane.xlu0 %4990  ;;  %v3117_v25 = vadd.f32 %v9166_v48, %v3116_v40  ;;  %v3124_v12 = vrot.slane %v3123_v55, 2 }
 0x37e   :  { %11159 = vst [vmem:[#allocation30_spill] sm:$0xff] %v9174_v33  ;;  %v5047_v47 = vsub.f32 %v9148_v2, %v5009_v62  ;;  %v5980_v27 = vmax.f32 %v5978_v61, %v5979_v63  ;;  %v5984_v1 = vmax.f32 %v5982_v30, %v5983_v43  ;;  %v4046_v32 = vmax.f32 %v9170_v59, %v4045_v8 }
 0x37f   :  { %7461 = vpow2.f32 %v5054_v14  ;;  %v5022_v38 = vrot.slane %v9174_v33, 4  ;;  %v3118_v3 = vrot.slane %v3117_v25, 2  ;;  %v9181_v49 = vpop.eup %7453  ;;  %v3125_v0 = vadd.f32 %v3124_v12, %v3123_v55 }
 0x380   :  { %v5056_v9 = vmul.f32 1.442695, %v5047_v47  ;;  %v6023_v4 = vsub.f32 %v9153_v42, %v5980_v27  ;;  %v5985_v53 = vrot.slane %v5984_v1, 1  ;;  %v4047_v39 = vrot.slane %v4046_v32, 2  ;;  %v9185_v11 = vpop.xlane.xlu1 %5967 }
 0x381   :  { %v5023_v29 = vmax.f32 %v9174_v33, %v5022_v38  ;;  %11160 = vst [vmem:[#allocation33_spill] sm:$0xff] %v9185_v11  ;;  %v3119_v19 = vadd.f32 %v3118_v3, %v3117_v25  ;;  %v3140_v46 = vrot.slane %v9181_v49, 4  ;;  %v5999_v21 = vrot.slane %v9185_v11, 4  ;;  %v9191_v54 = vpop.eup %7455 }
 0x382   :  { %7463 = vpow2.f32 %v5056_v9  ;;  %v6031_v22 = vmul.f32 1.442695, %v6023_v4  ;;  %v5986_v51 = vmax.f32 %v5984_v1, %v5985_v53  ;;  %v4048_v20 = vmax.f32 %v4046_v32, %v4047_v39 }
 0x383   :  { %v5024_v60 = vrot.slane %v5023_v29, 2  ;;  %v9189_v35 = vpop.xlane.xlu0 %4015  ;;  %v3120_v57 = vrot.slane %v3119_v19, 1  ;;  %v3126_v36 = vrot.slane %v3125_v0, 1  ;;  %v9195_v37 = vpop.eup %7457  ;;  %v6000_v45 = vmax.f32 %v9185_v11, %v5999_v21 }
 0x384   :  { %11161 = vst [vmem:[#allocation32_spill] sm:$0xff] %v9189_v35  ;;  %7465 = vpow2.f32 %v6031_v22  ;;  %v6024_v41 = vsub.f32 %v9159_v7, %v5986_v51  ;;  %v4049_v31 = vrot.slane %v4048_v20, 1  ;;  %v4051_v17 = vrot.slane %v9189_v35, 4 }
 0x385   :  { %v5025_v5 = vmax.f32 %v5023_v29, %v5024_v60  ;;  %v9198_v16 = vadd.f32 %v3120_v57, %v3119_v19  ;;  %v9200_v28 = vadd.f32 %v3126_v36, %v3125_v0  ;;  %v3141_v61 = vadd.f32 %v9181_v49, %v3140_v46 }
 0x386   :  { %v6033_v10 = vmul.f32 1.442695, %v6024_v41  ;;  %v4050_v26 = vmax.f32 %v4048_v20, %v4049_v31  ;;  %v4052_v50 = vmax.f32 %v9189_v35, %v4051_v17  ;;  %v9203_v34 = vpop.xlane.xlu1 %4992  ;;  %v6001_v6 = vrot.slane %v6000_v45, 2 }
 0x387   :  { %11162 = vst [vmem:[#allocation35_spill] sm:$0xff] %v9203_v34  ;;  %v9206_v30 = vpop.eup %7459  ;;  %v5026_v52 = vrot.slane %v5025_v5, 1  ;;  %v5028_v40 = vrot.slane %v9203_v34, 4  ;;  %7467 = vrcp.f32 %v9198_v16  ;;  %v3142_v43 = vrot.slane %v3141_v61, 2 }
 0x388   :  { %7469 = vpow2.f32 %v6033_v10  ;;  %v4073_v62 = vsub.f32 %v9170_v59, %v4050_v26  ;;  %v4053_v63 = vrot.slane %v4052_v50, 2  ;;  %v6002_v25 = vmax.f32 %v6000_v45, %v6001_v6  ;;  %v9214_v47 = vpop.xlane.xlu0 %5969 }
 0x389   :  { %v9211_v8 = vpop.eup %7461  ;;  %v5027_v14 = vmax.f32 %v5025_v5, %v5026_v52  ;;  %v5029_v55 = vmax.f32 %v9203_v34, %v5028_v40  ;;  %11163 = vst [vmem:[#allocation37_spill] sm:$0xff] %v9214_v47  ;;  %7471 = vrcp.f32 %v9200_v28  ;;  %v6005_v32 = vrot.slane %v9214_v47, 4 }
 0x38a   :  { %v4085_v27 = vmul.f32 1.442695, %v4073_v62  ;;  %v4054_v1 = vmax.f32 %v4052_v50, %v4053_v63  ;;  %v3143_v38 = vadd.f32 %v3142_v43, %v3141_v61  ;;  %v6003_v12 = vrot.slane %v6002_v25, 1 }
 0x38b   :  { %v5050_v3 = vsub.f32 %v9174_v33, %v5027_v14  ;;  %v5030_v9 = vrot.slane %v5029_v55, 2  ;;  %v9219_v4 = vpop.xlane.xlu1 %3032  ;;  %v3146_v53 = vrot.slane %v9191_v54, 4  ;;  %v6006_v19 = vmax.f32 %v9214_v47, %v6005_v32 }
 0x38c   :  { %11164 = vst [vmem:[#allocation34_spill] sm:$0xff] %v9219_v4  ;;  %v9222_v39 = vpop.eup %7463  ;;  %7473 = vpow2.f32 %v4085_v27  ;;  %v4055_v29 = vrot.slane %v4054_v1, 1  ;;  %v3056_v0 = vrot.slane %v9219_v4, 4  ;;  %v6004_v22 = vmax.f32 %v6002_v25, %v6003_v12 }
 0x38d   :  { %v5062_v46 = vmul.f32 1.442695, %v5050_v3  ;;  %v5031_v51 = vmax.f32 %v5029_v55, %v5030_v9  ;;  %v3144_v20 = vrot.slane %v3143_v38, 1  ;;  %v6007_v57 = vrot.slane %v6006_v19, 2 }
 0x38e   :  { %v9226_v60 = vpop.eup %7465  ;;  %v4056_v21 = vmax.f32 %v4054_v1, %v4055_v29  ;;  %v3057_v36 = vmax.f32 %v9219_v4, %v3056_v0  ;;  %v9230_v41 = vadd.f32 %v9191_v54, %v3146_v53  ;;  %v6027_v31 = vsub.f32 %v9185_v11, %v6004_v22 }
 0x38f   :  { %7475 = vpow2.f32 %v5062_v46  ;;  %v5032_v17 = vrot.slane %v5031_v51, 1  ;;  %v9233_v5 = vpop.xlane.xlu1 %3040  ;;  %v9235_v45 = vpop.xlane.xlu0 %3034  ;;  %v9237_v10 = vadd.f32 %v3144_v20, %v3143_v38  ;;  %v6008_v50 = vmax.f32 %v6006_v19, %v6007_v57 }
 0x390   :  { %11165 = vst [vmem:[#allocation39_spill] sm:$0xff] %v9233_v5  ;;  %11166 = vst [vmem:[#allocation36_spill] sm:$0xff] %v9235_v45  ;;  %v4074_v26 = vsub.f32 %v9189_v35, %v4056_v21  ;;  %v3058_v61 = vrot.slane %v3057_v36, 2  ;;  %v3080_v52 = vrot.slane %v9233_v5, 4  ;;  %v6039_v40 = vmul.f32 1.442695, %v6027_v31 }
 0x391   :  { %v7468_v6 = vpop.eup %7467  ;;  %v5033_v62 = vmax.f32 %v5031_v51, %v5032_v17  ;;  %v3062_v63 = vrot.slane %v9235_v45, 4  ;;  %7477 = vrcp.f32 %v9237_v10  ;;  %v6009_v25 = vrot.slane %v6008_v50, 1 }
 0x392   :  { %v9243_v43 = vpop.eup %7469  ;;  %v4087_v14 = vmul.f32 1.442695, %v4074_v26  ;;  %v3059_v55 = vmax.f32 %v3057_v36, %v3058_v61  ;;  %v3081_v27 = vmax.f32 %v9233_v5, %v3080_v52  ;;  %7479 = vpow2.f32 %v6039_v40 }
 0x393   :  { %v9246_v1 = vpop.eup %7471  ;;  %v5051_v32 = vsub.f32 %v9203_v34, %v5033_v62  ;;  %v3063_v38 = vmax.f32 %v9235_v45, %v3062_v63  ;;  %v3172_v3 = vmul.f32 %v7468_v6, %v9198_v16  ;;  %v6010_v12 = vmax.f32 %v6008_v50, %v6009_v25 }
 0x394   :  { %7481 = vpow2.f32 %v4087_v14  ;;  %v3060_v9 = vrot.slane %v3059_v55, 1  ;;  %v3082_v53 = vrot.slane %v3081_v27, 2  ;;  %v9251_v0 = vpop.xlane.xlu1 %4009  ;;  %v9257_v51 = vmul.f32 %v9246_v1, %v9200_v28 }
 0x395   :  { %v5064_v29 = vmul.f32 1.442695, %v5051_v32  ;;  %v3064_v19 = vrot.slane %v3063_v38, 2  ;;  %11167 = vst [vmem:[#allocation40_spill] sm:$0xff] %v9251_v0  ;;  %v9253_v46 = vpop.xlane.xlu0 %3042  ;;  %v3180_v22 = vsub.f32 2.0, %v3172_v3  ;;  %v6028_v21 = vsub.f32 %v9214_v47, %v6010_v12 }
 0x396   :  { %11168 = vst [vmem:[#allocation38_spill] sm:$0xff] %v9253_v46  ;;  %v9259_v20 = vpop.eup %7473  ;;  %v3061_v16 = vmax.f32 %v3059_v55, %v3060_v9  ;;  %v3083_v57 = vmax.f32 %v3081_v27, %v3082_v53  ;;  %v4033_v36 = vrot.slane %v9251_v0, 4  ;;  %v3086_v17 = vrot.slane %v9253_v46, 4 }
 0x397   :  { %7483 = vpow2.f32 %v5064_v29  ;;  %v3065_v31 = vmax.f32 %v3063_v38, %v3064_v19  ;;  %v3188_v26 = vmul.f32 %v7468_v6, %v3180_v22  ;;  %v6041_v50 = vmul.f32 1.442695, %v6028_v21 }
 0x398   :  { %v3094_v61 = vsub.f32 %v9219_v4, %v3061_v16  ;;  %v3084_v52 = vrot.slane %v3083_v57, 1  ;;  %v4034_v28 = vmax.f32 %v9251_v0, %v4033_v36  ;;  %v3087_v63 = vmax.f32 %v9253_v46, %v3086_v17  ;;  %v9269_v14 = vpop.xlane.xlu1 %5963 }
 0x399   :  { %v9266_v40 = vpop.eup %7475  ;;  %v3066_v62 = vrot.slane %v3065_v31, 1  ;;  %11169 = vst [vmem:[#allocation41_spill] sm:$0xff] %v9269_v14  ;;  %v9271_v25 = vpop.xlane.xlu0 %4986  ;;  %v3196_v55 = vmul.f32 %v9166_v48, %v3188_v26  ;;  %7485 = vpow2.f32 %v6041_v50  ;;  %v5987_v53 = vrot.slane %v9269_v14, 4 }
 0x39a   :  { %11170 = vst [vmem:[#allocation42_spill] sm:$0xff] %v9271_v25  ;;  %v3104_v6 = vmul.f32 1.442695, %v3094_v61  ;;  %v3085_v32 = vmax.f32 %v3083_v57, %v3084_v52  ;;  %v4035_v38 = vrot.slane %v4034_v28, 2  ;;  %v3088_v9 = vrot.slane %v3087_v63, 2 }
 0x39b   :  { %v9275_v3 = vpop.eup %7477  ;;  %v3067_v12 = vmax.f32 %v3065_v31, %v3066_v62  ;;  %v5010_v29 = vrot.slane %v9271_v25, 4  ;;  %v3204_v48 = vsel %vm2796_vm7, 0.0, %v3196_v55  ;;  %v5988_v17 = vmax.f32 %v9269_v14, %v5987_v53 }
 0x39c   :  { %7487 = vpow2.f32 %v3104_v6  ;;  %v3098_v19 = vsub.f32 %v9233_v5, %v3085_v32  ;;  %v4036_v22 = vmax.f32 %v4034_v28, %v4035_v38  ;;  %v9282_v16 = vpop.eup %7479  ;;  %v3089_v36 = vmax.f32 %v3087_v63, %v3088_v9  ;;  %v9287_v26 = vpop.xlane.xlu1 %4988  ;;  %3214 = vperm.xlu1 %7310, %v3204_v48  }
 0x39d   :  { %v3095_v57 = vsub.f32 %v9235_v45, %v3067_v12  ;;  %v5011_v31 = vmax.f32 %v9271_v25, %v5010_v29  ;;  %11172 = vst [vmem:[#allocation43_spill] sm:$0xff] %v9287_v26  ;;  %v9289_v50 = vpop.xlane.xlu0 %4011  ;;  %v5016_v62 = vrot.slane %v9287_v26, 4  ;;  %v5989_v63 = vrot.slane %v5988_v17, 2 }
 0x39e   :  { %11173 = vst [vmem:[#allocation44_spill] sm:$0xff] %v9289_v50  ;;  %v9291_v61 = vpop.eup %7481  ;;  %v3112_v52 = vmul.f32 1.442695, %v3098_v19  ;;  %v4037_v28 = vrot.slane %v4036_v22, 1  ;;  %v4039_v55 = vrot.slane %v9289_v50, 4  ;;  %v3090_v32 = vrot.slane %v3089_v36, 1 }
 0x39f   :  { %v3106_v6 = vmul.f32 1.442695, %v3095_v57  ;;  %v5012_v38 = vrot.slane %v5011_v31, 2  ;;  %v5017_v9 = vmax.f32 %v9287_v26, %v5016_v62  ;;  %v5990_v19 = vmax.f32 %v5988_v17, %v5989_v63 }
 0x3a0   :  { %7489 = vpow2.f32 %v3112_v52  ;;  %v4038_v12 = vmax.f32 %v4036_v22, %v4037_v28  ;;  %v4040_v53 = vmax.f32 %v9289_v50, %v4039_v55  ;;  %v3091_v48 = vmax.f32 %v3089_v36, %v3090_v32  ;;  %v9299_v45 = vpop.xlane.xlu1 %4017 }
 0x3a1   :  { %v9297_v29 = vpop.eup %7483  ;;  %7491 = vpow2.f32 %v3106_v6  ;;  %v5013_v27 = vmax.f32 %v5011_v31, %v5012_v38  ;;  %11174 = vst [vmem:[#allocation45_spill] sm:$0xff] %v9299_v45  ;;  %v9301_v5 = vpop.xlane.xlu0 %5965  ;;  %v5018_v4 = vrot.slane %v5017_v9, 2  ;;  %v4057_v22 = vrot.slane %v9299_v45, 4 }
 0x3a2   :  { %11175 = vst [vmem:[#allocation46_spill] sm:$0xff] %v9301_v5  ;;  %v4071_v57 = vsub.f32 %v9251_v0, %v4038_v12  ;;  %v4041_v47 = vrot.slane %v4040_v53, 2  ;;  %v3099_v52 = vsub.f32 %v9253_v46, %v3091_v48  ;;  %v5991_v28 = vrot.slane %v5990_v19, 1 }
 0x3a3   :  { %v5014_v62 = vrot.slane %v5013_v27, 1  ;;  %v5993_v55 = vrot.slane %v9301_v5, 4  ;;  %v9307_v6 = vpop.eup %7485  ;;  %v5019_v17 = vmax.f32 %v5017_v9, %v5018_v4  ;;  %v4058_v32 = vmax.f32 %v9299_v45, %v4057_v22 }
 0x3a4   :  { %v4081_v36 = vmul.f32 1.442695, %v4071_v57  ;;  %v4042_v31 = vmax.f32 %v4040_v53, %v4041_v47  ;;  %v3114_v63 = vmul.f32 1.442695, %v3099_v52  ;;  %v5992_v38 = vmax.f32 %v5990_v19, %v5991_v28  ;;  %v9311_v34 = vpop.xlane.xlu1 %5971 }
 0x3a5   :  { %v5015_v12 = vmax.f32 %v5013_v27, %v5014_v62  ;;  %v5994_v0 = vmax.f32 %v9301_v5, %v5993_v55  ;;  %11176 = vst [vmem:[#allocation47_spill] sm:$0xff] %v9311_v34  ;;  %v9313_v11 = vpop.xlane.xlu0 %4994  ;;  %v5020_v46 = vrot.slane %v5019_v17, 1  ;;  %v4059_v59 = vrot.slane %v4058_v32, 2 }
 0x3a6   :  { %11177 = vst [vmem:[#allocation48_spill] sm:$0xff] %v9313_v11  ;;  %v9315_v48 = vpop.eup %7487  ;;  %7493 = vpow2.f32 %v4081_v36  ;;  %v4043_v35 = vrot.slane %v4042_v31, 1  ;;  %v6025_v47 = vsub.f32 %v9269_v14, %v5992_v38  ;;  %v6011_v57 = vrot.slane %v9311_v34, 4 }
 0x3a7   :  { %7495 = vpow2.f32 %v3114_v63  ;;  %v5048_v4 = vsub.f32 %v9271_v25, %v5015_v12  ;;  %v5995_v9 = vrot.slane %v5994_v0, 2  ;;  %v5021_v53 = vmax.f32 %v5019_v17, %v5020_v46 }
 0x3a8   :  { %v4044_v27 = vmax.f32 %v4042_v31, %v4043_v35  ;;  %v4060_v19 = vmax.f32 %v4058_v32, %v4059_v59  ;;  %v6035_v22 = vmul.f32 1.442695, %v6025_v47  ;;  %v5034_v62 = vrot.slane %v9313_v11, 4  ;;  %v9321_v55 = vpop.xlane.xlu1 %4996 }
 0x3a9   :  { %v5058_v52 = vmul.f32 1.442695, %v5048_v4  ;;  %v5996_v28 = vmax.f32 %v5994_v0, %v5995_v9  ;;  %11178 = vst [vmem:[#allocation49_spill] sm:$0xff] %v9321_v55  ;;  %v5049_v63 = vsub.f32 %v9287_v26, %v5021_v53  ;;  %v6012_v46 = vmax.f32 %v9311_v34, %v6011_v57  ;;  %v9332_v31 = vpop.xlane.xlu0 %4019 }
 0x3aa   :  { %v9323_v36 = vpop.eup %7489  ;;  %v4072_v38 = vsub.f32 %v9289_v50, %v4044_v27  ;;  %v4061_v12 = vrot.slane %v4060_v19, 1  ;;  %7497 = vpow2.f32 %v6035_v22  ;;  %v5035_v17 = vmax.f32 %v9313_v11, %v5034_v62  ;;  %11179 = vst [vmem:[#allocation50_spill] sm:$0xff] %v9332_v31 }
 0x3ab   :  { %v9328_v35 = vpop.eup %7491  ;;  %v5997_v59 = vrot.slane %v5996_v28, 1  ;;  %v5040_v0 = vrot.slane %v9321_v55, 4  ;;  %7499 = vpow2.f32 %v5058_v52  ;;  %v5060_v32 = vmul.f32 1.442695, %v5049_v63 }
 0x3ac   :  { %v4083_v47 = vmul.f32 1.442695, %v4072_v38  ;;  %v4062_v4 = vmax.f32 %v4060_v19, %v4061_v12  ;;  %v6013_v53 = vrot.slane %v6012_v46, 2  ;;  %v5036_v27 = vrot.slane %v5035_v17, 2 }
 0x3ad   :  { %v5998_v9 = vmax.f32 %v5996_v28, %v5997_v59  ;;  %v5041_v26 = vmax.f32 %v9321_v55, %v5040_v0  ;;  %7501 = vpow2.f32 %v5060_v32  ;;  %v11180_v22 = vsub.f32 2.0, %v9257_v51 }
 0x3ae   :  { %v4075_v57 = vsub.f32 %v9299_v45, %v4062_v4  ;;  %v4063_v50 = vrot.slane %v9332_v31, 4  ;;  %7503 = vpow2.f32 %v4083_v47  ;;  %v6014_v63 = vmax.f32 %v6012_v46, %v6013_v53 }
 0x3af   :  { %v3189_v62 = vmul.f32 %v9246_v1, %v11180_v22  ;;  %v6026_v52 = vsub.f32 %v9301_v5, %v5998_v9  ;;  %v5037_v38 = vmax.f32 %v5035_v17, %v5036_v27  ;;  %v5042_v12 = vrot.slane %v5041_v26, 2  ;;  %v9349_v22 = vpop.xlane.xlu0 %5973 }
 0x3b0   :  { %v9341_v19 = vpop.eup %7493  ;;  %v4089_v28 = vmul.f32 1.442695, %v4075_v57  ;;  %v4064_v0 = vmax.f32 %v9332_v31, %v4063_v50  ;;  %v6015_v4 = vrot.slane %v6014_v63, 1  ;;  %v3176_v47 = vmul.f32 %v9275_v3, %v9237_v10  ;;  %11181 = vst [vmem:[#allocation51_spill] sm:$0xff] %v9349_v22 }
 0x3b1   :  { %v3197_v59 = vmul.f32 %v9161_v24, %v3189_v62  ;;  %v9345_v32 = vpop.eup %7495  ;;  %v6037_v51 = vmul.f32 1.442695, %v6026_v52  ;;  %v5038_v1 = vrot.slane %v5037_v38, 1  ;;  %v5043_v46 = vmax.f32 %v5041_v26, %v5042_v12 }
 0x3b2   :  { %7505 = vpow2.f32 %v4089_v28  ;;  %v4065_v53 = vrot.slane %v4064_v0, 2  ;;  %v6016_v24 = vmax.f32 %v6014_v63, %v6015_v4  ;;  %v3184_v50 = vsub.f32 2.0, %v3176_v47 }
 0x3b3   :  { %v3205_v9 = vsel %vm2797_vm8, 0.0, %v3197_v59  ;;  %7507 = vpow2.f32 %v6037_v51  ;;  %v5039_v27 = vmax.f32 %v5037_v38, %v5038_v1  ;;  %v5044_v57 = vrot.slane %v5043_v46, 1 }
 0x3b4   :  { %3219 = vperm.xlu0 %7299, %v3205_v9   ;;  %v4066_v62 = vmax.f32 %v4064_v0, %v4065_v53  ;;  %v3148_v52 = vrot.slane %v9230_v41, 2  ;;  %v6017_v45 = vrot.slane %v9349_v22, 4  ;;  %v9355_v10 = vpop.eup %7497  ;;  %v6029_v28 = vsub.f32 %v9311_v34, %v6016_v24 }
 0x3b5   :  { %v5052_v26 = vsub.f32 %v9313_v11, %v5039_v27  ;;  %v3192_v12 = vmul.f32 %v9275_v3, %v3184_v50  ;;  %v4093_v59 = vrot.slane %v9195_v37, 4  ;;  %v9361_v63 = vpop.eup %7499  ;;  %v5045_v38 = vmax.f32 %v5043_v46, %v5044_v57 }
 0x3b6   :  { %v4067_v51 = vrot.slane %v4066_v62, 1  ;;  %v3149_v0 = vadd.f32 %v3148_v52, %v9230_v41  ;;  %v6018_v4 = vmax.f32 %v9349_v22, %v6017_v45  ;;  %v6043_v1 = vmul.f32 1.442695, %v6029_v28 }
 0x3b7   :  { %v5066_v47 = vmul.f32 1.442695, %v5052_v26  ;;  %v3200_v9 = vmul.f32 %v9181_v49, %v3192_v12  ;;  %v4094_v53 = vadd.f32 %v9195_v37, %v4093_v59  ;;  %v9367_v24 = vpop.eup %7501  ;;  %v5053_v3 = vsub.f32 %v9321_v55, %v5045_v38 }
 0x3b8   :  { %v4068_v27 = vmax.f32 %v4066_v62, %v4067_v51  ;;  %v3150_v50 = vrot.slane %v3149_v0, 1  ;;  %v6019_v34 = vrot.slane %v6018_v4, 2  ;;  %v9370_v11 = vpop.eup %7503  ;;  %7509 = vpow2.f32 %v6043_v1 }
 0x3b9   :  { %v3208_v41 = vsel %vm2800_vm9, 0.0, %v3200_v9  ;;  %v4095_v45 = vrot.slane %v4094_v53, 2  ;;  %v4099_v57 = vrot.slane %v9206_v30, 4  ;;  %7511 = vpow2.f32 %v5066_v47 }
 0x3ba   :  { %v5068_v49 = vmul.f32 1.442695, %v5053_v3  ;;  %v4076_v52 = vsub.f32 %v9332_v31, %v4068_v27  ;;  %3234 = vperm.xlu0 %7299, %v3208_v41   ;;  %v3151_v28 = vadd.f32 %v3150_v50, %v3149_v0  ;;  %v6020_v26 = vmax.f32 %v6018_v4, %v6019_v34 }
 0x3bb   :  { %v4096_v12 = vadd.f32 %v4095_v45, %v4094_v53  ;;  %v4100_v62 = vadd.f32 %v9206_v30, %v4099_v57  ;;  %v5070_v59 = vrot.slane %v9211_v8, 4  ;;  %v5076_v1 = vrot.slane %v9222_v39, 4 }
 0x3bc   :  { %v9378_v38 = vpop.eup %7505  ;;  %7513 = vpow2.f32 %v5068_v49  ;;  %v4091_v51 = vmul.f32 1.442695, %v4076_v52  ;;  %v6047_v9 = vrot.slane %v9226_v60, 4  ;;  %v6021_v3 = vrot.slane %v6020_v26, 1 }
 0x3bd   :  { %v9382_v47 = vpop.eup %7507  ;;  %7515 = vrcp.f32 %v3151_v28  ;;  %v4097_v27 = vrot.slane %v4096_v12, 1  ;;  %v4101_v0 = vrot.slane %v4100_v62, 2  ;;  %v5071_v34 = vadd.f32 %v9211_v8, %v5070_v59 }
 0x3be   :  { %7517 = vpow2.f32 %v4091_v51  ;;  %v5077_v4 = vadd.f32 %v9222_v39, %v5076_v1  ;;  %v6048_v53 = vadd.f32 %v9226_v60, %v6047_v9  ;;  %v6022_v50 = vmax.f32 %v6020_v26, %v6021_v3 }
 0x3bf   :  { %v4098_v41 = vadd.f32 %v4097_v27, %v4096_v12  ;;  %v4102_v45 = vadd.f32 %v4101_v0, %v4100_v62  ;;  %v6053_v57 = vrot.slane %v9243_v43, 4  ;;  %v5072_v49 = vrot.slane %v5071_v34, 2 }
 0x3c0   :  { %v5078_v52 = vrot.slane %v5077_v4, 2  ;;  %v6049_v55 = vrot.slane %v6048_v53, 2  ;;  %v4117_v31 = vrot.slane %v9259_v20, 4  ;;  %v6030_v5 = vsub.f32 %v9349_v22, %v6022_v50 }
 0x3c1   :  { %7519 = vrcp.f32 %v4098_v41  ;;  %v4103_v51 = vrot.slane %v4102_v45, 1  ;;  %v6054_v59 = vadd.f32 %v9243_v43, %v6053_v57  ;;  %v5073_v14 = vadd.f32 %v5072_v49, %v5071_v34 }
 0x3c2   :  { %v5079_v1 = vadd.f32 %v5078_v52, %v5077_v4  ;;  %v6050_v25 = vadd.f32 %v6049_v55, %v6048_v53  ;;  %v4118_v26 = vadd.f32 %v9259_v20, %v4117_v31  ;;  %v9392_v12 = vpop.eup %7509  ;;  %v6045_v62 = vmul.f32 1.442695, %v6030_v5 }
 0x3c3   :  { %v9394_v9 = vadd.f32 %v4103_v51, %v4102_v45  ;;  %v6055_v3 = vrot.slane %v6054_v59, 2  ;;  %v5094_v27 = vrot.slane %v9266_v40, 4  ;;  %v9397_v0 = vpop.eup %7511  ;;  %v5074_v50 = vrot.slane %v5073_v14, 1 }
 0x3c4   :  { %v5080_v22 = vrot.slane %v5079_v1, 1  ;;  %v6051_v33 = vrot.slane %v6050_v25, 1  ;;  %v4119_v42 = vrot.slane %v4118_v26, 2  ;;  %7521 = vpow2.f32 %v6045_v62 }
 0x3c5   :  { %v6056_v34 = vadd.f32 %v6055_v3, %v6054_v59  ;;  %v5095_v55 = vadd.f32 %v9266_v40, %v5094_v27  ;;  %v6071_v31 = vrot.slane %v9282_v16, 4  ;;  %7523 = vrcp.f32 %v9394_v9 }
 0x3c6   :  { %v9401_v4 = vpop.eup %7513  ;;  %v5075_v5 = vadd.f32 %v5074_v50, %v5073_v14  ;;  %v9404_v53 = vadd.f32 %v5080_v22, %v5079_v1  ;;  %v9406_v45 = vadd.f32 %v6051_v33, %v6050_v25  ;;  %v4120_v52 = vadd.f32 %v4119_v42, %v4118_v26 }
 0x3c7   :  { %v7516_v57 = vpop.eup %7515  ;;  %v6057_v49 = vrot.slane %v6056_v34, 1  ;;  %v5096_v51 = vrot.slane %v5095_v55, 2  ;;  %v6072_v62 = vadd.f32 %v9282_v16, %v6071_v31  ;;  %v4123_v27 = vrot.slane %v9291_v61, 4 }
 0x3c8   :  { %v9409_v59 = vpop.eup %7517  ;;  %v3177_v3 = vmul.f32 %v7516_v57, %v3151_v28  ;;  %7525 = vrcp.f32 %v5075_v5  ;;  %v5100_v7 = vrot.slane %v9297_v29, 4  ;;  %v4121_v22 = vrot.slane %v4120_v52, 1 }
 0x3c9   :  { %7527 = vrcp.f32 %v9404_v53  ;;  %v6058_v14 = vadd.f32 %v6057_v49, %v6056_v34  ;;  %v5097_v33 = vadd.f32 %v5096_v51, %v5095_v55  ;;  %v6073_v42 = vrot.slane %v6072_v62, 2 }
 0x3ca   :  { %v3185_v25 = vsub.f32 2.0, %v3177_v3  ;;  %7529 = vrcp.f32 %v9406_v45  ;;  %v4124_v1 = vadd.f32 %v9291_v61, %v4123_v27  ;;  %v4122_v50 = vadd.f32 %v4121_v22, %v4120_v52 }
 0x3cb   :  { %v7520_v26 = vpop.eup %7519  ;;  %7531 = vrcp.f32 %v6058_v14  ;;  %v5098_v28 = vrot.slane %v5097_v33, 1  ;;  %v5101_v31 = vadd.f32 %v9297_v29, %v5100_v7  ;;  %v6074_v58 = vadd.f32 %v6073_v42, %v6072_v62 }
 0x3cc   :  { %v3193_v15 = vmul.f32 %v7516_v57, %v3185_v25  ;;  %v4149_v2 = vmul.f32 %v7520_v26, %v4098_v41  ;;  %v4125_v13 = vrot.slane %v4124_v1, 2  ;;  %7533 = vrcp.f32 %v4122_v50 }
 0x3cd   :  { %v9417_v34 = vadd.f32 %v5098_v28, %v5097_v33  ;;  %v5102_v55 = vrot.slane %v5101_v31, 2  ;;  %v6077_v49 = vrot.slane %v9307_v6, 4  ;;  %v6075_v27 = vrot.slane %v6074_v58, 1 }
 0x3ce   :  { %v3201_v51 = vmul.f32 %v9191_v54, %v3193_v15  ;;  %v4157_v3 = vsub.f32 2.0, %v4149_v2  ;;  %v4126_v23 = vadd.f32 %v4125_v13, %v4124_v1  ;;  %v9421_v56 = vpop.eup %7521  ;;  %v3128_v57 = vrot.slane %v9315_v48, 4 }
 0x3cf   :  { %11184 = vst [vmem:[#allocation52_spill] sm:$0xff] %v9421_v56  ;;  %7535 = vrcp.f32 %v9417_v34  ;;  %v5103_v7 = vadd.f32 %v5102_v55, %v5101_v31  ;;  %v6078_v41 = vadd.f32 %v9307_v6, %v6077_v49  ;;  %v7524_v52 = vpop.eup %7523  ;;  %v6076_v25 = vadd.f32 %v6075_v27, %v6074_v58 }
 0x3d0   :  { %v3209_v22 = vsel %vm2801_vm10, 0.0, %v3201_v51  ;;  %v4165_v33 = vmul.f32 %v7520_v26, %v4157_v3  ;;  %v4127_v42 = vrot.slane %v4126_v23, 1  ;;  %v4150_v15 = vmul.f32 %v7524_v52, %v9394_v9 }
 0x3d1   :  { %3239 = vperm.xlu1 %7310, %v3209_v22   ;;  %v5104_v13 = vrot.slane %v5103_v7, 1  ;;  %v6079_v2 = vrot.slane %v6078_v41, 2  ;;  %v3129_v54 = vadd.f32 %v9315_v48, %v3128_v57  ;;  %7537 = vrcp.f32 %v6076_v25 }
 0x3d2   :  { %v7526_v1 = vpop.eup %7525  ;;  %v4173_v28 = vmul.f32 %v9195_v37, %v4165_v33  ;;  %v9431_v31 = vadd.f32 %v4127_v42, %v4126_v23  ;;  %v3152_v55 = vrot.slane %v9323_v36, 4  ;;  %v4158_v51 = vsub.f32 2.0, %v4150_v15 }
 0x3d3   :  { %v7528_v49 = vpop.eup %7527  ;;  %v5126_v26 = vmul.f32 %v7526_v1, %v5075_v5  ;;  %v9434_v58 = vadd.f32 %v5104_v13, %v5103_v7  ;;  %v6080_v3 = vadd.f32 %v6079_v2, %v6078_v41  ;;  %v3130_v37 = vrot.slane %v3129_v54, 2 }
 0x3d4   :  { %v7530_v27 = vpop.eup %7529  ;;  %v4181_v9 = vsel %vm2796_vm7, 0.0, %v4173_v28  ;;  %v5127_v57 = vmul.f32 %v7528_v49, %v9404_v53  ;;  %7539 = vrcp.f32 %v9431_v31  ;;  %v4166_v23 = vmul.f32 %v7524_v52, %v4158_v51 }
 0x3d5   :  { %v7532_v22 = vpop.eup %7531  ;;  %4191 = vperm.xlu0 %7299, %v4181_v9   ;;  %v5134_v33 = vsub.f32 2.0, %v5126_v26  ;;  %v6103_v42 = vmul.f32 %v7530_v27, %v9406_v45  ;;  %7541 = vrcp.f32 %v9434_v58  ;;  %v6081_v41 = vrot.slane %v6080_v3, 1 }
 0x3d6   :  { %v5135_v5 = vsub.f32 2.0, %v5127_v57  ;;  %v6104_v7 = vmul.f32 %v7532_v22, %v6058_v14  ;;  %v3131_v15 = vadd.f32 %v3130_v37, %v3129_v54  ;;  %v7534_v13 = vpop.eup %7533  ;;  %v4174_v2 = vmul.f32 %v9206_v30, %v4166_v23 }
 0x3d7   :  { %v5142_v28 = vmul.f32 %v7526_v1, %v5134_v33  ;;  %v6111_v53 = vsub.f32 2.0, %v6103_v42  ;;  %v3153_v44 = vadd.f32 %v9323_v36, %v3152_v55  ;;  %v4153_v9 = vmul.f32 %v7534_v13, %v4122_v50 }
 0x3d8   :  { %v5143_v18 = vmul.f32 %v7528_v49, %v5135_v5  ;;  %v6112_v56 = vsub.f32 2.0, %v6104_v7  ;;  %v9444_v52 = vadd.f32 %v6081_v41, %v6080_v3  ;;  %v4182_v45 = vsel %vm2797_vm8, 0.0, %v4174_v2 }
 0x3d9   :  { %v7536_v51 = vpop.eup %7535  ;;  %v5150_v14 = vmul.f32 %v9211_v8, %v5142_v28  ;;  %v6119_v26 = vmul.f32 %v7530_v27, %v6111_v53  ;;  %v3132_v54 = vrot.slane %v3131_v15, 1  ;;  %4196 = vperm.xlu1 %7310, %v4182_v45   ;;  %v4161_v57 = vsub.f32 2.0, %v4153_v9 }
 0x3da   :  { %v5151_v30 = vmul.f32 %v9222_v39, %v5143_v18  ;;  %v6120_v1 = vmul.f32 %v7532_v22, %v6112_v56  ;;  %v5130_v55 = vmul.f32 %v7536_v51, %v9417_v34  ;;  %7543 = vrcp.f32 %v9444_v52 }
 0x3db   :  { %v5158_v50 = vsel %vm2796_vm7, 0.0, %v5150_v14  ;;  %v6127_v49 = vmul.f32 %v9226_v60, %v6119_v26  ;;  %v3133_v3 = vadd.f32 %v3132_v54, %v3131_v15  ;;  %v7538_v37 = vpop.eup %7537  ;;  %v4169_v23 = vmul.f32 %v7534_v13, %v4161_v57 }
 0x3dc   :  { %v5159_v8 = vsel %vm2797_vm8, 0.0, %v5151_v30  ;;  %v6128_v27 = vmul.f32 %v9243_v43, %v6120_v1  ;;  %v5138_v18 = vsub.f32 2.0, %v5130_v55  ;;  %v6107_v39 = vmul.f32 %v7538_v37, %v6076_v25 }
 0x3dd   :  { %5173 = vperm.xlu0 %7299, %v5159_v8   ;;  %v6135_v56 = vsel %vm2796_vm7, 0.0, %v6127_v49  ;;  %7545 = vrcp.f32 %v3133_v3  ;;  %v3154_v34 = vrot.slane %v3153_v44, 2  ;;  %5168 = vperm.xlu1 %7310, %v5158_v50   ;;  %v4177_v33 = vmul.f32 %v9259_v20, %v4169_v23 }
 0x3de   :  { %v7540_v22 = vpop.eup %7539  ;;  %v6136_v60 = vsel %vm2797_vm8, 0.0, %v6128_v27  ;;  %v5146_v42 = vmul.f32 %v7536_v51, %v5138_v18  ;;  %v3134_v5 = vrot.slane %v9328_v35, 4  ;;  %v6115_v7 = vsub.f32 2.0, %v6107_v39 }
 0x3df   :  { %v7542_v43 = vpop.eup %7541  ;;  %v4154_v41 = vmul.f32 %v7540_v22, %v9431_v31  ;;  %v3155_v15 = vadd.f32 %v3154_v34, %v3153_v44  ;;  %v3158_v13 = vrot.slane %v9345_v32, 4  ;;  %v4185_v25 = vsel %vm2800_vm9, 0.0, %v4177_v33 }
 0x3e0   :  { %v5154_v2 = vmul.f32 %v9266_v40, %v5146_v42  ;;  %v5131_v28 = vmul.f32 %v7542_v43, %v9434_v58  ;;  %v3135_v53 = vadd.f32 %v9328_v35, %v3134_v5  ;;  %v6123_v20 = vmul.f32 %v7538_v37, %v6115_v7 }
 0x3e1   :  { %6150 = vperm.xlu0 %7299, %v6136_v60   ;;  %v4162_v9 = vsub.f32 2.0, %v4154_v41  ;;  %v3156_v51 = vrot.slane %v3155_v15, 1  ;;  %v3159_v45 = vadd.f32 %v9345_v32, %v3158_v13  ;;  %6145 = vperm.xlu1 %7310, %v6135_v56   ;;  %v4105_v26 = vrot.slane %v9341_v19, 4 }
 0x3e2   :  { %v5162_v44 = vsel %vm2800_vm9, 0.0, %v5154_v2  ;;  %v5139_v31 = vsub.f32 2.0, %v5131_v28  ;;  %v3136_v14 = vrot.slane %v3135_v53, 2  ;;  %v6131_v40 = vmul.f32 %v9282_v16, %v6123_v20 }
 0x3e3   :  { %v4170_v54 = vmul.f32 %v7540_v22, %v4162_v9  ;;  %v3157_v58 = vadd.f32 %v3156_v51, %v3155_v15  ;;  %v3160_v30 = vrot.slane %v3159_v45, 2  ;;  %v4106_v55 = vadd.f32 %v9341_v19, %v4105_v26 }
 0x3e4   :  { %v5147_v1 = vmul.f32 %v7542_v43, %v5139_v31  ;;  %v3137_v57 = vadd.f32 %v3136_v14, %v3135_v53  ;;  %v5082_v50 = vrot.slane %v9361_v63, 4  ;;  %v7544_v49 = vpop.eup %7543  ;;  %v6139_v37 = vsel %vm2800_vm9, 0.0, %v6131_v40 }
 0x3e5   :  { %5188 = vperm.xlu0 %7299, %v5162_v44   ;;  %v4178_v8 = vmul.f32 %v9291_v61, %v4170_v54  ;;  %7547 = vrcp.f32 %v3157_v58  ;;  %v3161_v27 = vadd.f32 %v3160_v30, %v3159_v45  ;;  %4211 = vperm.xlu1 %7310, %v4185_v25   ;;  %v6108_v23 = vmul.f32 %v7544_v49, %v9444_v52 }
 0x3e6   :  { %v5155_v16 = vmul.f32 %v9297_v29, %v5147_v1  ;;  %v3138_v18 = vrot.slane %v3137_v57, 1  ;;  %v4107_v56 = vrot.slane %v4106_v55, 2  ;;  %v5083_v60 = vadd.f32 %v9361_v63, %v5082_v50 }
 0x3e7   :  { %v7546_v39 = vpop.eup %7545  ;;  %v4186_v34 = vsel %vm2801_vm10, 0.0, %v4178_v8  ;;  %v3162_v22 = vrot.slane %v3161_v27, 1  ;;  %v6059_v33 = vrot.slane %v9355_v10, 4  ;;  %v6116_v42 = vsub.f32 2.0, %v6108_v23 }
 0x3e8   :  { %v5163_v61 = vsel %vm2801_vm10, 0.0, %v5155_v16  ;;  %v3174_v5 = vmul.f32 %v7546_v39, %v3133_v3  ;;  %v3139_v43 = vadd.f32 %v3138_v18, %v3137_v57  ;;  %v4108_v52 = vadd.f32 %v4107_v56, %v4106_v55 }
 0x3e9   :  { %4216 = vperm.xlu0 %7299, %v4186_v34   ;;  %v3163_v29 = vadd.f32 %v3162_v22, %v3161_v27  ;;  %v5084_v7 = vrot.slane %v5083_v60, 2  ;;  %v6060_v41 = vadd.f32 %v9355_v10, %v6059_v33  ;;  %6165 = vperm.xlu1 %7310, %v6139_v37   ;;  %v6124_v15 = vmul.f32 %v7544_v49, %v6116_v42 }
 0x3ea   :  { %v3182_v13 = vsub.f32 2.0, %v3174_v5  ;;  %7549 = vrcp.f32 %v3139_v43  ;;  %v4111_v25 = vrot.slane %v9370_v11, 4  ;;  %v4109_v2 = vrot.slane %v4108_v52, 1 }
 0x3eb   :  { %7551 = vrcp.f32 %v3163_v29  ;;  %v5085_v28 = vadd.f32 %v5084_v7, %v5083_v60  ;;  %v6061_v53 = vrot.slane %v6060_v41, 2  ;;  %v6132_v20 = vmul.f32 %v9307_v6, %v6124_v15 }
 0x3ec   :  { %v3190_v3 = vmul.f32 %v7546_v39, %v3182_v13  ;;  %v4112_v9 = vadd.f32 %v9370_v11, %v4111_v25  ;;  %v5088_v51 = vrot.slane %v9367_v24, 4  ;;  %v4110_v45 = vadd.f32 %v4109_v2, %v4108_v52 }
 0x3ed   :  { %v5086_v44 = vrot.slane %v5085_v28, 1  ;;  %v6062_v31 = vadd.f32 %v6061_v53, %v6060_v41  ;;  %v6065_v14 = vrot.slane %v9382_v47, 4  ;;  %5193 = vperm.xlu1 %7310, %v5163_v61   ;;  %v6140_v26 = vsel %vm2801_vm10, 0.0, %v6132_v20 }
 0x3ee   :  { %v3198_v40 = vmul.f32 %v9315_v48, %v3190_v3  ;;  %v4113_v54 = vrot.slane %v4112_v9, 2  ;;  %v5089_v30 = vadd.f32 %v9367_v24, %v5088_v51  ;;  %6170 = vperm.xlu0 %7299, %v6140_v26   ;;  %7553 = vrcp.f32 %v4110_v45 }
 0x3ef   :  { %v7548_v6 = vpop.eup %7547  ;;  %v5087_v1 = vadd.f32 %v5086_v44, %v5085_v28  ;;  %v6063_v57 = vrot.slane %v6062_v31, 1  ;;  %v6066_v55 = vadd.f32 %v9382_v47, %v6065_v14  ;;  %v4129_v48 = vrot.slane %v9378_v38, 4 }
 0x3f0   :  { %v3206_v49 = vsel %vm2798_vm11, 0.0, %v3198_v40  ;;  %v3178_v37 = vmul.f32 %v7548_v6, %v3157_v58  ;;  %v4114_v8 = vadd.f32 %v4113_v54, %v4112_v9  ;;  %v5090_v27 = vrot.slane %v5089_v30, 2 }
 0x3f1   :  { %7555 = vrcp.f32 %v5087_v1  ;;  %v6064_v16 = vadd.f32 %v6063_v57, %v6062_v31  ;;  %v6067_v23 = vrot.slane %v6066_v55, 2  ;;  %3224 = vperm.xlu1 %7310, %v3206_v49   ;;  %v5106_v34 = vrot.slane %v9397_v0, 4 }
 0x3f2   :  { %v3186_v18 = vsub.f32 2.0, %v3178_v37  ;;  %v4115_v56 = vrot.slane %v4114_v8, 1  ;;  %v5091_v39 = vadd.f32 %v5090_v27, %v5089_v30  ;;  %v4130_v60 = vadd.f32 %v9378_v38, %v4129_v48 }
 0x3f3   :  { %7557 = vrcp.f32 %v6064_v16  ;;  %v6068_v22 = vadd.f32 %v6067_v23, %v6066_v55  ;;  %v6083_v33 = vrot.slane %v9392_v12, 4  ;;  %v5107_v52 = vadd.f32 %v9397_v0, %v5106_v34 }
 0x3f4   :  { %v7550_v58 = vpop.eup %7549  ;;  %v3194_v61 = vmul.f32 %v7548_v6, %v3186_v18  ;;  %v4116_v42 = vadd.f32 %v4115_v56, %v4114_v8  ;;  %v5092_v5 = vrot.slane %v5091_v39, 1  ;;  %v4131_v13 = vrot.slane %v4130_v60, 2 }
 0x3f5   :  { %v7552_v7 = vpop.eup %7551  ;;  %v3175_v41 = vmul.f32 %v7550_v58, %v3139_v43  ;;  %v6069_v15 = vrot.slane %v6068_v22, 1  ;;  %v6084_v25 = vadd.f32 %v9392_v12, %v6083_v33  ;;  %v5108_v51 = vrot.slane %v5107_v52, 2  ;;  %v8007_v33 = vld [vmem:[#allocation2 + $0x48] sm:$0xff] }
 0x3f6   :  { %v3202_v2 = vmul.f32 %v9323_v36, %v3194_v61  ;;  %v3179_v28 = vmul.f32 %v7552_v7, %v3163_v29  ;;  %7559 = vrcp.f32 %v4116_v42  ;;  %v5093_v53 = vadd.f32 %v5092_v5, %v5091_v39 }
 0x3f7   :  { %v3183_v20 = vsub.f32 2.0, %v3175_v41  ;;  %v6070_v3 = vadd.f32 %v6069_v15, %v6068_v22  ;;  %v4132_v9 = vadd.f32 %v4131_v13, %v4130_v60  ;;  %v6085_v26 = vrot.slane %v6084_v25, 2 }
 0x3f8   :  { %v3210_v31 = vsel %vm2802_vm13, 0.0, %v3202_v2  ;;  %v3187_v14 = vsub.f32 2.0, %v3179_v28  ;;  %7561 = vrcp.f32 %v5093_v53  ;;  %v7554_v43 = vpop.eup %7553  ;;  %v5109_v30 = vadd.f32 %v5108_v51, %v5107_v52 }
 0x3f9   :  { %3244 = vperm.xlu0 %7299, %v3210_v31   ;;  %v3191_v40 = vmul.f32 %v7550_v58, %v3183_v20  ;;  %7563 = vrcp.f32 %v6070_v3  ;;  %v4133_v54 = vrot.slane %v4132_v9, 1  ;;  %v4151_v29 = vmul.f32 %v7554_v43, %v4110_v45 }
 0x3fa   :  { %v3195_v36 = vmul.f32 %v7552_v7, %v3187_v14  ;;  %v6086_v6 = vadd.f32 %v6085_v26, %v6084_v25  ;;  %v4135_v57 = vrot.slane %v9409_v59, 4  ;;  %v5110_v8 = vrot.slane %v5109_v30, 1  ;;  %v11190_v25 = vld [vmem:[#allocation52_spill] sm:$0xff] }
 0x3fb   :  { %v7556_v55 = vpop.eup %7555  ;;  %v3199_v49 = vmul.f32 %v9328_v35, %v3191_v40  ;;  %v4134_v37 = vadd.f32 %v4133_v54, %v4132_v9  ;;  %v5112_v27 = vrot.slane %v9401_v4, 4  ;;  %v4159_v48 = vsub.f32 2.0, %v4151_v29 }
 0x3fc   :  { %v3203_v23 = vmul.f32 %v9345_v32, %v3195_v36  ;;  %v5128_v18 = vmul.f32 %v7556_v55, %v5087_v1  ;;  %v6087_v56 = vrot.slane %v6086_v6, 1  ;;  %v5111_v45 = vadd.f32 %v5110_v8, %v5109_v30 }
 0x3fd   :  { %v7558_v39 = vpop.eup %7557  ;;  %v3207_v22 = vsel %vm2799_vm12, 0.0, %v3199_v49  ;;  %7565 = vrcp.f32 %v4134_v37  ;;  %v4136_v60 = vadd.f32 %v9409_v59, %v4135_v57  ;;  %v4167_v58 = vmul.f32 %v7554_v43, %v4159_v48 }
 0x3fe   :  { %3229 = vperm.xlu1 %7310, %v3207_v22   ;;  %v3211_v35 = vsel %vm2803_vm14, 0.0, %v3203_v23  ;;  %v5136_v61 = vsub.f32 2.0, %v5128_v18  ;;  %v6105_v5 = vmul.f32 %v7558_v39, %v6064_v16  ;;  %7567 = vrcp.f32 %v5111_v45 }
 0x3ff   :  { %v6088_v32 = vadd.f32 %v6087_v56, %v6086_v6  ;;  %v4137_v52 = vrot.slane %v4136_v60, 2  ;;  %v5113_v1 = vadd.f32 %v9401_v4, %v5112_v27  ;;  %v4175_v41 = vmul.f32 %v9341_v19, %v4167_v58 }
 0x400   :  { %v7560_v7 = vpop.eup %7559  ;;  %v5144_v15 = vmul.f32 %v7556_v55, %v5136_v61  ;;  %v6113_v13 = vsub.f32 2.0, %v6105_v5  ;;  %v6089_v2 = vrot.slane %v11190_v25, 4 }
 0x401   :  { %v4152_v28 = vmul.f32 %v7560_v7, %v4116_v42  ;;  %7569 = vrcp.f32 %v6088_v32  ;;  %v4138_v20 = vadd.f32 %v4137_v52, %v4136_v60  ;;  %v5114_v9 = vrot.slane %v5113_v1, 2 }
 0x402   :  { %v7562_v51 = vpop.eup %7561  ;;  %3249 = vperm.xlu1 %7310, %v3211_v35   ;;  %v4183_v16 = vsel %vm2798_vm11, 0.0, %v4175_v41  ;;  %v5152_v31 = vmul.f32 %v9361_v63, %v5144_v15  ;;  %v6121_v14 = vmul.f32 %v7558_v39, %v6113_v13  ;;  %v6090_v26 = vadd.f32 %v11190_v25, %v6089_v2 }
 0x403   :  { %v7564_v43 = vpop.eup %7563  ;;  %v4160_v19 = vsub.f32 2.0, %v4152_v28  ;;  %v5129_v40 = vmul.f32 %v7562_v51, %v5093_v53  ;;  %v4139_v54 = vrot.slane %v4138_v20, 1  ;;  %v5115_v30 = vadd.f32 %v5114_v9, %v5113_v1 }
 0x404   :  { %v5160_v42 = vsel %vm2798_vm11, 0.0, %v5152_v31  ;;  %v6129_v36 = vmul.f32 %v9355_v10, %v6121_v14  ;;  %v6106_v29 = vmul.f32 %v7564_v43, %v6070_v3  ;;  %v6091_v6 = vrot.slane %v6090_v26, 2 }
 0x405   :  { %5178 = vperm.xlu0 %7299, %v5160_v42   ;;  %v4168_v57 = vmul.f32 %v7560_v7, %v4160_v19  ;;  %v5137_v55 = vsub.f32 2.0, %v5129_v40  ;;  %v4140_v49 = vadd.f32 %v4139_v54, %v4138_v20  ;;  %v5116_v63 = vrot.slane %v5115_v30, 1 }
 0x406   :  { %4201 = vperm.xlu1 %7310, %v4183_v16   ;;  %v6114_v8 = vsub.f32 2.0, %v6106_v29  ;;  %v6092_v27 = vadd.f32 %v6091_v6, %v6090_v26  ;;  %v6137_v3 = vsel %vm2798_vm11, 0.0, %v6129_v36 }
 0x407   :  { %v7566_v23 = vpop.eup %7565  ;;  %v4176_v53 = vmul.f32 %v9370_v11, %v4168_v57  ;;  %v5145_v48 = vmul.f32 %v7562_v51, %v5137_v55  ;;  %7571 = vrcp.f32 %v4140_v49  ;;  %v5117_v18 = vadd.f32 %v5116_v63, %v5115_v30  ;;  %v9559_v55 = vld [vmem:[#allocation2] sm:$0xff] }
 0x408   :  { %v6122_v56 = vmul.f32 %v7564_v43, %v6114_v8  ;;  %v4155_v39 = vmul.f32 %v7566_v23, %v4134_v37  ;;  %v6093_v22 = vrot.slane %v6092_v27, 1  ;;  %v7568_v10 = vpop.eup %7567 }
 0x409   :  { %v4184_v60 = vsel %vm2799_vm12, 0.0, %v4176_v53  ;;  %v5153_v35 = vmul.f32 %v9367_v24, %v5145_v48  ;;  %7573 = vrcp.f32 %v5117_v18  ;;  %v5132_v61 = vmul.f32 %v7568_v10, %v5111_v45  ;;  %v9562_v53 = vld [vmem:[#allocation2 + $0x20] sm:$0xff] }
 0x40a   :  { %6155 = vperm.xlu1 %7310, %v6137_v3   ;;  %4206 = vperm.xlu0 %7299, %v4184_v60   ;;  %v6130_v11 = vmul.f32 %v9382_v47, %v6122_v56  ;;  %v4163_v58 = vsub.f32 2.0, %v4155_v39  ;;  %v6094_v5 = vadd.f32 %v6093_v22, %v6092_v27  ;;  %v9567_v3 = vld [vmem:[#allocation2 + $0x80] sm:$0xff] }
 0x40b   :  { %v7570_v52 = vpop.eup %7569  ;;  %v5140_v7 = vsub.f32 2.0, %v5132_v61  ;;  %v5161_v15 = vsel %vm2799_vm12, 0.0, %v5153_v35 }
 0x40c   :  { %v6138_v37 = vsel %vm2799_vm12, 0.0, %v6130_v11  ;;  %v4171_v1 = vmul.f32 %v7566_v23, %v4163_v58  ;;  %v6109_v41 = vmul.f32 %v7570_v52, %v6088_v32  ;;  %7575 = vrcp.f32 %v6094_v5 }
 0x40d   :  { %v5148_v13 = vmul.f32 %v7568_v10, %v5140_v7 }
 0x40e   :  { %5183 = vperm.xlu1 %7310, %v5161_v15   ;;  %6160 = vperm.xlu0 %7299, %v6138_v37   ;;  %v4179_v24 = vmul.f32 %v9378_v38, %v4171_v1  ;;  %v6117_v47 = vsub.f32 2.0, %v6109_v41 }
 0x40f   :  { %v5156_v45 = vmul.f32 %v9397_v0, %v5148_v13 }
 0x410   :  { %v6125_v2 = vmul.f32 %v7570_v52, %v6117_v47  ;;  %v4187_v20 = vsel %vm2802_vm13, 0.0, %v4179_v24  ;;  %v9580_v47 = vld [vmem:[#allocation2 + $0xa0] sm:$0xff] }
 0x411   :  { %v7572_v28 = vpop.eup %7571  ;;  %v5164_v32 = vsel %vm2802_vm13, 0.0, %v5156_v45 }
 0x412   :  { %4221 = vperm.xlu1 %7310, %v4187_v20   ;;  %v6133_v9 = vmul.f32 %v9392_v12, %v6125_v2  ;;  %v4156_v51 = vmul.f32 %v7572_v28, %v4140_v49  ;;  %5198 = vperm.xlu0 %7299, %v5164_v32   ;;  %v9583_v32 = vld [vmem:[#allocation2 + $0x8] sm:$0xff] }
 0x413   :  { %v7574_v16 = vpop.eup %7573 }
 0x414   :  { %v4164_v31 = vsub.f32 2.0, %v4156_v51  ;;  %v5133_v38 = vmul.f32 %v7574_v16, %v5117_v18  ;;  %v6141_v14 = vsel %vm2802_vm13, 0.0, %v6133_v9 }
 0x416   :  { %6175 = vperm.xlu1 %7310, %v6141_v14   ;;  %v4172_v0 = vmul.f32 %v7572_v28, %v4164_v31  ;;  %v5141_v26 = vsub.f32 2.0, %v5133_v38  ;;  %v7576_v43 = vpop.eup %7575 }
 0x417   :  { %v6110_v54 = vmul.f32 %v7576_v43, %v6094_v5 }
 0x418   :  { %v4180_v19 = vmul.f32 %v9409_v59, %v4172_v0  ;;  %v5149_v40 = vmul.f32 %v7574_v16, %v5141_v26  ;;  %v9586_v0 = vld [vmem:[#allocation2 + $0x28] sm:$0xff] }
 0x419   :  { %v6118_v42 = vsub.f32 2.0, %v6110_v54 }
 0x41a   :  { %v4188_v30 = vsel %vm2803_vm14, 0.0, %v4180_v19  ;;  %v5157_v12 = vmul.f32 %v9401_v4, %v5149_v40 }
 0x41b   :  { %4226 = vperm.xlu0 %7299, %v4188_v30   ;;  %v6126_v29 = vmul.f32 %v7576_v43, %v6118_v42  ;;  %v3215_v6 = vpop.permute.xlu1 %3214  ;;  %v9589_v42 = vld [vmem:[#allocation2 + $0x30] sm:$0xff] }
 0x41c   :  { %v5165_v36 = vsel %vm2803_vm14, 0.0, %v5157_v12  ;;  %v3252_v49 = vmul.f32 %v9559_v55, %v3215_v6 }
 0x41d   :  { %5203 = vperm.xlu1 %7310, %v5165_v36   ;;  %v6134_v57 = vmul.f32 %v11190_v25, %v6126_v29 }
 0x41e   :  { %v3260_v63 = vrot.slane %v3252_v49, 4 }
 0x41f   :  { %v6142_v59 = vsel %vm2803_vm14, 0.0, %v6134_v57  ;;  %v9594_v57 = vld [vmem:[#allocation2 + $0x10] sm:$0xff] }
 0x420   :  { %6180 = vperm.xlu0 %7299, %v6142_v59   ;;  %v3261_v4 = vadd.f32 %v3260_v63, %v3252_v49 }
 0x422   :  { %v3262_v8 = vrot.slane %v3261_v4, 2 }
 0x424   :  { %v3263_v27 = vadd.f32 %v3262_v8, %v3261_v4 }
 0x426   :  { %v3264_v18 = vrot.slane %v3263_v27, 1 }
 0x428   :  { %v9565_v39 = vadd.f32 %v3264_v18, %v3263_v27 }
 0x42a   :  { %v3308_v58 = vmul.f32 %v9565_v39, %v9565_v39 }
 0x433   :  { %v3220_v23 = vpop.permute.xlu0 %3219 }
 0x434   :  { %v3253_v48 = vmul.f32 %v9562_v53, %v3220_v23 }
 0x436   :  { %v3266_v56 = vrot.slane %v3253_v48, 4 }
 0x438   :  { %v3267_v25 = vadd.f32 %v3266_v56, %v3253_v48  ;;  %v9599_v56 = vld [vmem:[#allocation2 + $0x38] sm:$0xff] }
 0x439   :  { %v3235_v10 = vpop.permute.xlu0 %3234 }
 0x43a   :  { %v3268_v22 = vrot.slane %v3267_v25, 2  ;;  %v3256_v60 = vmul.f32 %v9567_v3, %v3235_v10 }
 0x43c   :  { %v3269_v35 = vadd.f32 %v3268_v22, %v3267_v25  ;;  %v3284_v11 = vrot.slane %v3256_v60, 4 }
 0x43e   :  { %v3270_v61 = vrot.slane %v3269_v35, 1  ;;  %v3285_v5 = vadd.f32 %v3284_v11, %v3256_v60 }
 0x43f   :  { %3316 = vadd.xlane.f32.xlu0 %v3308_v58 }
 0x440   :  { %v9572_v52 = vadd.f32 %v3270_v61, %v3269_v35  ;;  %v3286_v37 = vrot.slane %v3285_v5, 2  ;;  %v9604_v35 = vld [vmem:[#allocation2 + $0x18] sm:$0xff] }
 0x442   :  { %v3309_v1 = vmul.f32 %v9572_v52, %v9572_v52  ;;  %v3287_v7 = vadd.f32 %v3286_v37, %v3285_v5 }
 0x444   :  { %3318 = vadd.xlane.f32.xlu1 %v3309_v1  ;;  %v3288_v41 = vrot.slane %v3287_v7, 1 }
 0x446   :  { %v9576_v15 = vadd.f32 %v3288_v41, %v3287_v7 }
 0x448   :  { %v3312_v24 = vmul.f32 %v9576_v15, %v9576_v15 }
 0x44a   :  { %3324 = vadd.xlane.f32.xlu1 %v3312_v24 }
 0x450   :  { %v3240_v13 = vpop.permute.xlu1 %3239 }
 0x451   :  { %v3257_v45 = vmul.f32 %v9580_v47, %v3240_v13 }
 0x453   :  { %v3290_v2 = vrot.slane %v3257_v45, 4 }
 0x454   :  { %v4192_v28 = vpop.permute.xlu0 %4191 }
 0x455   :  { %v3291_v20 = vadd.f32 %v3290_v2, %v3257_v45  ;;  %v4229_v9 = vmul.f32 %v9583_v32, %v4192_v28  ;;  %v9609_v2 = vld [vmem:[#allocation2 + $0x90] sm:$0xff] }
 0x457   :  { %v3292_v51 = vrot.slane %v3291_v20, 2  ;;  %v4237_v16 = vrot.slane %v4229_v9, 4 }
 0x458   :  { %v4197_v38 = vpop.permute.xlu1 %4196 }
 0x459   :  { %v3293_v31 = vadd.f32 %v3292_v51, %v3291_v20  ;;  %v4238_v14 = vadd.f32 %v4237_v16, %v4229_v9  ;;  %v4230_v26 = vmul.f32 %v9586_v0, %v4197_v38  ;;  %v9612_v51 = vld [vmem:[#allocation2 + $0x88] sm:$0xff] }
 0x45b   :  { %v3294_v43 = vrot.slane %v3293_v31, 1  ;;  %v4239_v19 = vrot.slane %v4238_v14, 2  ;;  %v4243_v40 = vrot.slane %v4230_v26, 4 }
 0x45c   :  { %v5174_v54 = vpop.permute.xlu0 %5173  ;;  %v5169_v12 = vpop.permute.xlu1 %5168 }
 0x45d   :  { %v4240_v30 = vadd.f32 %v4239_v19, %v4238_v14  ;;  %v5207_v36 = vmul.f32 %v9589_v42, %v5174_v54  ;;  %v9592_v29 = vadd.f32 %v3294_v43, %v3293_v31  ;;  %v4244_v6 = vadd.f32 %v4243_v40, %v4230_v26 }
 0x45e   :  { %v5206_v59 = vmul.f32 %v9594_v57, %v5169_v12 }
 0x45f   :  { %v4241_v49 = vrot.slane %v4240_v30, 1  ;;  %v5220_v63 = vrot.slane %v5207_v36, 4  ;;  %v3313_v4 = vmul.f32 %v9592_v29, %v9592_v29  ;;  %v4245_v8 = vrot.slane %v4244_v6, 2 }
 0x460   :  { %v5214_v27 = vrot.slane %v5206_v59, 4  ;;  %v6151_v23 = vpop.permute.xlu0 %6150  ;;  %v6146_v18 = vpop.permute.xlu1 %6145 }
 0x461   :  { %v5221_v48 = vadd.f32 %v5220_v63, %v5207_v36  ;;  %v6184_v25 = vmul.f32 %v9599_v56, %v6151_v23  ;;  %3326 = vadd.xlane.f32.xlu0 %v3313_v4  ;;  %v9602_v22 = vadd.f32 %v4241_v49, %v4240_v30  ;;  %v4246_v10 = vadd.f32 %v4245_v8, %v4244_v6 }
 0x462   :  { %v5215_v60 = vadd.f32 %v5214_v27, %v5206_v59  ;;  %v6183_v11 = vmul.f32 %v9604_v35, %v6146_v18  ;;  %v9619_v59 = vld [vmem:[#allocation2 + $0xa8] sm:$0xff]  ;;  %v9624_v27 = vld [vmem:[#allocation2 + $0x98] sm:$0xff] }
 0x463   :  { %v5222_v58 = vrot.slane %v5221_v48, 2  ;;  %v6197_v61 = vrot.slane %v6184_v25, 4  ;;  %v4285_v5 = vmul.f32 %v9602_v22, %v9602_v22  ;;  %v4247_v37 = vrot.slane %v4246_v10, 1 }
 0x464   :  { %v5216_v1 = vrot.slane %v5215_v60, 2  ;;  %v6191_v7 = vrot.slane %v6183_v11, 4  ;;  %v5189_v41 = vpop.permute.xlu0 %5188  ;;  %v4212_v45 = vpop.permute.xlu1 %4211 }
 0x465   :  { %v5223_v24 = vadd.f32 %v5222_v58, %v5221_v48  ;;  %v6198_v13 = vadd.f32 %v6197_v61, %v6184_v25  ;;  %v5210_v28 = vmul.f32 %v9609_v2, %v5189_v41  ;;  %4293 = vadd.xlane.f32.xlu1 %v4285_v5  ;;  %v4233_v16 = vmul.f32 %v9612_v51, %v4212_v45  ;;  %v9635_v45 = vld [vmem:[#allocation2 + $0xb0] sm:$0xff] }
 0x466   :  { %v5217_v20 = vadd.f32 %v5216_v1, %v5215_v60  ;;  %v6192_v9 = vadd.f32 %v6191_v7, %v6183_v11  ;;  %v9615_v31 = vadd.f32 %v4247_v37, %v4246_v10  ;;  %11191 = vst [vmem:[#allocation52_spill] sm:$0xff] %v9635_v45 }
 0x467   :  { %v5224_v38 = vrot.slane %v5223_v24, 1  ;;  %v6199_v14 = vrot.slane %v6198_v13, 2  ;;  %v5238_v26 = vrot.slane %v5210_v28, 4  ;;  %v4261_v40 = vrot.slane %v4233_v16, 4 }
 0x468   :  { %v5218_v43 = vrot.slane %v5217_v20, 1  ;;  %v6193_v19 = vrot.slane %v6192_v9, 2  ;;  %v4217_v54 = vpop.permute.xlu0 %4216  ;;  %v4286_v30 = vmul.f32 %v9615_v31, %v9615_v31  ;;  %v6166_v6 = vpop.permute.xlu1 %6165 }
 0x469   :  { %v6200_v12 = vadd.f32 %v6199_v14, %v6198_v13  ;;  %v5239_v36 = vadd.f32 %v5238_v26, %v5210_v28  ;;  %v4234_v49 = vmul.f32 %v9619_v59, %v4217_v54  ;;  %v9622_v63 = vadd.f32 %v5224_v38, %v5223_v24  ;;  %v9640_v14 = vld [vmem:[#allocation2 + $0xb8] sm:$0xff] }
 0x46a   :  { %v6194_v4 = vadd.f32 %v6193_v19, %v6192_v9  ;;  %v4262_v8 = vadd.f32 %v4261_v40, %v4233_v16  ;;  %v6187_v23 = vmul.f32 %v9624_v27, %v6166_v6  ;;  %4295 = vadd.xlane.f32.xlu0 %v4286_v30  ;;  %v9627_v48 = vadd.f32 %v5218_v43, %v5217_v20 }
 0x46b   :  { %v6201_v18 = vrot.slane %v6200_v12, 1  ;;  %v5240_v25 = vrot.slane %v5239_v36, 2  ;;  %v4267_v10 = vrot.slane %v4234_v49, 4  ;;  %v5263_v60 = vmul.f32 %v9622_v63, %v9622_v63 }
 0x46c   :  { %v6195_v11 = vrot.slane %v6194_v4, 1  ;;  %v4263_v58 = vrot.slane %v4262_v8, 2  ;;  %v6215_v61 = vrot.slane %v6187_v23, 4  ;;  %v5262_v5 = vmul.f32 %v9627_v48, %v9627_v48  ;;  %v5194_v7 = vpop.permute.xlu1 %5193 }
 0x46d   :  { %v5241_v37 = vadd.f32 %v5240_v25, %v5239_v36  ;;  %v4268_v1 = vadd.f32 %v4267_v10, %v4234_v49  ;;  %5272 = vadd.xlane.f32.xlu1 %v5263_v60  ;;  %v9633_v41 = vadd.f32 %v6201_v18, %v6200_v12  ;;  %v5211_v28 = vmul.f32 %v9635_v45, %v5194_v7  ;;  %v6171_v20 = vpop.permute.xlu0 %6170 }
 0x46e   :  { %v4264_v24 = vadd.f32 %v4263_v58, %v4262_v8  ;;  %v6216_v13 = vadd.f32 %v6215_v61, %v6187_v23  ;;  %5270 = vadd.xlane.f32.xlu0 %v5262_v5  ;;  %v9638_v9 = vadd.f32 %v6195_v11, %v6194_v4  ;;  %v6188_v26 = vmul.f32 %v9640_v14, %v6171_v20  ;;  %v9649_v23 = vld [vmem:[#allocation2 + $0x40] sm:$0xff] }
 0x46f   :  { %v5242_v16 = vrot.slane %v5241_v37, 1  ;;  %v4269_v38 = vrot.slane %v4268_v1, 2  ;;  %v6240_v43 = vmul.f32 %v9633_v41, %v9633_v41  ;;  %v5244_v54 = vrot.slane %v5211_v28, 4  ;;  %11192 = vst [vmem:[#allocation53_spill] sm:$0xff] %v9649_v23 }
 0x470   :  { %v4265_v19 = vrot.slane %v4264_v24, 1  ;;  %v6217_v40 = vrot.slane %v6216_v13, 2  ;;  %v6239_v30 = vmul.f32 %v9638_v9, %v9638_v9  ;;  %v6221_v36 = vrot.slane %v6188_v26, 4  ;;  %v3225_v6 = vpop.permute.xlu1 %3224 }
 0x471   :  { %v4270_v12 = vadd.f32 %v4269_v38, %v4268_v1  ;;  %6249 = vadd.xlane.f32.xlu1 %v6240_v43  ;;  %v9647_v49 = vadd.f32 %v5242_v16, %v5241_v37  ;;  %v5245_v8 = vadd.f32 %v5244_v54, %v5211_v28  ;;  %v3254_v18 = vmul.f32 %v9649_v23, %v3225_v6  ;;  %v9666_v54 = vld [vmem:[#allocation2 + $0xc0] sm:$0xff] }
 0x472   :  { %v6218_v4 = vadd.f32 %v6217_v40, %v6216_v13  ;;  %6247 = vadd.xlane.f32.xlu0 %v6239_v30  ;;  %v9652_v25 = vadd.f32 %v4265_v19, %v4264_v24  ;;  %v6222_v60 = vadd.f32 %v6221_v36, %v6188_v26  ;;  %11193 = vst [vmem:[#allocation54_spill] sm:$0xff] %v9666_v54 }
 0x473   :  { %v4271_v10 = vrot.slane %v4270_v12, 1  ;;  %v5266_v11 = vmul.f32 %v9647_v49, %v9647_v49  ;;  %v5246_v61 = vrot.slane %v5245_v8, 2  ;;  %v3272_v5 = vrot.slane %v3254_v18, 4 }
 0x474   :  { %v6219_v58 = vrot.slane %v6218_v4, 1  ;;  %v4289_v37 = vmul.f32 %v9652_v25, %v9652_v25  ;;  %v6223_v1 = vrot.slane %v6222_v60, 2 }
 0x475   :  { %5278 = vadd.xlane.f32.xlu1 %v5266_v11  ;;  %v9658_v7 = vadd.f32 %v4271_v10, %v4270_v12  ;;  %v5247_v13 = vadd.f32 %v5246_v61, %v5245_v8  ;;  %v3273_v28 = vadd.f32 %v3272_v5, %v3254_v18 }
 0x476   :  { %4301 = vadd.xlane.f32.xlu0 %v4289_v37  ;;  %v9660_v24 = vadd.f32 %v6219_v58, %v6218_v4  ;;  %v6224_v20 = vadd.f32 %v6223_v1, %v6222_v60  ;;  %v9677_v58 = vld [vmem:[#allocation2 + $0x60] sm:$0xff] }
 0x477   :  { %v4290_v16 = vmul.f32 %v9658_v7, %v9658_v7  ;;  %v5248_v38 = vrot.slane %v5247_v13, 1  ;;  %v3274_v26 = vrot.slane %v3273_v28, 2  ;;  %11194 = vst [vmem:[#allocation55_spill] sm:$0xff] %v9677_v58 }
 0x478   :  { %v3245_v43 = vpop.permute.xlu0 %3244  ;;  %v6243_v19 = vmul.f32 %v9660_v24, %v9660_v24  ;;  %v6225_v40 = vrot.slane %v6224_v20, 1 }
 0x479   :  { %v3258_v30 = vmul.f32 %v9666_v54, %v3245_v43  ;;  %4303 = vadd.xlane.f32.xlu1 %v4290_v16  ;;  %v3275_v12 = vadd.f32 %v3274_v26, %v3273_v28  ;;  %v9669_v36 = vadd.f32 %v5248_v38, %v5247_v13  ;;  %v9684_v38 = vld [vmem:[#allocation2 + $0xe0] sm:$0xff] }
 0x47a   :  { %6255 = vadd.xlane.f32.xlu0 %v6243_v19  ;;  %v9671_v4 = vadd.f32 %v6225_v40, %v6224_v20  ;;  %11196 = vst [vmem:[#allocation57_spill] sm:$0xff] %v9684_v38 }
 0x47b   :  { %v3296_v6 = vrot.slane %v3258_v30, 4  ;;  %v3276_v8 = vrot.slane %v3275_v12, 1  ;;  %v5267_v18 = vmul.f32 %v9669_v36, %v9669_v36 }
 0x47c   :  { %v6244_v11 = vmul.f32 %v9671_v4, %v9671_v4 }
 0x47d   :  { %v3230_v10 = vpop.permute.xlu1 %3229  ;;  %v3297_v60 = vadd.f32 %v3296_v6, %v3258_v30  ;;  %v9680_v5 = vadd.f32 %v3276_v8, %v3275_v12  ;;  %v8006_v6 = vld [vmem:[#allocation2 + $0x50] sm:$0xff] }
 0x47e   :  { %v3255_v61 = vmul.f32 %v9677_v58, %v3230_v10  ;;  %5280 = vadd.xlane.f32.xlu0 %v5267_v18  ;;  %6257 = vadd.xlane.f32.xlu1 %v6244_v11 }
 0x47f   :  { %11195 = vst [vmem:[#allocation56_spill] sm:$0xff] %v9680_v5  ;;  %v3298_v37 = vrot.slane %v3297_v60, 2  ;;  %v3310_v13 = vmul.f32 %v9680_v5, %v9680_v5 }
 0x480   :  { %v3278_v1 = vrot.slane %v3255_v61, 4 }
 0x481   :  { %v3299_v28 = vadd.f32 %v3298_v37, %v3297_v60  ;;  %v3250_v20 = vpop.permute.xlu1 %3249 }
 0x482   :  { %v3279_v16 = vadd.f32 %v3278_v1, %v3255_v61  ;;  %v3259_v26 = vmul.f32 %v9684_v38, %v3250_v20  ;;  %3320 = vadd.xlane.f32.xlu0 %v3310_v13 }
 0x483   :  { %v3300_v43 = vrot.slane %v3299_v28, 1 }
 0x484   :  { %v3280_v19 = vrot.slane %v3279_v16, 2  ;;  %v3302_v40 = vrot.slane %v3259_v26, 4  ;;  %v5179_v30 = vpop.permute.xlu0 %5178 }
 0x485   :  { %v4202_v12 = vpop.permute.xlu1 %4201  ;;  %v5208_v8 = vmul.f32 %v8006_v6, %v5179_v30  ;;  %v9687_v18 = vadd.f32 %v3300_v43, %v3299_v28  ;;  %v8008_v30 = vld [vmem:[#allocation2 + $0x58] sm:$0xff]  ;;  %v8009_v43 = vld [vmem:[#allocation2 + $0x68] sm:$0xff] }
 0x486   :  { %v3281_v10 = vadd.f32 %v3280_v19, %v3279_v16  ;;  %v3303_v11 = vadd.f32 %v3302_v40, %v3259_v26  ;;  %v4231_v60 = vmul.f32 %v8007_v33, %v4202_v12 }
 0x487   :  { %11197 = vst [vmem:[#allocation58_spill] sm:$0xff] %v9687_v18  ;;  %v5226_v37 = vrot.slane %v5208_v8, 4  ;;  %v3314_v61 = vmul.f32 %v9687_v18, %v9687_v18 }
 0x488   :  { %v3282_v1 = vrot.slane %v3281_v10, 1  ;;  %v3304_v20 = vrot.slane %v3303_v11, 2  ;;  %v4249_v13 = vrot.slane %v4231_v60, 4 }
 0x489   :  { %v5227_v50 = vadd.f32 %v5226_v37, %v5208_v8  ;;  %v6156_v44 = vpop.permute.xlu1 %6155  ;;  %v4207_v34 = vpop.permute.xlu0 %4206  ;;  %3328 = vadd.xlane.f32.xlu1 %v3314_v61  ;;  %v8010_v61 = vld [vmem:[#allocation2 + $0x70] sm:$0xff] }
 0x48a   :  { %v3305_v62 = vadd.f32 %v3304_v20, %v3303_v11  ;;  %v4250_v46 = vadd.f32 %v4249_v13, %v4231_v60  ;;  %v6185_v28 = vmul.f32 %v8008_v30, %v6156_v44  ;;  %v4232_v16 = vmul.f32 %v8009_v43, %v4207_v34  ;;  %v8011_v34 = vld [vmem:[#allocation2 + $0x78] sm:$0xff] }
 0x48b   :  { %v5228_v26 = vrot.slane %v5227_v50, 2  ;;  %v9691_v19 = vadd.f32 %v3282_v1, %v3281_v10 }
 0x48c   :  { %v3306_v33 = vrot.slane %v3305_v62, 1  ;;  %v4251_v40 = vrot.slane %v4250_v46, 2  ;;  %v6203_v12 = vrot.slane %v6185_v28, 4  ;;  %v4255_v6 = vrot.slane %v4232_v16, 4 }
 0x48d   :  { %11198 = vst [vmem:[#allocation59_spill] sm:$0xff] %v9691_v19  ;;  %v5229_v17 = vadd.f32 %v5228_v26, %v5227_v50  ;;  %v5184_v21 = vpop.permute.xlu1 %5183  ;;  %v6161_v38 = vpop.permute.xlu0 %6160  ;;  %v3311_v8 = vmul.f32 %v9691_v19, %v9691_v19 }
 0x48e   :  { %v4252_v37 = vadd.f32 %v4251_v40, %v4250_v46  ;;  %v6204_v11 = vadd.f32 %v6203_v12, %v6185_v28  ;;  %v4256_v60 = vadd.f32 %v4255_v6, %v4232_v16  ;;  %v5209_v44 = vmul.f32 %v8010_v61, %v5184_v21  ;;  %v8012_v40 = vld [vmem:[#allocation2 + $0xc8] sm:$0xff] }
 0x48f   :  { %v5230_v20 = vrot.slane %v5229_v17, 1  ;;  %v6186_v13 = vmul.f32 %v8011_v34, %v6161_v38  ;;  %3322 = vadd.xlane.f32.xlu0 %v3311_v8  ;;  %v9695_v10 = vadd.f32 %v3306_v33, %v3305_v62  ;;  %v8013_v62 = vld [vmem:[#allocation2 + $0xd0] sm:$0xff] }
 0x490   :  { %v4253_v1 = vrot.slane %v4252_v37, 1  ;;  %v6205_v30 = vrot.slane %v6204_v11, 2  ;;  %v4257_v43 = vrot.slane %v4256_v60, 2  ;;  %v5232_v50 = vrot.slane %v5209_v44, 4 }
 0x491   :  { %11199 = vst [vmem:[#allocation60_spill] sm:$0xff] %v9695_v10  ;;  %v6209_v26 = vrot.slane %v6186_v13, 4  ;;  %v4222_v58 = vpop.permute.xlu1 %4221  ;;  %v3315_v19 = vmul.f32 %v9695_v10, %v9695_v10  ;;  %v9699_v46 = vadd.f32 %v5230_v20, %v5229_v17  ;;  %v5199_v38 = vpop.permute.xlu0 %5198 }
 0x492   :  { %v6206_v28 = vadd.f32 %v6205_v30, %v6204_v11  ;;  %v4258_v16 = vadd.f32 %v4257_v43, %v4256_v60  ;;  %v5233_v21 = vadd.f32 %v5232_v50, %v5209_v44  ;;  %v4235_v12 = vmul.f32 %v8012_v40, %v4222_v58  ;;  %v8014_v30 = vld [vmem:[#allocation2 + $0xd8] sm:$0xff] }
 0x493   :  { %11200 = vst [vmem:[#allocation61_spill] sm:$0xff] %v9699_v46  ;;  %v6210_v6 = vadd.f32 %v6209_v26, %v6186_v13  ;;  %v5212_v33 = vmul.f32 %v8013_v62, %v5199_v38  ;;  %3330 = vadd.xlane.f32.xlu0 %v3315_v19  ;;  %v9701_v8 = vadd.f32 %v4253_v1, %v4252_v37 }
 0x494   :  { %v5264_v61 = vmul.f32 %v9699_v46, %v9699_v46  ;;  %v6207_v34 = vrot.slane %v6206_v28, 1  ;;  %v4259_v54 = vrot.slane %v4258_v16, 1  ;;  %v5234_v10 = vrot.slane %v5233_v21, 2 }
 0x495   :  { %11201 = vst [vmem:[#allocation62_spill] sm:$0xff] %v9701_v8  ;;  %v4273_v17 = vrot.slane %v4235_v12, 4  ;;  %v6211_v20 = vrot.slane %v6210_v6, 2  ;;  %v5250_v11 = vrot.slane %v5212_v33, 4  ;;  %v6176_v60 = vpop.permute.xlu1 %6175  ;;  %v4287_v58 = vmul.f32 %v9701_v8, %v9701_v8 }
 0x496   :  { %5274 = vadd.xlane.f32.xlu1 %v5264_v61  ;;  %v5235_v44 = vadd.f32 %v5234_v10, %v5233_v21  ;;  %v6189_v19 = vmul.f32 %v8014_v30, %v6176_v60  ;;  %v9707_v37 = vadd.f32 %v6207_v34, %v6206_v28  ;;  %v9709_v50 = vadd.f32 %v4259_v54, %v4258_v16 }
 0x497   :  { %v4274_v13 = vadd.f32 %v4273_v17, %v4235_v12  ;;  %v6212_v1 = vadd.f32 %v6211_v20, %v6210_v6  ;;  %v5251_v43 = vadd.f32 %v5250_v11, %v5212_v33  ;;  %4297 = vadd.xlane.f32.xlu0 %v4287_v58  ;;  %v8015_v33 = vld [vmem:[#allocation2 + $0xe8] sm:$0xff] }
 0x498   :  { %11202 = vst [vmem:[#allocation63_spill] sm:$0xff] %v9707_v37  ;;  %11203 = vst [vmem:[#allocation64_spill] sm:$0xff] %v9709_v50  ;;  %v5236_v26 = vrot.slane %v5235_v44, 1  ;;  %v6227_v38 = vrot.slane %v6189_v19, 4  ;;  %v6241_v62 = vmul.f32 %v9707_v37, %v9707_v37  ;;  %v4288_v10 = vmul.f32 %v9709_v50, %v9709_v50 }
 0x499   :  { %v4275_v40 = vrot.slane %v4274_v13, 2  ;;  %v6213_v46 = vrot.slane %v6212_v1, 1  ;;  %v5252_v8 = vrot.slane %v5251_v43, 2 }
 0x49a   :  { %v6228_v12 = vadd.f32 %v6227_v38, %v6189_v19  ;;  %v4227_v28 = vpop.permute.xlu0 %4226  ;;  %v9715_v61 = vadd.f32 %v5236_v26, %v5235_v44  ;;  %4299 = vadd.xlane.f32.xlu1 %v4288_v10 }
 0x49b   :  { %v4276_v21 = vadd.f32 %v4275_v40, %v4274_v13  ;;  %v5253_v6 = vadd.f32 %v5252_v8, %v5251_v43  ;;  %v4236_v54 = vmul.f32 %v8015_v33, %v4227_v28  ;;  %6251 = vadd.xlane.f32.xlu0 %v6241_v62  ;;  %v9717_v16 = vadd.f32 %v6213_v46, %v6212_v1  ;;  %v8016_v13 = vld [vmem:[#allocation2 + $0xf0] sm:$0xff]  ;;  %v9729_v28 = vld [vmem:[#allocation2 + $0xf8] sm:$0xff] }
 0x49c   :  { %11204 = vst [vmem:[#allocation65_spill] sm:$0xff] %v9715_v61  ;;  %v6229_v17 = vrot.slane %v6228_v12, 2  ;;  %v5204_v20 = vpop.permute.xlu1 %5203  ;;  %v5265_v11 = vmul.f32 %v9715_v61, %v9715_v61  ;;  %11208 = vst [vmem:[#allocation69_spill] sm:$0xff] %v9729_v28 }
 0x49d   :  { %11205 = vst [vmem:[#allocation66_spill] sm:$0xff] %v9717_v16  ;;  %v4277_v34 = vrot.slane %v4276_v21, 1  ;;  %v5254_v60 = vrot.slane %v5253_v6, 1  ;;  %v4279_v58 = vrot.slane %v4236_v54, 4  ;;  %v5213_v30 = vmul.f32 %v8016_v13, %v5204_v20 }
 0x49e   :  { %v6242_v44 = vmul.f32 %v9717_v16, %v9717_v16  ;;  %v6230_v8 = vadd.f32 %v6229_v17, %v6228_v12 }
 0x49f   :  { %v9723_v19 = vadd.f32 %v4277_v34, %v4276_v21  ;;  %v4280_v43 = vadd.f32 %v4279_v58, %v4236_v54  ;;  %v5256_v26 = vrot.slane %v5213_v30, 4  ;;  %5276 = vadd.xlane.f32.xlu0 %v5265_v11  ;;  %v9725_v46 = vadd.f32 %v5254_v60, %v5253_v6  ;;  %v6181_v40 = vpop.permute.xlu0 %6180 }
 0x4a0   :  { %6253 = vadd.xlane.f32.xlu1 %v6242_v44  ;;  %v6231_v1 = vrot.slane %v6230_v8, 1  ;;  %v6190_v33 = vmul.f32 %v9729_v28, %v6181_v40 }
 0x4a1   :  { %11206 = vst [vmem:[#allocation67_spill] sm:$0xff] %v9723_v19  ;;  %11207 = vst [vmem:[#allocation68_spill] sm:$0xff] %v9725_v46  ;;  %v4291_v38 = vmul.f32 %v9723_v19, %v9723_v19  ;;  %v4281_v62 = vrot.slane %v4280_v43, 2  ;;  %v5257_v10 = vadd.f32 %v5256_v26, %v5213_v30  ;;  %v5268_v21 = vmul.f32 %v9725_v46, %v9725_v46 }
 0x4a2   :  { %v9734_v12 = vadd.f32 %v6231_v1, %v6230_v8  ;;  %v6233_v6 = vrot.slane %v6190_v33, 4 }
 0x4a3   :  { %v4282_v54 = vadd.f32 %v4281_v62, %v4280_v43  ;;  %v5258_v34 = vrot.slane %v5257_v10, 2  ;;  %4305 = vadd.xlane.f32.xlu0 %v4291_v38 }
 0x4a4   :  { %11209 = vst [vmem:[#allocation70_spill] sm:$0xff] %v9734_v12  ;;  %5282 = vadd.xlane.f32.xlu1 %v5268_v21  ;;  %v6245_v17 = vmul.f32 %v9734_v12, %v9734_v12  ;;  %v6234_v60 = vadd.f32 %v6233_v6, %v6190_v33 }
 0x4a5   :  { %v4283_v20 = vrot.slane %v4282_v54, 1  ;;  %v5259_v11 = vadd.f32 %v5258_v34, %v5257_v10 }
 0x4a6   :  { %v6235_v13 = vrot.slane %v6234_v60, 2 }
 0x4a7   :  { %v5260_v58 = vrot.slane %v5259_v11, 1  ;;  %6259 = vadd.xlane.f32.xlu0 %v6245_v17  ;;  %v9738_v30 = vadd.f32 %v4283_v20, %v4282_v54 }
 0x4a8   :  { %v6236_v44 = vadd.f32 %v6235_v13, %v6234_v60 }
 0x4a9   :  { %11210 = vst [vmem:[#allocation71_spill] sm:$0xff] %v9738_v30  ;;  %v4292_v8 = vmul.f32 %v9738_v30, %v9738_v30  ;;  %v9742_v43 = vadd.f32 %v5260_v58, %v5259_v11 }
 0x4aa   :  { %v6237_v26 = vrot.slane %v6236_v44, 1 }
 0x4ab   :  { %11211 = vst [vmem:[#allocation72_spill] sm:$0xff] %v9742_v43  ;;  %4307 = vadd.xlane.f32.xlu1 %v4292_v8  ;;  %v5269_v1 = vmul.f32 %v9742_v43, %v9742_v43 }
 0x4ac   :  { %v9746_v40 = vadd.f32 %v6237_v26, %v6236_v44 }
 0x4ad   :  { %5284 = vadd.xlane.f32.xlu0 %v5269_v1 }
 0x4ae   :  { %11212 = vst [vmem:[#allocation73_spill] sm:$0xff] %v9746_v40  ;;  %v6246_v38 = vmul.f32 %v9746_v40, %v9746_v40 }
 0x4b0   :  { %6261 = vadd.xlane.f32.xlu1 %v6246_v38 }
 0x4cc   :  { %v3317_v62 = vpop.xlane.xlu0 %3316 }
 0x4cd   :  { %v3332_v10 = vadd.f32 1.0, %v3317_v62  ;;  %v3380_v54 = vadd.f32 1e-09, %v3317_v62 }
 0x4cf   :  { %7577 = vrcp.f32 %v3332_v10 }
 0x4d1   :  { %v3319_v33 = vpop.xlane.xlu1 %3318 }
 0x4d2   :  { %v3333_v21 = vadd.f32 1.0, %v3319_v33  ;;  %v3381_v34 = vadd.f32 1e-09, %v3319_v33 }
 0x4d4   :  { %7579 = vrcp.f32 %v3333_v21 }
 0x4d5   :  { %7581 = vrsqrt.f32 %v3380_v54 }
 0x4d7   :  { %v3325_v6 = vpop.xlane.xlu1 %3324 }
 0x4d8   :  { %v3336_v17 = vadd.f32 1.0, %v3325_v6  ;;  %v3384_v44 = vadd.f32 1e-09, %v3325_v6 }
 0x4d9   :  { %v7578_v20 = vpop.eup %7577 }
 0x4da   :  { %7583 = vrcp.f32 %v3336_v17  ;;  %v3348_v11 = vmul.f32 %v7578_v20, %v3332_v10 }
 0x4db   :  { %7585 = vrsqrt.f32 %v3381_v34 }
 0x4dc   :  { %v3356_v58 = vsub.f32 2.0, %v3348_v11  ;;  %7587 = vrsqrt.f32 %v3384_v44 }
 0x4de   :  { %v7580_v60 = vpop.eup %7579  ;;  %v3364_v8 = vmul.f32 %v7578_v20, %v3356_v58 }
 0x4df   :  { %v3349_v13 = vmul.f32 %v7580_v60, %v3333_v21  ;;  %v7582_v38 = vpop.eup %7581 }
 0x4e0   :  { %v3372_v1 = vmul.f32 %v3364_v8, %v3317_v62 }
 0x4e1   :  { %v3357_v26 = vsub.f32 2.0, %v3349_v13 }
 0x4e2   :  { %v3396_v28 = vmul.f32 %v7582_v38, %v3372_v1 }
 0x4e3   :  { %v3365_v43 = vmul.f32 %v7580_v60, %v3357_v26 }
 0x4e4   :  { %v7584_v40 = vpop.eup %7583  ;;  %v3404_v19 = vmul.f32 %v3396_v28, %v9565_v39 }
 0x4e5   :  { %v3373_v12 = vmul.f32 %v3365_v43, %v3319_v33  ;;  %v7586_v30 = vpop.eup %7585  ;;  %v3352_v54 = vmul.f32 %v7584_v40, %v3336_v17 }
 0x4e6   :  { %v3412_v10 = vmul.f32 %v9559_v55, %v3404_v19  ;;  %v7588_v60 = vpop.eup %7587 }
 0x4e7   :  { %v3397_v46 = vmul.f32 %v7586_v30, %v3373_v12  ;;  %v3360_v34 = vsub.f32 2.0, %v3352_v54 }
 0x4e8   :  { %3420 = vadd.xlane.f32.xlu1 %v3412_v10 }
 0x4e9   :  { %v3405_v21 = vmul.f32 %v3397_v46, %v9572_v52  ;;  %v3368_v11 = vmul.f32 %v7584_v40, %v3360_v34 }
 0x4eb   :  { %v3413_v62 = vmul.f32 %v9562_v53, %v3405_v21  ;;  %v3376_v20 = vmul.f32 %v3368_v11, %v3325_v6 }
 0x4ed   :  { %3422 = vadd.xlane.f32.xlu0 %v3413_v62  ;;  %v3400_v58 = vmul.f32 %v7588_v60, %v3376_v20 }
 0x4ee   :  { %v3327_v13 = vpop.xlane.xlu0 %3326 }
 0x4ef   :  { %v3337_v43 = vadd.f32 1.0, %v3327_v13  ;;  %v3408_v33 = vmul.f32 %v3400_v58, %v9576_v15  ;;  %v3385_v55 = vadd.f32 1e-09, %v3327_v13 }
 0x4f1   :  { %7589 = vrcp.f32 %v3337_v43  ;;  %v3416_v39 = vmul.f32 %v9567_v3, %v3408_v33 }
 0x4f2   :  { %v4294_v28 = vpop.xlane.xlu1 %4293 }
 0x4f3   :  { %v4309_v12 = vadd.f32 1.0, %v4294_v28  ;;  %3428 = vadd.xlane.f32.xlu1 %v3416_v39  ;;  %v4357_v52 = vadd.f32 1e-09, %v4294_v28 }
 0x4f5   :  { %7591 = vrcp.f32 %v4309_v12 }
 0x4f6   :  { %7593 = vrsqrt.f32 %v3385_v55 }
 0x4f7   :  { %v9756_v19 = vpop.xlane.xlu0 %4295 }
 0x4f8   :  { %v4310_v53 = vadd.f32 1.0, %v9756_v19  ;;  %v4358_v46 = vadd.f32 1e-09, %v9756_v19 }
 0x4fa   :  { %7595 = vrcp.f32 %v4310_v53  ;;  %v9760_v30 = vpop.xlane.xlu1 %5272 }
 0x4fb   :  { %v7590_v15 = vpop.eup %7589  ;;  %7597 = vrsqrt.f32 %v4357_v52  ;;  %v5287_v3 = vadd.f32 1.0, %v9760_v30  ;;  %v5335_v40 = vadd.f32 1e-09, %v9760_v30  ;;  %v9764_v6 = vpop.xlane.xlu0 %5270 }
 0x4fc   :  { %v3353_v17 = vmul.f32 %v7590_v15, %v3337_v43  ;;  %7599 = vrsqrt.f32 %v4358_v46  ;;  %v5286_v44 = vadd.f32 1.0, %v9764_v6  ;;  %v5334_v8 = vadd.f32 1e-09, %v9764_v6 }
 0x4fd   :  { %7601 = vrcp.f32 %v5287_v3 }
 0x4fe   :  { %v3361_v26 = vsub.f32 2.0, %v3353_v17  ;;  %7603 = vrsqrt.f32 %v5335_v40  ;;  %v9768_v1 = vpop.xlane.xlu1 %6249 }
 0x4ff   :  { %v7592_v38 = vpop.eup %7591  ;;  %7605 = vrcp.f32 %v5286_v44  ;;  %v6264_v54 = vadd.f32 1.0, %v9768_v1  ;;  %v6312_v34 = vadd.f32 1e-09, %v9768_v1  ;;  %v9772_v10 = vpop.xlane.xlu0 %6247 }
 0x500   :  { %v3369_v21 = vmul.f32 %v7590_v15, %v3361_v26  ;;  %v4325_v11 = vmul.f32 %v7592_v38, %v4309_v12  ;;  %7607 = vrsqrt.f32 %v5334_v8  ;;  %v9775_v62 = vadd.f32 1.0, %v9772_v10  ;;  %v7594_v33 = vpop.eup %7593 }
 0x501   :  { %7609 = vrcp.f32 %v6264_v54  ;;  %v6311_v58 = vadd.f32 1e-09, %v9772_v10 }
 0x502   :  { %v3377_v20 = vmul.f32 %v3369_v21, %v3327_v13  ;;  %v4333_v60 = vsub.f32 2.0, %v4325_v11  ;;  %7611 = vrsqrt.f32 %v6312_v34  ;;  %v9778_v43 = vpop.xlane.xlu1 %5278 }
 0x503   :  { %7613 = vrcp.f32 %v9775_v62  ;;  %v9782_v39 = vadd.f32 1.0, %v9778_v43  ;;  %v9784_v55 = vpop.xlane.xlu0 %4301  ;;  %v5338_v15 = vadd.f32 1e-09, %v9778_v43 }
 0x504   :  { %v7596_v12 = vpop.eup %7595  ;;  %v3401_v52 = vmul.f32 %v7594_v33, %v3377_v20  ;;  %v4341_v46 = vmul.f32 %v7592_v38, %v4333_v60  ;;  %v9788_v13 = vadd.f32 1.0, %v9784_v55  ;;  %v4361_v34 = vadd.f32 1e-09, %v9784_v55 }
 0x505   :  { %v7598_v40 = vpop.eup %7597  ;;  %v4326_v17 = vmul.f32 %v7596_v12, %v4310_v53  ;;  %7615 = vrcp.f32 %v9782_v39 }
 0x506   :  { %v7600_v8 = vpop.eup %7599  ;;  %v4349_v26 = vmul.f32 %v4341_v46, %v4294_v28  ;;  %7617 = vrsqrt.f32 %v6311_v58  ;;  %v9792_v21 = vpop.xlane.xlu1 %4303  ;;  %v3409_v11 = vmul.f32 %v3401_v52, %v9592_v29 }
 0x507   :  { %v7602_v20 = vpop.eup %7601  ;;  %v4334_v38 = vsub.f32 2.0, %v4326_v17  ;;  %7619 = vrcp.f32 %v9788_v13  ;;  %v9797_v60 = vadd.f32 1.0, %v9792_v21  ;;  %v9799_v33 = vpop.xlane.xlu0 %6255  ;;  %v4362_v29 = vadd.f32 1e-09, %v9792_v21 }
 0x508   :  { %v7604_v53 = vpop.eup %7603  ;;  %v4373_v61 = vmul.f32 %v7598_v40, %v4349_v26  ;;  %v5303_v16 = vmul.f32 %v7602_v20, %v5287_v3  ;;  %7621 = vrsqrt.f32 %v5338_v15  ;;  %v9802_v28 = vadd.f32 1.0, %v9799_v33 }
 0x509   :  { %v7606_v58 = vpop.eup %7605  ;;  %v4342_v46 = vmul.f32 %v7596_v12, %v4334_v38  ;;  %7623 = vrcp.f32 %v9797_v60  ;;  %v3417_v52 = vmul.f32 %v9580_v47, %v3409_v11  ;;  %v6315_v47 = vadd.f32 1e-09, %v9799_v33 }
 0x50a   :  { %v7608_v17 = vpop.eup %7607  ;;  %v5311_v37 = vsub.f32 2.0, %v5303_v16  ;;  %v5302_v50 = vmul.f32 %v7606_v58, %v5286_v44  ;;  %7625 = vrsqrt.f32 %v4361_v34  ;;  %v4381_v12 = vmul.f32 %v4373_v61, %v9602_v22 }
 0x50b   :  { %v7610_v18 = vpop.eup %7609  ;;  %v4350_v40 = vmul.f32 %v4342_v46, %v9756_v19  ;;  %7627 = vrcp.f32 %v9802_v28  ;;  %v9809_v3 = vpop.xlane.xlu0 %5280  ;;  %3430 = vadd.xlane.f32.xlu0 %v3417_v52 }
 0x50c   :  { %v7612_v15 = vpop.eup %7611  ;;  %v5319_v26 = vmul.f32 %v7602_v20, %v5311_v37  ;;  %v5310_v38 = vsub.f32 2.0, %v5302_v50  ;;  %v6280_v23 = vmul.f32 %v7610_v18, %v6264_v54  ;;  %v9813_v11 = vpop.xlane.xlu1 %6257  ;;  %7629 = vrsqrt.f32 %v4362_v29 }
 0x50d   :  { %v7614_v16 = vpop.eup %7613  ;;  %v4374_v44 = vmul.f32 %v7600_v8, %v4350_v40  ;;  %v9816_v19 = vadd.f32 1.0, %v9813_v11  ;;  %v6316_v34 = vadd.f32 1e-09, %v9813_v11  ;;  %v9823_v61 = vadd.f32 1.0, %v9809_v3 }
 0x50e   :  { %v5327_v46 = vmul.f32 %v5319_v26, %v9760_v30  ;;  %v5318_v52 = vmul.f32 %v7606_v58, %v5310_v38  ;;  %v6288_v22 = vsub.f32 2.0, %v6280_v23  ;;  %v6279_v37 = vmul.f32 %v7614_v16, %v9775_v62 }
 0x50f   :  { %v7616_v50 = vpop.eup %7615  ;;  %7631 = vrcp.f32 %v9816_v19  ;;  %v9825_v54 = vpop.xlane.xlu0 %3320  ;;  %v4389_v8 = vmul.f32 %v9583_v32, %v4381_v12  ;;  %v4382_v20 = vmul.f32 %v4374_v44, %v9615_v31  ;;  %v5339_v38 = vadd.f32 1e-09, %v9809_v3 }
 0x510   :  { %v7618_v29 = vpop.eup %7617  ;;  %v5351_v40 = vmul.f32 %v7604_v53, %v5327_v46  ;;  %v5326_v30 = vmul.f32 %v5318_v52, %v9764_v6  ;;  %v6296_v58 = vmul.f32 %v7610_v18, %v6288_v22  ;;  %v6287_v23 = vsub.f32 2.0, %v6279_v37 }
 0x511   :  { %v7620_v26 = vpop.eup %7619  ;;  %v5306_v62 = vmul.f32 %v7616_v50, %v9782_v39  ;;  %7633 = vrsqrt.f32 %v6315_v47  ;;  %v9833_v5 = vadd.f32 1.0, %v9825_v54  ;;  %4397 = vadd.xlane.f32.xlu1 %v4389_v8  ;;  %v4390_v39 = vmul.f32 %v9586_v0, %v4382_v20 }
 0x512   :  { %v7622_v45 = vpop.eup %7621  ;;  %v5350_v32 = vmul.f32 %v7608_v17, %v5326_v30  ;;  %v6304_v31 = vmul.f32 %v6296_v58, %v9768_v1  ;;  %v6295_v12 = vmul.f32 %v7614_v16, %v6287_v23  ;;  %v4329_v53 = vmul.f32 %v7620_v26, %v9788_v13 }
 0x513   :  { %v7624_v6 = vpop.eup %7623  ;;  %v5314_v18 = vsub.f32 2.0, %v5306_v62  ;;  %7635 = vrcp.f32 %v9823_v61  ;;  %v5359_v47 = vmul.f32 %v5351_v40, %v9622_v63  ;;  %4399 = vadd.xlane.f32.xlu0 %v4390_v39  ;;  %v3382_v63 = vadd.f32 1e-09, %v9825_v54 }
 0x514   :  { %v7626_v44 = vpop.eup %7625  ;;  %v6303_v46 = vmul.f32 %v6295_v12, %v9772_v10  ;;  %v4337_v52 = vsub.f32 2.0, %v4329_v53  ;;  %v4330_v22 = vmul.f32 %v7624_v6, %v9797_v60  ;;  %7637 = vrsqrt.f32 %v6316_v34 }
 0x515   :  { %v7628_v17 = vpop.eup %7627  ;;  %v6328_v1 = vmul.f32 %v7612_v15, %v6304_v31  ;;  %v5322_v16 = vmul.f32 %v7616_v50, %v5314_v18  ;;  %v5367_v13 = vmul.f32 %v9589_v42, %v5359_v47  ;;  %v5358_v37 = vmul.f32 %v5350_v32, %v9627_v48 }
 0x516   :  { %v4345_v8 = vmul.f32 %v7620_v26, %v4337_v52  ;;  %v4338_v30 = vsub.f32 2.0, %v4330_v22  ;;  %v6283_v0 = vmul.f32 %v7628_v17, %v9802_v28  ;;  %v9846_v20 = vpop.xlane.xlu1 %3328  ;;  %v7630_v10 = vpop.eup %7629  ;;  %v6327_v40 = vmul.f32 %v7618_v29, %v6303_v46 }
 0x517   :  { %v5330_v60 = vmul.f32 %v5322_v16, %v9778_v43  ;;  %7639 = vrcp.f32 %v9833_v5  ;;  %v9851_v15 = vadd.f32 1.0, %v9846_v20  ;;  %5376 = vadd.xlane.f32.xlu0 %v5367_v13  ;;  %v5366_v58 = vmul.f32 %v9594_v57, %v5358_v37 }
 0x518   :  { %v4353_v42 = vmul.f32 %v4345_v8, %v9784_v55  ;;  %v4346_v48 = vmul.f32 %v7624_v6, %v4338_v30  ;;  %v6291_v34 = vsub.f32 2.0, %v6283_v0  ;;  %7641 = vrsqrt.f32 %v5339_v38 }
 0x519   :  { %v7632_v50 = vpop.eup %7631  ;;  %v5354_v28 = vmul.f32 %v7622_v45, %v5330_v60  ;;  %7643 = vrcp.f32 %v9851_v15  ;;  %v6336_v29 = vmul.f32 %v6328_v1, %v9633_v41  ;;  %v3386_v55 = vadd.f32 1e-09, %v9846_v20  ;;  %5374 = vadd.xlane.f32.xlu1 %v5366_v58 }
 0x51a   :  { %v4377_v43 = vmul.f32 %v7626_v44, %v4353_v42  ;;  %v4354_v23 = vmul.f32 %v4346_v48, %v9792_v21  ;;  %v6299_v26 = vmul.f32 %v7628_v17, %v6291_v34  ;;  %v6284_v62 = vmul.f32 %v7632_v50, %v9816_v19 }
 0x51b   :  { %v7634_v32 = vpop.eup %7633  ;;  %v6344_v38 = vmul.f32 %v9599_v56, %v6336_v29  ;;  %v6335_v45 = vmul.f32 %v6327_v40, %v9638_v9  ;;  %v5362_v31 = vmul.f32 %v5354_v28, %v9647_v49  ;;  %7645 = vrsqrt.f32 %v3382_v63 }
 0x51c   :  { %v4378_v12 = vmul.f32 %v7630_v10, %v4354_v23  ;;  %v6307_v57 = vmul.f32 %v6299_v26, %v9799_v33  ;;  %v6292_v41 = vsub.f32 2.0, %v6284_v62  ;;  %v9864_v53 = vpop.xlane.xlu0 %3322  ;;  %v4385_v21 = vmul.f32 %v4377_v43, %v9652_v25 }
 0x51d   :  { %v7636_v6 = vpop.eup %7635  ;;  %v9868_v19 = vadd.f32 1.0, %v9864_v53  ;;  %v3383_v18 = vadd.f32 1e-09, %v9864_v53  ;;  %6353 = vadd.xlane.f32.xlu0 %v6344_v38  ;;  %v6343_v56 = vmul.f32 %v9604_v35, %v6335_v45  ;;  %v5370_v9 = vmul.f32 %v9609_v2, %v5362_v31 }
 0x51e   :  { %v7638_v49 = vpop.eup %7637  ;;  %v6331_v39 = vmul.f32 %v7634_v32, %v6307_v57  ;;  %v6300_v47 = vmul.f32 %v7632_v50, %v6292_v41  ;;  %v5307_v33 = vmul.f32 %v7636_v6, %v9823_v61  ;;  %v4393_v25 = vmul.f32 %v9612_v51, %v4385_v21  ;;  %v11214_v21 = vld [vmem:[#allocation56_spill] sm:$0xff] }
 0x51f   :  { %7647 = vrcp.f32 %v9868_v19  ;;  %6351 = vadd.xlane.f32.xlu1 %v6343_v56  ;;  %v4386_v44 = vmul.f32 %v4378_v12, %v9658_v7 }
 0x520   :  { %v6308_v46 = vmul.f32 %v6300_v47, %v9813_v11  ;;  %v5315_v52 = vsub.f32 2.0, %v5307_v33  ;;  %7649 = vrsqrt.f32 %v3386_v55  ;;  %v9878_v35 = vpop.xlane.xlu0 %3330  ;;  %v6339_v2 = vmul.f32 %v6331_v39, %v9660_v24  ;;  %v11213_v55 = vld [vmem:[#allocation52_spill] sm:$0xff]  ;;  %v11215_v47 = vld [vmem:[#allocation53_spill] sm:$0xff] }
 0x521   :  { %v7640_v22 = vpop.eup %7639  ;;  %7651 = vrsqrt.f32 %v3383_v18  ;;  %v9882_v61 = vadd.f32 1.0, %v9878_v35  ;;  %5382 = vadd.xlane.f32.xlu0 %v5370_v9  ;;  %v4394_v17 = vmul.f32 %v9619_v59, %v4386_v44  ;;  %v3387_v11 = vadd.f32 1e-09, %v9878_v35 }
 0x522   :  { %v7642_v1 = vpop.eup %7641  ;;  %v6332_v51 = vmul.f32 %v7638_v49, %v6308_v46  ;;  %v5323_v16 = vmul.f32 %v7636_v6, %v5315_v52  ;;  %v3350_v7 = vmul.f32 %v7640_v22, %v9833_v5  ;;  %v6347_v8 = vmul.f32 %v9624_v27, %v6339_v2 }
 0x523   :  { %v9887_v13 = vpop.xlane.xlu1 %5274  ;;  %v7644_v37 = vpop.eup %7643  ;;  %7653 = vrcp.f32 %v9882_v61  ;;  %4405 = vadd.xlane.f32.xlu1 %v4393_v25  ;;  %v11216_v25 = vld [vmem:[#allocation58_spill] sm:$0xff] }
 0x524   :  { %v5288_v24 = vadd.f32 1.0, %v9887_v13  ;;  %v5331_v30 = vmul.f32 %v5323_v16, %v9809_v3  ;;  %v3358_v59 = vsub.f32 2.0, %v3350_v7  ;;  %v3354_v0 = vmul.f32 %v7644_v37, %v9851_v15  ;;  %v9895_v5 = vpop.xlane.xlu0 %4297 }
 0x525   :  { %v5336_v63 = vadd.f32 1e-09, %v9887_v13  ;;  %v9898_v10 = vadd.f32 1.0, %v9895_v5  ;;  %v4359_v40 = vadd.f32 1e-09, %v9895_v5  ;;  %4407 = vadd.xlane.f32.xlu0 %v4394_v17  ;;  %v6340_v60 = vmul.f32 %v6332_v51, %v9671_v4  ;;  %v7646_v15 = vpop.eup %7645 }
 0x526   :  { %7655 = vrcp.f32 %v5288_v24  ;;  %v5355_v42 = vmul.f32 %v7642_v1, %v5331_v30  ;;  %v3366_v27 = vmul.f32 %v7640_v22, %v3358_v59  ;;  %v3362_v48 = vsub.f32 2.0, %v3354_v0  ;;  %v11217_v59 = vld [vmem:[#allocation54_spill] sm:$0xff] }
 0x527   :  { %7657 = vrsqrt.f32 %v3387_v11  ;;  %6359 = vadd.xlane.f32.xlu1 %v6347_v8  ;;  %v6348_v3 = vmul.f32 %v9640_v14, %v6340_v60  ;;  %v9905_v28 = vpop.xlane.xlu1 %4299 }
 0x528   :  { %7659 = vrcp.f32 %v9898_v10  ;;  %v3374_v34 = vmul.f32 %v3366_v27, %v9825_v54  ;;  %v3370_v50 = vmul.f32 %v7644_v37, %v3362_v48  ;;  %v9907_v58 = vpop.xlane.xlu0 %6251  ;;  %v5363_v4 = vmul.f32 %v5355_v42, %v9669_v36 }
 0x529   :  { %7661 = vrsqrt.f32 %v5336_v63  ;;  %v7648_v29 = vpop.eup %7647  ;;  %v9911_v43 = vadd.f32 1.0, %v9905_v28  ;;  %v4360_v23 = vadd.f32 1e-09, %v9905_v28  ;;  %v9915_v14 = vadd.f32 1.0, %v9907_v58  ;;  %6361 = vadd.xlane.f32.xlu0 %v6348_v3 }
 0x52a   :  { %7663 = vrsqrt.f32 %v4359_v40  ;;  %v7650_v54 = vpop.eup %7649  ;;  %v3398_v26 = vmul.f32 %v7646_v15, %v3374_v34  ;;  %v3378_v62 = vmul.f32 %v3370_v50, %v9846_v20  ;;  %v3351_v32 = vmul.f32 %v7648_v29, %v9868_v19 }
 0x52b   :  { %v5371_v38 = vmul.f32 %v11213_v55, %v5363_v4  ;;  %v7652_v36 = vpop.eup %7651  ;;  %7665 = vrcp.f32 %v9911_v43  ;;  %v6313_v12 = vadd.f32 1e-09, %v9907_v58 }
 0x52c   :  { %v3402_v45 = vmul.f32 %v7650_v54, %v3378_v62  ;;  %v3359_v31 = vsub.f32 2.0, %v3351_v32  ;;  %v9924_v41 = vpop.xlane.xlu0 %5276  ;;  %v3406_v6 = vmul.f32 %v3398_v26, %v11214_v21  ;;  %7667 = vrcp.f32 %v9915_v14 }
 0x52d   :  { %v9922_v57 = vpop.xlane.xlu1 %6253  ;;  %5384 = vadd.xlane.f32.xlu1 %v5371_v38  ;;  %v7654_v18 = vpop.eup %7653  ;;  %v9932_v19 = vadd.f32 1.0, %v9924_v41  ;;  %7669 = vrsqrt.f32 %v4360_v23  ;;  %v5337_v51 = vadd.f32 1e-09, %v9924_v41 }
 0x52e   :  { %v9929_v20 = vadd.f32 1.0, %v9922_v57  ;;  %v3367_v56 = vmul.f32 %v7648_v29, %v3359_v31  ;;  %v3355_v9 = vmul.f32 %v7654_v18, %v9882_v61  ;;  %v6314_v39 = vadd.f32 1e-09, %v9922_v57  ;;  %v11219_v29 = vld [vmem:[#allocation55_spill] sm:$0xff] }
 0x52f   :  { %v3414_v33 = vmul.f32 %v11215_v47, %v3406_v6  ;;  %v3410_v44 = vmul.f32 %v3402_v45, %v11216_v25  ;;  %v11220_v45 = vld [vmem:[#allocation60_spill] sm:$0xff] }
 0x530   :  { %v7656_v49 = vpop.eup %7655  ;;  %7671 = vrcp.f32 %v9929_v20  ;;  %v3375_v52 = vmul.f32 %v3367_v56, %v9864_v53  ;;  %v3363_v2 = vsub.f32 2.0, %v3355_v9  ;;  %v9942_v1 = vpop.xlane.xlu0 %4305 }
 0x531   :  { %v7658_v46 = vpop.eup %7657  ;;  %v5304_v22 = vmul.f32 %v7656_v49, %v5288_v24  ;;  %7673 = vrsqrt.f32 %v6313_v12  ;;  %v9940_v17 = vpop.xlane.xlu1 %5282  ;;  %3424 = vadd.xlane.f32.xlu1 %v3414_v33  ;;  %v9951_v30 = vadd.f32 1.0, %v9942_v1  ;;  %v3418_v0 = vmul.f32 %v11217_v59, %v3410_v44 }
 0x532   :  { %v7660_v61 = vpop.eup %7659  ;;  %7675 = vrcp.f32 %v9932_v19  ;;  %v9947_v16 = vadd.f32 1.0, %v9940_v17  ;;  %v3399_v11 = vmul.f32 %v7652_v36, %v3375_v52  ;;  %v3371_v37 = vmul.f32 %v7654_v18, %v3363_v2  ;;  %v11222_v52 = vld [vmem:[#allocation61_spill] sm:$0xff] }
 0x533   :  { %v7662_v7 = vpop.eup %7661  ;;  %v5312_v53 = vsub.f32 2.0, %v5304_v22  ;;  %v4327_v24 = vmul.f32 %v7660_v61, %v9898_v10  ;;  %7677 = vrsqrt.f32 %v6314_v39  ;;  %v5340_v27 = vadd.f32 1e-09, %v9940_v17  ;;  %v11218_v10 = vld [vmem:[#allocation59_spill] sm:$0xff]  ;;  %v11223_v22 = vld [vmem:[#allocation62_spill] sm:$0xff] }
 0x534   :  { %v7664_v8 = vpop.eup %7663  ;;  %v3379_v63 = vmul.f32 %v3371_v37, %v9878_v35  ;;  %7679 = vrcp.f32 %v9947_v16  ;;  %v9957_v48 = vpop.xlane.xlu0 %6259  ;;  %v3407_v3 = vmul.f32 %v3399_v11, %v11218_v10  ;;  %v4363_v55 = vadd.f32 1e-09, %v9942_v1 }
 0x535   :  { %v5320_v40 = vmul.f32 %v7656_v49, %v5312_v53  ;;  %v4335_v60 = vsub.f32 2.0, %v4327_v24  ;;  %v7666_v42 = vpop.eup %7665  ;;  %7681 = vrsqrt.f32 %v5337_v51  ;;  %3432 = vadd.xlane.f32.xlu1 %v3418_v0  ;;  %v9976_v56 = vadd.f32 1.0, %v9957_v48  ;;  %v11221_v49 = vld [vmem:[#allocation57_spill] sm:$0xff] }
 0x536   :  { %v3403_v15 = vmul.f32 %v7658_v46, %v3379_v63  ;;  %v4328_v4 = vmul.f32 %v7666_v42, %v9911_v43  ;;  %v7668_v35 = vpop.eup %7667  ;;  %7683 = vrcp.f32 %v9951_v30  ;;  %v3415_v23 = vmul.f32 %v11219_v29, %v3407_v3  ;;  %v8019_v3 = vld [vmem:[#allocation2 + $0x48] sm:$0xff] }
 0x537   :  { %v5328_v34 = vmul.f32 %v5320_v40, %v9887_v13  ;;  %v4343_v50 = vmul.f32 %v7660_v61, %v4335_v60  ;;  %v7670_v54 = vpop.eup %7669  ;;  %v6281_v32 = vmul.f32 %v7668_v35, %v9915_v14  ;;  %7685 = vrsqrt.f32 %v5340_v27  ;;  %v8018_v27 = vld [vmem:[#allocation2 + $0x50] sm:$0xff] }
 0x538   :  { %v4336_v62 = vsub.f32 2.0, %v4328_v4  ;;  %v9967_v38 = vpop.xlane.xlu1 %4307  ;;  %3426 = vadd.xlane.f32.xlu0 %v3415_v23  ;;  %v3411_v31 = vmul.f32 %v3403_v15, %v11220_v45  ;;  %v6317_v40 = vadd.f32 1e-09, %v9957_v48  ;;  %v11225_v23 = vld [vmem:[#allocation63_spill] sm:$0xff] }
 0x539   :  { %v4351_v26 = vmul.f32 %v4343_v50, %v9895_v5  ;;  %v5352_v13 = vmul.f32 %v7662_v7, %v5328_v34  ;;  %v9970_v43 = vadd.f32 1.0, %v9967_v38  ;;  %v6289_v5 = vsub.f32 2.0, %v6281_v32  ;;  %v11226_v32 = vld [vmem:[#allocation66_spill] sm:$0xff] }
 0x53a   :  { %v7672_v36 = vpop.eup %7671  ;;  %v4344_v6 = vmul.f32 %v7666_v42, %v4336_v62  ;;  %v9978_v9 = vpop.xlane.xlu0 %5284  ;;  %v3419_v39 = vmul.f32 %v11221_v49, %v3411_v31  ;;  %v8021_v31 = vld [vmem:[#allocation2 + $0x58] sm:$0xff] }
 0x53b   :  { %v7674_v12 = vpop.eup %7673  ;;  %v4375_v21 = vmul.f32 %v7664_v8, %v4351_v26  ;;  %v6282_v18 = vmul.f32 %v7672_v36, %v9929_v20  ;;  %7687 = vrcp.f32 %v9970_v43  ;;  %v6297_v33 = vmul.f32 %v7668_v35, %v6289_v5  ;;  %v11227_v5 = vld [vmem:[#allocation65_spill] sm:$0xff] }
 0x53c   :  { %v7676_v14 = vpop.eup %7675  ;;  %v4352_v47 = vmul.f32 %v4344_v6, %v9905_v28  ;;  %7689 = vrsqrt.f32 %v4363_v55  ;;  %v4364_v20 = vadd.f32 1e-09, %v9967_v38  ;;  %3434 = vadd.xlane.f32.xlu0 %v3419_v39  ;;  %v5360_v2 = vmul.f32 %v5352_v13, %v11222_v52  ;;  %v8020_v13 = vld [vmem:[#allocation2 + $0x68] sm:$0xff]  ;;  %v11228_v52 = vld [vmem:[#allocation68_spill] sm:$0xff] }
 0x53d   :  { %v6290_v25 = vsub.f32 2.0, %v6282_v18  ;;  %v5305_v44 = vmul.f32 %v7676_v14, %v9932_v19  ;;  %v7678_v46 = vpop.eup %7677  ;;  %v4383_v61 = vmul.f32 %v4375_v21, %v11223_v22  ;;  %v6305_v7 = vmul.f32 %v6297_v33, %v9907_v58  ;;  %v9987_v53 = vpop.xlane.xlu1 %6261 }
 0x53e   :  { %v7680_v51 = vpop.eup %7679  ;;  %v9990_v28 = vadd.f32 1.0, %v9978_v9  ;;  %v4376_v24 = vmul.f32 %v7670_v54, %v4352_v47  ;;  %7691 = vrcp.f32 %v9976_v56  ;;  %v9995_v59 = vadd.f32 1.0, %v9987_v53  ;;  %v8022_v47 = vld [vmem:[#allocation2 + $0x78] sm:$0xff] }
 0x53f   :  { %v6298_v11 = vmul.f32 %v7672_v36, %v6290_v25  ;;  %v5313_v37 = vsub.f32 2.0, %v5305_v44  ;;  %v7682_v19 = vpop.eup %7681  ;;  %v5308_v8 = vmul.f32 %v7680_v51, %v9947_v16  ;;  %v6329_v0 = vmul.f32 %v7674_v12, %v6305_v7  ;;  %v8023_v44 = vld [vmem:[#allocation2 + $0x70] sm:$0xff] }
 0x540   :  { %v7684_v60 = vpop.eup %7683  ;;  %7693 = vrcp.f32 %v9995_v59  ;;  %v5368_v10 = vmul.f32 %v8018_v27, %v5360_v2  ;;  %v4391_v15 = vmul.f32 %v8019_v3, %v4383_v61  ;;  %v5341_v39 = vadd.f32 1e-09, %v9978_v9  ;;  %v8024_v7 = vld [vmem:[#allocation2 + $0xd0] sm:$0xff] }
 0x541   :  { %v6306_v63 = vmul.f32 %v6298_v11, %v9922_v57  ;;  %v5321_v58 = vmul.f32 %v7676_v14, %v5313_v37  ;;  %v5316_v42 = vsub.f32 2.0, %v5308_v8  ;;  %v4331_v50 = vmul.f32 %v7684_v60, %v9951_v30  ;;  %v7686_v4 = vpop.eup %7685  ;;  %v11224_v57 = vld [vmem:[#allocation64_spill] sm:$0xff]  ;;  %v11229_v8 = vld [vmem:[#allocation67_spill] sm:$0xff] }
 0x542   :  { %7695 = vrsqrt.f32 %v4364_v20  ;;  %5378 = vadd.xlane.f32.xlu0 %v5368_v10  ;;  %4401 = vadd.xlane.f32.xlu1 %v4391_v15  ;;  %v4384_v29 = vmul.f32 %v4376_v24, %v11224_v57  ;;  %v6337_v54 = vmul.f32 %v6329_v0, %v11225_v23  ;;  %v6318_v30 = vadd.f32 1e-09, %v9987_v53 }
 0x543   :  { %v6330_v16 = vmul.f32 %v7678_v46, %v6306_v63  ;;  %v5329_v34 = vmul.f32 %v5321_v58, %v9924_v41  ;;  %v5324_v35 = vmul.f32 %v7680_v51, %v5316_v42  ;;  %7697 = vrcp.f32 %v9990_v28  ;;  %v8025_v42 = vld [vmem:[#allocation2 + $0xc8] sm:$0xff] }
 0x544   :  { %v4339_v62 = vsub.f32 2.0, %v4331_v50  ;;  %v4392_v45 = vmul.f32 %v8020_v13, %v4384_v29  ;;  %v6345_v12 = vmul.f32 %v8021_v31, %v6337_v54  ;;  %7699 = vrsqrt.f32 %v6317_v40  ;;  %v11231_v54 = vld [vmem:[#allocation70_spill] sm:$0xff] }
 0x545   :  { %v5353_v26 = vmul.f32 %v7682_v19, %v5329_v34  ;;  %v6338_v55 = vmul.f32 %v6330_v16, %v11226_v32  ;;  %v7688_v36 = vpop.eup %7687  ;;  %v5332_v41 = vmul.f32 %v5324_v35, %v9940_v17  ;;  %7701 = vrsqrt.f32 %v6318_v30  ;;  %v11230_v16 = vld [vmem:[#allocation71_spill] sm:$0xff]  ;;  %v8026_v35 = vld [vmem:[#allocation2 + $0xe8] sm:$0xff]  ;;  %v8028_v31 = vld [vmem:[#allocation2 + $0xf0] sm:$0xff] }
 0x546   :  { %v4347_v21 = vmul.f32 %v7684_v60, %v4339_v62  ;;  %v4332_v6 = vmul.f32 %v7688_v36, %v9970_v43  ;;  %v7690_v14 = vpop.eup %7689  ;;  %4403 = vadd.xlane.f32.xlu0 %v4392_v45  ;;  %6355 = vadd.xlane.f32.xlu1 %v6345_v12  ;;  %7703 = vrsqrt.f32 %v5341_v39  ;;  %v8027_v32 = vld [vmem:[#allocation2 + $0xd8] sm:$0xff]  ;;  %v11233_v30 = vld [vmem:[#allocation69_spill] sm:$0xff] }
 0x547   :  { %v5361_v18 = vmul.f32 %v5353_v26, %v11227_v5  ;;  %v5356_v49 = vmul.f32 %v7686_v4, %v5332_v41  ;;  %v6346_v17 = vmul.f32 %v8022_v47, %v6338_v55 }
 0x548   :  { %v4355_v33 = vmul.f32 %v4347_v21, %v9942_v1  ;;  %v4340_v25 = vsub.f32 2.0, %v4332_v6  ;;  %v7692_v20 = vpop.eup %7691 }
 0x549   :  { %v5369_v46 = vmul.f32 %v8023_v44, %v5361_v18  ;;  %v5364_v43 = vmul.f32 %v5356_v49, %v11228_v52  ;;  %v6285_v61 = vmul.f32 %v7692_v20, %v9976_v56  ;;  %v11237_v52 = vld [vmem:[#allocation22_spill] sm:$0xff] }
 0x54a   :  { %v4379_v2 = vmul.f32 %v7690_v14, %v4355_v33  ;;  %v4348_v22 = vmul.f32 %v7688_v36, %v4340_v25  ;;  %v7694_v51 = vpop.eup %7693  ;;  %6357 = vadd.xlane.f32.xlu0 %v6346_v17  ;;  %v11232_v36 = vld [vmem:[#allocation73_spill] sm:$0xff]  ;;  %v11236_v14 = vld [vmem:[#allocation20_spill] sm:$0xff] }
 0x54b   :  { %5380 = vadd.xlane.f32.xlu1 %v5369_v46  ;;  %v5372_v11 = vmul.f32 %v8024_v7, %v5364_v43  ;;  %v6293_v19 = vsub.f32 2.0, %v6285_v61  ;;  %v6286_v24 = vmul.f32 %v7694_v51, %v9995_v59 }
 0x54c   :  { %v7696_v37 = vpop.eup %7695  ;;  %v4356_v1 = vmul.f32 %v4348_v22, %v9967_v38  ;;  %v4387_v0 = vmul.f32 %v4379_v2, %v11229_v8 }
 0x54d   :  { %v7698_v63 = vpop.eup %7697  ;;  %v6301_v40 = vmul.f32 %v7692_v20, %v6293_v19  ;;  %v6294_v60 = vsub.f32 2.0, %v6286_v24 }
 0x54e   :  { %v4380_v58 = vmul.f32 %v7696_v37, %v4356_v1  ;;  %v5309_v56 = vmul.f32 %v7698_v63, %v9990_v28  ;;  %5386 = vadd.xlane.f32.xlu0 %v5372_v11  ;;  %v4395_v27 = vmul.f32 %v8025_v42, %v4387_v0  ;;  %v7700_v34 = vpop.eup %7699 }
 0x54f   :  { %v6309_v10 = vmul.f32 %v6301_v40, %v9957_v48  ;;  %v6302_v3 = vmul.f32 %v7694_v51, %v6294_v60  ;;  %v7702_v29 = vpop.eup %7701 }
 0x550   :  { %v5317_v15 = vsub.f32 2.0, %v5309_v56  ;;  %v4388_v38 = vmul.f32 %v4380_v58, %v11230_v16  ;;  %4409 = vadd.xlane.f32.xlu1 %v4395_v27  ;;  %v7704_v48 = vpop.eup %7703 }
 0x551   :  { %v6333_v59 = vmul.f32 %v7700_v34, %v6309_v10  ;;  %v6310_v50 = vmul.f32 %v6302_v3, %v9987_v53  ;;  %v11234_v53 = vld [vmem:[#allocation72_spill] sm:$0xff] }
 0x552   :  { %v5325_v4 = vmul.f32 %v7698_v63, %v5317_v15  ;;  %v4396_v57 = vmul.f32 %v8026_v35, %v4388_v38  ;;  %v11238_v38 = vld [vmem:[#allocation23_spill] sm:$0xff] }
 0x553   :  { %v6334_v23 = vmul.f32 %v7702_v29, %v6310_v50  ;;  %v6341_v26 = vmul.f32 %v6333_v59, %v11231_v54 }
 0x554   :  { %v5333_v28 = vmul.f32 %v5325_v4, %v9978_v9  ;;  %4411 = vadd.xlane.f32.xlu0 %v4396_v57  ;;  %v11235_v9 = vld [vmem:[#allocation21_spill] sm:$0xff] }
 0x555   :  { %v6349_v55 = vmul.f32 %v8027_v32, %v6341_v26  ;;  %v6342_v41 = vmul.f32 %v6334_v23, %v11232_v36  ;;  %v11239_v32 = vld [vmem:[#allocation24_spill] sm:$0xff] }
 0x556   :  { %v5357_v62 = vmul.f32 %v7704_v48, %v5333_v28 }
 0x557   :  { %6363 = vadd.xlane.f32.xlu1 %v6349_v55  ;;  %v6350_v13 = vmul.f32 %v11233_v30, %v6342_v41 }
 0x558   :  { %v5365_v45 = vmul.f32 %v5357_v62, %v11234_v53 }
 0x559   :  { %6365 = vadd.xlane.f32.xlu0 %v6350_v13 }
 0x55a   :  { %v5373_v12 = vmul.f32 %v8028_v31, %v5365_v45 }
 0x55c   :  { %5388 = vadd.xlane.f32.xlu1 %v5373_v12 }
 0x575   :  { %v3421_v21 = vpop.xlane.xlu1 %3420 }
 0x576   :  { %v3436_v6 = vadd.f32 %v3421_v21, %v11235_v9  ;;  %v11240_v9 = vld [vmem:[#allocation25_spill] sm:$0xff] }
 0x578   :  { %v3444_v5 = vrot.slane %v3436_v6, 4 }
 0x57a   :  { %v3423_v18 = vpop.xlane.xlu0 %3422  ;;  %v3445_v39 = vmax.f32 %v3436_v6, %v3444_v5 }
 0x57b   :  { %v3437_v49 = vadd.f32 %v3423_v18, %v11236_v14 }
 0x57c   :  { %v3446_v17 = vrot.slane %v3445_v39, 2 }
 0x57d   :  { %v3450_v47 = vrot.slane %v3437_v49, 4 }
 0x57e   :  { %v3447_v25 = vmax.f32 %v3445_v39, %v3446_v17 }
 0x57f   :  { %v3451_v33 = vmax.f32 %v3437_v49, %v3450_v47 }
 0x580   :  { %v3429_v46 = vpop.xlane.xlu1 %3428  ;;  %v3448_v20 = vrot.slane %v3447_v25, 1 }
 0x581   :  { %v3452_v44 = vrot.slane %v3451_v33, 2  ;;  %v3440_v43 = vadd.f32 %v3429_v46, %v11237_v52 }
 0x582   :  { %v3449_v22 = vmax.f32 %v3447_v25, %v3448_v20 }
 0x583   :  { %v3453_v2 = vmax.f32 %v3451_v33, %v3452_v44  ;;  %v3468_v61 = vrot.slane %v3440_v43, 4  ;;  %v11241_v44 = vld [vmem:[#allocation26_spill] sm:$0xff] }
 0x584   :  { %v3492_v7 = vsub.f32 %v3436_v6, %v3449_v22 }
 0x585   :  { %v3454_v51 = vrot.slane %v3453_v2, 1  ;;  %v3469_v11 = vmax.f32 %v3440_v43, %v3468_v61  ;;  %v11242_v61 = vld [vmem:[#allocation27_spill] sm:$0xff] }
 0x586   :  { %v3500_v1 = vmul.f32 1.442695, %v3492_v7 }
 0x587   :  { %v3455_v37 = vmax.f32 %v3453_v2, %v3454_v51  ;;  %v3470_v19 = vrot.slane %v3469_v11, 2 }
 0x588   :  { %7705 = vpow2.f32 %v3500_v1 }
 0x589   :  { %v3493_v24 = vsub.f32 %v3437_v49, %v3455_v37  ;;  %v3471_v8 = vmax.f32 %v3469_v11, %v3470_v19 }
 0x58b   :  { %v3502_v0 = vmul.f32 1.442695, %v3493_v24  ;;  %v3472_v63 = vrot.slane %v3471_v8, 1 }
 0x58d   :  { %7707 = vpow2.f32 %v3502_v0  ;;  %v3473_v58 = vmax.f32 %v3471_v8, %v3472_v63  ;;  %v11243_v63 = vld [vmem:[#allocation28_spill] sm:$0xff] }
 0x58f   :  { %v3496_v40 = vsub.f32 %v3440_v43, %v3473_v58 }
 0x591   :  { %v3508_v60 = vmul.f32 1.442695, %v3496_v40 }
 0x592   :  { %v10029_v56 = vpop.eup %7705 }
 0x593   :  { %7709 = vpow2.f32 %v3508_v60  ;;  %v3516_v42 = vrot.slane %v10029_v56, 4 }
 0x595   :  { %v3517_v10 = vadd.f32 %v10029_v56, %v3516_v42 }
 0x597   :  { %v10032_v27 = vpop.eup %7707  ;;  %v3518_v16 = vrot.slane %v3517_v10, 2 }
 0x598   :  { %v3522_v3 = vrot.slane %v10032_v27, 4  ;;  %v3431_v15 = vpop.xlane.xlu0 %3430 }
 0x599   :  { %v3441_v34 = vadd.f32 %v3431_v15, %v11238_v38  ;;  %v3519_v50 = vadd.f32 %v3518_v16, %v3517_v10  ;;  %v11244_v15 = vld [vmem:[#allocation29_spill] sm:$0xff] }
 0x59a   :  { %v3523_v59 = vadd.f32 %v10032_v27, %v3522_v3 }
 0x59b   :  { %v3474_v4 = vrot.slane %v3441_v34, 4  ;;  %v3520_v57 = vrot.slane %v3519_v50, 1 }
 0x59c   :  { %v3524_v35 = vrot.slane %v3523_v59, 2 }
 0x59d   :  { %v10038_v29 = vpop.eup %7709  ;;  %v3475_v23 = vmax.f32 %v3441_v34, %v3474_v4  ;;  %v3521_v26 = vadd.f32 %v3520_v57, %v3519_v50 }
 0x59e   :  { %v3525_v28 = vadd.f32 %v3524_v35, %v3523_v59  ;;  %v4398_v54 = vpop.xlane.xlu1 %4397  ;;  %v3540_v48 = vrot.slane %v10038_v29, 4 }
 0x59f   :  { %v3476_v62 = vrot.slane %v3475_v23, 2  ;;  %v4413_v55 = vadd.f32 %v4398_v54, %v11239_v32  ;;  %7711 = vrcp.f32 %v3521_v26 }
 0x5a0   :  { %v3526_v36 = vrot.slane %v3525_v28, 1  ;;  %v3541_v41 = vadd.f32 %v10038_v29, %v3540_v48  ;;  %v4400_v45 = vpop.xlane.xlu0 %4399 }
 0x5a1   :  { %v3477_v30 = vmax.f32 %v3475_v23, %v3476_v62  ;;  %v4421_v13 = vrot.slane %v4413_v55, 4  ;;  %v4414_v6 = vadd.f32 %v4400_v45, %v11240_v9  ;;  %v11245_v62 = vld [vmem:[#allocation30_spill] sm:$0xff]  ;;  %v11246_v45 = vld [vmem:[#allocation31_spill] sm:$0xff] }
 0x5a2   :  { %v3527_v53 = vadd.f32 %v3526_v36, %v3525_v28  ;;  %v3542_v31 = vrot.slane %v3541_v41, 2 }
 0x5a3   :  { %v3478_v12 = vrot.slane %v3477_v30, 1  ;;  %v4422_v21 = vmax.f32 %v4413_v55, %v4421_v13  ;;  %v4427_v49 = vrot.slane %v4414_v6, 4 }
 0x5a4   :  { %7713 = vrcp.f32 %v3527_v53  ;;  %v3543_v5 = vadd.f32 %v3542_v31, %v3541_v41  ;;  %v5377_v39 = vpop.xlane.xlu0 %5376 }
 0x5a5   :  { %v3479_v18 = vmax.f32 %v3477_v30, %v3478_v12  ;;  %v4423_v14 = vrot.slane %v4422_v21, 2  ;;  %v4428_v25 = vmax.f32 %v4414_v6, %v4427_v49  ;;  %v10045_v46 = vadd.f32 %v5377_v39, %v11241_v44 }
 0x5a6   :  { %v3544_v47 = vrot.slane %v3543_v5, 1  ;;  %v5375_v20 = vpop.xlane.xlu1 %5374 }
 0x5a7   :  { %v3497_v17 = vsub.f32 %v3441_v34, %v3479_v18  ;;  %v4424_v33 = vmax.f32 %v4422_v21, %v4423_v14  ;;  %v4429_v22 = vrot.slane %v4428_v25, 2  ;;  %v10050_v51 = vadd.f32 %v5375_v20, %v11242_v61  ;;  %v11247_v14 = vld [vmem:[#allocation32_spill] sm:$0xff] }
 0x5a8   :  { %v10047_v52 = vadd.f32 %v3544_v47, %v3543_v5  ;;  %v5404_v11 = vrot.slane %v10045_v46, 4 }
 0x5a9   :  { %v3510_v43 = vmul.f32 1.442695, %v3497_v17  ;;  %v4425_v2 = vrot.slane %v4424_v33, 1  ;;  %v7712_v7 = vpop.eup %7711  ;;  %v4430_v19 = vmax.f32 %v4428_v25, %v4429_v22  ;;  %v5398_v24 = vrot.slane %v10050_v51, 4 }
 0x5aa   :  { %v6354_v37 = vpop.xlane.xlu0 %6353  ;;  %7715 = vrcp.f32 %v10047_v52  ;;  %v5405_v8 = vmax.f32 %v10045_v46, %v5404_v11  ;;  %v3572_v40 = vmul.f32 %v7712_v7, %v3521_v26 }
 0x5ab   :  { %v4426_v1 = vmax.f32 %v4424_v33, %v4425_v2  ;;  %7717 = vpow2.f32 %v3510_v43  ;;  %v10057_v58 = vadd.f32 %v6354_v37, %v11243_v63  ;;  %v4431_v10 = vrot.slane %v4430_v19, 1  ;;  %v11248_v43 = vld [vmem:[#allocation33_spill] sm:$0xff] }
 0x5ac   :  { %v6352_v0 = vpop.xlane.xlu1 %6351  ;;  %v5399_v3 = vmax.f32 %v10050_v51, %v5398_v24  ;;  %v5406_v38 = vrot.slane %v5405_v8, 2  ;;  %v3580_v50 = vsub.f32 2.0, %v3572_v40 }
 0x5ad   :  { %v4469_v42 = vsub.f32 %v4413_v55, %v4426_v1  ;;  %v10063_v16 = vadd.f32 %v6352_v0, %v11244_v15  ;;  %v6381_v34 = vrot.slane %v10057_v58, 4  ;;  %v4432_v57 = vmax.f32 %v4430_v19, %v4431_v10 }
 0x5ae   :  { %v10059_v60 = vpop.eup %7713  ;;  %v5383_v59 = vpop.xlane.xlu0 %5382  ;;  %v5400_v23 = vrot.slane %v5399_v3, 2  ;;  %v5407_v54 = vmax.f32 %v5405_v8, %v5406_v38  ;;  %v10074_v55 = vmul.f32 %v7712_v7, %v3580_v50 }
 0x5af   :  { %v10067_v4 = vmul.f32 %v10059_v60, %v3527_v53  ;;  %v4477_v35 = vmul.f32 1.442695, %v4469_v42  ;;  %v6375_v28 = vrot.slane %v10063_v16, 4  ;;  %v6382_v26 = vmax.f32 %v10057_v58, %v6381_v34 }
 0x5b0   :  { %v4406_v48 = vpop.xlane.xlu1 %4405  ;;  %v10072_v32 = vadd.f32 %v5383_v59, %v11245_v62  ;;  %v4470_v36 = vsub.f32 %v4414_v6, %v4432_v57  ;;  %v5401_v41 = vmax.f32 %v5399_v3, %v5400_v23  ;;  %v5408_v13 = vrot.slane %v5407_v54, 1  ;;  %v11249_v62 = vld [vmem:[#allocation35_spill] sm:$0xff] }
 0x5b1   :  { %7719 = vpow2.f32 %v4477_v35  ;;  %v6376_v30 = vmax.f32 %v10063_v16, %v6375_v28  ;;  %v6383_v53 = vrot.slane %v6382_v26, 2  ;;  %v10078_v31 = vadd.f32 %v4406_v48, %v11246_v45 }
 0x5b2   :  { %v5422_v12 = vrot.slane %v10072_v32, 4  ;;  %v4408_v21 = vpop.xlane.xlu0 %4407  ;;  %v4479_v9 = vmul.f32 1.442695, %v4470_v36  ;;  %v5402_v5 = vrot.slane %v5401_v41, 1  ;;  %v5409_v39 = vmax.f32 %v5407_v54, %v5408_v13 }
 0x5b3   :  { %v6377_v18 = vrot.slane %v6376_v30, 2  ;;  %v10082_v49 = vadd.f32 %v4408_v21, %v11247_v14  ;;  %v6384_v47 = vmax.f32 %v6382_v26, %v6383_v53  ;;  %v4445_v6 = vrot.slane %v10078_v31, 4 }
 0x5b4   :  { %v5423_v17 = vmax.f32 %v10072_v32, %v5422_v12  ;;  %v6360_v33 = vpop.xlane.xlu1 %6359  ;;  %v10086_v25 = vpop.eup %7715  ;;  %7721 = vpow2.f32 %v4479_v9  ;;  %v5403_v44 = vmax.f32 %v5401_v41, %v5402_v5  ;;  %v5447_v61 = vsub.f32 %v10045_v46, %v5409_v39 }
 0x5b5   :  { %v6378_v20 = vmax.f32 %v6376_v30, %v6377_v18  ;;  %v10089_v2 = vadd.f32 %v6360_v33, %v11248_v43  ;;  %v10091_v22 = vpop.eup %7717  ;;  %v6385_v7 = vrot.slane %v6384_v47, 1  ;;  %v4446_v11 = vmax.f32 %v10078_v31, %v4445_v6 }
 0x5b6   :  { %v5424_v37 = vrot.slane %v5423_v17, 2  ;;  %v5446_v1 = vsub.f32 %v10050_v51, %v5403_v44  ;;  %v4451_v8 = vrot.slane %v10082_v49, 4  ;;  %v5456_v0 = vmul.f32 1.442695, %v5447_v61  ;;  %v6362_v50 = vpop.xlane.xlu0 %6361 }
 0x5b7   :  { %v6379_v19 = vrot.slane %v6378_v20, 1  ;;  %v6399_v24 = vrot.slane %v10089_v2, 4  ;;  %v6386_v63 = vmax.f32 %v6384_v47, %v6385_v7  ;;  %v4447_v40 = vrot.slane %v4446_v11, 2 }
 0x5b8   :  { %v5425_v42 = vmax.f32 %v5423_v17, %v5424_v37  ;;  %v5454_v10 = vmul.f32 1.442695, %v5446_v1  ;;  %v4452_v46 = vmax.f32 %v10082_v49, %v4451_v8  ;;  %7723 = vpow2.f32 %v5456_v0  ;;  %v11251_v17 = vld [vmem:[#allocation34_spill] sm:$0xff] }
 0x5b9   :  { %v6380_v3 = vmax.f32 %v6378_v20, %v6379_v19  ;;  %v6400_v15 = vmax.f32 %v10089_v2, %v6399_v24  ;;  %v6424_v34 = vsub.f32 %v10057_v58, %v6386_v63  ;;  %v4448_v51 = vmax.f32 %v4446_v11, %v4447_v40  ;;  %v11250_v58 = vld [vmem:[#allocation37_spill] sm:$0xff]  ;;  %v11252_v24 = vld [vmem:[#allocation39_spill] sm:$0xff] }
 0x5ba   :  { %v5385_v38 = vpop.xlane.xlu1 %5384  ;;  %v5426_v59 = vrot.slane %v5425_v42, 1  ;;  %7725 = vpow2.f32 %v5454_v10  ;;  %v4453_v28 = vrot.slane %v4452_v46, 2  ;;  %v10108_v53 = vadd.f32 %v6362_v50, %v11250_v58 }
 0x5bb   :  { %v10101_v35 = vpop.eup %7719  ;;  %v6423_v57 = vsub.f32 %v10063_v16, %v6380_v3  ;;  %v6401_v23 = vrot.slane %v6400_v15, 2  ;;  %v6433_v54 = vmul.f32 1.442695, %v6424_v34  ;;  %v4449_v26 = vrot.slane %v4448_v51, 1 }
 0x5bc   :  { %v5427_v48 = vmax.f32 %v5425_v42, %v5426_v59  ;;  %v10105_v36 = vadd.f32 %v5385_v38, %v11249_v62  ;;  %v4454_v13 = vmax.f32 %v4452_v46, %v4453_v28  ;;  %v6405_v14 = vrot.slane %v10108_v53, 4 }
 0x5bd   :  { %v6431_v41 = vmul.f32 1.442695, %v6423_v57  ;;  %v6402_v30 = vmax.f32 %v6400_v15, %v6401_v23  ;;  %7727 = vpow2.f32 %v6433_v54  ;;  %v4450_v45 = vmax.f32 %v4448_v51, %v4449_v26  ;;  %v11254_v57 = vld [vmem:[#allocation36_spill] sm:$0xff] }
 0x5be   :  { %v5450_v12 = vsub.f32 %v10072_v32, %v5427_v48  ;;  %v5428_v16 = vrot.slane %v10105_v36, 4  ;;  %v3425_v21 = vpop.xlane.xlu1 %3424  ;;  %v10112_v9 = vpop.eup %7721  ;;  %v4455_v18 = vrot.slane %v4454_v13, 1  ;;  %v6406_v20 = vmax.f32 %v10108_v53, %v6405_v14 }
 0x5bf   :  { %7729 = vpow2.f32 %v6431_v41  ;;  %v6403_v5 = vrot.slane %v6402_v30, 1  ;;  %v4473_v39 = vsub.f32 %v10078_v31, %v4450_v45  ;;  %v10118_v33 = vadd.f32 %v3425_v21, %v11251_v17 }
 0x5c0   :  { %v5462_v47 = vmul.f32 1.442695, %v5450_v12  ;;  %v5429_v6 = vmax.f32 %v10105_v36, %v5428_v16  ;;  %v4456_v32 = vmax.f32 %v4454_v13, %v4455_v18  ;;  %v3596_v43 = vmul.f32 %v10029_v56, %v10074_v55  ;;  %v11255_v18 = vld [vmem:[#allocation38_spill] sm:$0xff] }
 0x5c1   :  { %v6404_v44 = vmax.f32 %v6402_v30, %v6403_v5  ;;  %v4485_v61 = vmul.f32 1.442695, %v4473_v39  ;;  %v3456_v11 = vrot.slane %v10118_v33, 4  ;;  %v6407_v19 = vrot.slane %v6406_v20, 2 }
 0x5c2   :  { %7731 = vpow2.f32 %v5462_v47  ;;  %v5430_v7 = vrot.slane %v5429_v6, 2  ;;  %v3433_v37 = vpop.xlane.xlu1 %3432  ;;  %v4474_v1 = vsub.f32 %v10082_v49, %v4456_v32  ;;  %v10129_v0 = vpop.eup %7723  ;;  %v3604_v40 = vsel %vm2796_vm7, 0.0, %v3596_v43 }
 0x5c3   :  { %v6427_v31 = vsub.f32 %v10089_v2, %v6404_v44  ;;  %v10127_v8 = vadd.f32 %v3433_v37, %v11252_v24  ;;  %7733 = vpow2.f32 %v4485_v61  ;;  %v3457_v56 = vmax.f32 %v10118_v33, %v3456_v11  ;;  %3614 = vperm.xlu1 %7310, %v3604_v40  }
 0x5c4   :  { %v5431_v63 = vmax.f32 %v5429_v6, %v5430_v7  ;;  %v10134_v42 = vpop.eup %7725  ;;  %v4487_v3 = vmul.f32 1.442695, %v4474_v1  ;;  %v6408_v2 = vmax.f32 %v6406_v20, %v6407_v19  ;;  %v3581_v34 = vsub.f32 2.0, %v10067_v4 }
 0x5c5   :  { %v6439_v10 = vmul.f32 1.442695, %v6427_v31  ;;  %v3480_v49 = vrot.slane %v10127_v8, 4  ;;  %v3458_v46 = vrot.slane %v3457_v56, 2  ;;  %v3427_v38 = vpop.xlane.xlu0 %3426  ;;  %v3576_v51 = vmul.f32 %v10086_v25, %v10047_v52 }
 0x5c6   :  { %v5432_v15 = vrot.slane %v5431_v63, 1  ;;  %v6409_v59 = vrot.slane %v6408_v2, 1  ;;  %v10142_v23 = vadd.f32 %v3427_v38, %v11254_v57  ;;  %v3589_v48 = vmul.f32 %v10059_v60, %v3581_v34  ;;  %v11259_v38 = vld [vmem:[#allocation42_spill] sm:$0xff] }
 0x5c7   :  { %7735 = vpow2.f32 %v6439_v10  ;;  %v3481_v50 = vmax.f32 %v10127_v8, %v3480_v49  ;;  %v10144_v28 = vpop.eup %7727  ;;  %v3459_v26 = vmax.f32 %v3457_v56, %v3458_v46  ;;  %v3584_v30 = vsub.f32 2.0, %v3576_v51  ;;  %v11258_v49 = vld [vmem:[#allocation40_spill] sm:$0xff] }
 0x5c8   :  { %7737 = vpow2.f32 %v4487_v3  ;;  %v5433_v54 = vmax.f32 %v5431_v63, %v5432_v15  ;;  %v6410_v4 = vmax.f32 %v6408_v2, %v6409_v59  ;;  %v3462_v52 = vrot.slane %v10142_v23, 4 }
 0x5c9   :  { %v10147_v62 = vpop.eup %7729  ;;  %v3482_v41 = vrot.slane %v3481_v50, 2  ;;  %v3460_v58 = vrot.slane %v3459_v26, 1  ;;  %v3435_v45 = vpop.xlane.xlu0 %3434  ;;  %v3597_v12 = vmul.f32 %v10032_v27, %v3589_v48  ;;  %v3546_v16 = vrot.slane %v10091_v22, 4 }
 0x5ca   :  { %v5451_v13 = vsub.f32 %v10105_v36, %v5433_v54  ;;  %v6428_v21 = vsub.f32 %v10108_v53, %v6410_v4  ;;  %v3463_v60 = vmax.f32 %v10142_v23, %v3462_v52  ;;  %v10156_v14 = vadd.f32 %v3435_v45, %v11255_v18 }
 0x5cb   :  { %v3483_v5 = vmax.f32 %v3481_v50, %v3482_v41  ;;  %v3461_v6 = vmax.f32 %v3459_v26, %v3460_v58  ;;  %v3605_v36 = vsel %vm2797_vm8, 0.0, %v3597_v12  ;;  %v3592_v44 = vmul.f32 %v10086_v25, %v3584_v30 }
 0x5cc   :  { %v10158_v39 = vpop.eup %7731  ;;  %v5464_v47 = vmul.f32 1.442695, %v5451_v13  ;;  %v6441_v27 = vmul.f32 1.442695, %v6428_v21  ;;  %v3464_v20 = vrot.slane %v3463_v60, 2  ;;  %v3486_v53 = vrot.slane %v10156_v14, 4  ;;  %3619 = vperm.xlu0 %7299, %v3605_v36  }
 0x5cd   :  { %v3484_v32 = vrot.slane %v3483_v5, 1  ;;  %v10164_v43 = vpop.eup %7733  ;;  %v3494_v61 = vsub.f32 %v10118_v33, %v3461_v6  ;;  %v3600_v7 = vmul.f32 %v10038_v29, %v3592_v44  ;;  %v3547_v11 = vadd.f32 %v10091_v22, %v3546_v16  ;;  %v11260_v16 = vld [vmem:[#allocation41_spill] sm:$0xff] }
 0x5ce   :  { %7739 = vpow2.f32 %v5464_v47  ;;  %v3465_v31 = vmax.f32 %v3463_v60, %v3464_v20  ;;  %v3487_v25 = vmax.f32 %v10156_v14, %v3486_v53  ;;  %v4499_v10 = vrot.slane %v10112_v9, 4 }
 0x5cf   :  { %7741 = vpow2.f32 %v6441_v27  ;;  %v3485_v37 = vmax.f32 %v3483_v5, %v3484_v32  ;;  %v3504_v1 = vmul.f32 1.442695, %v3494_v61  ;;  %v4402_v19 = vpop.xlane.xlu1 %4401  ;;  %v5379_v24 = vpop.xlane.xlu0 %5378  ;;  %v3608_v56 = vsel %vm2800_vm9, 0.0, %v3600_v7  ;;  %v11261_v5 = vld [vmem:[#allocation44_spill] sm:$0xff] }
 0x5d0   :  { %v3548_v40 = vrot.slane %v3547_v11, 2  ;;  %v3466_v33 = vrot.slane %v3465_v31, 1  ;;  %v3488_v2 = vrot.slane %v3487_v25, 2  ;;  %v10177_v15 = vadd.f32 %v4402_v19, %v11258_v49  ;;  %3634 = vperm.xlu1 %7310, %v3608_v56   ;;  %v11263_v56 = vld [vmem:[#allocation46_spill] sm:$0xff] }
 0x5d1   :  { %v10173_v3 = vpop.eup %7735  ;;  %v3498_v29 = vsub.f32 %v10127_v8, %v3485_v37  ;;  %7743 = vpow2.f32 %v3504_v1  ;;  %v10182_v34 = vadd.f32 %v5379_v24, %v11259_v38  ;;  %v4500_v59 = vadd.f32 %v10112_v9, %v4499_v10 }
 0x5d2   :  { %v10179_v46 = vpop.eup %7737  ;;  %v3549_v51 = vadd.f32 %v3548_v40, %v3547_v11  ;;  %v3467_v57 = vmax.f32 %v3465_v31, %v3466_v33  ;;  %v3489_v54 = vmax.f32 %v3487_v25, %v3488_v2  ;;  %v4433_v8 = vrot.slane %v10177_v15, 4  ;;  %v11262_v31 = vld [vmem:[#allocation43_spill] sm:$0xff] }
 0x5d3   :  { %v3512_v50 = vmul.f32 1.442695, %v3498_v29  ;;  %v5410_v26 = vrot.slane %v10182_v34, 4  ;;  %v6356_v48 = vpop.xlane.xlu1 %6355  ;;  %v4404_v4 = vpop.xlane.xlu0 %4403  ;;  %v4501_v52 = vrot.slane %v4500_v59, 2  ;;  %v4493_v30 = vrot.slane %v10101_v35, 4 }
 0x5d4   :  { %v3550_v41 = vrot.slane %v3549_v51, 1  ;;  %v3495_v13 = vsub.f32 %v10142_v23, %v3467_v57  ;;  %v3490_v58 = vrot.slane %v3489_v54, 1  ;;  %v4434_v45 = vmax.f32 %v10177_v15, %v4433_v8  ;;  %v11264_v8 = vld [vmem:[#allocation48_spill] sm:$0xff] }
 0x5d5   :  { %7745 = vpow2.f32 %v3512_v50  ;;  %v5411_v12 = vmax.f32 %v10182_v34, %v5410_v26  ;;  %v10192_v21 = vadd.f32 %v6356_v48, %v11260_v16  ;;  %v10195_v60 = vadd.f32 %v4404_v4, %v11261_v5  ;;  %v11265_v16 = vld [vmem:[#allocation45_spill] sm:$0xff] }
 0x5d6   :  { %v10197_v18 = vadd.f32 %v3550_v41, %v3549_v51  ;;  %v3506_v47 = vmul.f32 1.442695, %v3495_v13  ;;  %v3491_v6 = vmax.f32 %v3489_v54, %v3490_v58  ;;  %v4435_v36 = vrot.slane %v4434_v45, 2 }
 0x5d7   :  { %v10199_v44 = vadd.f32 %v4501_v52, %v4500_v59  ;;  %v5412_v23 = vrot.slane %v5411_v12, 2  ;;  %v6387_v32 = vrot.slane %v10192_v21, 4  ;;  %v4439_v20 = vrot.slane %v10195_v60, 4  ;;  %v6358_v61 = vpop.xlane.xlu0 %6357 }
 0x5d8   :  { %v10201_v27 = vpop.eup %7739  ;;  %v5381_v53 = vpop.xlane.xlu1 %5380  ;;  %7747 = vrcp.f32 %v10197_v18  ;;  %v3499_v11 = vsub.f32 %v10156_v14, %v3491_v6  ;;  %v4436_v37 = vmax.f32 %v4434_v45, %v4435_v36  ;;  %v10215_v40 = vadd.f32 %v6358_v61, %v11263_v56 }
 0x5d9   :  { %v10206_v7 = vpop.eup %7741  ;;  %7749 = vpow2.f32 %v3506_v47  ;;  %v10210_v25 = vadd.f32 %v5381_v53, %v11262_v31  ;;  %v5413_v1 = vmax.f32 %v5411_v12, %v5412_v23  ;;  %v6388_v19 = vmax.f32 %v10192_v21, %v6387_v32 }
 0x5da   :  { %v4440_v24 = vmax.f32 %v10195_v60, %v4439_v20  ;;  %v3514_v10 = vmul.f32 1.442695, %v3499_v11  ;;  %v4437_v29 = vrot.slane %v4436_v37, 1  ;;  %v4503_v2 = vrot.slane %v10199_v44, 1 }
 0x5db   :  { %v5416_v33 = vrot.slane %v10210_v25, 4  ;;  %v10219_v49 = vpop.eup %7743  ;;  %v5414_v14 = vrot.slane %v5413_v1, 1  ;;  %v6389_v38 = vrot.slane %v6388_v19, 2  ;;  %v6393_v59 = vrot.slane %v10215_v40, 4  ;;  %v5387_v50 = vpop.xlane.xlu0 %5386 }
 0x5dc   :  { %v4441_v51 = vrot.slane %v4440_v24, 2  ;;  %7751 = vpow2.f32 %v3514_v10  ;;  %v4438_v57 = vmax.f32 %v4436_v37, %v4437_v29  ;;  %v10224_v26 = vadd.f32 %v5387_v50, %v11264_v8 }
 0x5dd   :  { %v5417_v54 = vmax.f32 %v10210_v25, %v5416_v33  ;;  %v5415_v48 = vmax.f32 %v5413_v1, %v5414_v14  ;;  %v6390_v4 = vmax.f32 %v6388_v19, %v6389_v38  ;;  %v6394_v52 = vmax.f32 %v10215_v40, %v6393_v59  ;;  %v4410_v13 = vpop.xlane.xlu1 %4409 }
 0x5de   :  { %v4442_v41 = vmax.f32 %v4440_v24, %v4441_v51  ;;  %v4471_v45 = vsub.f32 %v10177_v15, %v4438_v57  ;;  %v10231_v5 = vadd.f32 %v4410_v13, %v11265_v16  ;;  %v5434_v47 = vrot.slane %v10224_v26, 4 }
 0x5df   :  { %v10227_v58 = vpop.eup %7745  ;;  %v5418_v12 = vrot.slane %v5417_v54, 2  ;;  %v5448_v6 = vsub.f32 %v10182_v34, %v5415_v48  ;;  %v6391_v36 = vrot.slane %v6390_v4, 1  ;;  %v6395_v32 = vrot.slane %v6394_v52, 2 }
 0x5e0   :  { %v4443_v23 = vrot.slane %v4442_v41, 1  ;;  %v4481_v20 = vmul.f32 1.442695, %v4471_v45  ;;  %v4457_v61 = vrot.slane %v10231_v5, 4  ;;  %v5435_v11 = vmax.f32 %v10224_v26, %v5434_v47 }
 0x5e1   :  { %v5419_v53 = vmax.f32 %v5417_v54, %v5418_v12  ;;  %v4412_v37 = vpop.xlane.xlu0 %4411  ;;  %v5458_v15 = vmul.f32 1.442695, %v5448_v6  ;;  %v6392_v1 = vmax.f32 %v6390_v4, %v6391_v36  ;;  %v6396_v24 = vmax.f32 %v6394_v52, %v6395_v32  ;;  %v11266_v54 = vld [vmem:[#allocation50_spill] sm:$0xff]  ;;  %v11267_v52 = vld [vmem:[#allocation47_spill] sm:$0xff] }
 0x5e2   :  { %v10237_v31 = vpop.eup %7747  ;;  %v4444_v19 = vmax.f32 %v4442_v41, %v4443_v23  ;;  %7753 = vpow2.f32 %v4481_v20  ;;  %v4458_v10 = vmax.f32 %v10231_v5, %v4457_v61  ;;  %v5436_v29 = vrot.slane %v5435_v11, 2  ;;  %v11268_v23 = vld [vmem:[#allocation51_spill] sm:$0xff] }
 0x5e3   :  { %v10239_v56 = vpop.eup %7749  ;;  %v5420_v34 = vrot.slane %v5419_v53, 1  ;;  %7755 = vpow2.f32 %v5458_v15  ;;  %v6425_v33 = vsub.f32 %v10192_v21, %v6392_v1  ;;  %v6397_v38 = vrot.slane %v6396_v24, 1  ;;  %v11269_v1 = vld [vmem:[#allocation49_spill] sm:$0xff] }
 0x5e4   :  { %v4472_v14 = vsub.f32 %v10195_v60, %v4444_v19  ;;  %v4459_v59 = vrot.slane %v4458_v10, 2  ;;  %v5437_v50 = vmax.f32 %v5435_v11, %v5436_v29  ;;  %v6364_v57 = vpop.xlane.xlu1 %6363  ;;  %v10245_v8 = vadd.f32 %v4412_v37, %v11266_v54 }
 0x5e5   :  { %v5421_v51 = vmax.f32 %v5419_v53, %v5420_v34  ;;  %v6435_v48 = vmul.f32 1.442695, %v6425_v33  ;;  %v6398_v41 = vmax.f32 %v6396_v24, %v6397_v38  ;;  %v10248_v13 = vadd.f32 %v6364_v57, %v11267_v52 }
 0x5e6   :  { %v4483_v4 = vmul.f32 1.442695, %v4472_v14  ;;  %v10250_v45 = vpop.eup %7751  ;;  %v4460_v12 = vmax.f32 %v4458_v10, %v4459_v59  ;;  %v5438_v60 = vrot.slane %v5437_v50, 1  ;;  %v4463_v16 = vrot.slane %v10245_v8, 4  ;;  %v6366_v47 = vpop.xlane.xlu0 %6365 }
 0x5e7   :  { %v5449_v21 = vsub.f32 %v10210_v25, %v5421_v51  ;;  %7757 = vpow2.f32 %v6435_v48  ;;  %v6426_v6 = vsub.f32 %v10215_v40, %v6398_v41  ;;  %v6411_v36 = vrot.slane %v10248_v13, 4 }
 0x5e8   :  { %v10257_v32 = vadd.f32 %v6366_v47, %v11268_v23  ;;  %7759 = vpow2.f32 %v4483_v4  ;;  %v4461_v53 = vrot.slane %v4460_v12, 1  ;;  %v5439_v61 = vmax.f32 %v5437_v50, %v5438_v60 }
 0x5e9   :  { %v5460_v20 = vmul.f32 1.442695, %v5449_v21  ;;  %v5389_v11 = vpop.xlane.xlu1 %5388  ;;  %v6437_v37 = vmul.f32 1.442695, %v6426_v6  ;;  %v6412_v25 = vmax.f32 %v10248_v13, %v6411_v36  ;;  %v4464_v15 = vmax.f32 %v10245_v8, %v4463_v16 }
 0x5ea   :  { %v10262_v19 = vadd.f32 %v5389_v11, %v11269_v1  ;;  %v4462_v40 = vmax.f32 %v4460_v12, %v4461_v53  ;;  %v5452_v24 = vsub.f32 %v10224_v26, %v5439_v61  ;;  %v6417_v34 = vrot.slane %v10257_v32, 4 }
 0x5eb   :  { %7761 = vpow2.f32 %v5460_v20  ;;  %v6413_v10 = vrot.slane %v6412_v25, 2  ;;  %v4465_v29 = vrot.slane %v4464_v15, 2  ;;  %v3577_v50 = vmul.f32 %v10237_v31, %v10197_v18 }
 0x5ec   :  { %7763 = vpow2.f32 %v6437_v37  ;;  %v5440_v33 = vrot.slane %v10262_v19, 4  ;;  %v10267_v14 = vpop.eup %7753  ;;  %v4475_v38 = vsub.f32 %v10231_v5, %v4462_v40  ;;  %v5466_v51 = vmul.f32 1.442695, %v5452_v24 }
 0x5ed   :  { %v6418_v59 = vmax.f32 %v10257_v32, %v6417_v34  ;;  %v10273_v57 = vpop.eup %7755  ;;  %v6414_v26 = vmax.f32 %v6412_v25, %v6413_v10  ;;  %v4466_v54 = vmax.f32 %v4464_v15, %v4465_v29  ;;  %v4504_v4 = vadd.f32 %v4503_v2, %v10199_v44 }
 0x5ee   :  { %v5441_v48 = vmax.f32 %v10262_v19, %v5440_v33  ;;  %v4489_v41 = vmul.f32 1.442695, %v4475_v38  ;;  %7765 = vpow2.f32 %v5466_v51  ;;  %v3585_v5 = vsub.f32 2.0, %v3577_v50 }
 0x5ef   :  { %v6419_v52 = vrot.slane %v6418_v59, 2  ;;  %v6415_v21 = vrot.slane %v6414_v26, 1  ;;  %v4467_v12 = vrot.slane %v4466_v54, 1  ;;  %7767 = vrcp.f32 %v4504_v4 }
 0x5f0   :  { %v5442_v60 = vrot.slane %v5441_v48, 2  ;;  %7769 = vpow2.f32 %v4489_v41  ;;  %v3593_v16 = vmul.f32 %v10237_v31, %v3585_v5  ;;  %v4494_v47 = vadd.f32 %v10101_v35, %v4493_v30 }
 0x5f1   :  { %v6420_v18 = vmax.f32 %v6418_v59, %v6419_v52  ;;  %v10283_v6 = vpop.eup %7757  ;;  %v6416_v36 = vmax.f32 %v6414_v26, %v6415_v21  ;;  %v4468_v44 = vmax.f32 %v4466_v54, %v4467_v12  ;;  %v4517_v23 = vrot.slane %v10164_v43, 4 }
 0x5f2   :  { %v5443_v2 = vmax.f32 %v5441_v48, %v5442_v60  ;;  %v10286_v20 = vpop.eup %7759  ;;  %v3601_v61 = vmul.f32 %v10091_v22, %v3593_v16  ;;  %v4495_v11 = vrot.slane %v4494_v47, 2  ;;  %v5476_v37 = vrot.slane %v10129_v0, 4 }
 0x5f3   :  { %v6421_v53 = vrot.slane %v6420_v18, 1  ;;  %v6429_v31 = vsub.f32 %v10248_v13, %v6416_v36  ;;  %v4476_v25 = vsub.f32 %v10245_v8, %v4468_v44  ;;  %v4518_v15 = vadd.f32 %v10164_v43, %v4517_v23 }
 0x5f4   :  { %v5444_v30 = vrot.slane %v5443_v2, 1  ;;  %v3609_v34 = vsel %vm2801_vm10, 0.0, %v3601_v61  ;;  %v4496_v10 = vadd.f32 %v4495_v11, %v4494_v47  ;;  %v5477_v29 = vadd.f32 %v10129_v0, %v5476_v37 }
 0x5f5   :  { %v10293_v1 = vpop.eup %7761  ;;  %v6422_v40 = vmax.f32 %v6420_v18, %v6421_v53  ;;  %v6443_v33 = vmul.f32 1.442695, %v6429_v31  ;;  %v4491_v38 = vmul.f32 1.442695, %v4476_v25  ;;  %3639 = vperm.xlu1 %7310, %v3609_v34   ;;  %v4519_v13 = vrot.slane %v4518_v15, 2 }
 0x5f6   :  { %v10298_v22 = vpop.eup %7763  ;;  %v5445_v51 = vmax.f32 %v5443_v2, %v5444_v30  ;;  %v4497_v59 = vrot.slane %v4496_v10, 1  ;;  %v5478_v50 = vrot.slane %v5477_v29, 2  ;;  %v4523_v26 = vrot.slane %v10179_v46, 4 }
 0x5f7   :  { %v6430_v8 = vsub.f32 %v10257_v32, %v6422_v40  ;;  %7771 = vpow2.f32 %v6443_v33  ;;  %v4520_v48 = vadd.f32 %v4519_v13, %v4518_v15  ;;  %v5494_v41 = vrot.slane %v10158_v39, 4 }
 0x5f8   :  { %v5453_v54 = vsub.f32 %v10262_v19, %v5445_v51  ;;  %v10304_v52 = vpop.eup %7765  ;;  %7773 = vpow2.f32 %v4491_v38  ;;  %v10306_v21 = vadd.f32 %v4497_v59, %v4496_v10  ;;  %v5479_v12 = vadd.f32 %v5478_v50, %v5477_v29 }
 0x5f9   :  { %v6445_v5 = vmul.f32 1.442695, %v6430_v8  ;;  %v7768_v60 = vpop.eup %7767  ;;  %v4521_v32 = vrot.slane %v4520_v48, 1  ;;  %v4524_v16 = vadd.f32 %v10179_v46, %v4523_v26  ;;  %v5495_v47 = vadd.f32 %v10158_v39, %v5494_v41 }
 0x5fa   :  { %v5468_v18 = vmul.f32 1.442695, %v5453_v54  ;;  %v10310_v36 = vpop.eup %7769  ;;  %v4550_v19 = vmul.f32 %v7768_v60, %v4504_v4  ;;  %v5480_v44 = vrot.slane %v5479_v12, 1  ;;  %v5470_v2 = vrot.slane %v10134_v42, 4 }
 0x5fb   :  { %7775 = vpow2.f32 %v6445_v5  ;;  %v4522_v23 = vadd.f32 %v4521_v32, %v4520_v48  ;;  %v4525_v53 = vrot.slane %v4524_v16, 2  ;;  %v5496_v61 = vrot.slane %v5495_v47, 2 }
 0x5fc   :  { %7777 = vpow2.f32 %v5468_v18  ;;  %v4558_v11 = vsub.f32 2.0, %v4550_v19  ;;  %v5481_v37 = vadd.f32 %v5480_v44, %v5479_v12  ;;  %v5471_v31 = vadd.f32 %v10134_v42, %v5470_v2 }
 0x5fd   :  { %7779 = vrcp.f32 %v10306_v21  ;;  %v4526_v25 = vadd.f32 %v4525_v53, %v4524_v16  ;;  %v5497_v30 = vadd.f32 %v5496_v61, %v5495_v47  ;;  %v5500_v15 = vrot.slane %v10201_v27, 4 }
 0x5fe   :  { %7781 = vrcp.f32 %v4522_v23  ;;  %v4566_v40 = vmul.f32 %v7768_v60, %v4558_v11  ;;  %v5472_v4 = vrot.slane %v5471_v31, 2  ;;  %v6447_v34 = vrot.slane %v10147_v62, 4 }
 0x5ff   :  { %7783 = vrcp.f32 %v5481_v37  ;;  %v4527_v10 = vrot.slane %v4526_v25, 1  ;;  %v5498_v29 = vrot.slane %v5497_v30, 1  ;;  %v5501_v33 = vadd.f32 %v10201_v27, %v5500_v15 }
 0x600   :  { %v6453_v38 = vrot.slane %v10144_v28, 4  ;;  %v4574_v51 = vmul.f32 %v10112_v9, %v4566_v40  ;;  %v5473_v13 = vadd.f32 %v5472_v4, %v5471_v31  ;;  %v6448_v8 = vadd.f32 %v10147_v62, %v6447_v34 }
 0x601   :  { %v3534_v59 = vrot.slane %v10239_v56, 4  ;;  %v10322_v50 = vpop.eup %7771  ;;  %v4528_v26 = vadd.f32 %v4527_v10, %v4526_v25  ;;  %v10324_v54 = vadd.f32 %v5498_v29, %v5497_v30  ;;  %v5502_v48 = vrot.slane %v5501_v33, 2 }
 0x602   :  { %v6454_v41 = vadd.f32 %v10144_v28, %v6453_v38  ;;  %v10327_v5 = vpop.eup %7773  ;;  %v4582_v12 = vsel %vm2797_vm8, 0.0, %v4574_v51  ;;  %v5474_v60 = vrot.slane %v5473_v13, 1  ;;  %v6449_v9 = vrot.slane %v6448_v8, 2 }
 0x603   :  { %v3535_v18 = vadd.f32 %v10239_v56, %v3534_v59  ;;  %4596 = vperm.xlu0 %7299, %v4582_v12   ;;  %7785 = vrcp.f32 %v4528_v26  ;;  %v5503_v32 = vadd.f32 %v5502_v48, %v5501_v33  ;;  %v6471_v47 = vrot.slane %v10173_v3, 4 }
 0x604   :  { %v6455_v16 = vrot.slane %v6454_v41, 2  ;;  %7787 = vrcp.f32 %v10324_v54  ;;  %v5475_v44 = vadd.f32 %v5474_v60, %v5473_v13  ;;  %v6450_v2 = vadd.f32 %v6449_v9, %v6448_v8 }
 0x605   :  { %v10333_v19 = vpop.eup %7775  ;;  %v3536_v53 = vrot.slane %v3535_v18, 2  ;;  %v5504_v11 = vrot.slane %v5503_v32, 1  ;;  %v6472_v25 = vadd.f32 %v10173_v3, %v6471_v47  ;;  %v3552_v30 = vrot.slane %v10227_v58, 4 }
 0x606   :  { %v10336_v61 = vpop.eup %7777  ;;  %v6456_v31 = vadd.f32 %v6455_v16, %v6454_v41  ;;  %7789 = vrcp.f32 %v5475_v44  ;;  %v6451_v40 = vrot.slane %v6450_v2, 1  ;;  %v6477_v34 = vrot.slane %v10206_v7, 4 }
 0x607   :  { %v7780_v15 = vpop.eup %7779  ;;  %v3537_v4 = vadd.f32 %v3536_v53, %v3535_v18  ;;  %v5505_v33 = vadd.f32 %v5504_v11, %v5503_v32  ;;  %v6473_v51 = vrot.slane %v6472_v25, 2  ;;  %v3553_v41 = vadd.f32 %v10227_v58, %v3552_v30 }
 0x608   :  { %v7782_v10 = vpop.eup %7781  ;;  %v4549_v29 = vmul.f32 %v7780_v15, %v10306_v21  ;;  %v6457_v38 = vrot.slane %v6456_v31, 1  ;;  %v6452_v59 = vadd.f32 %v6451_v40, %v6450_v2  ;;  %v6478_v2 = vadd.f32 %v10206_v7, %v6477_v34 }
 0x609   :  { %v7784_v13 = vpop.eup %7783  ;;  %v4553_v8 = vmul.f32 %v7782_v10, %v4522_v23  ;;  %v3538_v48 = vrot.slane %v3537_v4, 1  ;;  %7791 = vrcp.f32 %v5505_v33  ;;  %v6474_v47 = vadd.f32 %v6473_v51, %v6472_v25 }
 0x60a   :  { %v4557_v12 = vsub.f32 2.0, %v4549_v29  ;;  %v5527_v60 = vmul.f32 %v7784_v13, %v5481_v37  ;;  %v6458_v9 = vadd.f32 %v6457_v38, %v6456_v31  ;;  %7793 = vrcp.f32 %v6452_v59 }
 0x60b   :  { %v4561_v16 = vsub.f32 2.0, %v4553_v8  ;;  %v10343_v18 = vadd.f32 %v3538_v48, %v3537_v4  ;;  %v3554_v32 = vrot.slane %v3553_v41, 2  ;;  %v6475_v23 = vrot.slane %v6474_v47, 1 }
 0x60c   :  { %v4565_v53 = vmul.f32 %v7780_v15, %v4557_v12  ;;  %v5535_v21 = vsub.f32 2.0, %v5527_v60  ;;  %7795 = vrcp.f32 %v6458_v9  ;;  %v3528_v29 = vrot.slane %v10219_v49, 4 }
 0x60d   :  { %v4569_v11 = vmul.f32 %v7782_v10, %v4561_v16  ;;  %7797 = vrcp.f32 %v10343_v18  ;;  %v7786_v30 = vpop.eup %7785  ;;  %v3555_v31 = vadd.f32 %v3554_v32, %v3553_v41  ;;  %v10350_v38 = vadd.f32 %v6475_v23, %v6474_v47 }
 0x60e   :  { %v4573_v37 = vmul.f32 %v10101_v35, %v4565_v53  ;;  %v5543_v40 = vmul.f32 %v7784_v13, %v5535_v21  ;;  %v7788_v4 = vpop.eup %7787  ;;  %v4554_v15 = vmul.f32 %v7786_v30, %v4528_v26  ;;  %v6479_v51 = vrot.slane %v6478_v2, 2 }
 0x60f   :  { %v4577_v25 = vmul.f32 %v10164_v43, %v4569_v11  ;;  %v5530_v34 = vmul.f32 %v7788_v4, %v10324_v54  ;;  %v3556_v48 = vrot.slane %v3555_v31, 1  ;;  %7799 = vrcp.f32 %v10350_v38 }
 0x610   :  { %v4581_v10 = vsel %vm2796_vm7, 0.0, %v4573_v37  ;;  %v5551_v8 = vmul.f32 %v10129_v0, %v5543_v40  ;;  %v7790_v35 = vpop.eup %7789  ;;  %v4562_v41 = vsub.f32 2.0, %v4554_v15  ;;  %v6480_v43 = vadd.f32 %v6479_v51, %v6478_v2 }
 0x611   :  { %4591 = vperm.xlu1 %7310, %v4581_v10   ;;  %v4585_v13 = vsel %vm2800_vm9, 0.0, %v4577_v25  ;;  %v5538_v12 = vsub.f32 2.0, %v5530_v34  ;;  %v5526_v60 = vmul.f32 %v7790_v35, %v5475_v44  ;;  %v3557_v16 = vadd.f32 %v3556_v48, %v3555_v31 }
 0x612   :  { %4611 = vperm.xlu0 %7299, %v4585_v13   ;;  %v5559_v26 = vsel %vm2797_vm8, 0.0, %v5551_v8  ;;  %v4570_v0 = vmul.f32 %v7786_v30, %v4562_v41  ;;  %v6481_v47 = vrot.slane %v6480_v43, 1  ;;  %v3529_v54 = vadd.f32 %v10219_v49, %v3528_v29 }
 0x613   :  { %v3558_v53 = vrot.slane %v10250_v45, 4  ;;  %v7792_v21 = vpop.eup %7791  ;;  %v5546_v32 = vmul.f32 %v7788_v4, %v5538_v12  ;;  %v5534_v11 = vsub.f32 2.0, %v5526_v60  ;;  %7801 = vrcp.f32 %v3557_v16 }
 0x614   :  { %v4529_v23 = vrot.slane %v10310_v36, 4  ;;  %v7794_v2 = vpop.eup %7793  ;;  %v4578_v37 = vmul.f32 %v10179_v46, %v4570_v0  ;;  %v5531_v40 = vmul.f32 %v7792_v21, %v5505_v33  ;;  %v10365_v25 = vadd.f32 %v6481_v47, %v6480_v43 }
 0x615   :  { %v3530_v44 = vrot.slane %v3529_v54, 2  ;;  %v5554_v30 = vmul.f32 %v10158_v39, %v5546_v32  ;;  %v5542_v29 = vmul.f32 %v7790_v35, %v5534_v11  ;;  %v6503_v15 = vmul.f32 %v7794_v2, %v6452_v59 }
 0x616   :  { %v7796_v31 = vpop.eup %7795  ;;  %5573 = vperm.xlu0 %7299, %v5559_v26   ;;  %v3559_v51 = vadd.f32 %v10250_v45, %v3558_v53  ;;  %v4586_v10 = vsel %vm2801_vm10, 0.0, %v4578_v37  ;;  %v5539_v8 = vsub.f32 2.0, %v5531_v40  ;;  %7803 = vrcp.f32 %v10365_v25 }
 0x617   :  { %v7798_v4 = vpop.eup %7797  ;;  %v6504_v34 = vmul.f32 %v7796_v31, %v6458_v9  ;;  %4616 = vperm.xlu1 %7310, %v4586_v10   ;;  %v5562_v46 = vsel %vm2800_vm9, 0.0, %v5554_v30  ;;  %v5550_v33 = vmul.f32 %v10134_v42, %v5542_v29  ;;  %v6511_v48 = vsub.f32 2.0, %v6503_v15 }
 0x618   :  { %v3575_v39 = vmul.f32 %v7798_v4, %v10343_v18  ;;  %v5547_v59 = vmul.f32 %v7792_v21, %v5539_v8  ;;  %v3531_v13 = vadd.f32 %v3530_v44, %v3529_v54  ;;  %v3560_v41 = vrot.slane %v3559_v51, 2 }
 0x619   :  { %v6512_v35 = vsub.f32 2.0, %v6504_v34  ;;  %v5558_v43 = vsel %vm2796_vm7, 0.0, %v5550_v33  ;;  %v6519_v9 = vmul.f32 %v7794_v2, %v6511_v48  ;;  %v4530_v12 = vadd.f32 %v10310_v36, %v4529_v23  ;;  %v7800_v60 = vpop.eup %7799 }
 0x61a   :  { %5588 = vperm.xlu0 %7299, %v5562_v46   ;;  %v3583_v26 = vsub.f32 2.0, %v3575_v39  ;;  %v5555_v0 = vmul.f32 %v10201_v27, %v5547_v59  ;;  %v3532_v42 = vrot.slane %v3531_v13, 1  ;;  %v3561_v53 = vadd.f32 %v3560_v41, %v3559_v51 }
 0x61b   :  { %v6520_v47 = vmul.f32 %v7796_v31, %v6512_v35  ;;  %5568 = vperm.xlu1 %7310, %v5558_v43   ;;  %v6527_v18 = vmul.f32 %v10147_v62, %v6519_v9  ;;  %v6507_v54 = vmul.f32 %v7800_v60, %v10350_v38  ;;  %v4531_v32 = vrot.slane %v4530_v12, 2 }
 0x61c   :  { %v3591_v21 = vmul.f32 %v7798_v4, %v3583_v26  ;;  %v5563_v11 = vsel %vm2801_vm10, 0.0, %v5555_v0  ;;  %v3533_v37 = vadd.f32 %v3532_v42, %v3531_v13  ;;  %v3562_v23 = vrot.slane %v3561_v53, 1 }
 0x61d   :  { %v6528_v2 = vmul.f32 %v10144_v28, %v6520_v47  ;;  %v7802_v40 = vpop.eup %7801  ;;  %v6535_v27 = vsel %vm2796_vm7, 0.0, %v6527_v18  ;;  %v6515_v31 = vsub.f32 2.0, %v6507_v54  ;;  %v4532_v62 = vadd.f32 %v4531_v32, %v4530_v12 }
 0x61e   :  { %5593 = vperm.xlu0 %7299, %v5563_v11   ;;  %v3599_v44 = vmul.f32 %v10239_v56, %v3591_v21  ;;  %v3578_v30 = vmul.f32 %v7802_v40, %v3557_v16  ;;  %7805 = vrcp.f32 %v3533_v37  ;;  %v3563_v29 = vadd.f32 %v3562_v23, %v3561_v53 }
 0x61f   :  { %v6536_v38 = vsel %vm2797_vm8, 0.0, %v6528_v2  ;;  %6545 = vperm.xlu1 %7310, %v6535_v27   ;;  %v6523_v51 = vmul.f32 %v7800_v60, %v6515_v31  ;;  %v4533_v4 = vrot.slane %v4532_v62, 1  ;;  %v4505_v10 = vrot.slane %v10267_v14, 4 }
 0x620   :  { %v3607_v28 = vsel %vm2799_vm12, 0.0, %v3599_v44  ;;  %v7804_v55 = vpop.eup %7803  ;;  %v3586_v8 = vsub.f32 2.0, %v3578_v30  ;;  %7807 = vrcp.f32 %v3563_v29  ;;  %v5482_v56 = vrot.slane %v10273_v57, 4 }
 0x621   :  { %v4511_v34 = vrot.slane %v10286_v20, 4  ;;  %v6531_v17 = vmul.f32 %v10173_v3, %v6523_v51  ;;  %v6508_v16 = vmul.f32 %v7804_v55, %v10365_v25  ;;  %v4534_v46 = vadd.f32 %v4533_v4, %v4532_v62 }
 0x622   :  { %3629 = vperm.xlu0 %7299, %v3607_v28   ;;  %v4506_v33 = vadd.f32 %v10267_v14, %v4505_v10  ;;  %v3594_v48 = vmul.f32 %v7802_v40, %v3586_v8  ;;  %v5483_v39 = vadd.f32 %v10273_v57, %v5482_v56  ;;  %v5488_v35 = vrot.slane %v10293_v1, 4 }
 0x623   :  { %v4512_v59 = vadd.f32 %v10286_v20, %v4511_v34  ;;  %6550 = vperm.xlu1 %7310, %v6536_v38   ;;  %v6539_v13 = vsel %vm2800_vm9, 0.0, %v6531_v17  ;;  %v6516_v41 = vsub.f32 2.0, %v6508_v16  ;;  %7809 = vrcp.f32 %v4534_v46 }
 0x624   :  { %v4507_v43 = vrot.slane %v4506_v33, 2  ;;  %v3602_v3 = vmul.f32 %v10227_v58, %v3594_v48  ;;  %v5484_v25 = vrot.slane %v5483_v39, 2  ;;  %v5489_v26 = vadd.f32 %v10293_v1, %v5488_v35 }
 0x625   :  { %v4513_v9 = vrot.slane %v4512_v59, 2  ;;  %v6524_v12 = vmul.f32 %v7804_v55, %v6516_v41  ;;  %v4535_v0 = vrot.slane %v10327_v5, 4  ;;  %v5506_v47 = vrot.slane %v10304_v52, 4 }
 0x626   :  { %v4508_v60 = vadd.f32 %v4507_v43, %v4506_v33  ;;  %v3610_v53 = vsel %vm2802_vm13, 0.0, %v3602_v3  ;;  %v5485_v63 = vadd.f32 %v5484_v25, %v5483_v39  ;;  %v5490_v21 = vrot.slane %v5489_v26, 2 }
 0x627   :  { %v4514_v18 = vadd.f32 %v4513_v9, %v4512_v59  ;;  %6565 = vperm.xlu1 %7310, %v6539_v13   ;;  %3644 = vperm.xlu0 %7299, %v3610_v53   ;;  %v6532_v58 = vmul.f32 %v10206_v7, %v6524_v12  ;;  %v4536_v32 = vadd.f32 %v10327_v5, %v4535_v0  ;;  %v6459_v44 = vrot.slane %v10283_v6, 4 }
 0x628   :  { %v4509_v54 = vrot.slane %v4508_v60, 1  ;;  %v5507_v11 = vadd.f32 %v10304_v52, %v5506_v47  ;;  %v7806_v2 = vpop.eup %7805  ;;  %v5486_v23 = vrot.slane %v5485_v63, 1  ;;  %v5491_v27 = vadd.f32 %v5490_v21, %v5489_v26 }
 0x629   :  { %v4515_v40 = vrot.slane %v4514_v18, 1  ;;  %v6540_v31 = vsel %vm2801_vm10, 0.0, %v6532_v58  ;;  %v3574_v62 = vmul.f32 %v7806_v2, %v3533_v37  ;;  %v4537_v30 = vrot.slane %v4536_v32, 2 }
 0x62a   :  { %v4510_v38 = vadd.f32 %v4509_v54, %v4508_v60  ;;  %v7808_v28 = vpop.eup %7807  ;;  %v5487_v51 = vadd.f32 %v5486_v23, %v5485_v63  ;;  %v5492_v4 = vrot.slane %v5491_v27, 1  ;;  %v5508_v10 = vrot.slane %v5507_v11, 2 }
 0x62b   :  { %v10415_v7 = vadd.f32 %v4515_v40, %v4514_v18  ;;  %6570 = vperm.xlu1 %7310, %v6540_v31   ;;  %v3582_v55 = vsub.f32 2.0, %v3574_v62  ;;  %v3579_v8 = vmul.f32 %v7808_v28, %v3563_v29  ;;  %v4538_v56 = vadd.f32 %v4537_v30, %v4536_v32 }
 0x62c   :  { %7811 = vrcp.f32 %v4510_v38  ;;  %v5493_v34 = vadd.f32 %v5492_v4, %v5491_v27  ;;  %v5509_v17 = vadd.f32 %v5508_v10, %v5507_v11  ;;  %v6460_v24 = vadd.f32 %v10283_v6, %v6459_v44 }
 0x62d   :  { %7813 = vrcp.f32 %v5487_v51  ;;  %v7810_v16 = vpop.eup %7809  ;;  %v3590_v37 = vmul.f32 %v7806_v2, %v3582_v55  ;;  %v3587_v33 = vsub.f32 2.0, %v3579_v8  ;;  %v4539_v48 = vrot.slane %v4538_v56, 1 }
 0x62e   :  { %7815 = vrcp.f32 %v10415_v7  ;;  %v4555_v39 = vmul.f32 %v7810_v16, %v4534_v46  ;;  %v5510_v59 = vrot.slane %v5509_v17, 1  ;;  %v6461_v35 = vrot.slane %v6460_v24, 2 }
 0x62f   :  { %7817 = vrcp.f32 %v5493_v34  ;;  %v3598_v13 = vmul.f32 %v10219_v49, %v3590_v37  ;;  %v3595_v29 = vmul.f32 %v7808_v28, %v3587_v33  ;;  %v4540_v41 = vadd.f32 %v4539_v48, %v4538_v56 }
 0x630   :  { %v5512_v43 = vrot.slane %v10336_v61, 4  ;;  %v4563_v3 = vsub.f32 2.0, %v4555_v39  ;;  %v5511_v25 = vadd.f32 %v5510_v59, %v5509_v17  ;;  %v6462_v9 = vadd.f32 %v6461_v35, %v6460_v24 }
 0x631   :  { %v6465_v26 = vrot.slane %v10298_v22, 4  ;;  %v3606_v60 = vsel %vm2798_vm11, 0.0, %v3598_v13  ;;  %v3603_v0 = vmul.f32 %v10250_v45, %v3595_v29  ;;  %7819 = vrcp.f32 %v4540_v41 }
 0x632   :  { %v5513_v46 = vadd.f32 %v10336_v61, %v5512_v43  ;;  %3624 = vperm.xlu1 %7310, %v3606_v60   ;;  %v4571_v47 = vmul.f32 %v7810_v16, %v4563_v3  ;;  %7821 = vrcp.f32 %v5511_v25  ;;  %v6463_v49 = vrot.slane %v6462_v9, 1 }
 0x633   :  { %v6466_v53 = vadd.f32 %v10298_v22, %v6465_v26  ;;  %v6483_v18 = vrot.slane %v10322_v50, 4  ;;  %v6489_v21 = vrot.slane %v10333_v19, 4  ;;  %v3611_v2 = vsel %vm2803_vm14, 0.0, %v3603_v0 }
 0x634   :  { %v5514_v63 = vrot.slane %v5513_v46, 2  ;;  %v4579_v58 = vmul.f32 %v10310_v36, %v4571_v47  ;;  %v6464_v54 = vadd.f32 %v6463_v49, %v6462_v9 }
 0x635   :  { %v6467_v32 = vrot.slane %v6466_v53, 2  ;;  %v6484_v40 = vadd.f32 %v10322_v50, %v6483_v18  ;;  %v6490_v27 = vadd.f32 %v10333_v19, %v6489_v21 }
 0x636   :  { %v7812_v11 = vpop.eup %7811  ;;  %v5515_v23 = vadd.f32 %v5514_v63, %v5513_v46  ;;  %3649 = vperm.xlu1 %7310, %v3611_v2   ;;  %v4587_v31 = vsel %vm2802_vm13, 0.0, %v4579_v58  ;;  %7823 = vrcp.f32 %v6464_v54 }
 0x637   :  { %v7814_v44 = vpop.eup %7813  ;;  %v4551_v62 = vmul.f32 %v7812_v11, %v4510_v38  ;;  %v6468_v30 = vadd.f32 %v6467_v32, %v6466_v53  ;;  %4621 = vperm.xlu0 %7299, %v4587_v31   ;;  %v6485_v10 = vrot.slane %v6484_v40, 2  ;;  %v6491_v55 = vrot.slane %v6490_v27, 2 }
 0x638   :  { %v7816_v36 = vpop.eup %7815  ;;  %v5528_v28 = vmul.f32 %v7814_v44, %v5487_v51  ;;  %v5516_v4 = vrot.slane %v5515_v23, 1 }
 0x639   :  { %v7818_v8 = vpop.eup %7817  ;;  %v4559_v56 = vsub.f32 2.0, %v4551_v62  ;;  %v4552_v17 = vmul.f32 %v7816_v36, %v10415_v7  ;;  %v6469_v24 = vrot.slane %v6468_v30, 1  ;;  %v6486_v48 = vadd.f32 %v6485_v10, %v6484_v40 }
 0x63a   :  { %v5536_v16 = vsub.f32 2.0, %v5528_v28  ;;  %v5529_v37 = vmul.f32 %v7818_v8, %v5493_v34  ;;  %v5517_v33 = vadd.f32 %v5516_v4, %v5515_v23  ;;  %v6492_v35 = vadd.f32 %v6491_v55, %v6490_v27 }
 0x63b   :  { %v4567_v39 = vmul.f32 %v7812_v11, %v4559_v56  ;;  %v4560_v59 = vsub.f32 2.0, %v4552_v17  ;;  %v6470_v38 = vadd.f32 %v6469_v24, %v6468_v30  ;;  %v7820_v13 = vpop.eup %7819  ;;  %v6487_v51 = vrot.slane %v6486_v48, 1 }
 0x63c   :  { %v5544_v29 = vmul.f32 %v7814_v44, %v5536_v16  ;;  %v5537_v43 = vsub.f32 2.0, %v5529_v37  ;;  %7825 = vrcp.f32 %v5517_v33  ;;  %v7822_v3 = vpop.eup %7821  ;;  %v4556_v60 = vmul.f32 %v7820_v13, %v4540_v41 }
 0x63d   :  { %v4575_v9 = vmul.f32 %v10267_v14, %v4567_v39  ;;  %v4568_v26 = vmul.f32 %v7816_v36, %v4560_v59  ;;  %7827 = vrcp.f32 %v6470_v38  ;;  %v5532_v0 = vmul.f32 %v7822_v3, %v5511_v25  ;;  %v8029_v39 = vld [vmem:[#allocation2] sm:$0xff] }
 0x63e   :  { %v5552_v7 = vmul.f32 %v10273_v57, %v5544_v29  ;;  %v5545_v34 = vmul.f32 %v7818_v8, %v5537_v43  ;;  %v6488_v46 = vadd.f32 %v6487_v51, %v6486_v48  ;;  %v4564_v53 = vsub.f32 2.0, %v4556_v60 }
 0x63f   :  { %v4583_v47 = vsel %vm2798_vm11, 0.0, %v4575_v9  ;;  %v4576_v49 = vmul.f32 %v10286_v20, %v4568_v26  ;;  %v6493_v63 = vrot.slane %v6492_v35, 1  ;;  %v5540_v41 = vsub.f32 2.0, %v5532_v0  ;;  %v8030_v9 = vld [vmem:[#allocation2 + $0x20] sm:$0xff] }
 0x640   :  { %4601 = vperm.xlu1 %7310, %v4583_v47   ;;  %v5560_v18 = vsel %vm2798_vm11, 0.0, %v5552_v7  ;;  %v5553_v14 = vmul.f32 %v10293_v1, %v5545_v34  ;;  %7829 = vrcp.f32 %v6488_v46  ;;  %v7824_v21 = vpop.eup %7823  ;;  %v4572_v57 = vmul.f32 %v7820_v13, %v4564_v53  ;;  %v8031_v34 = vld [vmem:[#allocation2 + $0x80] sm:$0xff] }
 0x641   :  { %5578 = vperm.xlu0 %7299, %v5560_v18   ;;  %v6494_v25 = vadd.f32 %v6493_v63, %v6492_v35  ;;  %v5548_v58 = vmul.f32 %v7822_v3, %v5540_v41  ;;  %v6505_v32 = vmul.f32 %v7824_v21, %v6464_v54  ;;  %v4584_v11 = vsel %vm2799_vm12, 0.0, %v4576_v49 }
 0x642   :  { %v4580_v20 = vmul.f32 %v10327_v5, %v4572_v57  ;;  %v5561_v2 = vsel %vm2799_vm12, 0.0, %v5553_v14  ;;  %v3615_v56 = vpop.permute.xlu1 %3614 }
 0x643   :  { %7831 = vrcp.f32 %v6494_v25  ;;  %v5556_v1 = vmul.f32 %v10304_v52, %v5548_v58  ;;  %v6513_v23 = vsub.f32 2.0, %v6505_v32  ;;  %v3652_v59 = vmul.f32 %v8029_v39, %v3615_v56  ;;  %v8032_v58 = vld [vmem:[#allocation2 + $0xa0] sm:$0xff]  ;;  %v8034_v56 = vld [vmem:[#allocation2 + $0x8] sm:$0xff] }
 0x644   :  { %4606 = vperm.xlu1 %7310, %v4584_v11   ;;  %v4588_v54 = vsel %vm2803_vm14, 0.0, %v4580_v20 }
 0x645   :  { %5583 = vperm.xlu0 %7299, %v5561_v2   ;;  %v6521_v27 = vmul.f32 %v7824_v21, %v6513_v23  ;;  %v5564_v5 = vsel %vm2802_vm13, 0.0, %v5556_v1 }
 0x646   :  { %v7826_v40 = vpop.eup %7825 }
 0x647   :  { %v7828_v44 = vpop.eup %7827  ;;  %v5533_v31 = vmul.f32 %v7826_v40, %v5517_v33  ;;  %v6529_v62 = vmul.f32 %v10283_v6, %v6521_v27 }
 0x648   :  { %4626 = vperm.xlu1 %7310, %v4588_v54   ;;  %v6506_v30 = vmul.f32 %v7828_v44, %v6470_v38 }
 0x649   :  { %5598 = vperm.xlu0 %7299, %v5564_v5   ;;  %v5541_v36 = vsub.f32 2.0, %v5533_v31  ;;  %v6537_v4 = vsel %vm2798_vm11, 0.0, %v6529_v62  ;;  %v8033_v5 = vld [vmem:[#allocation2 + $0x28] sm:$0xff] }
 0x64a   :  { %v7830_v28 = vpop.eup %7829  ;;  %v6514_v52 = vsub.f32 2.0, %v6506_v30 }
 0x64b   :  { %v5549_v10 = vmul.f32 %v7826_v40, %v5541_v36  ;;  %v6509_v55 = vmul.f32 %v7830_v28, %v6488_v46  ;;  %v3620_v3 = vpop.permute.xlu0 %3619 }
 0x64c   :  { %6555 = vperm.xlu1 %7310, %v6537_v4   ;;  %v6522_v8 = vmul.f32 %v7828_v44, %v6514_v52  ;;  %v3653_v26 = vmul.f32 %v8030_v9, %v3620_v3 }
 0x64d   :  { %v7832_v17 = vpop.eup %7831  ;;  %v5557_v24 = vmul.f32 %v10336_v61, %v5549_v10  ;;  %v6517_v16 = vsub.f32 2.0, %v6509_v55  ;;  %v3660_v61 = vrot.slane %v3652_v59, 4 }
 0x64e   :  { %v6530_v37 = vmul.f32 %v10298_v22, %v6522_v8  ;;  %v6510_v6 = vmul.f32 %v7832_v17, %v6494_v25 }
 0x64f   :  { %v5565_v33 = vsel %vm2803_vm14, 0.0, %v5557_v24  ;;  %v6525_v48 = vmul.f32 %v7830_v28, %v6517_v16  ;;  %v3661_v43 = vadd.f32 %v3660_v61, %v3652_v59  ;;  %v3635_v60 = vpop.permute.xlu1 %3634  ;;  %v8035_v16 = vld [vmem:[#allocation2 + $0x88] sm:$0xff] }
 0x650   :  { %5603 = vperm.xlu0 %7299, %v5565_v33   ;;  %v6538_v12 = vsel %vm2799_vm12, 0.0, %v6530_v37  ;;  %v6518_v38 = vsub.f32 2.0, %v6510_v6  ;;  %v3656_v0 = vmul.f32 %v8031_v34, %v3635_v60 }
 0x651   :  { %6560 = vperm.xlu1 %7310, %v6538_v12   ;;  %v6533_v35 = vmul.f32 %v10322_v50, %v6525_v48  ;;  %v3662_v15 = vrot.slane %v3661_v43, 2  ;;  %v3666_v50 = vrot.slane %v3653_v26, 4 }
 0x652   :  { %v6526_v13 = vmul.f32 %v7832_v17, %v6518_v38  ;;  %v3684_v47 = vrot.slane %v3656_v0, 4  ;;  %v8036_v38 = vld [vmem:[#allocation2 + $0x30] sm:$0xff] }
 0x653   :  { %v6541_v22 = vsel %vm2802_vm13, 0.0, %v6533_v35  ;;  %v3663_v7 = vadd.f32 %v3662_v15, %v3661_v43  ;;  %v3667_v42 = vadd.f32 %v3666_v50, %v3653_v26 }
 0x654   :  { %v6534_v29 = vmul.f32 %v10333_v19, %v6526_v13  ;;  %v3685_v53 = vadd.f32 %v3684_v47, %v3656_v0 }
 0x655   :  { %6575 = vperm.xlu1 %7310, %v6541_v22   ;;  %v3664_v46 = vrot.slane %v3663_v7, 1  ;;  %v3668_v19 = vrot.slane %v3667_v42, 2 }
 0x656   :  { %v6542_v51 = vsel %vm2803_vm14, 0.0, %v6534_v29  ;;  %v3686_v18 = vrot.slane %v3685_v53, 2  ;;  %v8037_v29 = vld [vmem:[#allocation2 + $0xa8] sm:$0xff] }
 0x657   :  { %v10470_v49 = vadd.f32 %v3664_v46, %v3663_v7  ;;  %v3669_v63 = vadd.f32 %v3668_v19, %v3667_v42  ;;  %v8038_v7 = vld [vmem:[#allocation2 + $0x90] sm:$0xff] }
 0x658   :  { %v3687_v41 = vadd.f32 %v3686_v18, %v3685_v53  ;;  %v8039_v19 = vld [vmem:[#allocation2 + $0x10] sm:$0xff] }
 0x659   :  { %6580 = vperm.xlu1 %7310, %v6542_v51   ;;  %v3708_v45 = vmul.f32 %v10470_v49, %v10470_v49  ;;  %v3670_v14 = vrot.slane %v3669_v63, 1 }
 0x65a   :  { %v3688_v21 = vrot.slane %v3687_v41, 1 }
 0x65b   :  { %v10474_v25 = vadd.f32 %v3670_v14, %v3669_v63 }
 0x65c   :  { %v10478_v2 = vadd.f32 %v3688_v21, %v3687_v41 }
 0x65d   :  { %v3709_v20 = vmul.f32 %v10474_v25, %v10474_v25 }
 0x65e   :  { %v3712_v40 = vmul.f32 %v10478_v2, %v10478_v2 }
 0x66f   :  { %3716 = vadd.xlane.f32.xlu0 %v3708_v45 }
 0x674   :  { %v3640_v57 = vpop.permute.xlu1 %3639 }
 0x675   :  { %v3657_v32 = vmul.f32 %v8032_v58, %v3640_v57  ;;  %v8040_v57 = vld [vmem:[#allocation2 + $0xb0] sm:$0xff] }
 0x677   :  { %v3690_v11 = vrot.slane %v3657_v32, 4 }
 0x679   :  { %v3691_v1 = vadd.f32 %v3690_v11, %v3657_v32 }
 0x67b   :  { %v3692_v23 = vrot.slane %v3691_v1, 2 }
 0x67d   :  { %3718 = vadd.xlane.f32.xlu1 %v3709_v20  ;;  %v3693_v27 = vadd.f32 %v3692_v23, %v3691_v1 }
 0x67f   :  { %v3694_v44 = vrot.slane %v3693_v27, 1 }
 0x681   :  { %3724 = vadd.xlane.f32.xlu1 %v3712_v40  ;;  %v10482_v54 = vadd.f32 %v3694_v44, %v3693_v27  ;;  %v8041_v44 = vld [vmem:[#allocation2 + $0x18] sm:$0xff] }
 0x682   :  { %v4597_v31 = vpop.permute.xlu0 %4596 }
 0x683   :  { %v4630_v62 = vmul.f32 %v8033_v5, %v4597_v31  ;;  %v3713_v30 = vmul.f32 %v10482_v54, %v10482_v54 }
 0x685   :  { %v4643_v36 = vrot.slane %v4630_v62, 4  ;;  %3726 = vadd.xlane.f32.xlu0 %v3713_v30 }
 0x687   :  { %v4644_v28 = vadd.f32 %v4643_v36, %v4630_v62 }
 0x689   :  { %v4645_v52 = vrot.slane %v4644_v28, 2 }
 0x68b   :  { %v4646_v4 = vadd.f32 %v4645_v52, %v4644_v28 }
 0x68d   :  { %v4647_v10 = vrot.slane %v4646_v4, 1 }
 0x68f   :  { %v10486_v8 = vadd.f32 %v4647_v10, %v4646_v4 }
 0x690   :  { %v4592_v55 = vpop.permute.xlu1 %4591 }
 0x691   :  { %v4629_v17 = vmul.f32 %v8034_v56, %v4592_v55  ;;  %v4612_v24 = vpop.permute.xlu0 %4611  ;;  %v4686_v6 = vmul.f32 %v10486_v8, %v10486_v8 }
 0x692   :  { %v4633_v37 = vmul.f32 %v8035_v16, %v4612_v24 }
 0x693   :  { %v4637_v33 = vrot.slane %v4629_v17, 4  ;;  %4695 = vadd.xlane.f32.xlu1 %v4686_v6 }
 0x694   :  { %v4661_v48 = vrot.slane %v4633_v37, 4 }
 0x695   :  { %v4638_v39 = vadd.f32 %v4637_v33, %v4629_v17  ;;  %v5574_v59 = vpop.permute.xlu0 %5573 }
 0x696   :  { %v4662_v12 = vadd.f32 %v4661_v48, %v4633_v37  ;;  %v5607_v35 = vmul.f32 %v8036_v38, %v5574_v59  ;;  %v4617_v61 = vpop.permute.xlu1 %4616  ;;  %v8042_v37 = vld [vmem:[#allocation2 + $0x38] sm:$0xff] }
 0x697   :  { %v4639_v13 = vrot.slane %v4638_v39, 2  ;;  %v4634_v43 = vmul.f32 %v8037_v29, %v4617_v61 }
 0x698   :  { %v4663_v22 = vrot.slane %v4662_v12, 2  ;;  %v5620_v51 = vrot.slane %v5607_v35, 4 }
 0x699   :  { %v4640_v3 = vadd.f32 %v4639_v13, %v4638_v39  ;;  %v5589_v15 = vpop.permute.xlu0 %5588  ;;  %v4667_v26 = vrot.slane %v4634_v43, 4 }
 0x69a   :  { %v4664_v9 = vadd.f32 %v4663_v22, %v4662_v12  ;;  %v5621_v60 = vadd.f32 %v5620_v51, %v5607_v35  ;;  %v5610_v50 = vmul.f32 %v8038_v7, %v5589_v15  ;;  %v5569_v0 = vpop.permute.xlu1 %5568  ;;  %v8043_v15 = vld [vmem:[#allocation2 + $0x60] sm:$0xff] }
 0x69b   :  { %v4641_v34 = vrot.slane %v4640_v3, 1  ;;  %v4668_v42 = vadd.f32 %v4667_v26, %v4634_v43  ;;  %v5606_v53 = vmul.f32 %v8039_v19, %v5569_v0  ;;  %v8044_v26 = vld [vmem:[#allocation2 + $0x98] sm:$0xff] }
 0x69c   :  { %v4665_v46 = vrot.slane %v4664_v9, 1  ;;  %v5622_v47 = vrot.slane %v5621_v60, 2  ;;  %v5638_v45 = vrot.slane %v5610_v50, 4 }
 0x69d   :  { %v10490_v63 = vadd.f32 %v4641_v34, %v4640_v3  ;;  %v5594_v18 = vpop.permute.xlu0 %5593  ;;  %v4669_v14 = vrot.slane %v4668_v42, 2  ;;  %v5614_v21 = vrot.slane %v5606_v53, 4 }
 0x69e   :  { %v5623_v41 = vadd.f32 %v5622_v47, %v5621_v60  ;;  %v5611_v58 = vmul.f32 %v8040_v57, %v5594_v18  ;;  %v5639_v32 = vadd.f32 %v5638_v45, %v5610_v50  ;;  %v6546_v20 = vpop.permute.xlu1 %6545  ;;  %v10494_v1 = vadd.f32 %v4665_v46, %v4664_v9  ;;  %v8045_v50 = vld [vmem:[#allocation2 + $0xc0] sm:$0xff]  ;;  %v8046_v57 = vld [vmem:[#allocation2 + $0xb8] sm:$0xff] }
 0x69f   :  { %v4685_v11 = vmul.f32 %v10490_v63, %v10490_v63  ;;  %v4670_v23 = vadd.f32 %v4669_v14, %v4668_v42  ;;  %v5615_v27 = vadd.f32 %v5614_v21, %v5606_v53  ;;  %v6583_v31 = vmul.f32 %v8041_v44, %v6546_v20 }
 0x6a0   :  { %v5624_v40 = vrot.slane %v5623_v41, 1  ;;  %v5640_v5 = vrot.slane %v5639_v32, 2  ;;  %v5644_v62 = vrot.slane %v5611_v58, 4  ;;  %v4689_v36 = vmul.f32 %v10494_v1, %v10494_v1 }
 0x6a1   :  { %4693 = vadd.xlane.f32.xlu0 %v4685_v11  ;;  %v3630_v30 = vpop.permute.xlu0 %3629  ;;  %v4671_v28 = vrot.slane %v4670_v23, 1  ;;  %v5616_v52 = vrot.slane %v5615_v27, 2  ;;  %v6591_v4 = vrot.slane %v6583_v31, 4 }
 0x6a2   :  { %v5641_v10 = vadd.f32 %v5640_v5, %v5639_v32  ;;  %v5645_v55 = vadd.f32 %v5644_v62, %v5611_v58  ;;  %v6551_v56 = vpop.permute.xlu1 %6550  ;;  %4701 = vadd.xlane.f32.xlu1 %v4689_v36  ;;  %v10498_v17 = vadd.f32 %v5624_v40, %v5623_v41  ;;  %v3655_v9 = vmul.f32 %v8043_v15, %v3630_v30  ;;  %v8049_v15 = vld [vmem:[#allocation2 + $0xc8] sm:$0xff] }
 0x6a3   :  { %v5617_v24 = vadd.f32 %v5616_v52, %v5615_v27  ;;  %v6592_v16 = vadd.f32 %v6591_v4, %v6583_v31  ;;  %v6584_v6 = vmul.f32 %v8042_v37, %v6551_v56  ;;  %v10500_v39 = vadd.f32 %v4671_v28, %v4670_v23 }
 0x6a4   :  { %v5642_v33 = vrot.slane %v5641_v10, 1  ;;  %v5646_v48 = vrot.slane %v5645_v55, 2  ;;  %v5663_v59 = vmul.f32 %v10498_v17, %v10498_v17  ;;  %v3678_v32 = vrot.slane %v3655_v9, 4 }
 0x6a5   :  { %v5618_v12 = vrot.slane %v5617_v24, 1  ;;  %v6593_v38 = vrot.slane %v6592_v16, 2  ;;  %v6597_v35 = vrot.slane %v6584_v6, 4  ;;  %v4690_v29 = vmul.f32 %v10500_v39, %v10500_v39 }
 0x6a6   :  { %v5647_v13 = vadd.f32 %v5646_v48, %v5645_v55  ;;  %v6566_v61 = vpop.permute.xlu1 %6565  ;;  %v3645_v22 = vpop.permute.xlu0 %3644  ;;  %5672 = vadd.xlane.f32.xlu1 %v5663_v59  ;;  %v10506_v43 = vadd.f32 %v5642_v33, %v5641_v10  ;;  %v3679_v28 = vadd.f32 %v3678_v32, %v3655_v9  ;;  %v8050_v32 = vld [vmem:[#allocation2 + $0x48] sm:$0xff] }
 0x6a7   :  { %v6594_v51 = vadd.f32 %v6593_v38, %v6592_v16  ;;  %v6598_v3 = vadd.f32 %v6597_v35, %v6584_v6  ;;  %v6587_v60 = vmul.f32 %v8044_v26, %v6566_v61  ;;  %v3658_v34 = vmul.f32 %v8045_v50, %v3645_v22  ;;  %4703 = vadd.xlane.f32.xlu0 %v4690_v29  ;;  %v8047_v16 = vld [vmem:[#allocation2 + $0x40] sm:$0xff] }
 0x6a8   :  { %v5648_v7 = vrot.slane %v5647_v13, 1  ;;  %v10508_v0 = vadd.f32 %v5618_v12, %v5617_v24  ;;  %v5666_v46 = vmul.f32 %v10506_v43, %v10506_v43  ;;  %v3680_v48 = vrot.slane %v3679_v28, 2  ;;  %v8048_v22 = vld [vmem:[#allocation2 + $0xe0] sm:$0xff] }
 0x6a9   :  { %v6595_v42 = vrot.slane %v6594_v51, 1  ;;  %v6599_v47 = vrot.slane %v6598_v3, 2  ;;  %v6615_v19 = vrot.slane %v6587_v60, 4  ;;  %v3696_v53 = vrot.slane %v3658_v34, 4 }
 0x6aa   :  { %v6571_v45 = vpop.permute.xlu1 %6570  ;;  %v5662_v18 = vmul.f32 %v10508_v0, %v10508_v0  ;;  %5678 = vadd.xlane.f32.xlu1 %v5666_v46  ;;  %v10514_v14 = vadd.f32 %v5648_v7, %v5647_v13 }
 0x6ab   :  { %v6600_v41 = vadd.f32 %v6599_v47, %v6598_v3  ;;  %v6616_v21 = vadd.f32 %v6615_v19, %v6587_v60  ;;  %v6588_v58 = vmul.f32 %v8046_v57, %v6571_v45  ;;  %v3697_v11 = vadd.f32 %v3696_v53, %v3658_v34 }
 0x6ac   :  { %5670 = vadd.xlane.f32.xlu0 %v5662_v18  ;;  %v10516_v20 = vadd.f32 %v6595_v42, %v6594_v51  ;;  %v5667_v23 = vmul.f32 %v10514_v14, %v10514_v14  ;;  %v3681_v60 = vadd.f32 %v3680_v48, %v3679_v28 }
 0x6ad   :  { %v6601_v40 = vrot.slane %v6600_v41, 1  ;;  %v6617_v27 = vrot.slane %v6616_v21, 2  ;;  %v6621_v44 = vrot.slane %v6588_v58, 4  ;;  %v3698_v31 = vrot.slane %v3697_v11, 2 }
 0x6ae   :  { %11275 = vst [vmem:[#allocation52_spill] sm:$0xff] %v10516_v20  ;;  %v6639_v5 = vmul.f32 %v10516_v20, %v10516_v20  ;;  %5680 = vadd.xlane.f32.xlu1 %v5667_v23  ;;  %v3682_v53 = vrot.slane %v3681_v60, 1 }
 0x6af   :  { %v6618_v62 = vadd.f32 %v6617_v27, %v6616_v21  ;;  %v6622_v30 = vadd.f32 %v6621_v44, %v6588_v58  ;;  %v10522_v36 = vadd.f32 %v6601_v40, %v6600_v41  ;;  %v3699_v52 = vadd.f32 %v3698_v31, %v3697_v11  ;;  %v8051_v44 = vld [vmem:[#allocation2 + $0x50] sm:$0xff] }
 0x6b0   :  { %6647 = vadd.xlane.f32.xlu0 %v6639_v5 }
 0x6b1   :  { %11276 = vst [vmem:[#allocation56_spill] sm:$0xff] %v10522_v36  ;;  %v6619_v4 = vrot.slane %v6618_v62, 1  ;;  %v6623_v10 = vrot.slane %v6622_v30, 2  ;;  %v3625_v55 = vpop.permute.xlu1 %3624  ;;  %v6640_v56 = vmul.f32 %v10522_v36, %v10522_v36  ;;  %v3700_v24 = vrot.slane %v3699_v52, 1 }
 0x6b2   :  { %v3654_v37 = vmul.f32 %v8047_v16, %v3625_v55  ;;  %v8052_v55 = vld [vmem:[#allocation2 + $0x68] sm:$0xff] }
 0x6b3   :  { %v6624_v6 = vadd.f32 %v6623_v10, %v6622_v30  ;;  %v10526_v33 = vadd.f32 %v6619_v4, %v6618_v62  ;;  %v10528_v12 = vadd.f32 %v3700_v24, %v3699_v52  ;;  %v10542_v62 = vadd.f32 %v3682_v53, %v3681_v60 }
 0x6b4   :  { %v3672_v59 = vrot.slane %v3654_v37, 4  ;;  %6649 = vadd.xlane.f32.xlu0 %v6640_v56 }
 0x6b5   :  { %11277 = vst [vmem:[#allocation53_spill] sm:$0xff] %v10526_v33  ;;  %v6625_v38 = vrot.slane %v6624_v6, 1  ;;  %v3650_v35 = vpop.permute.xlu1 %3649  ;;  %v6643_v13 = vmul.f32 %v10526_v33, %v10526_v33  ;;  %v3714_v3 = vmul.f32 %v10528_v12, %v10528_v12  ;;  %11279 = vst [vmem:[#allocation54_spill] sm:$0xff] %v10542_v62 }
 0x6b6   :  { %v3673_v61 = vadd.f32 %v3672_v59, %v3654_v37  ;;  %v3659_v29 = vmul.f32 %v8048_v22, %v3650_v35  ;;  %v4622_v51 = vpop.permute.xlu0 %4621  ;;  %v3711_v59 = vmul.f32 %v10542_v62, %v10542_v62 }
 0x6b7   :  { %v4635_v9 = vmul.f32 %v8049_v15, %v4622_v51  ;;  %v10534_v26 = vadd.f32 %v6625_v38, %v6624_v6  ;;  %3728 = vadd.xlane.f32.xlu1 %v3714_v3  ;;  %v8053_v6 = vld [vmem:[#allocation2 + $0x70] sm:$0xff] }
 0x6b8   :  { %v3674_v7 = vrot.slane %v3673_v61, 2  ;;  %v3702_v50 = vrot.slane %v3659_v29, 4  ;;  %6655 = vadd.xlane.f32.xlu0 %v6643_v13 }
 0x6b9   :  { %11278 = vst [vmem:[#allocation58_spill] sm:$0xff] %v10534_v26  ;;  %v4673_v34 = vrot.slane %v4635_v9, 4  ;;  %v6644_v46 = vmul.f32 %v10534_v26, %v10534_v26 }
 0x6ba   :  { %v3675_v42 = vadd.f32 %v3674_v7, %v3673_v61  ;;  %v3703_v47 = vadd.f32 %v3702_v50, %v3659_v29 }
 0x6bb   :  { %v4674_v19 = vadd.f32 %v4673_v34, %v4635_v9  ;;  %v8054_v9 = vld [vmem:[#allocation2 + $0xe8] sm:$0xff] }
 0x6bc   :  { %v3676_v45 = vrot.slane %v3675_v42, 1  ;;  %v3704_v18 = vrot.slane %v3703_v47, 2  ;;  %6657 = vadd.xlane.f32.xlu0 %v6644_v46  ;;  %v8055_v46 = vld [vmem:[#allocation2 + $0xd0] sm:$0xff] }
 0x6bd   :  { %v4675_v41 = vrot.slane %v4674_v19, 2 }
 0x6be   :  { %v3705_v21 = vadd.f32 %v3704_v18, %v3703_v47  ;;  %v10538_v58 = vadd.f32 %v3676_v45, %v3675_v42 }
 0x6bf   :  { %v4602_v57 = vpop.permute.xlu1 %4601  ;;  %v4676_v23 = vadd.f32 %v4675_v41, %v4674_v19 }
 0x6c0   :  { %v4631_v11 = vmul.f32 %v8050_v32, %v4602_v57  ;;  %v5579_v40 = vpop.permute.xlu0 %5578  ;;  %v3706_v27 = vrot.slane %v3705_v21, 1  ;;  %v3710_v5 = vmul.f32 %v10538_v58, %v10538_v58 }
 0x6c1   :  { %v5608_v31 = vmul.f32 %v8051_v44, %v5579_v40  ;;  %v4677_v28 = vrot.slane %v4676_v23, 1 }
 0x6c2   :  { %v4649_v30 = vrot.slane %v4631_v11, 4  ;;  %3720 = vadd.xlane.f32.xlu0 %v3710_v5  ;;  %v10548_v38 = vadd.f32 %v3706_v27, %v3705_v21 }
 0x6c3   :  { %v4607_v52 = vpop.permute.xlu1 %4606  ;;  %v5626_v4 = vrot.slane %v5608_v31, 4  ;;  %v10544_v16 = vadd.f32 %v4677_v28, %v4676_v23  ;;  %v8056_v23 = vld [vmem:[#allocation2 + $0x58] sm:$0xff] }
 0x6c4   :  { %v4650_v10 = vadd.f32 %v4649_v30, %v4631_v11  ;;  %v4632_v56 = vmul.f32 %v8052_v55, %v4607_v52  ;;  %v5584_v24 = vpop.permute.xlu0 %5583  ;;  %11281 = vst [vmem:[#allocation55_spill] sm:$0xff] %v10548_v38  ;;  %v3715_v47 = vmul.f32 %v10548_v38, %v10548_v38 }
 0x6c5   :  { %11280 = vst [vmem:[#allocation59_spill] sm:$0xff] %v10544_v16  ;;  %v5627_v37 = vadd.f32 %v5626_v4, %v5608_v31  ;;  %v5609_v48 = vmul.f32 %v8053_v6, %v5584_v24  ;;  %v4691_v61 = vmul.f32 %v10544_v16, %v10544_v16 }
 0x6c6   :  { %v4651_v35 = vrot.slane %v4650_v10, 2  ;;  %v4655_v13 = vrot.slane %v4632_v56, 4  ;;  %3722 = vadd.xlane.f32.xlu0 %v3711_v59  ;;  %v8057_v59 = vld [vmem:[#allocation2 + $0xf0] sm:$0xff] }
 0x6c7   :  { %v5628_v22 = vrot.slane %v5627_v37, 2  ;;  %v4627_v29 = vpop.permute.xlu1 %4626  ;;  %v5632_v51 = vrot.slane %v5609_v48, 4  ;;  %4705 = vadd.xlane.f32.xlu1 %v4691_v61 }
 0x6c8   :  { %v4652_v3 = vadd.f32 %v4651_v35, %v4650_v10  ;;  %v4656_v15 = vadd.f32 %v4655_v13, %v4632_v56  ;;  %v4636_v60 = vmul.f32 %v8054_v9, %v4627_v29  ;;  %v5599_v7 = vpop.permute.xlu0 %5598 }
 0x6c9   :  { %v5629_v50 = vadd.f32 %v5628_v22, %v5627_v37  ;;  %v5633_v34 = vadd.f32 %v5632_v51, %v5609_v48  ;;  %v5612_v42 = vmul.f32 %v8055_v46, %v5599_v7  ;;  %v8058_v22 = vld [vmem:[#allocation2 + $0x78] sm:$0xff] }
 0x6ca   :  { %v4653_v19 = vrot.slane %v4652_v3, 1  ;;  %v4657_v53 = vrot.slane %v4656_v15, 2  ;;  %v4679_v45 = vrot.slane %v4636_v60, 4  ;;  %3730 = vadd.xlane.f32.xlu0 %v3715_v47 }
 0x6cb   :  { %v5630_v18 = vrot.slane %v5629_v50, 1  ;;  %v5634_v41 = vrot.slane %v5633_v34, 2  ;;  %v6556_v21 = vpop.permute.xlu1 %6555  ;;  %v5650_v57 = vrot.slane %v5612_v42, 4 }
 0x6cc   :  { %v4658_v32 = vadd.f32 %v4657_v53, %v4656_v15  ;;  %v4680_v11 = vadd.f32 %v4679_v45, %v4636_v60  ;;  %v6585_v40 = vmul.f32 %v8056_v23, %v6556_v21  ;;  %v10554_v27 = vadd.f32 %v4653_v19, %v4652_v3  ;;  %v8059_v45 = vld [vmem:[#allocation2 + $0xd8] sm:$0xff] }
 0x6cd   :  { %v5635_v44 = vadd.f32 %v5634_v41, %v5633_v34  ;;  %v5651_v31 = vadd.f32 %v5650_v57, %v5612_v42  ;;  %v10556_v5 = vadd.f32 %v5630_v18, %v5629_v50 }
 0x6ce   :  { %11282 = vst [vmem:[#allocation60_spill] sm:$0xff] %v10554_v27  ;;  %v4659_v30 = vrot.slane %v4658_v32, 1  ;;  %v4681_v28 = vrot.slane %v4680_v11, 2  ;;  %v6603_v52 = vrot.slane %v6585_v40, 4  ;;  %v4687_v4 = vmul.f32 %v10554_v27, %v10554_v27 }
 0x6cf   :  { %11283 = vst [vmem:[#allocation57_spill] sm:$0xff] %v10556_v5  ;;  %v5636_v10 = vrot.slane %v5635_v44, 1  ;;  %v5652_v55 = vrot.slane %v5651_v31, 2  ;;  %v5604_v56 = vpop.permute.xlu0 %5603  ;;  %v5664_v24 = vmul.f32 %v10556_v5, %v10556_v5 }
 0x6d0   :  { %v4682_v37 = vadd.f32 %v4681_v28, %v4680_v11  ;;  %v6604_v6 = vadd.f32 %v6603_v52, %v6585_v40  ;;  %v6561_v48 = vpop.permute.xlu1 %6560  ;;  %v5613_v35 = vmul.f32 %v8057_v59, %v5604_v56  ;;  %4697 = vadd.xlane.f32.xlu0 %v4687_v4  ;;  %v10562_v13 = vadd.f32 %v4659_v30, %v4658_v32  ;;  %v8060_v4 = vld [vmem:[#allocation2 + $0xf8] sm:$0xff] }
 0x6d1   :  { %v5653_v61 = vadd.f32 %v5652_v55, %v5651_v31  ;;  %v6586_v29 = vmul.f32 %v8058_v22, %v6561_v48  ;;  %5674 = vadd.xlane.f32.xlu1 %v5664_v24  ;;  %v10564_v51 = vadd.f32 %v5636_v10, %v5635_v44 }
 0x6d2   :  { %11284 = vst [vmem:[#allocation61_spill] sm:$0xff] %v10562_v13  ;;  %v4683_v3 = vrot.slane %v4682_v37, 1  ;;  %v6605_v15 = vrot.slane %v6604_v6, 2  ;;  %v5656_v9 = vrot.slane %v5613_v35, 4  ;;  %v4688_v60 = vmul.f32 %v10562_v13, %v10562_v13 }
 0x6d3   :  { %11285 = vst [vmem:[#allocation62_spill] sm:$0xff] %v10564_v51  ;;  %v5654_v7 = vrot.slane %v5653_v61, 1  ;;  %v6609_v50 = vrot.slane %v6586_v29, 4  ;;  %v5665_v34 = vmul.f32 %v10564_v51, %v10564_v51 }
 0x6d4   :  { %v6606_v46 = vadd.f32 %v6605_v15, %v6604_v6  ;;  %v5657_v42 = vadd.f32 %v5656_v9, %v5613_v35  ;;  %v6576_v47 = vpop.permute.xlu1 %6575  ;;  %4699 = vadd.xlane.f32.xlu0 %v4688_v60  ;;  %v10570_v19 = vadd.f32 %v4683_v3, %v4682_v37 }
 0x6d5   :  { %v6610_v53 = vadd.f32 %v6609_v50, %v6586_v29  ;;  %v6589_v18 = vmul.f32 %v8059_v45, %v6576_v47  ;;  %5676 = vadd.xlane.f32.xlu1 %v5665_v34  ;;  %v10572_v41 = vadd.f32 %v5654_v7, %v5653_v61 }
 0x6d6   :  { %11286 = vst [vmem:[#allocation64_spill] sm:$0xff] %v10570_v19  ;;  %v6607_v21 = vrot.slane %v6606_v46, 1  ;;  %v5658_v57 = vrot.slane %v5657_v42, 2  ;;  %v4692_v32 = vmul.f32 %v10570_v19, %v10570_v19 }
 0x6d7   :  { %11287 = vst [vmem:[#allocation63_spill] sm:$0xff] %v10572_v41  ;;  %v6611_v11 = vrot.slane %v6610_v53, 2  ;;  %v6627_v23 = vrot.slane %v6589_v18, 4  ;;  %v5668_v40 = vmul.f32 %v10572_v41, %v10572_v41 }
 0x6d8   :  { %v5659_v44 = vadd.f32 %v5658_v57, %v5657_v42  ;;  %v6581_v31 = vpop.permute.xlu1 %6580  ;;  %4707 = vadd.xlane.f32.xlu0 %v4692_v32  ;;  %v10578_v30 = vadd.f32 %v6607_v21, %v6606_v46 }
 0x6d9   :  { %v6612_v28 = vadd.f32 %v6611_v11, %v6610_v53  ;;  %v6628_v52 = vadd.f32 %v6627_v23, %v6589_v18  ;;  %v6590_v10 = vmul.f32 %v8060_v4, %v6581_v31  ;;  %5682 = vadd.xlane.f32.xlu1 %v5668_v40 }
 0x6da   :  { %11288 = vst [vmem:[#allocation66_spill] sm:$0xff] %v10578_v30  ;;  %v5660_v55 = vrot.slane %v5659_v44, 1  ;;  %v6641_v56 = vmul.f32 %v10578_v30, %v10578_v30 }
 0x6db   :  { %v6613_v24 = vrot.slane %v6612_v28, 1  ;;  %v6629_v37 = vrot.slane %v6628_v52, 2  ;;  %v6633_v6 = vrot.slane %v6590_v10, 4 }
 0x6dc   :  { %6651 = vadd.xlane.f32.xlu0 %v6641_v56  ;;  %v10582_v48 = vadd.f32 %v5660_v55, %v5659_v44 }
 0x6dd   :  { %v6630_v59 = vadd.f32 %v6629_v37, %v6628_v52  ;;  %v6634_v35 = vadd.f32 %v6633_v6, %v6590_v10  ;;  %v10584_v61 = vadd.f32 %v6613_v24, %v6612_v28 }
 0x6de   :  { %11289 = vst [vmem:[#allocation65_spill] sm:$0xff] %v10582_v48  ;;  %v5669_v22 = vmul.f32 %v10582_v48, %v10582_v48 }
 0x6df   :  { %11290 = vst [vmem:[#allocation68_spill] sm:$0xff] %v10584_v61  ;;  %v6631_v29 = vrot.slane %v6630_v59, 1  ;;  %v6635_v3 = vrot.slane %v6634_v35, 2  ;;  %v6642_v15 = vmul.f32 %v10584_v61, %v10584_v61 }
 0x6e0   :  { %5684 = vadd.xlane.f32.xlu1 %v5669_v22 }
 0x6e1   :  { %v6636_v9 = vadd.f32 %v6635_v3, %v6634_v35  ;;  %6653 = vadd.xlane.f32.xlu0 %v6642_v15  ;;  %v10590_v60 = vadd.f32 %v6631_v29, %v6630_v59 }
 0x6e3   :  { %11291 = vst [vmem:[#allocation67_spill] sm:$0xff] %v10590_v60  ;;  %v6637_v7 = vrot.slane %v6636_v9, 1  ;;  %v6645_v50 = vmul.f32 %v10590_v60, %v10590_v60 }
 0x6e5   :  { %6659 = vadd.xlane.f32.xlu0 %v6645_v50  ;;  %v10594_v34 = vadd.f32 %v6637_v7, %v6636_v9 }
 0x6e7   :  { %11292 = vst [vmem:[#allocation71_spill] sm:$0xff] %v10594_v34  ;;  %v6646_v46 = vmul.f32 %v10594_v34, %v10594_v34 }
 0x6e9   :  { %6661 = vadd.xlane.f32.xlu0 %v6646_v46 }
 0x6fc   :  { %v3717_v42 = vpop.xlane.xlu0 %3716 }
 0x6fd   :  { %v3732_v53 = vadd.f32 1.0, %v3717_v42  ;;  %v3780_v28 = vadd.f32 1e-09, %v3717_v42 }
 0x6ff   :  { %7833 = vrcp.f32 %v3732_v53 }
 0x709   :  { %v7834_v11 = vpop.eup %7833 }
 0x70a   :  { %v3719_v47 = vpop.xlane.xlu1 %3718  ;;  %v3748_v10 = vmul.f32 %v7834_v11, %v3732_v53 }
 0x70b   :  { %v3733_v45 = vadd.f32 1.0, %v3719_v47  ;;  %v3781_v56 = vadd.f32 1e-09, %v3719_v47 }
 0x70c   :  { %v3756_v6 = vsub.f32 2.0, %v3748_v10 }
 0x70d   :  { %7835 = vrcp.f32 %v3733_v45 }
 0x70e   :  { %v10598_v18 = vpop.xlane.xlu1 %3724  ;;  %v3764_v15 = vmul.f32 %v7834_v11, %v3756_v6 }
 0x70f   :  { %v3736_v32 = vadd.f32 1.0, %v10598_v18  ;;  %v3784_v6 = vadd.f32 1e-09, %v10598_v18 }
 0x710   :  { %v3772_v11 = vmul.f32 %v3764_v15, %v3717_v42 }
 0x711   :  { %7837 = vrcp.f32 %v3736_v32 }
 0x712   :  { %v10600_v21 = vpop.xlane.xlu0 %3726 }
 0x713   :  { %v3737_v23 = vadd.f32 1.0, %v10600_v21  ;;  %v3785_v61 = vadd.f32 1e-09, %v10600_v21 }
 0x715   :  { %7839 = vrcp.f32 %v3737_v23 }
 0x717   :  { %v7836_v40 = vpop.eup %7835 }
 0x718   :  { %v3749_v4 = vmul.f32 %v7836_v40, %v3733_v45 }
 0x71a   :  { %v3757_v37 = vsub.f32 2.0, %v3749_v4 }
 0x71b   :  { %v7838_v9 = vpop.eup %7837 }
 0x71c   :  { %v3765_v3 = vmul.f32 %v7836_v40, %v3757_v37  ;;  %v3752_v10 = vmul.f32 %v7838_v9, %v3736_v32 }
 0x71e   :  { %v3773_v40 = vmul.f32 %v3765_v3, %v3719_v47  ;;  %v3760_v15 = vsub.f32 2.0, %v3752_v10 }
 0x71f   :  { %v7840_v46 = vpop.eup %7839 }
 0x720   :  { %v10602_v57 = vpop.xlane.xlu1 %4695  ;;  %v3753_v34 = vmul.f32 %v7840_v46, %v3737_v23 }
 0x721   :  { %v4710_v44 = vadd.f32 1.0, %v10602_v57  ;;  %v4758_v42 = vadd.f32 1e-09, %v10602_v57 }
 0x722   :  { %v3761_v23 = vsub.f32 2.0, %v3753_v34  ;;  %v3768_v34 = vmul.f32 %v7838_v9, %v3760_v15 }
 0x723   :  { %7841 = vrcp.f32 %v4710_v44 }
 0x724   :  { %7843 = vrsqrt.f32 %v3780_v28 }
 0x72d   :  { %v7842_v45 = vpop.eup %7841 }
 0x72e   :  { %v10607_v31 = vpop.xlane.xlu0 %4693  ;;  %v7844_v37 = vpop.eup %7843  ;;  %v4726_v33 = vmul.f32 %v7842_v45, %v4710_v44 }
 0x72f   :  { %v10609_v52 = vpop.xlane.xlu1 %4701  ;;  %v4709_v55 = vadd.f32 1.0, %v10607_v31  ;;  %v3796_v3 = vmul.f32 %v7844_v37, %v3772_v11  ;;  %v4757_v30 = vadd.f32 1e-09, %v10607_v31  ;;  %v3769_v37 = vmul.f32 %v7840_v46, %v3761_v23 }
 0x730   :  { %v4713_v59 = vadd.f32 1.0, %v10609_v52  ;;  %v4734_v48 = vsub.f32 2.0, %v4726_v33  ;;  %v4761_v19 = vadd.f32 1e-09, %v10609_v52 }
 0x731   :  { %7845 = vrcp.f32 %v4709_v55  ;;  %v3804_v10 = vmul.f32 %v3796_v3, %v10470_v49 }
 0x732   :  { %7847 = vrsqrt.f32 %v3781_v56 }
 0x733   :  { %v10612_v24 = vpop.xlane.xlu1 %5672  ;;  %7849 = vrcp.f32 %v4713_v59 }
 0x734   :  { %v10615_v35 = vpop.xlane.xlu0 %4703  ;;  %v5687_v22 = vadd.f32 1.0, %v10612_v24 }
 0x735   :  { %v10621_v7 = vadd.f32 1.0, %v10615_v35 }
 0x736   :  { %7851 = vrcp.f32 %v5687_v22 }
 0x737   :  { %v10618_v29 = vpop.xlane.xlu1 %5678  ;;  %7853 = vrcp.f32 %v10621_v7 }
 0x738   :  { %v10626_v53 = vadd.f32 1.0, %v10618_v29 }
 0x739   :  { %v10623_v50 = vpop.xlane.xlu0 %5670 }
 0x73a   :  { %v10629_v28 = vadd.f32 1.0, %v10623_v50  ;;  %7855 = vrcp.f32 %v10626_v53  ;;  %v5734_v3 = vadd.f32 1e-09, %v10623_v50 }
 0x73b   :  { %v10631_v4 = vpop.xlane.xlu1 %5680  ;;  %v7846_v60 = vpop.eup %7845 }
 0x73c   :  { %v10634_v56 = vadd.f32 1.0, %v10631_v4  ;;  %v7848_v47 = vpop.eup %7847  ;;  %7857 = vrcp.f32 %v10629_v28  ;;  %v4725_v20 = vmul.f32 %v7846_v60, %v4709_v55  ;;  %v5735_v55 = vadd.f32 1e-09, %v10612_v24 }
 0x73d   :  { %v10638_v26 = vpop.xlane.xlu0 %6647  ;;  %v3797_v32 = vmul.f32 %v7848_v47, %v3773_v40  ;;  %v7850_v36 = vpop.eup %7849 }
 0x73e   :  { %7859 = vrcp.f32 %v10634_v56  ;;  %v10650_v41 = vadd.f32 1.0, %v10638_v26  ;;  %v4729_v47 = vmul.f32 %v7850_v36, %v4713_v59 }
 0x73f   :  { %7861 = vrsqrt.f32 %v3784_v6  ;;  %v3805_v11 = vmul.f32 %v3797_v32, %v10474_v25  ;;  %v4733_v6 = vsub.f32 2.0, %v4725_v20  ;;  %v4762_v32 = vadd.f32 1e-09, %v10615_v35 }
 0x740   :  { %7863 = vrsqrt.f32 %v3785_v61  ;;  %v7852_v40 = vpop.eup %7851 }
 0x741   :  { %v10646_v44 = vpop.xlane.xlu0 %6649  ;;  %7865 = vrsqrt.f32 %v4758_v42  ;;  %v4742_v42 = vmul.f32 %v7842_v45, %v4734_v48  ;;  %v7854_v49 = vpop.eup %7853  ;;  %v5703_v9 = vmul.f32 %v7852_v40, %v5687_v22  ;;  %v3776_v48 = vmul.f32 %v3768_v34, %v10598_v18 }
 0x742   :  { %7867 = vrsqrt.f32 %v4757_v30  ;;  %v10660_v16 = vadd.f32 1.0, %v10646_v44  ;;  %v10670_v30 = vsel %vm124_vm0, %v3805_v11, %v3804_v10  ;;  %v4741_v46 = vmul.f32 %v7846_v60, %v4733_v6 }
 0x743   :  { %7869 = vrsqrt.f32 %v4761_v19  ;;  %11293 = vst [vmem:[#allocation70_spill] sm:$0xff] %v10670_v30  ;;  %v5738_v19 = vadd.f32 1e-09, %v10618_v29  ;;  %v4737_v45 = vsub.f32 2.0, %v4729_v47  ;;  %v4750_v23 = vmul.f32 %v4742_v42, %v10602_v57 }
 0x744   :  { %v10655_v33 = vpop.xlane.xlu1 %3728  ;;  %7871 = vrcp.f32 %v10650_v41  ;;  %v10667_v20 = vpop.eup %7855  ;;  %v3777_v11 = vmul.f32 %v3769_v37, %v10600_v21  ;;  %v5739_v10 = vadd.f32 1e-09, %v10631_v4  ;;  %v5711_v34 = vsub.f32 2.0, %v5703_v9 }
 0x745   :  { %v10657_v61 = vpop.xlane.xlu0 %6655  ;;  %v10663_v25 = vadd.f32 1.0, %v10655_v33  ;;  %7873 = vrsqrt.f32 %v5735_v55  ;;  %v4730_v60 = vmul.f32 %v7854_v49, %v10621_v7  ;;  %v6711_v55 = vadd.f32 1e-09, %v10638_v26 }
 0x746   :  { %v7858_v59 = vpop.eup %7857  ;;  %v5706_v47 = vmul.f32 %v10667_v20, %v10626_v53  ;;  %v10688_v21 = vadd.f32 1.0, %v10657_v61  ;;  %v4749_v42 = vmul.f32 %v4741_v46, %v10607_v31  ;;  %v4745_v13 = vmul.f32 %v7850_v36, %v4737_v45 }
 0x747   :  { %7875 = vrcp.f32 %v10663_v25  ;;  %v5702_v57 = vmul.f32 %v7858_v59, %v10629_v28  ;;  %v5719_v5 = vmul.f32 %v7852_v40, %v5711_v34  ;;  %v4738_v53 = vsub.f32 2.0, %v4730_v60 }
 0x748   :  { %v7860_v15 = vpop.eup %7859  ;;  %7877 = vrcp.f32 %v10660_v16  ;;  %v6712_v28 = vadd.f32 1e-09, %v10646_v44  ;;  %v5714_v30 = vsub.f32 2.0, %v5706_v47  ;;  %v3786_v40 = vadd.f32 1e-09, %v10655_v33 }
 0x749   :  { %v10676_v22 = vpop.xlane.xlu0 %6657  ;;  %v7862_v18 = vpop.eup %7861  ;;  %7879 = vrsqrt.f32 %v4762_v32  ;;  %v5707_v7 = vmul.f32 %v7860_v15, %v10634_v56  ;;  %v5710_v62 = vsub.f32 2.0, %v5702_v57 }
 0x74a   :  { %v7864_v6 = vpop.eup %7863  ;;  %7881 = vrsqrt.f32 %v5738_v19  ;;  %v3800_v9 = vmul.f32 %v7862_v18, %v3776_v48  ;;  %v4753_v48 = vmul.f32 %v4745_v13, %v10609_v52  ;;  %v5727_v18 = vmul.f32 %v5719_v5, %v10612_v24 }
 0x74b   :  { %v7866_v37 = vpop.eup %7865  ;;  %7883 = vrsqrt.f32 %v5734_v3  ;;  %v3801_v51 = vmul.f32 %v7864_v6, %v3777_v11  ;;  %v5715_v46 = vsub.f32 2.0, %v5707_v7  ;;  %v10711_v13 = vadd.f32 1.0, %v10676_v22 }
 0x74c   :  { %v4774_v32 = vmul.f32 %v7866_v37, %v4750_v23  ;;  %7885 = vrsqrt.f32 %v5739_v10  ;;  %v7868_v27 = vpop.eup %7867  ;;  %v10702_v3 = vmul.f32 %v3800_v9, %v10478_v2  ;;  %v5722_v2 = vmul.f32 %v10667_v20, %v5714_v30 }
 0x74d   :  { %7887 = vrsqrt.f32 %v6711_v55  ;;  %v7870_v38 = vpop.eup %7869  ;;  %v4773_v56 = vmul.f32 %v7868_v27, %v4749_v42  ;;  %v10706_v11 = vmul.f32 %v3801_v51, %v10482_v54  ;;  %v4746_v27 = vmul.f32 %v7854_v49, %v4738_v53 }
 0x74e   :  { %7889 = vrcp.f32 %v10688_v21  ;;  %v7872_v31 = vpop.eup %7871  ;;  %v4782_v23 = vmul.f32 %v4774_v32, %v10486_v8  ;;  %v5718_v60 = vmul.f32 %v7858_v59, %v5710_v62  ;;  %v4777_v24 = vmul.f32 %v7870_v38, %v4753_v48 }
 0x74f   :  { %v10693_v19 = vpop.xlane.xlu0 %3720  ;;  %v7874_v45 = vpop.eup %7873  ;;  %v6679_v8 = vmul.f32 %v7872_v31, %v10650_v41  ;;  %v4781_v5 = vmul.f32 %v4773_v56, %v10490_v63  ;;  %v5723_v49 = vmul.f32 %v7860_v15, %v5715_v46  ;;  %v4754_v30 = vmul.f32 %v4746_v27, %v10615_v35 }
 0x750   :  { %v10697_v36 = vadd.f32 1.0, %v10693_v19  ;;  %v3782_v57 = vadd.f32 1e-09, %v10693_v19  ;;  %v5751_v20 = vmul.f32 %v7874_v45, %v5727_v18  ;;  %v5726_v15 = vmul.f32 %v5718_v60, %v10623_v50 }
 0x751   :  { %v7876_v10 = vpop.eup %7875  ;;  %v6687_v37 = vsub.f32 2.0, %v6679_v8  ;;  %v10742_v9 = vsel %vm124_vm0, %v4782_v23, %v4781_v5  ;;  %v6715_v35 = vadd.f32 1e-09, %v10657_v61  ;;  %v6716_v46 = vadd.f32 1e-09, %v10676_v22 }
 0x752   :  { %7891 = vrcp.f32 %v10697_v36  ;;  %v7878_v34 = vpop.eup %7877  ;;  %v3754_v47 = vmul.f32 %v7876_v10, %v10663_v25  ;;  %v5730_v25 = vmul.f32 %v5722_v2, %v10618_v29  ;;  %v10748_v29 = vmul.f32 %v4777_v24, %v10494_v1 }
 0x753   :  { %7893 = vrsqrt.f32 %v6712_v28  ;;  %v10713_v52 = vpop.xlane.xlu0 %3722  ;;  %v7880_v55 = vpop.eup %7879  ;;  %v6680_v59 = vmul.f32 %v7878_v34, %v10660_v16  ;;  %v5731_v16 = vmul.f32 %v5723_v49, %v10631_v4  ;;  %v5759_v28 = vmul.f32 %v5751_v20, %v10498_v17 }
 0x754   :  { %v10718_v54 = vadd.f32 1.0, %v10713_v52  ;;  %v10720_v51 = vpop.xlane.xlu1 %4705  ;;  %7895 = vrsqrt.f32 %v3786_v40  ;;  %v7882_v6 = vpop.eup %7881  ;;  %v3762_v50 = vsub.f32 2.0, %v3754_v47  ;;  %v3783_v53 = vadd.f32 1e-09, %v10713_v52 }
 0x755   :  { %v10727_v62 = vadd.f32 1.0, %v10720_v51  ;;  %v7884_v41 = vpop.eup %7883  ;;  %v4778_v56 = vmul.f32 %v7880_v55, %v4754_v30  ;;  %v6688_v48 = vsub.f32 2.0, %v6680_v59  ;;  %v5754_v4 = vmul.f32 %v7882_v6, %v5730_v25 }
 0x756   :  { %7897 = vrcp.f32 %v10718_v54  ;;  %v7886_v38 = vpop.eup %7885  ;;  %v5750_v45 = vmul.f32 %v7884_v41, %v5726_v15  ;;  %v6695_v23 = vmul.f32 %v7872_v31, %v6687_v37  ;;  %v3770_v8 = vmul.f32 %v7876_v10, %v3762_v50 }
 0x757   :  { %7899 = vrcp.f32 %v10711_v13  ;;  %v10732_v63 = vpop.xlane.xlu0 %3730  ;;  %v10739_v7 = vpop.eup %7887  ;;  %v5755_v27 = vmul.f32 %v7886_v38, %v5731_v16  ;;  %v10767_v24 = vmul.f32 %v4778_v56, %v10500_v39  ;;  %v6696_v49 = vmul.f32 %v7878_v34, %v6688_v48 }
 0x758   :  { %v10737_v42 = vadd.f32 1.0, %v10732_v63  ;;  %7901 = vrcp.f32 %v10727_v62  ;;  %v7890_v32 = vpop.eup %7889  ;;  %v5758_v10 = vmul.f32 %v5750_v45, %v10508_v0  ;;  %v10774_v47 = vmul.f32 %v6695_v23, %v10638_v26 }
 0x759   :  { %7903 = vrsqrt.f32 %v3782_v57  ;;  %v6683_v2 = vmul.f32 %v7890_v32, %v10688_v21  ;;  %v10780_v39 = vmul.f32 %v5755_v27, %v10514_v14  ;;  %v3787_v0 = vadd.f32 1e-09, %v10732_v63 }
 0x75a   :  { %7905 = vrcp.f32 %v10737_v42  ;;  %v6704_v25 = vmul.f32 %v6696_v49, %v10646_v44  ;;  %v10795_v16 = vsel %vm124_vm0, %v5759_v28, %v5758_v10  ;;  %v11294_v10 = vld [vmem:[#allocation54_spill] sm:$0xff] }
 0x75b   :  { %7907 = vrsqrt.f32 %v6715_v35  ;;  %v6691_v34 = vsub.f32 2.0, %v6683_v2  ;;  %v4763_v35 = vadd.f32 1e-09, %v10720_v51 }
 0x75c   :  { %v7892_v40 = vpop.eup %7891  ;;  %7909 = vrsqrt.f32 %v3783_v53 }
 0x75d   :  { %v10754_v18 = vpop.xlane.xlu0 %4697  ;;  %v7894_v1 = vpop.eup %7893  ;;  %v3750_v60 = vmul.f32 %v7892_v40, %v10697_v36  ;;  %7911 = vrsqrt.f32 %v6716_v46  ;;  %v10770_v36 = vmul.f32 %v5754_v4, %v10506_v43  ;;  %v3778_v43 = vmul.f32 %v3770_v8, %v10655_v33 }
 0x75e   :  { %v10758_v17 = vpop.xlane.xlu1 %5674  ;;  %v10764_v31 = vadd.f32 1.0, %v10754_v18  ;;  %v7896_v5 = vpop.eup %7895  ;;  %v6699_v56 = vmul.f32 %v7890_v32, %v6691_v34  ;;  %v10811_v45 = vmul.f32 %v7894_v1, %v6704_v25 }
 0x75f   :  { %v10761_v55 = vadd.f32 1.0, %v10758_v17  ;;  %v3758_v21 = vsub.f32 2.0, %v3750_v60  ;;  %v5736_v37 = vadd.f32 1e-09, %v10758_v17 }
 0x760   :  { %v7898_v6 = vpop.eup %7897 }
 0x761   :  { %7913 = vrcp.f32 %v10761_v55  ;;  %v10777_v57 = vpop.xlane.xlu0 %4699  ;;  %v7900_v41 = vpop.eup %7899  ;;  %v3766_v20 = vmul.f32 %v7892_v40, %v3758_v21  ;;  %v3751_v30 = vmul.f32 %v7898_v6, %v10718_v54  ;;  %v3802_v40 = vmul.f32 %v7896_v5, %v3778_v43 }
 0x762   :  { %v10783_v59 = vpop.xlane.xlu1 %5676  ;;  %7915 = vrcp.f32 %v10764_v31  ;;  %v7902_v38 = vpop.eup %7901  ;;  %v6684_v33 = vmul.f32 %v7900_v41, %v10711_v13  ;;  %v10800_v50 = vadd.f32 1.0, %v10777_v57  ;;  %v4759_v13 = vadd.f32 1e-09, %v10754_v18 }
 0x763   :  { %v10789_v26 = vadd.f32 1.0, %v10783_v59  ;;  %v3774_v14 = vmul.f32 %v3766_v20, %v10693_v19  ;;  %v3759_v15 = vsub.f32 2.0, %v3751_v30  ;;  %v7904_v54 = vpop.eup %7903  ;;  %v4731_v28 = vmul.f32 %v7902_v38, %v10727_v62 }
 0x764   :  { %v7906_v46 = vpop.eup %7905  ;;  %v6692_v2 = vsub.f32 2.0, %v6684_v33  ;;  %v10826_v21 = vmul.f32 %v3802_v40, %v10528_v12 }
 0x765   :  { %v10802_v53 = vpop.xlane.xlu0 %4707  ;;  %v3798_v44 = vmul.f32 %v7904_v54, %v3774_v14  ;;  %v3767_v48 = vmul.f32 %v7898_v6, %v3759_v15  ;;  %7917 = vrcp.f32 %v10789_v26  ;;  %v10809_v4 = vpop.eup %7907  ;;  %v3755_v32 = vmul.f32 %v7906_v46, %v10737_v42  ;;  %v11295_v14 = vld [vmem:[#allocation70_spill] sm:$0xff] }
 0x766   :  { %v10805_v19 = vpop.xlane.xlu1 %5682  ;;  %7919 = vrsqrt.f32 %v3787_v0  ;;  %v7910_v27 = vpop.eup %7909  ;;  %v4739_v6 = vsub.f32 2.0, %v4731_v28  ;;  %v10834_v43 = vadd.f32 1.0, %v10802_v53  ;;  %v10836_v25 = vmul.f32 %v7900_v41, %v6692_v2 }
 0x767   :  { %v3775_v23 = vmul.f32 %v3767_v48, %v10713_v52  ;;  %7921 = vrsqrt.f32 %v5736_v37  ;;  %v3806_v60 = vmul.f32 %v3798_v44, %v10538_v58  ;;  %v10818_v62 = vadd.f32 1.0, %v10805_v19  ;;  %v10822_v5 = vpop.eup %7911 }
 0x768   :  { %7923 = vrcp.f32 %v10800_v50  ;;  %v3763_v49 = vsub.f32 2.0, %v3755_v32  ;;  %v5737_v52 = vadd.f32 1e-09, %v10783_v59  ;;  %v10829_v58 = vmul.f32 %v6699_v56, %v10657_v61 }
 0x769   :  { %v10820_v8 = vpop.xlane.xlu0 %6651  ;;  %v3799_v1 = vmul.f32 %v7910_v27, %v3775_v23  ;;  %7925 = vrsqrt.f32 %v4763_v35  ;;  %v3821_v12 = vsel %vm127_vm1, %v3806_v60, %v11295_v14  ;;  %v4760_v15 = vadd.f32 1e-09, %v10777_v57 }
 0x76a   :  { %7927 = vrsqrt.f32 %v4759_v13  ;;  %v3771_v20 = vmul.f32 %v7906_v46, %v3763_v49  ;;  %v4747_v35 = vmul.f32 %v7902_v38, %v4739_v6  ;;  %v5740_v56 = vadd.f32 1e-09, %v10805_v19 }
 0x76b   :  { %v7914_v42 = vpop.eup %7913  ;;  %v3807_v34 = vmul.f32 %v3799_v1, %v11294_v10  ;;  %7929 = vrcp.f32 %v10818_v62  ;;  %v4764_v40 = vadd.f32 1e-09, %v10802_v53 }
 0x76c   :  { %v5704_v30 = vmul.f32 %v7914_v42, %v10761_v55  ;;  %v7916_v0 = vpop.eup %7915  ;;  %v3779_v54 = vmul.f32 %v3771_v20, %v10732_v63  ;;  %7931 = vrsqrt.f32 %v5737_v52  ;;  %v10856_v63 = vadd.f32 1.0, %v10820_v8 }
 0x76d   :  { %v10842_v61 = vpop.xlane.xlu1 %5684  ;;  %v3822_v37 = vsel %vm130_vm2, %v3807_v34, %v3821_v12  ;;  %v4727_v41 = vmul.f32 %v7916_v0, %v10764_v31  ;;  %7933 = vrcp.f32 %v10834_v43 }
 0x76e   :  { %v5712_v55 = vsub.f32 2.0, %v5704_v30  ;;  %v10846_v33 = vpop.xlane.xlu0 %6653  ;;  %v10851_v44 = vadd.f32 1.0, %v10842_v61  ;;  %v3823_v38 = vsel %vm133_vm3, %v10702_v3, %v3822_v37  ;;  %7935 = vrsqrt.f32 %v4760_v15 }
 0x76f   :  { %v7918_v48 = vpop.eup %7917  ;;  %v4735_v13 = vsub.f32 2.0, %v4727_v41  ;;  %v10864_v2 = vadd.f32 1.0, %v10846_v33  ;;  %v5741_v3 = vadd.f32 1e-09, %v10842_v61  ;;  %v3824_v30 = vsel %vm136_vm4, %v10706_v11, %v3823_v38 }
 0x770   :  { %v5720_v46 = vmul.f32 %v7914_v42, %v5712_v55  ;;  %v7920_v28 = vpop.eup %7919  ;;  %v5705_v31 = vmul.f32 %v7918_v48, %v10789_v26  ;;  %7937 = vrcp.f32 %v10851_v44  ;;  %v6713_v15 = vadd.f32 1e-09, %v10820_v8 }
 0x771   :  { %v7922_v23 = vpop.eup %7921  ;;  %v3803_v32 = vmul.f32 %v7920_v28, %v3779_v54  ;;  %v4743_v49 = vmul.f32 %v7916_v0, %v4735_v13  ;;  %7939 = vrsqrt.f32 %v5740_v56  ;;  %v11296_v0 = vld [vmem:[#allocation55_spill] sm:$0xff]  ;;  %v3825_v41 = vsel %vm139_vm5, %v10826_v21, %v3824_v30  ;;  %v11297_v56 = vld [vmem:[#allocation57_spill] sm:$0xff] }
 0x772   :  { %v5728_v27 = vmul.f32 %v5720_v46, %v10758_v17  ;;  %v10866_v60 = vpop.xlane.xlu0 %6659  ;;  %v7924_v1 = vpop.eup %7923  ;;  %v5713_v52 = vsub.f32 2.0, %v5705_v31  ;;  %7941 = vrcp.f32 %v10856_v63  ;;  %v4755_v28 = vmul.f32 %v4747_v35, %v10720_v51 }
 0x773   :  { %v7926_v42 = vpop.eup %7925  ;;  %v4728_v6 = vmul.f32 %v7924_v1, %v10800_v50  ;;  %v10872_v17 = vadd.f32 1.0, %v10866_v60  ;;  %v4751_v34 = vmul.f32 %v4743_v49, %v10754_v18  ;;  %7943 = vrsqrt.f32 %v4764_v40 }
 0x774   :  { %v5752_v26 = vmul.f32 %v7922_v23, %v5728_v27  ;;  %v7928_v10 = vpop.eup %7927  ;;  %v5721_v20 = vmul.f32 %v7918_v48, %v5713_v52  ;;  %v3811_v14 = vmul.f32 %v3803_v32, %v11296_v0  ;;  %7945 = vrcp.f32 %v10864_v2  ;;  %v11298_v27 = vld [vmem:[#allocation60_spill] sm:$0xff] }
 0x775   :  { %v4736_v12 = vsub.f32 2.0, %v4728_v6  ;;  %v7930_v37 = vpop.eup %7929  ;;  %v4775_v54 = vmul.f32 %v7928_v10, %v4751_v34  ;;  %7947 = vrcp.f32 %v10872_v17  ;;  %v6717_v51 = vadd.f32 1e-09, %v10866_v60 }
 0x776   :  { %v10880_v50 = vpop.xlane.xlu0 %6661  ;;  %v5729_v55 = vmul.f32 %v5721_v20, %v10783_v59  ;;  %v7932_v11 = vpop.eup %7931  ;;  %v5760_v48 = vmul.f32 %v5752_v26, %v11297_v56  ;;  %v5708_v40 = vmul.f32 %v7930_v37, %v10818_v62  ;;  %7949 = vrsqrt.f32 %v5741_v3  ;;  %v11299_v62 = vld [vmem:[#allocation62_spill] sm:$0xff] }
 0x777   :  { %v10884_v18 = vadd.f32 1.0, %v10880_v50  ;;  %v4744_v46 = vmul.f32 %v7924_v1, %v4736_v12  ;;  %v6714_v59 = vadd.f32 1e-09, %v10846_v33  ;;  %v7934_v13 = vpop.eup %7933  ;;  %v3826_v21 = vsel %vm142_vm6, %v3811_v14, %v3825_v41  ;;  %v11300_v14 = vld [vmem:[#allocation61_spill] sm:$0xff] }
 0x778   :  { %v5753_v38 = vmul.f32 %v7932_v11, %v5729_v55  ;;  %v5716_v23 = vsub.f32 2.0, %v5708_v40  ;;  %v7936_v32 = vpop.eup %7935  ;;  %v4783_v1 = vmul.f32 %v4775_v54, %v11298_v27  ;;  %v4732_v52 = vmul.f32 %v7934_v13, %v10834_v43  ;;  %3828 = vst [vmem:[#allocation8] sm:$0xff] %v3826_v21 }
 0x779   :  { %v4752_v31 = vmul.f32 %v4744_v46, %v10777_v57  ;;  %7951 = vrcp.f32 %v10884_v18  ;;  %v5775_v3 = vsel %vm127_vm1, %v5760_v48, %v10795_v16  ;;  %v4779_v10 = vmul.f32 %v7926_v42, %v4755_v28  ;;  %v11301_v28 = vld [vmem:[#allocation59_spill] sm:$0xff] }
 0x77a   :  { %v5761_v49 = vmul.f32 %v5753_v38, %v11299_v62  ;;  %v7938_v35 = vpop.eup %7937  ;;  %v5724_v26 = vmul.f32 %v7930_v37, %v5716_v23  ;;  %7953 = vrsqrt.f32 %v6713_v15  ;;  %v4740_v20 = vsub.f32 2.0, %v4732_v52  ;;  %v11303_v62 = vld [vmem:[#allocation64_spill] sm:$0xff] }
 0x77b   :  { %v4776_v57 = vmul.f32 %v7936_v32, %v4752_v31  ;;  %v7940_v6 = vpop.eup %7939  ;;  %v5709_v30 = vmul.f32 %v7938_v35, %v10851_v44  ;;  %7955 = vrsqrt.f32 %v6714_v59  ;;  %v6718_v54 = vadd.f32 1e-09, %v10880_v50 }
 0x77c   :  { %v5776_v34 = vsel %vm130_vm2, %v5761_v49, %v5775_v3  ;;  %v7942_v0 = vpop.eup %7941  ;;  %v5732_v12 = vmul.f32 %v5724_v26, %v10805_v19  ;;  %v4798_v16 = vsel %vm127_vm1, %v4783_v1, %v10742_v9  ;;  %v4748_v15 = vmul.f32 %v7934_v13, %v4740_v20  ;;  %v11304_v26 = vld [vmem:[#allocation65_spill] sm:$0xff] }
 0x77d   :  { %v4784_v43 = vmul.f32 %v4776_v57, %v11300_v14  ;;  %v7944_v55 = vpop.eup %7943  ;;  %v5717_v37 = vsub.f32 2.0, %v5709_v30  ;;  %v6681_v42 = vmul.f32 %v7942_v0, %v10856_v63  ;;  %v5777_v44 = vsel %vm133_vm3, %v10770_v36, %v5776_v34  ;;  %v11305_v30 = vld [vmem:[#allocation56_spill] sm:$0xff] }
 0x77e   :  { %v7946_v41 = vpop.eup %7945  ;;  %v5756_v56 = vmul.f32 %v7940_v6, %v5732_v12  ;;  %7957 = vrsqrt.f32 %v6717_v51  ;;  %v4756_v48 = vmul.f32 %v4748_v15, %v10802_v53  ;;  %v4787_v38 = vmul.f32 %v4779_v10, %v11301_v28  ;;  %v11302_v53 = vld [vmem:[#allocation63_spill] sm:$0xff] }
 0x77f   :  { %v4799_v11 = vsel %vm130_vm2, %v4784_v43, %v4798_v16  ;;  %v5725_v46 = vmul.f32 %v7938_v35, %v5717_v37  ;;  %v6689_v40 = vsub.f32 2.0, %v6681_v42  ;;  %v7948_v9 = vpop.eup %7947  ;;  %v6682_v63 = vmul.f32 %v7946_v41, %v10864_v2  ;;  %v11312_v28 = vld [vmem:[#allocation71_spill] sm:$0xff] }
 0x780   :  { %v4800_v19 = vsel %vm133_vm3, %v10748_v29, %v4799_v11  ;;  %7959 = vrsqrt.f32 %v6718_v54  ;;  %v7950_v59 = vpop.eup %7949  ;;  %v4780_v13 = vmul.f32 %v7944_v55, %v4756_v48  ;;  %v6685_v29 = vmul.f32 %v7948_v9, %v10872_v17  ;;  %v11307_v54 = vld [vmem:[#allocation52_spill] sm:$0xff]  ;;  %v11311_v48 = vld [vmem:[#allocation58_spill] sm:$0xff] }
 0x781   :  { %v4801_v36 = vsel %vm136_vm4, %v10767_v24, %v4800_v19  ;;  %v5733_v31 = vmul.f32 %v5725_v46, %v10842_v61  ;;  %v6697_v23 = vmul.f32 %v7942_v0, %v6689_v40  ;;  %v5764_v32 = vmul.f32 %v5756_v56, %v11302_v53  ;;  %v11310_v56 = vld [vmem:[#allocation67_spill] sm:$0xff] }
 0x782   :  { %v6690_v27 = vsub.f32 2.0, %v6682_v63  ;;  %v4802_v1 = vsel %vm139_vm5, %v4787_v38, %v4801_v36  ;;  %v5778_v2 = vsel %vm136_vm4, %v10780_v39, %v5777_v44  ;;  %v4788_v49 = vmul.f32 %v4780_v13, %v11303_v62  ;;  %v11309_v44 = vld [vmem:[#allocation53_spill] sm:$0xff] }
 0x783   :  { %v7952_v21 = vpop.eup %7951  ;;  %v5757_v52 = vmul.f32 %v7950_v59, %v5733_v31  ;;  %v6705_v24 = vmul.f32 %v6697_v23, %v10820_v8  ;;  %v6693_v51 = vsub.f32 2.0, %v6685_v29  ;;  %v6727_v61 = vmul.f32 %v10739_v7, %v10774_v47  ;;  %v11306_v47 = vld [vmem:[#allocation66_spill] sm:$0xff] }
 0x784   :  { %v7954_v35 = vpop.eup %7953  ;;  %v6708_v17 = vmul.f32 %v10836_v25, %v10676_v22  ;;  %v6698_v3 = vmul.f32 %v7946_v41, %v6690_v27  ;;  %v6686_v57 = vmul.f32 %v7952_v21, %v10884_v18  ;;  %v4803_v34 = vsel %vm142_vm6, %v4788_v49, %v4802_v1  ;;  %v11308_v41 = vld [vmem:[#allocation68_spill] sm:$0xff] }
 0x785   :  { %v5765_v6 = vmul.f32 %v5757_v52, %v11304_v26  ;;  %v6729_v10 = vmul.f32 %v7954_v35, %v6705_v24  ;;  %v6701_v39 = vmul.f32 %v7948_v9, %v6693_v51  ;;  %v7956_v20 = vpop.eup %7955  ;;  %v6736_v8 = vmul.f32 %v10811_v45, %v11305_v30  ;;  %4805 = vst [vmem:[#allocation8 + $0x8] sm:$0xff] %v4803_v34 }
 0x786   :  { %v6706_v0 = vmul.f32 %v6698_v3, %v10846_v33  ;;  %v6694_v14 = vsub.f32 2.0, %v6686_v57  ;;  %v5779_v7 = vsel %vm139_vm5, %v5764_v32, %v5778_v2  ;;  %v6731_v22 = vmul.f32 %v10809_v4, %v10829_v58 }
 0x787   :  { %v6737_v25 = vmul.f32 %v6729_v10, %v11306_v47  ;;  %v6709_v18 = vmul.f32 %v6701_v39, %v10866_v60  ;;  %v5780_v43 = vsel %vm142_vm6, %v5765_v6, %v5779_v7  ;;  %v6735_v55 = vmul.f32 %v6727_v61, %v11307_v54 }
 0x788   :  { %v7958_v12 = vpop.eup %7957  ;;  %v6732_v45 = vmul.f32 %v10822_v5, %v6708_v17  ;;  %v6730_v16 = vmul.f32 %v7956_v20, %v6706_v0  ;;  %v6702_v33 = vmul.f32 %v7952_v21, %v6694_v14  ;;  %5782 = vst [vmem:[#allocation8 + $0x10] sm:$0xff] %v5780_v43  ;;  %v6739_v60 = vmul.f32 %v6731_v22, %v11309_v44 }
 0x789   :  { %v6733_v15 = vmul.f32 %v7958_v12, %v6709_v18  ;;  %v6751_v42 = vsel %vm124_vm0, %v6736_v8, %v6735_v55 }
 0x78a   :  { %v7960_v37 = vpop.eup %7959  ;;  %v6738_v4 = vmul.f32 %v6730_v16, %v11308_v41  ;;  %v6710_v58 = vmul.f32 %v6702_v33, %v10880_v50  ;;  %v6752_v11 = vsel %vm127_vm1, %v6737_v25, %v6751_v42  ;;  %v6740_v46 = vmul.f32 %v6732_v45, %v11311_v48 }
 0x78b   :  { %v6741_v19 = vmul.f32 %v6733_v15, %v11310_v56 }
 0x78c   :  { %v6753_v5 = vsel %vm130_vm2, %v6738_v4, %v6752_v11  ;;  %v6734_v40 = vmul.f32 %v7960_v37, %v6710_v58 }
 0x78d   :  { %v6754_v9 = vsel %vm133_vm3, %v6739_v60, %v6753_v5 }
 0x78e   :  { %v6742_v38 = vmul.f32 %v6734_v40, %v11312_v28  ;;  %v6755_v63 = vsel %vm136_vm4, %v6740_v46, %v6754_v9 }
 0x78f   :  { %v6756_v50 = vsel %vm139_vm5, %v6741_v19, %v6755_v63 }
 0x790   :  { %v6757_v36 = vsel %vm142_vm6, %v6742_v38, %v6756_v50 }
 0x791   :  { %6759 = vst [vmem:[#allocation8 + $0x18] sm:$0xff] %v6757_v36 }
 0x792   :  { %8116 = shalt.err (!%p8113_p6)
}
 0x793   :  { %s8117_s4 = scalar_lea.hbm %s10974_s3, 512 }
 0x794   :  { %p8118_p7 = scmp.ne.s32.totalorder %s10974_s3, %s8117_s4  ;;  %p8121_p8 = scmp.lt.u32.totalorder %s8117_s4, %s10974_s3 }
 0x796   :  { %p8123_p9 = pnand %p8121_p8, %p8118_p7 }
 0x798   :  { %8126 = shalt.err (!%p8123_p9)
}
 0x799   :  { %6769 = dma.vmem_to_hbm [thread:$0]  %s6767_s27, 512, %s10974_s3, [#allocation5]  }
 0x79a   :  { %8131 = dma.done.wait [#allocation5], 512  }
 0x79b   :  { %8132 = vsyncadd [#allocation5], 4294966784 }
 0x79c   :  { %6773 = vsyncpa [#allocation4], 1 }
 0x79d   :  { %6774 = vsyncpa [#allocation7], 1 }
 0x79e   :  { %6775 = vsyncpa [#allocation5], 1 }

</bundles_post_ra>
